<compile_context>
chip_gen: v5e
topology: v5e:2x2
jax: 0.10.0
libtpu: 0.0.40
codegen_flags: <defaults>
</compile_context>

<pallas_src>
import numpy as np
import jax
import jax.numpy as jnp
from jax.experimental import pallas as pl
from jax.experimental.pallas import tpu as pltpu

BN_EPS = 1e-5


def _round_up(x, m):
    return ((x + m - 1) // m) * m


# ---------------------------------------------------------------- fused forward kernel
def make_fused_kernel(num_layers, S, Bp, b_real, D, Vp):
    """D = padded embed/hidden width (multiple of 128). Gate width = 4*D."""

    def kernel(*refs):
        (feat_ref, emb_ref, fc1w_ref, fc1b_ref, gamma_ref, beta_ref) = refs[:6]
        layer_refs = refs[6:6 + 3 * num_layers]
        linw_ref, linb_ref = refs[6 + 3 * num_layers:8 + 3 * num_layers]
        o_ref = refs[8 + 3 * num_layers]
        x_scr, gx_scr = refs[9 + 3 * num_layers:]

        # ---- fc1 + BatchNorm1d (training mode: batch stats over the REAL rows only) ----
        y = (jnp.dot(feat_ref[...], fc1w_ref[...], preferred_element_type=jnp.float32)
             + fc1b_ref[...])                                             # (Bp, D)
        rows = jax.lax.broadcasted_iota(jnp.int32, (Bp, D), 0)
        mask = (rows < b_real).astype(jnp.float32)
        inv_b = 1.0 / float(b_real)
        mean = jnp.sum(y * mask, axis=0, keepdims=True) * inv_b
        diff = (y - mean) * mask
        var = jnp.sum(diff * diff, axis=0, keepdims=True) * inv_b         # biased var
        x_scr[0] = (gamma_ref[...] * (y - mean) * jax.lax.rsqrt(var + BN_EPS)
                    + beta_ref[...])                                      # timestep 0
        x_scr[pl.ds(1, S - 1)] = emb_ref[...]                             # timesteps 1..T

        # ---- multi-layer LSTM, time loop in-kernel, x@W_ih hoisted out of recurrence ----
        for l in range(num_layers):
            wih_ref, whh_ref, b_ref = layer_refs[3 * l:3 * l + 3]

            x_all = x_scr[...].reshape(S * Bp, D)
            gx = (jnp.dot(x_all, wih_ref[...], preferred_element_type=jnp.float32)
                  + b_ref[...])                                           # (S*Bp, 4D)
            gx_scr[...] = gx.reshape(S, Bp, 4 * D)

            def step(t, carry):
                h, c = carry                                             # vreg-resident
                gates = gx_scr[t] + jnp.dot(h, whh_ref[...],
                                            preferred_element_type=jnp.float32)
                i = jax.nn.sigmoid(gates[:, 0 * D:1 * D])
                f = jax.nn.sigmoid(gates[:, 1 * D:2 * D])
                g = jnp.tanh(gates[:, 2 * D:3 * D])
                o = jax.nn.sigmoid(gates[:, 3 * D:4 * D])
                c_new = f * c + i * g
                h_new = o * jnp.tanh(c_new)
                x_scr[t] = h_new          # layer output -> next layer's input
                return (h_new, c_new)

            zeros = jnp.zeros((Bp, D), jnp.float32)
            jax.lax.fori_loop(0, S, step, (zeros, zeros), unroll=True)

        # ---- final Linear on the dense (S*Bp, D) slab (lane-dense Vp output) ----
        h_all = x_scr[...].reshape(S * Bp, D)
        logits = (jnp.dot(h_all, linw_ref[...], preferred_element_type=jnp.float32)
                  + linb_ref[...])
        o_ref[...] = logits.reshape(S, Bp, Vp)

    return kernel


# ---------------------------------------------------------------- full forward
def decoder_forward(params, features, captions, lengths):
    """lengths: numpy array of ints, sorted descending (pack_padded_sequence contract)."""
    B, F = features.shape
    T = captions.shape[1]
    S = T + 1
    E = params["fc1_w"].shape[1]
    H = params["lstm"][0][1].shape[0]
    V = params["lin_w"].shape[1]
    num_layers = len(params["lstm"])

    Bp = _round_up(B, 8)
    D = _round_up(max(E, H), 128)      # shared padded embed/hidden width
    Vp = _round_up(V, 128)

    f32 = jnp.float32
    # ---- wrapper-side zero-padding (kernel math keeps padded lanes/rows at zero) ----
    feat_p = jnp.zeros((Bp, F), f32).at[:B].set(features)
    fc1w_p = jnp.zeros((F, D), f32).at[:, :E].set(params["fc1_w"])
    fc1b_p = jnp.zeros((1, D), f32).at[:, :E].set(params["fc1_b"])
    gamma_p = jnp.zeros((1, D), f32).at[:, :E].set(params["bn_gamma"])
    beta_p = jnp.zeros((1, D), f32).at[:, :E].set(params["bn_beta"])

    embed_p = jnp.zeros((V, D), f32).at[:, :E].set(params["embed"])
    emb = jnp.take(embed_p, captions, axis=0)                  # (B, T, D) glue gather
    emb_tm = jnp.transpose(emb, (1, 0, 2))                     # (T, B, D) time-major
    emb_tm = jnp.zeros((T, Bp, D), f32).at[:, :B].set(emb_tm)

    lstm_p = []
    for (w_ih, w_hh, b) in params["lstm"]:
        ein = w_ih.shape[0]
        wih_p = jnp.zeros((D, 4 * D), f32)
        whh_p = jnp.zeros((D, 4 * D), f32)
        b_p = jnp.zeros((1, 4 * D), f32)
        for k in range(4):  # gate order (i, f, g, o), each gate 128-lane aligned
            wih_p = wih_p.at[:ein, k * D:k * D + H].set(w_ih[:, k * H:(k + 1) * H])
            whh_p = whh_p.at[:H, k * D:k * D + H].set(w_hh[:, k * H:(k + 1) * H])
            b_p = b_p.at[:, k * D:k * D + H].set(b[:, k * H:(k + 1) * H])
        lstm_p.extend([wih_p, whh_p, b_p])

    linw_p = jnp.zeros((D, Vp), f32).at[:H, :V].set(params["lin_w"])
    linb_p = jnp.zeros((1, Vp), f32).at[:, :V].set(params["lin_b"])

    kernel = make_fused_kernel(num_layers, S, Bp, B, D, Vp)
    out = pl.pallas_call(
        kernel,
        out_shape=jax.ShapeDtypeStruct((S, Bp, Vp), f32),
        scratch_shapes=[
            pltpu.VMEM((S, Bp, D), f32),        # layer input/output sequence
            pltpu.VMEM((S, Bp, 4 * D), f32),    # hoisted input-projection gates
        ],
    )(feat_p, emb_tm, fc1w_p, fc1b_p, gamma_p, beta_p, *lstm_p, linw_p, linb_p)

    logits = out[:, :B, :V]                                    # (S, B, V)

    # pack_padded_sequence ordering: time-major, first batch_sizes[t] rows at step t
    # TODO(synk): lengths must be concrete at trace time (pack index built host-side).
    lengths = np.asarray(lengths)
    flat_idx = []
    for t in range(int(lengths.max())):
        bs = int((lengths > t).sum())
        flat_idx.extend(t * B + bi for bi in range(bs))
    flat_idx = jnp.asarray(np.array(flat_idx, dtype=np.int32))
    return logits.reshape(S * B, V)[flat_idx]                  # (sum(lengths), V)


# ---------------------------------------------------------------- pure-JAX reference
def reference_forward(params, features, captions, lengths):
    y = features @ params["fc1_w"] + params["fc1_b"]
    mean = y.mean(0, keepdims=True)
    var = ((y - mean) ** 2).mean(0, keepdims=True)
    feat = params["bn_gamma"] * (y - mean) / jnp.sqrt(var + BN_EPS) + params["bn_beta"]
    emb = params["embed"][captions]
    x = jnp.transpose(jnp.concatenate([feat[:, None, :], emb], 1), (1, 0, 2))
    for (w_ih, w_hh, b) in params["lstm"]:
        S, B, _ = x.shape
        H = w_hh.shape[0]
        hs, cs = jnp.zeros((B, H)), jnp.zeros((B, H))
        outs = []
        for t in range(S):
            gates = x[t] @ w_ih + hs @ w_hh + b
            i = jax.nn.sigmoid(gates[:, :H]); f = jax.nn.sigmoid(gates[:, H:2 * H])
            g = jnp.tanh(gates[:, 2 * H:3 * H]); o = jax.nn.sigmoid(gates[:, 3 * H:])
            cs = f * cs + i * g
            hs = o * jnp.tanh(cs)
            outs.append(hs)
        x = jnp.stack(outs, 0)
    S, B, H = x.shape
    lengths = np.asarray(lengths)
    idx = []
    for t in range(int(lengths.max())):
        bs = int((lengths > t).sum())
        idx.extend(t * B + bi for bi in range(bs))
    packed_h = x.reshape(S * B, H)[jnp.asarray(np.array(idx, np.int32))]
    return packed_h @ params["lin_w"] + params["lin_b"]


# ---------------------------------------------------------------- param init (deterministic)
def init_params(key, F, E, H, V, num_layers):
    ks = jax.random.split(key, 8 + 3 * num_layers)
    p = {
        "fc1_w":   0.1 * jax.random.normal(ks[0], (F, E), jnp.float32),
        "fc1_b":   0.1 * jax.random.normal(ks[1], (1, E), jnp.float32),
        "bn_gamma": 1.0 + 0.05 * jax.random.normal(ks[2], (1, E), jnp.float32),
        "bn_beta": 0.05 * jax.random.normal(ks[3], (1, E), jnp.float32),
        "embed":   0.1 * jax.random.normal(ks[4], (V, E), jnp.float32),
        "lin_w":   0.1 * jax.random.normal(ks[5], (H, V), jnp.float32),
        "lin_b":   0.1 * jax.random.normal(ks[6], (1, V), jnp.float32),
        "lstm": [],
    }
    for l in range(num_layers):
        ein = E if l == 0 else H
        kw = jax.random.split(ks[7 + l], 3)
        # PyTorch bias_ih + bias_hh folded into one (1, 4H) bias.
        p["lstm"].append((
            0.1 * jax.random.normal(kw[0], (ein, 4 * H), jnp.float32),
            0.1 * jax.random.normal(kw[1], (H, 4 * H), jnp.float32),
            0.1 * jax.random.normal(kw[2], (1, 4 * H), jnp.float32),
        ))
    return p


if __name__ == "__main__":
    # Small shapes consistent with the module.
    F, E, H, V = 48, 32, 32, 40           # cnn_features_size, embed, hidden, vocab
    NUM_LAYERS = 2
    B, T_CAP = 2, 8                       # batch, caption length -> seq len S = 9
    lengths = np.array([9, 7], dtype=np.int32)   # sorted descending (pack contract)

    key = jax.random.PRNGKey(0)
    kf, kc, kp = jax.random.split(key, 3)
    params = init_params(kp, F, E, H, V, NUM_LAYERS)

    features = jax.random.normal(kf, (B, F), jnp.float32)
    captions = jax.random.randint(kc, (B, T_CAP), 0, V, dtype=jnp.int32)

    out = decoder_forward(params, features, captions, lengths)
    out = jax.block_until_ready(out)

    ref = reference_forward(params, features, captions, lengths)
    assert out.shape == (int(lengths.sum()), V), out.shape
    np.testing.assert_allclose(np.asarray(out), np.asarray(ref), atol=2e-2, rtol=2e-2)

    print("KERNEL_OK")
</pallas_src>

<mosaic_0001>
module attributes {stable_mosaic.version = 11 : i64} {
  func.func @kernel(%arg0: memref<8x48xf32, #tpu.memory_space<vmem>>, %arg1: memref<8x8x128xf32, #tpu.memory_space<vmem>>, %arg2: memref<48x128xf32, #tpu.memory_space<vmem>>, %arg3: memref<1x128xf32, #tpu.memory_space<vmem>>, %arg4: memref<1x128xf32, #tpu.memory_space<vmem>>, %arg5: memref<1x128xf32, #tpu.memory_space<vmem>>, %arg6: memref<128x512xf32, #tpu.memory_space<vmem>>, %arg7: memref<128x512xf32, #tpu.memory_space<vmem>>, %arg8: memref<1x512xf32, #tpu.memory_space<vmem>>, %arg9: memref<128x512xf32, #tpu.memory_space<vmem>>, %arg10: memref<128x512xf32, #tpu.memory_space<vmem>>, %arg11: memref<1x512xf32, #tpu.memory_space<vmem>>, %arg12: memref<128x128xf32, #tpu.memory_space<vmem>>, %arg13: memref<1x128xf32, #tpu.memory_space<vmem>>, %arg14: memref<9x8x128xf32, #tpu.memory_space<vmem>>, %arg15: memref<9x8x128xf32, #tpu.memory_space<vmem>>, %arg16: memref<9x8x512xf32, #tpu.memory_space<vmem>>) attributes {dimension_semantics = [], scalar_prefetch = 0 : i64, scratch_operands = 2 : i64, tpu.core_type = #tpu.core_type<tc>} {
    %c0 = arith.constant 0 : index
    %c0_0 = arith.constant 0 : index
    %0 = vector.load %arg0[%c0, %c0_0] : memref<8x48xf32, #tpu.memory_space<vmem>>, vector<8x48xf32>
    %c0_1 = arith.constant 0 : index
    %c0_2 = arith.constant 0 : index
    %1 = vector.load %arg2[%c0_1, %c0_2] : memref<48x128xf32, #tpu.memory_space<vmem>>, vector<48x128xf32>
    %cst = arith.constant dense<0.000000e+00> : vector<8x128xf32>
    %2 = tpu.matmul %0, %1, %cst {dimension_numbers = #tpu.dot_dimension_numbers<[1], [0], [0], [1], [0, 0, 1, 1], [], []>} : vector<8x48xf32>, vector<48x128xf32>, vector<8x128xf32> -> vector<8x128xf32>
    %c0_3 = arith.constant 0 : index
    %c0_4 = arith.constant 0 : index
    %3 = vector.load %arg3[%c0_3, %c0_4] : memref<1x128xf32, #tpu.memory_space<vmem>>, vector<1x128xf32>
    %4 = vector.broadcast %3 : vector<1x128xf32> to vector<8x128xf32>
    %5 = arith.addf %2, %4 : vector<8x128xf32>
    %6 = tpu.iota {dimensions = array<i32: 0>} : vector<8x128xi32>
    %c2_i32 = arith.constant 2 : i32
    %7 = vector.broadcast %c2_i32 : i32 to vector<8x128xi32>
    %8 = arith.cmpi slt, %6, %7 : vector<8x128xi32>
    %9 = arith.extui %8 : vector<8x128xi1> to vector<8x128xi32>
    %10 = arith.sitofp %9 : vector<8x128xi32> to vector<8x128xf32>
    %11 = arith.mulf %5, %10 : vector<8x128xf32>
    %cst_5 = arith.constant dense<0.000000e+00> : vector<128xf32>
    %12 = vector.multi_reduction <add>, %11, %cst_5 [0] : vector<8x128xf32> to vector<128xf32>
    %13 = vector.shape_cast %12 : vector<128xf32> to vector<1x128xf32>
    %cst_6 = arith.constant 5.000000e-01 : f32
    %14 = vector.broadcast %cst_6 : f32 to vector<1x128xf32>
    %15 = arith.mulf %13, %14 : vector<1x128xf32>
    %16 = vector.broadcast %15 : vector<1x128xf32> to vector<8x128xf32>
    %17 = arith.subf %5, %16 : vector<8x128xf32>
    %18 = arith.mulf %17, %10 : vector<8x128xf32>
    %19 = arith.mulf %18, %18 : vector<8x128xf32>
    %cst_7 = arith.constant dense<0.000000e+00> : vector<128xf32>
    %20 = vector.multi_reduction <add>, %19, %cst_7 [0] : vector<8x128xf32> to vector<128xf32>
    %21 = vector.shape_cast %20 : vector<128xf32> to vector<1x128xf32>
    %cst_8 = arith.constant 5.000000e-01 : f32
    %22 = vector.broadcast %cst_8 : f32 to vector<1x128xf32>
    %23 = arith.mulf %21, %22 : vector<1x128xf32>
    %c0_9 = arith.constant 0 : index
    %c0_10 = arith.constant 0 : index
    %24 = vector.load %arg4[%c0_9, %c0_10] : memref<1x128xf32, #tpu.memory_space<vmem>>, vector<1x128xf32>
    %25 = vector.broadcast %15 : vector<1x128xf32> to vector<8x128xf32>
    %26 = arith.subf %5, %25 : vector<8x128xf32>
    %27 = vector.broadcast %24 : vector<1x128xf32> to vector<8x128xf32>
    %28 = arith.mulf %27, %26 : vector<8x128xf32>
    %cst_11 = arith.constant 9.99999974E-6 : f32
    %29 = vector.broadcast %cst_11 : f32 to vector<1x128xf32>
    %30 = arith.addf %23, %29 : vector<1x128xf32>
    %31 = math.rsqrt %30 : vector<1x128xf32>
    %32 = vector.broadcast %31 : vector<1x128xf32> to vector<8x128xf32>
    %33 = arith.mulf %28, %32 : vector<8x128xf32>
    %c0_12 = arith.constant 0 : index
    %c0_13 = arith.constant 0 : index
    %34 = vector.load %arg5[%c0_12, %c0_13] : memref<1x128xf32, #tpu.memory_space<vmem>>, vector<1x128xf32>
    %35 = vector.broadcast %34 : vector<1x128xf32> to vector<8x128xf32>
    %36 = arith.addf %33, %35 : vector<8x128xf32>
    %c0_14 = arith.constant 0 : index
    %c0_15 = arith.constant 0 : index
    %c0_16 = arith.constant 0 : index
    %37 = vector.load %arg15[%c0_14, %c0_15, %c0_16] : memref<9x8x128xf32, #tpu.memory_space<vmem>>, vector<1x8x128xf32>
    %38 = vector.shape_cast %37 : vector<1x8x128xf32> to vector<8x128xf32>
    %39 = vector.shape_cast %36 : vector<8x128xf32> to vector<1x8x128xf32>
    tpu.vector_store %arg15[%c0_14, %c0_15, %c0_16], %39 {strides = array<i32>} : memref<9x8x128xf32, #tpu.memory_space<vmem>>, vector<1x8x128xf32>,
    %c0_17 = arith.constant 0 : index
    %c0_18 = arith.constant 0 : index
    %c0_19 = arith.constant 0 : index
    %40 = vector.load %arg1[%c0_17, %c0_18, %c0_19] : memref<8x8x128xf32, #tpu.memory_space<vmem>>, vector<8x8x128xf32>
    %c1 = arith.constant 1 : index
    %c0_20 = arith.constant 0 : index
    %c0_21 = arith.constant 0 : index
    %41 = vector.load %arg15[%c1, %c0_20, %c0_21] : memref<9x8x128xf32, #tpu.memory_space<vmem>>, vector<8x8x128xf32>
    tpu.vector_store %arg15[%c1, %c0_20, %c0_21], %40 {strides = array<i32>} : memref<9x8x128xf32, #tpu.memory_space<vmem>>, vector<8x8x128xf32>,
    %c0_22 = arith.constant 0 : index
    %c0_23 = arith.constant 0 : index
    %c0_24 = arith.constant 0 : index
    %42 = vector.load %arg15[%c0_22, %c0_23, %c0_24] : memref<9x8x128xf32, #tpu.memory_space<vmem>>, vector<9x8x128xf32>
    %43 = vector.shape_cast %42 : vector<9x8x128xf32> to vector<72x128xf32>
    %c0_25 = arith.constant 0 : index
    %c0_26 = arith.constant 0 : index
    %44 = vector.load %arg6[%c0_25, %c0_26] : memref<128x512xf32, #tpu.memory_space<vmem>>, vector<128x512xf32>
    %cst_27 = arith.constant dense<0.000000e+00> : vector<72x512xf32>
    %45 = tpu.matmul %43, %44, %cst_27 {dimension_numbers = #tpu.dot_dimension_numbers<[1], [0], [0], [1], [0, 0, 1, 1], [], []>} : vector<72x128xf32>, vector<128x512xf32>, vector<72x512xf32> -> vector<72x512xf32>
    %c0_28 = arith.constant 0 : index
    %c0_29 = arith.constant 0 : index
    %46 = vector.load %arg8[%c0_28, %c0_29] : memref<1x512xf32, #tpu.memory_space<vmem>>, vector<1x512xf32>
    %47 = vector.broadcast %46 : vector<1x512xf32> to vector<72x512xf32>
    %48 = arith.addf %45, %47 : vector<72x512xf32>
    %49 = vector.shape_cast %48 : vector<72x512xf32> to vector<9x8x512xf32>
    %c0_30 = arith.constant 0 : index
    %c0_31 = arith.constant 0 : index
    %c0_32 = arith.constant 0 : index
    %50 = vector.load %arg16[%c0_30, %c0_31, %c0_32] : memref<9x8x512xf32, #tpu.memory_space<vmem>>, vector<9x8x512xf32>
    tpu.vector_store %arg16[%c0_30, %c0_31, %c0_32], %49 {strides = array<i32>} : memref<9x8x512xf32, #tpu.memory_space<vmem>>, vector<9x8x512xf32>,
    %cst_33 = arith.constant 0.000000e+00 : f32
    %51 = vector.broadcast %cst_33 : f32 to vector<8x128xf32>
    %c0_i32 = arith.constant 0 : i32
    %52 = arith.index_cast %c0_i32 : i32 to index
    %c0_34 = arith.constant 0 : index
    %c0_35 = arith.constant 0 : index
    %53 = vector.load %arg16[%52, %c0_34, %c0_35] : memref<9x8x512xf32, #tpu.memory_space<vmem>>, vector<1x8x512xf32>
    %54 = vector.shape_cast %53 : vector<1x8x512xf32> to vector<8x512xf32>
    %c0_36 = arith.constant 0 : index
    %c0_37 = arith.constant 0 : index
    %55 = vector.load %arg7[%c0_36, %c0_37] : memref<128x512xf32, #tpu.memory_space<vmem>>, vector<128x512xf32>
    %cst_38 = arith.constant dense<0.000000e+00> : vector<8x512xf32>
    %56 = tpu.matmul %51, %55, %cst_38 {dimension_numbers = #tpu.dot_dimension_numbers<[1], [0], [0], [1], [0, 0, 1, 1], [], []>} : vector<8x128xf32>, vector<128x512xf32>, vector<8x512xf32> -> vector<8x512xf32>
    %57 = arith.addf %54, %56 : vector<8x512xf32>
    %58 = vector.extract_strided_slice %57 {offsets = [0, 0], sizes = [8, 128], strides = [1, 1]} : vector<8x512xf32> to vector<8x128xf32>
    %59 = arith.negf %58 : vector<8x128xf32>
    %60 = math.exp %59 : vector<8x128xf32>
    %cst_39 = arith.constant 1.000000e+00 : f32
    %61 = vector.broadcast %cst_39 : f32 to vector<8x128xf32>
    %62 = arith.addf %61, %60 : vector<8x128xf32>
    %63 = arith.divf %61, %62 : vector<8x128xf32>
    %64 = vector.extract_strided_slice %57 {offsets = [0, 128], sizes = [8, 128], strides = [1, 1]} : vector<8x512xf32> to vector<8x128xf32>
    %65 = arith.negf %64 : vector<8x128xf32>
    %66 = math.exp %65 : vector<8x128xf32>
    %cst_40 = arith.constant 1.000000e+00 : f32
    %67 = vector.broadcast %cst_40 : f32 to vector<8x128xf32>
    %68 = arith.addf %67, %66 : vector<8x128xf32>
    %69 = arith.divf %67, %68 : vector<8x128xf32>
    %70 = vector.extract_strided_slice %57 {offsets = [0, 256], sizes = [8, 128], strides = [1, 1]} : vector<8x512xf32> to vector<8x128xf32>
    %71 = math.tanh %70 : vector<8x128xf32>
    %72 = vector.extract_strided_slice %57 {offsets = [0, 384], sizes = [8, 128], strides = [1, 1]} : vector<8x512xf32> to vector<8x128xf32>
    %73 = arith.negf %72 : vector<8x128xf32>
    %74 = math.exp %73 : vector<8x128xf32>
    %cst_41 = arith.constant 1.000000e+00 : f32
    %75 = vector.broadcast %cst_41 : f32 to vector<8x128xf32>
    %76 = arith.addf %75, %74 : vector<8x128xf32>
    %77 = arith.divf %75, %76 : vector<8x128xf32>
    %78 = arith.mulf %69, %51 : vector<8x128xf32>
    %79 = arith.mulf %63, %71 : vector<8x128xf32>
    %80 = arith.addf %78, %79 : vector<8x128xf32>
    %81 = math.tanh %80 : vector<8x128xf32>
    %82 = arith.mulf %77, %81 : vector<8x128xf32>
    %83 = arith.index_cast %c0_i32 : i32 to index
    %c0_42 = arith.constant 0 : index
    %c0_43 = arith.constant 0 : index
    %84 = vector.load %arg15[%83, %c0_42, %c0_43] : memref<9x8x128xf32, #tpu.memory_space<vmem>>, vector<1x8x128xf32>
    %85 = vector.shape_cast %84 : vector<1x8x128xf32> to vector<8x128xf32>
    %86 = vector.shape_cast %82 : vector<8x128xf32> to vector<1x8x128xf32>
    tpu.vector_store %arg15[%83, %c0_42, %c0_43], %86 {strides = array<i32>} : memref<9x8x128xf32, #tpu.memory_space<vmem>>, vector<1x8x128xf32>,
    %c1_i32 = arith.constant 1 : i32
    %87 = arith.index_cast %c1_i32 : i32 to index
    %c0_44 = arith.constant 0 : index
    %c0_45 = arith.constant 0 : index
    %88 = vector.load %arg16[%87, %c0_44, %c0_45] : memref<9x8x512xf32, #tpu.memory_space<vmem>>, vector<1x8x512xf32>
    %89 = vector.shape_cast %88 : vector<1x8x512xf32> to vector<8x512xf32>
    %c0_46 = arith.constant 0 : index
    %c0_47 = arith.constant 0 : index
    %90 = vector.load %arg7[%c0_46, %c0_47] : memref<128x512xf32, #tpu.memory_space<vmem>>, vector<128x512xf32>
    %cst_48 = arith.constant dense<0.000000e+00> : vector<8x512xf32>
    %91 = tpu.matmul %82, %90, %cst_48 {dimension_numbers = #tpu.dot_dimension_numbers<[1], [0], [0], [1], [0, 0, 1, 1], [], []>} : vector<8x128xf32>, vector<128x512xf32>, vector<8x512xf32> -> vector<8x512xf32>
    %92 = arith.addf %89, %91 : vector<8x512xf32>
    %93 = vector.extract_strided_slice %92 {offsets = [0, 0], sizes = [8, 128], strides = [1, 1]} : vector<8x512xf32> to vector<8x128xf32>
    %94 = arith.negf %93 : vector<8x128xf32>
    %95 = math.exp %94 : vector<8x128xf32>
    %cst_49 = arith.constant 1.000000e+00 : f32
    %96 = vector.broadcast %cst_49 : f32 to vector<8x128xf32>
    %97 = arith.addf %96, %95 : vector<8x128xf32>
    %98 = arith.divf %96, %97 : vector<8x128xf32>
    %99 = vector.extract_strided_slice %92 {offsets = [0, 128], sizes = [8, 128], strides = [1, 1]} : vector<8x512xf32> to vector<8x128xf32>
    %100 = arith.negf %99 : vector<8x128xf32>
    %101 = math.exp %100 : vector<8x128xf32>
    %cst_50 = arith.constant 1.000000e+00 : f32
    %102 = vector.broadcast %cst_50 : f32 to vector<8x128xf32>
    %103 = arith.addf %102, %101 : vector<8x128xf32>
    %104 = arith.divf %102, %103 : vector<8x128xf32>
    %105 = vector.extract_strided_slice %92 {offsets = [0, 256], sizes = [8, 128], strides = [1, 1]} : vector<8x512xf32> to vector<8x128xf32>
    %106 = math.tanh %105 : vector<8x128xf32>
    %107 = vector.extract_strided_slice %92 {offsets = [0, 384], sizes = [8, 128], strides = [1, 1]} : vector<8x512xf32> to vector<8x128xf32>
    %108 = arith.negf %107 : vector<8x128xf32>
    %109 = math.exp %108 : vector<8x128xf32>
    %cst_51 = arith.constant 1.000000e+00 : f32
    %110 = vector.broadcast %cst_51 : f32 to vector<8x128xf32>
    %111 = arith.addf %110, %109 : vector<8x128xf32>
    %112 = arith.divf %110, %111 : vector<8x128xf32>
    %113 = arith.mulf %104, %80 : vector<8x128xf32>
    %114 = arith.mulf %98, %106 : vector<8x128xf32>
    %115 = arith.addf %113, %114 : vector<8x128xf32>
    %116 = math.tanh %115 : vector<8x128xf32>
    %117 = arith.mulf %112, %116 : vector<8x128xf32>
    %118 = arith.index_cast %c1_i32 : i32 to index
    %c0_52 = arith.constant 0 : index
    %c0_53 = arith.constant 0 : index
    %119 = vector.load %arg15[%118, %c0_52, %c0_53] : memref<9x8x128xf32, #tpu.memory_space<vmem>>, vector<1x8x128xf32>
    %120 = vector.shape_cast %119 : vector<1x8x128xf32> to vector<8x128xf32>
    %121 = vector.shape_cast %117 : vector<8x128xf32> to vector<1x8x128xf32>
    tpu.vector_store %arg15[%118, %c0_52, %c0_53], %121 {strides = array<i32>} : memref<9x8x128xf32, #tpu.memory_space<vmem>>, vector<1x8x128xf32>,
    %c2_i32_54 = arith.constant 2 : i32
    %122 = arith.index_cast %c2_i32_54 : i32 to index
    %c0_55 = arith.constant 0 : index
    %c0_56 = arith.constant 0 : index
    %123 = vector.load %arg16[%122, %c0_55, %c0_56] : memref<9x8x512xf32, #tpu.memory_space<vmem>>, vector<1x8x512xf32>
    %124 = vector.shape_cast %123 : vector<1x8x512xf32> to vector<8x512xf32>
    %c0_57 = arith.constant 0 : index
    %c0_58 = arith.constant 0 : index
    %125 = vector.load %arg7[%c0_57, %c0_58] : memref<128x512xf32, #tpu.memory_space<vmem>>, vector<128x512xf32>
    %cst_59 = arith.constant dense<0.000000e+00> : vector<8x512xf32>
    %126 = tpu.matmul %117, %125, %cst_59 {dimension_numbers = #tpu.dot_dimension_numbers<[1], [0], [0], [1], [0, 0, 1, 1], [], []>} : vector<8x128xf32>, vector<128x512xf32>, vector<8x512xf32> -> vector<8x512xf32>
    %127 = arith.addf %124, %126 : vector<8x512xf32>
    %128 = vector.extract_strided_slice %127 {offsets = [0, 0], sizes = [8, 128], strides = [1, 1]} : vector<8x512xf32> to vector<8x128xf32>
    %129 = arith.negf %128 : vector<8x128xf32>
    %130 = math.exp %129 : vector<8x128xf32>
    %cst_60 = arith.constant 1.000000e+00 : f32
    %131 = vector.broadcast %cst_60 : f32 to vector<8x128xf32>
    %132 = arith.addf %131, %130 : vector<8x128xf32>
    %133 = arith.divf %131, %132 : vector<8x128xf32>
    %134 = vector.extract_strided_slice %127 {offsets = [0, 128], sizes = [8, 128], strides = [1, 1]} : vector<8x512xf32> to vector<8x128xf32>
    %135 = arith.negf %134 : vector<8x128xf32>
    %136 = math.exp %135 : vector<8x128xf32>
    %cst_61 = arith.constant 1.000000e+00 : f32
    %137 = vector.broadcast %cst_61 : f32 to vector<8x128xf32>
    %138 = arith.addf %137, %136 : vector<8x128xf32>
    %139 = arith.divf %137, %138 : vector<8x128xf32>
    %140 = vector.extract_strided_slice %127 {offsets = [0, 256], sizes = [8, 128], strides = [1, 1]} : vector<8x512xf32> to vector<8x128xf32>
    %141 = math.tanh %140 : vector<8x128xf32>
    %142 = vector.extract_strided_slice %127 {offsets = [0, 384], sizes = [8, 128], strides = [1, 1]} : vector<8x512xf32> to vector<8x128xf32>
    %143 = arith.negf %142 : vector<8x128xf32>
    %144 = math.exp %143 : vector<8x128xf32>
    %cst_62 = arith.constant 1.000000e+00 : f32
    %145 = vector.broadcast %cst_62 : f32 to vector<8x128xf32>
    %146 = arith.addf %145, %144 : vector<8x128xf32>
    %147 = arith.divf %145, %146 : vector<8x128xf32>
    %148 = arith.mulf %139, %115 : vector<8x128xf32>
    %149 = arith.mulf %133, %141 : vector<8x128xf32>
    %150 = arith.addf %148, %149 : vector<8x128xf32>
    %151 = math.tanh %150 : vector<8x128xf32>
    %152 = arith.mulf %147, %151 : vector<8x128xf32>
    %153 = arith.index_cast %c2_i32_54 : i32 to index
    %c0_63 = arith.constant 0 : index
    %c0_64 = arith.constant 0 : index
    %154 = vector.load %arg15[%153, %c0_63, %c0_64] : memref<9x8x128xf32, #tpu.memory_space<vmem>>, vector<1x8x128xf32>
    %155 = vector.shape_cast %154 : vector<1x8x128xf32> to vector<8x128xf32>
    %156 = vector.shape_cast %152 : vector<8x128xf32> to vector<1x8x128xf32>
    tpu.vector_store %arg15[%153, %c0_63, %c0_64], %156 {strides = array<i32>} : memref<9x8x128xf32, #tpu.memory_space<vmem>>, vector<1x8x128xf32>,
    %c3_i32 = arith.constant 3 : i32
    %157 = arith.index_cast %c3_i32 : i32 to index
    %c0_65 = arith.constant 0 : index
    %c0_66 = arith.constant 0 : index
    %158 = vector.load %arg16[%157, %c0_65, %c0_66] : memref<9x8x512xf32, #tpu.memory_space<vmem>>, vector<1x8x512xf32>
    %159 = vector.shape_cast %158 : vector<1x8x512xf32> to vector<8x512xf32>
    %c0_67 = arith.constant 0 : index
    %c0_68 = arith.constant 0 : index
    %160 = vector.load %arg7[%c0_67, %c0_68] : memref<128x512xf32, #tpu.memory_space<vmem>>, vector<128x512xf32>
    %cst_69 = arith.constant dense<0.000000e+00> : vector<8x512xf32>
    %161 = tpu.matmul %152, %160, %cst_69 {dimension_numbers = #tpu.dot_dimension_numbers<[1], [0], [0], [1], [0, 0, 1, 1], [], []>} : vector<8x128xf32>, vector<128x512xf32>, vector<8x512xf32> -> vector<8x512xf32>
    %162 = arith.addf %159, %161 : vector<8x512xf32>
    %163 = vector.extract_strided_slice %162 {offsets = [0, 0], sizes = [8, 128], strides = [1, 1]} : vector<8x512xf32> to vector<8x128xf32>
    %164 = arith.negf %163 : vector<8x128xf32>
    %165 = math.exp %164 : vector<8x128xf32>
    %cst_70 = arith.constant 1.000000e+00 : f32
    %166 = vector.broadcast %cst_70 : f32 to vector<8x128xf32>
    %167 = arith.addf %166, %165 : vector<8x128xf32>
    %168 = arith.divf %166, %167 : vector<8x128xf32>
    %169 = vector.extract_strided_slice %162 {offsets = [0, 128], sizes = [8, 128], strides = [1, 1]} : vector<8x512xf32> to vector<8x128xf32>
    %170 = arith.negf %169 : vector<8x128xf32>
    %171 = math.exp %170 : vector<8x128xf32>
    %cst_71 = arith.constant 1.000000e+00 : f32
    %172 = vector.broadcast %cst_71 : f32 to vector<8x128xf32>
    %173 = arith.addf %172, %171 : vector<8x128xf32>
    %174 = arith.divf %172, %173 : vector<8x128xf32>
    %175 = vector.extract_strided_slice %162 {offsets = [0, 256], sizes = [8, 128], strides = [1, 1]} : vector<8x512xf32> to vector<8x128xf32>
    %176 = math.tanh %175 : vector<8x128xf32>
    %177 = vector.extract_strided_slice %162 {offsets = [0, 384], sizes = [8, 128], strides = [1, 1]} : vector<8x512xf32> to vector<8x128xf32>
    %178 = arith.negf %177 : vector<8x128xf32>
    %179 = math.exp %178 : vector<8x128xf32>
    %cst_72 = arith.constant 1.000000e+00 : f32
    %180 = vector.broadcast %cst_72 : f32 to vector<8x128xf32>
    %181 = arith.addf %180, %179 : vector<8x128xf32>
    %182 = arith.divf %180, %181 : vector<8x128xf32>
    %183 = arith.mulf %174, %150 : vector<8x128xf32>
    %184 = arith.mulf %168, %176 : vector<8x128xf32>
    %185 = arith.addf %183, %184 : vector<8x128xf32>
    %186 = math.tanh %185 : vector<8x128xf32>
    %187 = arith.mulf %182, %186 : vector<8x128xf32>
    %188 = arith.index_cast %c3_i32 : i32 to index
    %c0_73 = arith.constant 0 : index
    %c0_74 = arith.constant 0 : index
    %189 = vector.load %arg15[%188, %c0_73, %c0_74] : memref<9x8x128xf32, #tpu.memory_space<vmem>>, vector<1x8x128xf32>
    %190 = vector.shape_cast %189 : vector<1x8x128xf32> to vector<8x128xf32>
    %191 = vector.shape_cast %187 : vector<8x128xf32> to vector<1x8x128xf32>
    tpu.vector_store %arg15[%188, %c0_73, %c0_74], %191 {strides = array<i32>} : memref<9x8x128xf32, #tpu.memory_space<vmem>>, vector<1x8x128xf32>,
    %c4_i32 = arith.constant 4 : i32
    %192 = arith.index_cast %c4_i32 : i32 to index
    %c0_75 = arith.constant 0 : index
    %c0_76 = arith.constant 0 : index
    %193 = vector.load %arg16[%192, %c0_75, %c0_76] : memref<9x8x512xf32, #tpu.memory_space<vmem>>, vector<1x8x512xf32>
    %194 = vector.shape_cast %193 : vector<1x8x512xf32> to vector<8x512xf32>
    %c0_77 = arith.constant 0 : index
    %c0_78 = arith.constant 0 : index
    %195 = vector.load %arg7[%c0_77, %c0_78] : memref<128x512xf32, #tpu.memory_space<vmem>>, vector<128x512xf32>
    %cst_79 = arith.constant dense<0.000000e+00> : vector<8x512xf32>
    %196 = tpu.matmul %187, %195, %cst_79 {dimension_numbers = #tpu.dot_dimension_numbers<[1], [0], [0], [1], [0, 0, 1, 1], [], []>} : vector<8x128xf32>, vector<128x512xf32>, vector<8x512xf32> -> vector<8x512xf32>
    %197 = arith.addf %194, %196 : vector<8x512xf32>
    %198 = vector.extract_strided_slice %197 {offsets = [0, 0], sizes = [8, 128], strides = [1, 1]} : vector<8x512xf32> to vector<8x128xf32>
    %199 = arith.negf %198 : vector<8x128xf32>
    %200 = math.exp %199 : vector<8x128xf32>
    %cst_80 = arith.constant 1.000000e+00 : f32
    %201 = vector.broadcast %cst_80 : f32 to vector<8x128xf32>
    %202 = arith.addf %201, %200 : vector<8x128xf32>
    %203 = arith.divf %201, %202 : vector<8x128xf32>
    %204 = vector.extract_strided_slice %197 {offsets = [0, 128], sizes = [8, 128], strides = [1, 1]} : vector<8x512xf32> to vector<8x128xf32>
    %205 = arith.negf %204 : vector<8x128xf32>
    %206 = math.exp %205 : vector<8x128xf32>
    %cst_81 = arith.constant 1.000000e+00 : f32
    %207 = vector.broadcast %cst_81 : f32 to vector<8x128xf32>
    %208 = arith.addf %207, %206 : vector<8x128xf32>
    %209 = arith.divf %207, %208 : vector<8x128xf32>
    %210 = vector.extract_strided_slice %197 {offsets = [0, 256], sizes = [8, 128], strides = [1, 1]} : vector<8x512xf32> to vector<8x128xf32>
    %211 = math.tanh %210 : vector<8x128xf32>
    %212 = vector.extract_strided_slice %197 {offsets = [0, 384], sizes = [8, 128], strides = [1, 1]} : vector<8x512xf32> to vector<8x128xf32>
    %213 = arith.negf %212 : vector<8x128xf32>
    %214 = math.exp %213 : vector<8x128xf32>
    %cst_82 = arith.constant 1.000000e+00 : f32
    %215 = vector.broadcast %cst_82 : f32 to vector<8x128xf32>
    %216 = arith.addf %215, %214 : vector<8x128xf32>
    %217 = arith.divf %215, %216 : vector<8x128xf32>
    %218 = arith.mulf %209, %185 : vector<8x128xf32>
    %219 = arith.mulf %203, %211 : vector<8x128xf32>
    %220 = arith.addf %218, %219 : vector<8x128xf32>
    %221 = math.tanh %220 : vector<8x128xf32>
    %222 = arith.mulf %217, %221 : vector<8x128xf32>
    %223 = arith.index_cast %c4_i32 : i32 to index
    %c0_83 = arith.constant 0 : index
    %c0_84 = arith.constant 0 : index
    %224 = vector.load %arg15[%223, %c0_83, %c0_84] : memref<9x8x128xf32, #tpu.memory_space<vmem>>, vector<1x8x128xf32>
    %225 = vector.shape_cast %224 : vector<1x8x128xf32> to vector<8x128xf32>
    %226 = vector.shape_cast %222 : vector<8x128xf32> to vector<1x8x128xf32>
    tpu.vector_store %arg15[%223, %c0_83, %c0_84], %226 {strides = array<i32>} : memref<9x8x128xf32, #tpu.memory_space<vmem>>, vector<1x8x128xf32>,
    %c5_i32 = arith.constant 5 : i32
    %227 = arith.index_cast %c5_i32 : i32 to index
    %c0_85 = arith.constant 0 : index
    %c0_86 = arith.constant 0 : index
    %228 = vector.load %arg16[%227, %c0_85, %c0_86] : memref<9x8x512xf32, #tpu.memory_space<vmem>>, vector<1x8x512xf32>
    %229 = vector.shape_cast %228 : vector<1x8x512xf32> to vector<8x512xf32>
    %c0_87 = arith.constant 0 : index
    %c0_88 = arith.constant 0 : index
    %230 = vector.load %arg7[%c0_87, %c0_88] : memref<128x512xf32, #tpu.memory_space<vmem>>, vector<128x512xf32>
    %cst_89 = arith.constant dense<0.000000e+00> : vector<8x512xf32>
    %231 = tpu.matmul %222, %230, %cst_89 {dimension_numbers = #tpu.dot_dimension_numbers<[1], [0], [0], [1], [0, 0, 1, 1], [], []>} : vector<8x128xf32>, vector<128x512xf32>, vector<8x512xf32> -> vector<8x512xf32>
    %232 = arith.addf %229, %231 : vector<8x512xf32>
    %233 = vector.extract_strided_slice %232 {offsets = [0, 0], sizes = [8, 128], strides = [1, 1]} : vector<8x512xf32> to vector<8x128xf32>
    %234 = arith.negf %233 : vector<8x128xf32>
    %235 = math.exp %234 : vector<8x128xf32>
    %cst_90 = arith.constant 1.000000e+00 : f32
    %236 = vector.broadcast %cst_90 : f32 to vector<8x128xf32>
    %237 = arith.addf %236, %235 : vector<8x128xf32>
    %238 = arith.divf %236, %237 : vector<8x128xf32>
    %239 = vector.extract_strided_slice %232 {offsets = [0, 128], sizes = [8, 128], strides = [1, 1]} : vector<8x512xf32> to vector<8x128xf32>
    %240 = arith.negf %239 : vector<8x128xf32>
    %241 = math.exp %240 : vector<8x128xf32>
    %cst_91 = arith.constant 1.000000e+00 : f32
    %242 = vector.broadcast %cst_91 : f32 to vector<8x128xf32>
    %243 = arith.addf %242, %241 : vector<8x128xf32>
    %244 = arith.divf %242, %243 : vector<8x128xf32>
    %245 = vector.extract_strided_slice %232 {offsets = [0, 256], sizes = [8, 128], strides = [1, 1]} : vector<8x512xf32> to vector<8x128xf32>
    %246 = math.tanh %245 : vector<8x128xf32>
    %247 = vector.extract_strided_slice %232 {offsets = [0, 384], sizes = [8, 128], strides = [1, 1]} : vector<8x512xf32> to vector<8x128xf32>
    %248 = arith.negf %247 : vector<8x128xf32>
    %249 = math.exp %248 : vector<8x128xf32>
    %cst_92 = arith.constant 1.000000e+00 : f32
    %250 = vector.broadcast %cst_92 : f32 to vector<8x128xf32>
    %251 = arith.addf %250, %249 : vector<8x128xf32>
    %252 = arith.divf %250, %251 : vector<8x128xf32>
    %253 = arith.mulf %244, %220 : vector<8x128xf32>
    %254 = arith.mulf %238, %246 : vector<8x128xf32>
    %255 = arith.addf %253, %254 : vector<8x128xf32>
    %256 = math.tanh %255 : vector<8x128xf32>
    %257 = arith.mulf %252, %256 : vector<8x128xf32>
    %258 = arith.index_cast %c5_i32 : i32 to index
    %c0_93 = arith.constant 0 : index
    %c0_94 = arith.constant 0 : index
    %259 = vector.load %arg15[%258, %c0_93, %c0_94] : memref<9x8x128xf32, #tpu.memory_space<vmem>>, vector<1x8x128xf32>
    %260 = vector.shape_cast %259 : vector<1x8x128xf32> to vector<8x128xf32>
    %261 = vector.shape_cast %257 : vector<8x128xf32> to vector<1x8x128xf32>
    tpu.vector_store %arg15[%258, %c0_93, %c0_94], %261 {strides = array<i32>} : memref<9x8x128xf32, #tpu.memory_space<vmem>>, vector<1x8x128xf32>,
    %c6_i32 = arith.constant 6 : i32
    %262 = arith.index_cast %c6_i32 : i32 to index
    %c0_95 = arith.constant 0 : index
    %c0_96 = arith.constant 0 : index
    %263 = vector.load %arg16[%262, %c0_95, %c0_96] : memref<9x8x512xf32, #tpu.memory_space<vmem>>, vector<1x8x512xf32>
    %264 = vector.shape_cast %263 : vector<1x8x512xf32> to vector<8x512xf32>
    %c0_97 = arith.constant 0 : index
    %c0_98 = arith.constant 0 : index
    %265 = vector.load %arg7[%c0_97, %c0_98] : memref<128x512xf32, #tpu.memory_space<vmem>>, vector<128x512xf32>
    %cst_99 = arith.constant dense<0.000000e+00> : vector<8x512xf32>
    %266 = tpu.matmul %257, %265, %cst_99 {dimension_numbers = #tpu.dot_dimension_numbers<[1], [0], [0], [1], [0, 0, 1, 1], [], []>} : vector<8x128xf32>, vector<128x512xf32>, vector<8x512xf32> -> vector<8x512xf32>
    %267 = arith.addf %264, %266 : vector<8x512xf32>
    %268 = vector.extract_strided_slice %267 {offsets = [0, 0], sizes = [8, 128], strides = [1, 1]} : vector<8x512xf32> to vector<8x128xf32>
    %269 = arith.negf %268 : vector<8x128xf32>
    %270 = math.exp %269 : vector<8x128xf32>
    %cst_100 = arith.constant 1.000000e+00 : f32
    %271 = vector.broadcast %cst_100 : f32 to vector<8x128xf32>
    %272 = arith.addf %271, %270 : vector<8x128xf32>
    %273 = arith.divf %271, %272 : vector<8x128xf32>
    %274 = vector.extract_strided_slice %267 {offsets = [0, 128], sizes = [8, 128], strides = [1, 1]} : vector<8x512xf32> to vector<8x128xf32>
    %275 = arith.negf %274 : vector<8x128xf32>
    %276 = math.exp %275 : vector<8x128xf32>
    %cst_101 = arith.constant 1.000000e+00 : f32
    %277 = vector.broadcast %cst_101 : f32 to vector<8x128xf32>
    %278 = arith.addf %277, %276 : vector<8x128xf32>
    %279 = arith.divf %277, %278 : vector<8x128xf32>
    %280 = vector.extract_strided_slice %267 {offsets = [0, 256], sizes = [8, 128], strides = [1, 1]} : vector<8x512xf32> to vector<8x128xf32>
    %281 = math.tanh %280 : vector<8x128xf32>
    %282 = vector.extract_strided_slice %267 {offsets = [0, 384], sizes = [8, 128], strides = [1, 1]} : vector<8x512xf32> to vector<8x128xf32>
    %283 = arith.negf %282 : vector<8x128xf32>
    %284 = math.exp %283 : vector<8x128xf32>
    %cst_102 = arith.constant 1.000000e+00 : f32
    %285 = vector.broadcast %cst_102 : f32 to vector<8x128xf32>
    %286 = arith.addf %285, %284 : vector<8x128xf32>
    %287 = arith.divf %285, %286 : vector<8x128xf32>
    %288 = arith.mulf %279, %255 : vector<8x128xf32>
    %289 = arith.mulf %273, %281 : vector<8x128xf32>
    %290 = arith.addf %288, %289 : vector<8x128xf32>
    %291 = math.tanh %290 : vector<8x128xf32>
    %292 = arith.mulf %287, %291 : vector<8x128xf32>
    %293 = arith.index_cast %c6_i32 : i32 to index
    %c0_103 = arith.constant 0 : index
    %c0_104 = arith.constant 0 : index
    %294 = vector.load %arg15[%293, %c0_103, %c0_104] : memref<9x8x128xf32, #tpu.memory_space<vmem>>, vector<1x8x128xf32>
    %295 = vector.shape_cast %294 : vector<1x8x128xf32> to vector<8x128xf32>
    %296 = vector.shape_cast %292 : vector<8x128xf32> to vector<1x8x128xf32>
    tpu.vector_store %arg15[%293, %c0_103, %c0_104], %296 {strides = array<i32>} : memref<9x8x128xf32, #tpu.memory_space<vmem>>, vector<1x8x128xf32>,
    %c7_i32 = arith.constant 7 : i32
    %297 = arith.index_cast %c7_i32 : i32 to index
    %c0_105 = arith.constant 0 : index
    %c0_106 = arith.constant 0 : index
    %298 = vector.load %arg16[%297, %c0_105, %c0_106] : memref<9x8x512xf32, #tpu.memory_space<vmem>>, vector<1x8x512xf32>
    %299 = vector.shape_cast %298 : vector<1x8x512xf32> to vector<8x512xf32>
    %c0_107 = arith.constant 0 : index
    %c0_108 = arith.constant 0 : index
    %300 = vector.load %arg7[%c0_107, %c0_108] : memref<128x512xf32, #tpu.memory_space<vmem>>, vector<128x512xf32>
    %cst_109 = arith.constant dense<0.000000e+00> : vector<8x512xf32>
    %301 = tpu.matmul %292, %300, %cst_109 {dimension_numbers = #tpu.dot_dimension_numbers<[1], [0], [0], [1], [0, 0, 1, 1], [], []>} : vector<8x128xf32>, vector<128x512xf32>, vector<8x512xf32> -> vector<8x512xf32>
    %302 = arith.addf %299, %301 : vector<8x512xf32>
    %303 = vector.extract_strided_slice %302 {offsets = [0, 0], sizes = [8, 128], strides = [1, 1]} : vector<8x512xf32> to vector<8x128xf32>
    %304 = arith.negf %303 : vector<8x128xf32>
    %305 = math.exp %304 : vector<8x128xf32>
    %cst_110 = arith.constant 1.000000e+00 : f32
    %306 = vector.broadcast %cst_110 : f32 to vector<8x128xf32>
    %307 = arith.addf %306, %305 : vector<8x128xf32>
    %308 = arith.divf %306, %307 : vector<8x128xf32>
    %309 = vector.extract_strided_slice %302 {offsets = [0, 128], sizes = [8, 128], strides = [1, 1]} : vector<8x512xf32> to vector<8x128xf32>
    %310 = arith.negf %309 : vector<8x128xf32>
    %311 = math.exp %310 : vector<8x128xf32>
    %cst_111 = arith.constant 1.000000e+00 : f32
    %312 = vector.broadcast %cst_111 : f32 to vector<8x128xf32>
    %313 = arith.addf %312, %311 : vector<8x128xf32>
    %314 = arith.divf %312, %313 : vector<8x128xf32>
    %315 = vector.extract_strided_slice %302 {offsets = [0, 256], sizes = [8, 128], strides = [1, 1]} : vector<8x512xf32> to vector<8x128xf32>
    %316 = math.tanh %315 : vector<8x128xf32>
    %317 = vector.extract_strided_slice %302 {offsets = [0, 384], sizes = [8, 128], strides = [1, 1]} : vector<8x512xf32> to vector<8x128xf32>
    %318 = arith.negf %317 : vector<8x128xf32>
    %319 = math.exp %318 : vector<8x128xf32>
    %cst_112 = arith.constant 1.000000e+00 : f32
    %320 = vector.broadcast %cst_112 : f32 to vector<8x128xf32>
    %321 = arith.addf %320, %319 : vector<8x128xf32>
    %322 = arith.divf %320, %321 : vector<8x128xf32>
    %323 = arith.mulf %314, %290 : vector<8x128xf32>
    %324 = arith.mulf %308, %316 : vector<8x128xf32>
    %325 = arith.addf %323, %324 : vector<8x128xf32>
    %326 = math.tanh %325 : vector<8x128xf32>
    %327 = arith.mulf %322, %326 : vector<8x128xf32>
    %328 = arith.index_cast %c7_i32 : i32 to index
    %c0_113 = arith.constant 0 : index
    %c0_114 = arith.constant 0 : index
    %329 = vector.load %arg15[%328, %c0_113, %c0_114] : memref<9x8x128xf32, #tpu.memory_space<vmem>>, vector<1x8x128xf32>
    %330 = vector.shape_cast %329 : vector<1x8x128xf32> to vector<8x128xf32>
    %331 = vector.shape_cast %327 : vector<8x128xf32> to vector<1x8x128xf32>
    tpu.vector_store %arg15[%328, %c0_113, %c0_114], %331 {strides = array<i32>} : memref<9x8x128xf32, #tpu.memory_space<vmem>>, vector<1x8x128xf32>,
    %c8_i32 = arith.constant 8 : i32
    %332 = arith.index_cast %c8_i32 : i32 to index
    %c0_115 = arith.constant 0 : index
    %c0_116 = arith.constant 0 : index
    %333 = vector.load %arg16[%332, %c0_115, %c0_116] : memref<9x8x512xf32, #tpu.memory_space<vmem>>, vector<1x8x512xf32>
    %334 = vector.shape_cast %333 : vector<1x8x512xf32> to vector<8x512xf32>
    %c0_117 = arith.constant 0 : index
    %c0_118 = arith.constant 0 : index
    %335 = vector.load %arg7[%c0_117, %c0_118] : memref<128x512xf32, #tpu.memory_space<vmem>>, vector<128x512xf32>
    %cst_119 = arith.constant dense<0.000000e+00> : vector<8x512xf32>
    %336 = tpu.matmul %327, %335, %cst_119 {dimension_numbers = #tpu.dot_dimension_numbers<[1], [0], [0], [1], [0, 0, 1, 1], [], []>} : vector<8x128xf32>, vector<128x512xf32>, vector<8x512xf32> -> vector<8x512xf32>
    %337 = arith.addf %334, %336 : vector<8x512xf32>
    %338 = vector.extract_strided_slice %337 {offsets = [0, 0], sizes = [8, 128], strides = [1, 1]} : vector<8x512xf32> to vector<8x128xf32>
    %339 = arith.negf %338 : vector<8x128xf32>
    %340 = math.exp %339 : vector<8x128xf32>
    %cst_120 = arith.constant 1.000000e+00 : f32
    %341 = vector.broadcast %cst_120 : f32 to vector<8x128xf32>
    %342 = arith.addf %341, %340 : vector<8x128xf32>
    %343 = arith.divf %341, %342 : vector<8x128xf32>
    %344 = vector.extract_strided_slice %337 {offsets = [0, 128], sizes = [8, 128], strides = [1, 1]} : vector<8x512xf32> to vector<8x128xf32>
    %345 = arith.negf %344 : vector<8x128xf32>
    %346 = math.exp %345 : vector<8x128xf32>
    %cst_121 = arith.constant 1.000000e+00 : f32
    %347 = vector.broadcast %cst_121 : f32 to vector<8x128xf32>
    %348 = arith.addf %347, %346 : vector<8x128xf32>
    %349 = arith.divf %347, %348 : vector<8x128xf32>
    %350 = vector.extract_strided_slice %337 {offsets = [0, 256], sizes = [8, 128], strides = [1, 1]} : vector<8x512xf32> to vector<8x128xf32>
    %351 = math.tanh %350 : vector<8x128xf32>
    %352 = vector.extract_strided_slice %337 {offsets = [0, 384], sizes = [8, 128], strides = [1, 1]} : vector<8x512xf32> to vector<8x128xf32>
    %353 = arith.negf %352 : vector<8x128xf32>
    %354 = math.exp %353 : vector<8x128xf32>
    %cst_122 = arith.constant 1.000000e+00 : f32
    %355 = vector.broadcast %cst_122 : f32 to vector<8x128xf32>
    %356 = arith.addf %355, %354 : vector<8x128xf32>
    %357 = arith.divf %355, %356 : vector<8x128xf32>
    %358 = arith.mulf %349, %325 : vector<8x128xf32>
    %359 = arith.mulf %343, %351 : vector<8x128xf32>
    %360 = arith.addf %358, %359 : vector<8x128xf32>
    %361 = math.tanh %360 : vector<8x128xf32>
    %362 = arith.mulf %357, %361 : vector<8x128xf32>
    %363 = arith.index_cast %c8_i32 : i32 to index
    %c0_123 = arith.constant 0 : index
    %c0_124 = arith.constant 0 : index
    %364 = vector.load %arg15[%363, %c0_123, %c0_124] : memref<9x8x128xf32, #tpu.memory_space<vmem>>, vector<1x8x128xf32>
    %365 = vector.shape_cast %364 : vector<1x8x128xf32> to vector<8x128xf32>
    %366 = vector.shape_cast %362 : vector<8x128xf32> to vector<1x8x128xf32>
    tpu.vector_store %arg15[%363, %c0_123, %c0_124], %366 {strides = array<i32>} : memref<9x8x128xf32, #tpu.memory_space<vmem>>, vector<1x8x128xf32>,
    %c9_i32 = arith.constant 9 : i32
    %c0_125 = arith.constant 0 : index
    %c0_126 = arith.constant 0 : index
    %c0_127 = arith.constant 0 : index
    %367 = vector.load %arg15[%c0_125, %c0_126, %c0_127] : memref<9x8x128xf32, #tpu.memory_space<vmem>>, vector<9x8x128xf32>
    %368 = vector.shape_cast %367 : vector<9x8x128xf32> to vector<72x128xf32>
    %c0_128 = arith.constant 0 : index
    %c0_129 = arith.constant 0 : index
    %369 = vector.load %arg9[%c0_128, %c0_129] : memref<128x512xf32, #tpu.memory_space<vmem>>, vector<128x512xf32>
    %cst_130 = arith.constant dense<0.000000e+00> : vector<72x512xf32>
    %370 = tpu.matmul %368, %369, %cst_130 {dimension_numbers = #tpu.dot_dimension_numbers<[1], [0], [0], [1], [0, 0, 1, 1], [], []>} : vector<72x128xf32>, vector<128x512xf32>, vector<72x512xf32> -> vector<72x512xf32>
    %c0_131 = arith.constant 0 : index
    %c0_132 = arith.constant 0 : index
    %371 = vector.load %arg11[%c0_131, %c0_132] : memref<1x512xf32, #tpu.memory_space<vmem>>, vector<1x512xf32>
    %372 = vector.broadcast %371 : vector<1x512xf32> to vector<72x512xf32>
    %373 = arith.addf %370, %372 : vector<72x512xf32>
    %374 = vector.shape_cast %373 : vector<72x512xf32> to vector<9x8x512xf32>
    %c0_133 = arith.constant 0 : index
    %c0_134 = arith.constant 0 : index
    %c0_135 = arith.constant 0 : index
    %375 = vector.load %arg16[%c0_133, %c0_134, %c0_135] : memref<9x8x512xf32, #tpu.memory_space<vmem>>, vector<9x8x512xf32>
    tpu.vector_store %arg16[%c0_133, %c0_134, %c0_135], %374 {strides = array<i32>} : memref<9x8x512xf32, #tpu.memory_space<vmem>>, vector<9x8x512xf32>,
    %cst_136 = arith.constant 0.000000e+00 : f32
    %376 = vector.broadcast %cst_136 : f32 to vector<8x128xf32>
    %c0_i32_137 = arith.constant 0 : i32
    %377 = arith.index_cast %c0_i32_137 : i32 to index
    %c0_138 = arith.constant 0 : index
    %c0_139 = arith.constant 0 : index
    %378 = vector.load %arg16[%377, %c0_138, %c0_139] : memref<9x8x512xf32, #tpu.memory_space<vmem>>, vector<1x8x512xf32>
    %379 = vector.shape_cast %378 : vector<1x8x512xf32> to vector<8x512xf32>
    %c0_140 = arith.constant 0 : index
    %c0_141 = arith.constant 0 : index
    %380 = vector.load %arg10[%c0_140, %c0_141] : memref<128x512xf32, #tpu.memory_space<vmem>>, vector<128x512xf32>
    %cst_142 = arith.constant dense<0.000000e+00> : vector<8x512xf32>
    %381 = tpu.matmul %376, %380, %cst_142 {dimension_numbers = #tpu.dot_dimension_numbers<[1], [0], [0], [1], [0, 0, 1, 1], [], []>} : vector<8x128xf32>, vector<128x512xf32>, vector<8x512xf32> -> vector<8x512xf32>
    %382 = arith.addf %379, %381 : vector<8x512xf32>
    %383 = vector.extract_strided_slice %382 {offsets = [0, 0], sizes = [8, 128], strides = [1, 1]} : vector<8x512xf32> to vector<8x128xf32>
    %384 = arith.negf %383 : vector<8x128xf32>
    %385 = math.exp %384 : vector<8x128xf32>
    %cst_143 = arith.constant 1.000000e+00 : f32
    %386 = vector.broadcast %cst_143 : f32 to vector<8x128xf32>
    %387 = arith.addf %386, %385 : vector<8x128xf32>
    %388 = arith.divf %386, %387 : vector<8x128xf32>
    %389 = vector.extract_strided_slice %382 {offsets = [0, 128], sizes = [8, 128], strides = [1, 1]} : vector<8x512xf32> to vector<8x128xf32>
    %390 = arith.negf %389 : vector<8x128xf32>
    %391 = math.exp %390 : vector<8x128xf32>
    %cst_144 = arith.constant 1.000000e+00 : f32
    %392 = vector.broadcast %cst_144 : f32 to vector<8x128xf32>
    %393 = arith.addf %392, %391 : vector<8x128xf32>
    %394 = arith.divf %392, %393 : vector<8x128xf32>
    %395 = vector.extract_strided_slice %382 {offsets = [0, 256], sizes = [8, 128], strides = [1, 1]} : vector<8x512xf32> to vector<8x128xf32>
    %396 = math.tanh %395 : vector<8x128xf32>
    %397 = vector.extract_strided_slice %382 {offsets = [0, 384], sizes = [8, 128], strides = [1, 1]} : vector<8x512xf32> to vector<8x128xf32>
    %398 = arith.negf %397 : vector<8x128xf32>
    %399 = math.exp %398 : vector<8x128xf32>
    %cst_145 = arith.constant 1.000000e+00 : f32
    %400 = vector.broadcast %cst_145 : f32 to vector<8x128xf32>
    %401 = arith.addf %400, %399 : vector<8x128xf32>
    %402 = arith.divf %400, %401 : vector<8x128xf32>
    %403 = arith.mulf %394, %376 : vector<8x128xf32>
    %404 = arith.mulf %388, %396 : vector<8x128xf32>
    %405 = arith.addf %403, %404 : vector<8x128xf32>
    %406 = math.tanh %405 : vector<8x128xf32>
    %407 = arith.mulf %402, %406 : vector<8x128xf32>
    %408 = arith.index_cast %c0_i32_137 : i32 to index
    %c0_146 = arith.constant 0 : index
    %c0_147 = arith.constant 0 : index
    %409 = vector.load %arg15[%408, %c0_146, %c0_147] : memref<9x8x128xf32, #tpu.memory_space<vmem>>, vector<1x8x128xf32>
    %410 = vector.shape_cast %409 : vector<1x8x128xf32> to vector<8x128xf32>
    %411 = vector.shape_cast %407 : vector<8x128xf32> to vector<1x8x128xf32>
    tpu.vector_store %arg15[%408, %c0_146, %c0_147], %411 {strides = array<i32>} : memref<9x8x128xf32, #tpu.memory_space<vmem>>, vector<1x8x128xf32>,
    %c1_i32_148 = arith.constant 1 : i32
    %412 = arith.index_cast %c1_i32_148 : i32 to index
    %c0_149 = arith.constant 0 : index
    %c0_150 = arith.constant 0 : index
    %413 = vector.load %arg16[%412, %c0_149, %c0_150] : memref<9x8x512xf32, #tpu.memory_space<vmem>>, vector<1x8x512xf32>
    %414 = vector.shape_cast %413 : vector<1x8x512xf32> to vector<8x512xf32>
    %c0_151 = arith.constant 0 : index
    %c0_152 = arith.constant 0 : index
    %415 = vector.load %arg10[%c0_151, %c0_152] : memref<128x512xf32, #tpu.memory_space<vmem>>, vector<128x512xf32>
    %cst_153 = arith.constant dense<0.000000e+00> : vector<8x512xf32>
    %416 = tpu.matmul %407, %415, %cst_153 {dimension_numbers = #tpu.dot_dimension_numbers<[1], [0], [0], [1], [0, 0, 1, 1], [], []>} : vector<8x128xf32>, vector<128x512xf32>, vector<8x512xf32> -> vector<8x512xf32>
    %417 = arith.addf %414, %416 : vector<8x512xf32>
    %418 = vector.extract_strided_slice %417 {offsets = [0, 0], sizes = [8, 128], strides = [1, 1]} : vector<8x512xf32> to vector<8x128xf32>
    %419 = arith.negf %418 : vector<8x128xf32>
    %420 = math.exp %419 : vector<8x128xf32>
    %cst_154 = arith.constant 1.000000e+00 : f32
    %421 = vector.broadcast %cst_154 : f32 to vector<8x128xf32>
    %422 = arith.addf %421, %420 : vector<8x128xf32>
    %423 = arith.divf %421, %422 : vector<8x128xf32>
    %424 = vector.extract_strided_slice %417 {offsets = [0, 128], sizes = [8, 128], strides = [1, 1]} : vector<8x512xf32> to vector<8x128xf32>
    %425 = arith.negf %424 : vector<8x128xf32>
    %426 = math.exp %425 : vector<8x128xf32>
    %cst_155 = arith.constant 1.000000e+00 : f32
    %427 = vector.broadcast %cst_155 : f32 to vector<8x128xf32>
    %428 = arith.addf %427, %426 : vector<8x128xf32>
    %429 = arith.divf %427, %428 : vector<8x128xf32>
    %430 = vector.extract_strided_slice %417 {offsets = [0, 256], sizes = [8, 128], strides = [1, 1]} : vector<8x512xf32> to vector<8x128xf32>
    %431 = math.tanh %430 : vector<8x128xf32>
    %432 = vector.extract_strided_slice %417 {offsets = [0, 384], sizes = [8, 128], strides = [1, 1]} : vector<8x512xf32> to vector<8x128xf32>
    %433 = arith.negf %432 : vector<8x128xf32>
    %434 = math.exp %433 : vector<8x128xf32>
    %cst_156 = arith.constant 1.000000e+00 : f32
    %435 = vector.broadcast %cst_156 : f32 to vector<8x128xf32>
    %436 = arith.addf %435, %434 : vector<8x128xf32>
    %437 = arith.divf %435, %436 : vector<8x128xf32>
    %438 = arith.mulf %429, %405 : vector<8x128xf32>
    %439 = arith.mulf %423, %431 : vector<8x128xf32>
    %440 = arith.addf %438, %439 : vector<8x128xf32>
    %441 = math.tanh %440 : vector<8x128xf32>
    %442 = arith.mulf %437, %441 : vector<8x128xf32>
    %443 = arith.index_cast %c1_i32_148 : i32 to index
    %c0_157 = arith.constant 0 : index
    %c0_158 = arith.constant 0 : index
    %444 = vector.load %arg15[%443, %c0_157, %c0_158] : memref<9x8x128xf32, #tpu.memory_space<vmem>>, vector<1x8x128xf32>
    %445 = vector.shape_cast %444 : vector<1x8x128xf32> to vector<8x128xf32>
    %446 = vector.shape_cast %442 : vector<8x128xf32> to vector<1x8x128xf32>
    tpu.vector_store %arg15[%443, %c0_157, %c0_158], %446 {strides = array<i32>} : memref<9x8x128xf32, #tpu.memory_space<vmem>>, vector<1x8x128xf32>,
    %c2_i32_159 = arith.constant 2 : i32
    %447 = arith.index_cast %c2_i32_159 : i32 to index
    %c0_160 = arith.constant 0 : index
    %c0_161 = arith.constant 0 : index
    %448 = vector.load %arg16[%447, %c0_160, %c0_161] : memref<9x8x512xf32, #tpu.memory_space<vmem>>, vector<1x8x512xf32>
    %449 = vector.shape_cast %448 : vector<1x8x512xf32> to vector<8x512xf32>
    %c0_162 = arith.constant 0 : index
    %c0_163 = arith.constant 0 : index
    %450 = vector.load %arg10[%c0_162, %c0_163] : memref<128x512xf32, #tpu.memory_space<vmem>>, vector<128x512xf32>
    %cst_164 = arith.constant dense<0.000000e+00> : vector<8x512xf32>
    %451 = tpu.matmul %442, %450, %cst_164 {dimension_numbers = #tpu.dot_dimension_numbers<[1], [0], [0], [1], [0, 0, 1, 1], [], []>} : vector<8x128xf32>, vector<128x512xf32>, vector<8x512xf32> -> vector<8x512xf32>
    %452 = arith.addf %449, %451 : vector<8x512xf32>
    %453 = vector.extract_strided_slice %452 {offsets = [0, 0], sizes = [8, 128], strides = [1, 1]} : vector<8x512xf32> to vector<8x128xf32>
    %454 = arith.negf %453 : vector<8x128xf32>
    %455 = math.exp %454 : vector<8x128xf32>
    %cst_165 = arith.constant 1.000000e+00 : f32
    %456 = vector.broadcast %cst_165 : f32 to vector<8x128xf32>
    %457 = arith.addf %456, %455 : vector<8x128xf32>
    %458 = arith.divf %456, %457 : vector<8x128xf32>
    %459 = vector.extract_strided_slice %452 {offsets = [0, 128], sizes = [8, 128], strides = [1, 1]} : vector<8x512xf32> to vector<8x128xf32>
    %460 = arith.negf %459 : vector<8x128xf32>
    %461 = math.exp %460 : vector<8x128xf32>
    %cst_166 = arith.constant 1.000000e+00 : f32
    %462 = vector.broadcast %cst_166 : f32 to vector<8x128xf32>
    %463 = arith.addf %462, %461 : vector<8x128xf32>
    %464 = arith.divf %462, %463 : vector<8x128xf32>
    %465 = vector.extract_strided_slice %452 {offsets = [0, 256], sizes = [8, 128], strides = [1, 1]} : vector<8x512xf32> to vector<8x128xf32>
    %466 = math.tanh %465 : vector<8x128xf32>
    %467 = vector.extract_strided_slice %452 {offsets = [0, 384], sizes = [8, 128], strides = [1, 1]} : vector<8x512xf32> to vector<8x128xf32>
    %468 = arith.negf %467 : vector<8x128xf32>
    %469 = math.exp %468 : vector<8x128xf32>
    %cst_167 = arith.constant 1.000000e+00 : f32
    %470 = vector.broadcast %cst_167 : f32 to vector<8x128xf32>
    %471 = arith.addf %470, %469 : vector<8x128xf32>
    %472 = arith.divf %470, %471 : vector<8x128xf32>
    %473 = arith.mulf %464, %440 : vector<8x128xf32>
    %474 = arith.mulf %458, %466 : vector<8x128xf32>
    %475 = arith.addf %473, %474 : vector<8x128xf32>
    %476 = math.tanh %475 : vector<8x128xf32>
    %477 = arith.mulf %472, %476 : vector<8x128xf32>
    %478 = arith.index_cast %c2_i32_159 : i32 to index
    %c0_168 = arith.constant 0 : index
    %c0_169 = arith.constant 0 : index
    %479 = vector.load %arg15[%478, %c0_168, %c0_169] : memref<9x8x128xf32, #tpu.memory_space<vmem>>, vector<1x8x128xf32>
    %480 = vector.shape_cast %479 : vector<1x8x128xf32> to vector<8x128xf32>
    %481 = vector.shape_cast %477 : vector<8x128xf32> to vector<1x8x128xf32>
    tpu.vector_store %arg15[%478, %c0_168, %c0_169], %481 {strides = array<i32>} : memref<9x8x128xf32, #tpu.memory_space<vmem>>, vector<1x8x128xf32>,
    %c3_i32_170 = arith.constant 3 : i32
    %482 = arith.index_cast %c3_i32_170 : i32 to index
    %c0_171 = arith.constant 0 : index
    %c0_172 = arith.constant 0 : index
    %483 = vector.load %arg16[%482, %c0_171, %c0_172] : memref<9x8x512xf32, #tpu.memory_space<vmem>>, vector<1x8x512xf32>
    %484 = vector.shape_cast %483 : vector<1x8x512xf32> to vector<8x512xf32>
    %c0_173 = arith.constant 0 : index
    %c0_174 = arith.constant 0 : index
    %485 = vector.load %arg10[%c0_173, %c0_174] : memref<128x512xf32, #tpu.memory_space<vmem>>, vector<128x512xf32>
    %cst_175 = arith.constant dense<0.000000e+00> : vector<8x512xf32>
    %486 = tpu.matmul %477, %485, %cst_175 {dimension_numbers = #tpu.dot_dimension_numbers<[1], [0], [0], [1], [0, 0, 1, 1], [], []>} : vector<8x128xf32>, vector<128x512xf32>, vector<8x512xf32> -> vector<8x512xf32>
    %487 = arith.addf %484, %486 : vector<8x512xf32>
    %488 = vector.extract_strided_slice %487 {offsets = [0, 0], sizes = [8, 128], strides = [1, 1]} : vector<8x512xf32> to vector<8x128xf32>
    %489 = arith.negf %488 : vector<8x128xf32>
    %490 = math.exp %489 : vector<8x128xf32>
    %cst_176 = arith.constant 1.000000e+00 : f32
    %491 = vector.broadcast %cst_176 : f32 to vector<8x128xf32>
    %492 = arith.addf %491, %490 : vector<8x128xf32>
    %493 = arith.divf %491, %492 : vector<8x128xf32>
    %494 = vector.extract_strided_slice %487 {offsets = [0, 128], sizes = [8, 128], strides = [1, 1]} : vector<8x512xf32> to vector<8x128xf32>
    %495 = arith.negf %494 : vector<8x128xf32>
    %496 = math.exp %495 : vector<8x128xf32>
    %cst_177 = arith.constant 1.000000e+00 : f32
    %497 = vector.broadcast %cst_177 : f32 to vector<8x128xf32>
    %498 = arith.addf %497, %496 : vector<8x128xf32>
    %499 = arith.divf %497, %498 : vector<8x128xf32>
    %500 = vector.extract_strided_slice %487 {offsets = [0, 256], sizes = [8, 128], strides = [1, 1]} : vector<8x512xf32> to vector<8x128xf32>
    %501 = math.tanh %500 : vector<8x128xf32>
    %502 = vector.extract_strided_slice %487 {offsets = [0, 384], sizes = [8, 128], strides = [1, 1]} : vector<8x512xf32> to vector<8x128xf32>
    %503 = arith.negf %502 : vector<8x128xf32>
    %504 = math.exp %503 : vector<8x128xf32>
    %cst_178 = arith.constant 1.000000e+00 : f32
    %505 = vector.broadcast %cst_178 : f32 to vector<8x128xf32>
    %506 = arith.addf %505, %504 : vector<8x128xf32>
    %507 = arith.divf %505, %506 : vector<8x128xf32>
    %508 = arith.mulf %499, %475 : vector<8x128xf32>
    %509 = arith.mulf %493, %501 : vector<8x128xf32>
    %510 = arith.addf %508, %509 : vector<8x128xf32>
    %511 = math.tanh %510 : vector<8x128xf32>
    %512 = arith.mulf %507, %511 : vector<8x128xf32>
    %513 = arith.index_cast %c3_i32_170 : i32 to index
    %c0_179 = arith.constant 0 : index
    %c0_180 = arith.constant 0 : index
    %514 = vector.load %arg15[%513, %c0_179, %c0_180] : memref<9x8x128xf32, #tpu.memory_space<vmem>>, vector<1x8x128xf32>
    %515 = vector.shape_cast %514 : vector<1x8x128xf32> to vector<8x128xf32>
    %516 = vector.shape_cast %512 : vector<8x128xf32> to vector<1x8x128xf32>
    tpu.vector_store %arg15[%513, %c0_179, %c0_180], %516 {strides = array<i32>} : memref<9x8x128xf32, #tpu.memory_space<vmem>>, vector<1x8x128xf32>,
    %c4_i32_181 = arith.constant 4 : i32
    %517 = arith.index_cast %c4_i32_181 : i32 to index
    %c0_182 = arith.constant 0 : index
    %c0_183 = arith.constant 0 : index
    %518 = vector.load %arg16[%517, %c0_182, %c0_183] : memref<9x8x512xf32, #tpu.memory_space<vmem>>, vector<1x8x512xf32>
    %519 = vector.shape_cast %518 : vector<1x8x512xf32> to vector<8x512xf32>
    %c0_184 = arith.constant 0 : index
    %c0_185 = arith.constant 0 : index
    %520 = vector.load %arg10[%c0_184, %c0_185] : memref<128x512xf32, #tpu.memory_space<vmem>>, vector<128x512xf32>
    %cst_186 = arith.constant dense<0.000000e+00> : vector<8x512xf32>
    %521 = tpu.matmul %512, %520, %cst_186 {dimension_numbers = #tpu.dot_dimension_numbers<[1], [0], [0], [1], [0, 0, 1, 1], [], []>} : vector<8x128xf32>, vector<128x512xf32>, vector<8x512xf32> -> vector<8x512xf32>
    %522 = arith.addf %519, %521 : vector<8x512xf32>
    %523 = vector.extract_strided_slice %522 {offsets = [0, 0], sizes = [8, 128], strides = [1, 1]} : vector<8x512xf32> to vector<8x128xf32>
    %524 = arith.negf %523 : vector<8x128xf32>
    %525 = math.exp %524 : vector<8x128xf32>
    %cst_187 = arith.constant 1.000000e+00 : f32
    %526 = vector.broadcast %cst_187 : f32 to vector<8x128xf32>
    %527 = arith.addf %526, %525 : vector<8x128xf32>
    %528 = arith.divf %526, %527 : vector<8x128xf32>
    %529 = vector.extract_strided_slice %522 {offsets = [0, 128], sizes = [8, 128], strides = [1, 1]} : vector<8x512xf32> to vector<8x128xf32>
    %530 = arith.negf %529 : vector<8x128xf32>
    %531 = math.exp %530 : vector<8x128xf32>
    %cst_188 = arith.constant 1.000000e+00 : f32
    %532 = vector.broadcast %cst_188 : f32 to vector<8x128xf32>
    %533 = arith.addf %532, %531 : vector<8x128xf32>
    %534 = arith.divf %532, %533 : vector<8x128xf32>
    %535 = vector.extract_strided_slice %522 {offsets = [0, 256], sizes = [8, 128], strides = [1, 1]} : vector<8x512xf32> to vector<8x128xf32>
    %536 = math.tanh %535 : vector<8x128xf32>
    %537 = vector.extract_strided_slice %522 {offsets = [0, 384], sizes = [8, 128], strides = [1, 1]} : vector<8x512xf32> to vector<8x128xf32>
    %538 = arith.negf %537 : vector<8x128xf32>
    %539 = math.exp %538 : vector<8x128xf32>
    %cst_189 = arith.constant 1.000000e+00 : f32
    %540 = vector.broadcast %cst_189 : f32 to vector<8x128xf32>
    %541 = arith.addf %540, %539 : vector<8x128xf32>
    %542 = arith.divf %540, %541 : vector<8x128xf32>
    %543 = arith.mulf %534, %510 : vector<8x128xf32>
    %544 = arith.mulf %528, %536 : vector<8x128xf32>
    %545 = arith.addf %543, %544 : vector<8x128xf32>
    %546 = math.tanh %545 : vector<8x128xf32>
    %547 = arith.mulf %542, %546 : vector<8x128xf32>
    %548 = arith.index_cast %c4_i32_181 : i32 to index
    %c0_190 = arith.constant 0 : index
    %c0_191 = arith.constant 0 : index
    %549 = vector.load %arg15[%548, %c0_190, %c0_191] : memref<9x8x128xf32, #tpu.memory_space<vmem>>, vector<1x8x128xf32>
    %550 = vector.shape_cast %549 : vector<1x8x128xf32> to vector<8x128xf32>
    %551 = vector.shape_cast %547 : vector<8x128xf32> to vector<1x8x128xf32>
    tpu.vector_store %arg15[%548, %c0_190, %c0_191], %551 {strides = array<i32>} : memref<9x8x128xf32, #tpu.memory_space<vmem>>, vector<1x8x128xf32>,
    %c5_i32_192 = arith.constant 5 : i32
    %552 = arith.index_cast %c5_i32_192 : i32 to index
    %c0_193 = arith.constant 0 : index
    %c0_194 = arith.constant 0 : index
    %553 = vector.load %arg16[%552, %c0_193, %c0_194] : memref<9x8x512xf32, #tpu.memory_space<vmem>>, vector<1x8x512xf32>
    %554 = vector.shape_cast %553 : vector<1x8x512xf32> to vector<8x512xf32>
    %c0_195 = arith.constant 0 : index
    %c0_196 = arith.constant 0 : index
    %555 = vector.load %arg10[%c0_195, %c0_196] : memref<128x512xf32, #tpu.memory_space<vmem>>, vector<128x512xf32>
    %cst_197 = arith.constant dense<0.000000e+00> : vector<8x512xf32>
    %556 = tpu.matmul %547, %555, %cst_197 {dimension_numbers = #tpu.dot_dimension_numbers<[1], [0], [0], [1], [0, 0, 1, 1], [], []>} : vector<8x128xf32>, vector<128x512xf32>, vector<8x512xf32> -> vector<8x512xf32>
    %557 = arith.addf %554, %556 : vector<8x512xf32>
    %558 = vector.extract_strided_slice %557 {offsets = [0, 0], sizes = [8, 128], strides = [1, 1]} : vector<8x512xf32> to vector<8x128xf32>
    %559 = arith.negf %558 : vector<8x128xf32>
    %560 = math.exp %559 : vector<8x128xf32>
    %cst_198 = arith.constant 1.000000e+00 : f32
    %561 = vector.broadcast %cst_198 : f32 to vector<8x128xf32>
    %562 = arith.addf %561, %560 : vector<8x128xf32>
    %563 = arith.divf %561, %562 : vector<8x128xf32>
    %564 = vector.extract_strided_slice %557 {offsets = [0, 128], sizes = [8, 128], strides = [1, 1]} : vector<8x512xf32> to vector<8x128xf32>
    %565 = arith.negf %564 : vector<8x128xf32>
    %566 = math.exp %565 : vector<8x128xf32>
    %cst_199 = arith.constant 1.000000e+00 : f32
    %567 = vector.broadcast %cst_199 : f32 to vector<8x128xf32>
    %568 = arith.addf %567, %566 : vector<8x128xf32>
    %569 = arith.divf %567, %568 : vector<8x128xf32>
    %570 = vector.extract_strided_slice %557 {offsets = [0, 256], sizes = [8, 128], strides = [1, 1]} : vector<8x512xf32> to vector<8x128xf32>
    %571 = math.tanh %570 : vector<8x128xf32>
    %572 = vector.extract_strided_slice %557 {offsets = [0, 384], sizes = [8, 128], strides = [1, 1]} : vector<8x512xf32> to vector<8x128xf32>
    %573 = arith.negf %572 : vector<8x128xf32>
    %574 = math.exp %573 : vector<8x128xf32>
    %cst_200 = arith.constant 1.000000e+00 : f32
    %575 = vector.broadcast %cst_200 : f32 to vector<8x128xf32>
    %576 = arith.addf %575, %574 : vector<8x128xf32>
    %577 = arith.divf %575, %576 : vector<8x128xf32>
    %578 = arith.mulf %569, %545 : vector<8x128xf32>
    %579 = arith.mulf %563, %571 : vector<8x128xf32>
    %580 = arith.addf %578, %579 : vector<8x128xf32>
    %581 = math.tanh %580 : vector<8x128xf32>
    %582 = arith.mulf %577, %581 : vector<8x128xf32>
    %583 = arith.index_cast %c5_i32_192 : i32 to index
    %c0_201 = arith.constant 0 : index
    %c0_202 = arith.constant 0 : index
    %584 = vector.load %arg15[%583, %c0_201, %c0_202] : memref<9x8x128xf32, #tpu.memory_space<vmem>>, vector<1x8x128xf32>
    %585 = vector.shape_cast %584 : vector<1x8x128xf32> to vector<8x128xf32>
    %586 = vector.shape_cast %582 : vector<8x128xf32> to vector<1x8x128xf32>
    tpu.vector_store %arg15[%583, %c0_201, %c0_202], %586 {strides = array<i32>} : memref<9x8x128xf32, #tpu.memory_space<vmem>>, vector<1x8x128xf32>,
    %c6_i32_203 = arith.constant 6 : i32
    %587 = arith.index_cast %c6_i32_203 : i32 to index
    %c0_204 = arith.constant 0 : index
    %c0_205 = arith.constant 0 : index
    %588 = vector.load %arg16[%587, %c0_204, %c0_205] : memref<9x8x512xf32, #tpu.memory_space<vmem>>, vector<1x8x512xf32>
    %589 = vector.shape_cast %588 : vector<1x8x512xf32> to vector<8x512xf32>
    %c0_206 = arith.constant 0 : index
    %c0_207 = arith.constant 0 : index
    %590 = vector.load %arg10[%c0_206, %c0_207] : memref<128x512xf32, #tpu.memory_space<vmem>>, vector<128x512xf32>
    %cst_208 = arith.constant dense<0.000000e+00> : vector<8x512xf32>
    %591 = tpu.matmul %582, %590, %cst_208 {dimension_numbers = #tpu.dot_dimension_numbers<[1], [0], [0], [1], [0, 0, 1, 1], [], []>} : vector<8x128xf32>, vector<128x512xf32>, vector<8x512xf32> -> vector<8x512xf32>
    %592 = arith.addf %589, %591 : vector<8x512xf32>
    %593 = vector.extract_strided_slice %592 {offsets = [0, 0], sizes = [8, 128], strides = [1, 1]} : vector<8x512xf32> to vector<8x128xf32>
    %594 = arith.negf %593 : vector<8x128xf32>
    %595 = math.exp %594 : vector<8x128xf32>
    %cst_209 = arith.constant 1.000000e+00 : f32
    %596 = vector.broadcast %cst_209 : f32 to vector<8x128xf32>
    %597 = arith.addf %596, %595 : vector<8x128xf32>
    %598 = arith.divf %596, %597 : vector<8x128xf32>
    %599 = vector.extract_strided_slice %592 {offsets = [0, 128], sizes = [8, 128], strides = [1, 1]} : vector<8x512xf32> to vector<8x128xf32>
    %600 = arith.negf %599 : vector<8x128xf32>
    %601 = math.exp %600 : vector<8x128xf32>
    %cst_210 = arith.constant 1.000000e+00 : f32
    %602 = vector.broadcast %cst_210 : f32 to vector<8x128xf32>
    %603 = arith.addf %602, %601 : vector<8x128xf32>
    %604 = arith.divf %602, %603 : vector<8x128xf32>
    %605 = vector.extract_strided_slice %592 {offsets = [0, 256], sizes = [8, 128], strides = [1, 1]} : vector<8x512xf32> to vector<8x128xf32>
    %606 = math.tanh %605 : vector<8x128xf32>
    %607 = vector.extract_strided_slice %592 {offsets = [0, 384], sizes = [8, 128], strides = [1, 1]} : vector<8x512xf32> to vector<8x128xf32>
    %608 = arith.negf %607 : vector<8x128xf32>
    %609 = math.exp %608 : vector<8x128xf32>
    %cst_211 = arith.constant 1.000000e+00 : f32
    %610 = vector.broadcast %cst_211 : f32 to vector<8x128xf32>
    %611 = arith.addf %610, %609 : vector<8x128xf32>
    %612 = arith.divf %610, %611 : vector<8x128xf32>
    %613 = arith.mulf %604, %580 : vector<8x128xf32>
    %614 = arith.mulf %598, %606 : vector<8x128xf32>
    %615 = arith.addf %613, %614 : vector<8x128xf32>
    %616 = math.tanh %615 : vector<8x128xf32>
    %617 = arith.mulf %612, %616 : vector<8x128xf32>
    %618 = arith.index_cast %c6_i32_203 : i32 to index
    %c0_212 = arith.constant 0 : index
    %c0_213 = arith.constant 0 : index
    %619 = vector.load %arg15[%618, %c0_212, %c0_213] : memref<9x8x128xf32, #tpu.memory_space<vmem>>, vector<1x8x128xf32>
    %620 = vector.shape_cast %619 : vector<1x8x128xf32> to vector<8x128xf32>
    %621 = vector.shape_cast %617 : vector<8x128xf32> to vector<1x8x128xf32>
    tpu.vector_store %arg15[%618, %c0_212, %c0_213], %621 {strides = array<i32>} : memref<9x8x128xf32, #tpu.memory_space<vmem>>, vector<1x8x128xf32>,
    %c7_i32_214 = arith.constant 7 : i32
    %622 = arith.index_cast %c7_i32_214 : i32 to index
    %c0_215 = arith.constant 0 : index
    %c0_216 = arith.constant 0 : index
    %623 = vector.load %arg16[%622, %c0_215, %c0_216] : memref<9x8x512xf32, #tpu.memory_space<vmem>>, vector<1x8x512xf32>
    %624 = vector.shape_cast %623 : vector<1x8x512xf32> to vector<8x512xf32>
    %c0_217 = arith.constant 0 : index
    %c0_218 = arith.constant 0 : index
    %625 = vector.load %arg10[%c0_217, %c0_218] : memref<128x512xf32, #tpu.memory_space<vmem>>, vector<128x512xf32>
    %cst_219 = arith.constant dense<0.000000e+00> : vector<8x512xf32>
    %626 = tpu.matmul %617, %625, %cst_219 {dimension_numbers = #tpu.dot_dimension_numbers<[1], [0], [0], [1], [0, 0, 1, 1], [], []>} : vector<8x128xf32>, vector<128x512xf32>, vector<8x512xf32> -> vector<8x512xf32>
    %627 = arith.addf %624, %626 : vector<8x512xf32>
    %628 = vector.extract_strided_slice %627 {offsets = [0, 0], sizes = [8, 128], strides = [1, 1]} : vector<8x512xf32> to vector<8x128xf32>
    %629 = arith.negf %628 : vector<8x128xf32>
    %630 = math.exp %629 : vector<8x128xf32>
    %cst_220 = arith.constant 1.000000e+00 : f32
    %631 = vector.broadcast %cst_220 : f32 to vector<8x128xf32>
    %632 = arith.addf %631, %630 : vector<8x128xf32>
    %633 = arith.divf %631, %632 : vector<8x128xf32>
    %634 = vector.extract_strided_slice %627 {offsets = [0, 128], sizes = [8, 128], strides = [1, 1]} : vector<8x512xf32> to vector<8x128xf32>
    %635 = arith.negf %634 : vector<8x128xf32>
    %636 = math.exp %635 : vector<8x128xf32>
    %cst_221 = arith.constant 1.000000e+00 : f32
    %637 = vector.broadcast %cst_221 : f32 to vector<8x128xf32>
    %638 = arith.addf %637, %636 : vector<8x128xf32>
    %639 = arith.divf %637, %638 : vector<8x128xf32>
    %640 = vector.extract_strided_slice %627 {offsets = [0, 256], sizes = [8, 128], strides = [1, 1]} : vector<8x512xf32> to vector<8x128xf32>
    %641 = math.tanh %640 : vector<8x128xf32>
    %642 = vector.extract_strided_slice %627 {offsets = [0, 384], sizes = [8, 128], strides = [1, 1]} : vector<8x512xf32> to vector<8x128xf32>
    %643 = arith.negf %642 : vector<8x128xf32>
    %644 = math.exp %643 : vector<8x128xf32>
    %cst_222 = arith.constant 1.000000e+00 : f32
    %645 = vector.broadcast %cst_222 : f32 to vector<8x128xf32>
    %646 = arith.addf %645, %644 : vector<8x128xf32>
    %647 = arith.divf %645, %646 : vector<8x128xf32>
    %648 = arith.mulf %639, %615 : vector<8x128xf32>
    %649 = arith.mulf %633, %641 : vector<8x128xf32>
    %650 = arith.addf %648, %649 : vector<8x128xf32>
    %651 = math.tanh %650 : vector<8x128xf32>
    %652 = arith.mulf %647, %651 : vector<8x128xf32>
    %653 = arith.index_cast %c7_i32_214 : i32 to index
    %c0_223 = arith.constant 0 : index
    %c0_224 = arith.constant 0 : index
    %654 = vector.load %arg15[%653, %c0_223, %c0_224] : memref<9x8x128xf32, #tpu.memory_space<vmem>>, vector<1x8x128xf32>
    %655 = vector.shape_cast %654 : vector<1x8x128xf32> to vector<8x128xf32>
    %656 = vector.shape_cast %652 : vector<8x128xf32> to vector<1x8x128xf32>
    tpu.vector_store %arg15[%653, %c0_223, %c0_224], %656 {strides = array<i32>} : memref<9x8x128xf32, #tpu.memory_space<vmem>>, vector<1x8x128xf32>,
    %c8_i32_225 = arith.constant 8 : i32
    %657 = arith.index_cast %c8_i32_225 : i32 to index
    %c0_226 = arith.constant 0 : index
    %c0_227 = arith.constant 0 : index
    %658 = vector.load %arg16[%657, %c0_226, %c0_227] : memref<9x8x512xf32, #tpu.memory_space<vmem>>, vector<1x8x512xf32>
    %659 = vector.shape_cast %658 : vector<1x8x512xf32> to vector<8x512xf32>
    %c0_228 = arith.constant 0 : index
    %c0_229 = arith.constant 0 : index
    %660 = vector.load %arg10[%c0_228, %c0_229] : memref<128x512xf32, #tpu.memory_space<vmem>>, vector<128x512xf32>
    %cst_230 = arith.constant dense<0.000000e+00> : vector<8x512xf32>
    %661 = tpu.matmul %652, %660, %cst_230 {dimension_numbers = #tpu.dot_dimension_numbers<[1], [0], [0], [1], [0, 0, 1, 1], [], []>} : vector<8x128xf32>, vector<128x512xf32>, vector<8x512xf32> -> vector<8x512xf32>
    %662 = arith.addf %659, %661 : vector<8x512xf32>
    %663 = vector.extract_strided_slice %662 {offsets = [0, 0], sizes = [8, 128], strides = [1, 1]} : vector<8x512xf32> to vector<8x128xf32>
    %664 = arith.negf %663 : vector<8x128xf32>
    %665 = math.exp %664 : vector<8x128xf32>
    %cst_231 = arith.constant 1.000000e+00 : f32
    %666 = vector.broadcast %cst_231 : f32 to vector<8x128xf32>
    %667 = arith.addf %666, %665 : vector<8x128xf32>
    %668 = arith.divf %666, %667 : vector<8x128xf32>
    %669 = vector.extract_strided_slice %662 {offsets = [0, 128], sizes = [8, 128], strides = [1, 1]} : vector<8x512xf32> to vector<8x128xf32>
    %670 = arith.negf %669 : vector<8x128xf32>
    %671 = math.exp %670 : vector<8x128xf32>
    %cst_232 = arith.constant 1.000000e+00 : f32
    %672 = vector.broadcast %cst_232 : f32 to vector<8x128xf32>
    %673 = arith.addf %672, %671 : vector<8x128xf32>
    %674 = arith.divf %672, %673 : vector<8x128xf32>
    %675 = vector.extract_strided_slice %662 {offsets = [0, 256], sizes = [8, 128], strides = [1, 1]} : vector<8x512xf32> to vector<8x128xf32>
    %676 = math.tanh %675 : vector<8x128xf32>
    %677 = vector.extract_strided_slice %662 {offsets = [0, 384], sizes = [8, 128], strides = [1, 1]} : vector<8x512xf32> to vector<8x128xf32>
    %678 = arith.negf %677 : vector<8x128xf32>
    %679 = math.exp %678 : vector<8x128xf32>
    %cst_233 = arith.constant 1.000000e+00 : f32
    %680 = vector.broadcast %cst_233 : f32 to vector<8x128xf32>
    %681 = arith.addf %680, %679 : vector<8x128xf32>
    %682 = arith.divf %680, %681 : vector<8x128xf32>
    %683 = arith.mulf %674, %650 : vector<8x128xf32>
    %684 = arith.mulf %668, %676 : vector<8x128xf32>
    %685 = arith.addf %683, %684 : vector<8x128xf32>
    %686 = math.tanh %685 : vector<8x128xf32>
    %687 = arith.mulf %682, %686 : vector<8x128xf32>
    %688 = arith.index_cast %c8_i32_225 : i32 to index
    %c0_234 = arith.constant 0 : index
    %c0_235 = arith.constant 0 : index
    %689 = vector.load %arg15[%688, %c0_234, %c0_235] : memref<9x8x128xf32, #tpu.memory_space<vmem>>, vector<1x8x128xf32>
    %690 = vector.shape_cast %689 : vector<1x8x128xf32> to vector<8x128xf32>
    %691 = vector.shape_cast %687 : vector<8x128xf32> to vector<1x8x128xf32>
    tpu.vector_store %arg15[%688, %c0_234, %c0_235], %691 {strides = array<i32>} : memref<9x8x128xf32, #tpu.memory_space<vmem>>, vector<1x8x128xf32>,
    %c9_i32_236 = arith.constant 9 : i32
    %c0_237 = arith.constant 0 : index
    %c0_238 = arith.constant 0 : index
    %c0_239 = arith.constant 0 : index
    %692 = vector.load %arg15[%c0_237, %c0_238, %c0_239] : memref<9x8x128xf32, #tpu.memory_space<vmem>>, vector<9x8x128xf32>
    %693 = vector.shape_cast %692 : vector<9x8x128xf32> to vector<72x128xf32>
    %c0_240 = arith.constant 0 : index
    %c0_241 = arith.constant 0 : index
    %694 = vector.load %arg12[%c0_240, %c0_241] : memref<128x128xf32, #tpu.memory_space<vmem>>, vector<128x128xf32>
    %cst_242 = arith.constant dense<0.000000e+00> : vector<72x128xf32>
    %695 = tpu.matmul %693, %694, %cst_242 {dimension_numbers = #tpu.dot_dimension_numbers<[1], [0], [0], [1], [0, 0, 1, 1], [], []>} : vector<72x128xf32>, vector<128x128xf32>, vector<72x128xf32> -> vector<72x128xf32>
    %c0_243 = arith.constant 0 : index
    %c0_244 = arith.constant 0 : index
    %696 = vector.load %arg13[%c0_243, %c0_244] : memref<1x128xf32, #tpu.memory_space<vmem>>, vector<1x128xf32>
    %697 = vector.broadcast %696 : vector<1x128xf32> to vector<72x128xf32>
    %698 = arith.addf %695, %697 : vector<72x128xf32>
    %699 = vector.shape_cast %698 : vector<72x128xf32> to vector<9x8x128xf32>
    %c0_245 = arith.constant 0 : index
    %c0_246 = arith.constant 0 : index
    %c0_247 = arith.constant 0 : index
    %700 = vector.load %arg14[%c0_245, %c0_246, %c0_247] : memref<9x8x128xf32, #tpu.memory_space<vmem>>, vector<9x8x128xf32>
    tpu.vector_store %arg14[%c0_245, %c0_246, %c0_247], %699 {strides = array<i32>} : memref<9x8x128xf32, #tpu.memory_space<vmem>>, vector<9x8x128xf32>,
    return
  }
}

</mosaic_0001>

<bundles_post_ra>
// kernel: tpu_custom_call.1
= control target key start
LH: loop header
LB: loop body
LE: loop exit
PB: predicated region body
PF: predicated region fallthrough
CT: control target
= control target key end

     0   :  { %19 = vsyncpa [#allocation5], 0  ;;  %s8448_s0 = inlined_call_operand.hbm [shape: f32[8,48], index: 0, kind: input, shape index: {}]   ;;  %s8449_s1 = inlined_call_operand.hbm [shape: f32[8,8,128], index: 1, kind: input, shape index: {}]   ;;  %s8450_s2 = inlined_call_operand.hbm [shape: f32[48,128], index: 2, kind: input, shape index: {}]   ;;  %s8451_s3 = inlined_call_operand.hbm [shape: f32[1,128], index: 3, kind: input, shape index: {}]   ;;  %s8452_s4 = inlined_call_operand.hbm [shape: f32[1,128], index: 4, kind: input, shape index: {}]   ;;  %s8453_s5 = inlined_call_operand.hbm [shape: f32[1,128], index: 5, kind: input, shape index: {}]   ;;  %s8454_s6 = inlined_call_operand.hbm [shape: f32[128,512], index: 6, kind: input, shape index: {}]   ;;  %s8455_s7 = inlined_call_operand.hbm [shape: f32[128,512], index: 7, kind: input, shape index: {}]   ;;  %s8456_s8 = inlined_call_operand.vmem [shape: f32[1,512], index: 8, kind: input, shape index: {}]   ;;  %s8457_s9 = inlined_call_operand.hbm [shape: f32[128,512], index: 9, kind: input, shape index: {}]   ;;  %s8458_s10 = inlined_call_operand.hbm [shape: f32[128,512], index: 10, kind: input, shape index: {}]   ;;  %s8459_s11 = inlined_call_operand.vmem [shape: f32[1,512], index: 11, kind: input, shape index: {}]   ;;  %s8460_s12 = inlined_call_operand.hbm [shape: f32[128,128], index: 12, kind: input, shape index: {}]   ;;  %s8461_s13 = inlined_call_operand.vmem [shape: f32[1,128], index: 13, kind: input, shape index: {}]   ;;  %s8462_s14 = inlined_call_operand.hbm [shape: f32[9,8,128], index: 14, kind: output, shape index: {}]  }
   0x1   :  { %20 = vsyncpa [#allocation8], 0 }
   0x2   :  { %21 = vsyncpa [#allocation11], 0 }
   0x3   :  { %22 = vsyncpa [#allocation14], 0 }
   0x4   :  { %23 = vsyncpa [#allocation17], 0 }
   0x5   :  { %24 = vsyncpa [#allocation20], 0  ;;  %s41_s15 = sshll.u32 %s8449_s1, 4  ;;  %s42_s15 = int_to_ptr.hbm [resolvable:$true] %s41_s15 }
   0x6   :  { %25 = vsyncpa [#allocation6], 0  ;;  %s5593_s16 = smov [#allocation7]   ;;  %s68_s20 = sshll.u32 %s8451_s3, 4  ;;  %s69_s20 = int_to_ptr.hbm [resolvable:$true] %s68_s20 }
   0x7   :  { %s43_s17 = sshll.u32 %s5593_s16, 4  ;;  %s5594_s21 = smov 128   ;;  %s44_s17 = int_to_ptr.vmem [resolvable:$true] %s43_s17 }
   0x8   :  { %s5595_s22 = smov 8   ;;  %s5596_s23 = smov [#allocation10]  }
   0x9   :  { %49 = dma.hbm_to_vmem [thread:$0]  %s42_s15, 1024, %s44_s17, [#allocation8], %s5594_s21, %s5594_s21, %s5595_s22  }
   0xa   :  { %s70_s24 = sshll.u32 %s5596_s23, 4  ;;  %s90_s26 = sshll.u32 %s8453_s5, 4  ;;  %s71_s24 = int_to_ptr.vmem [resolvable:$true] %s70_s24  ;;  %s91_s26 = int_to_ptr.hbm [resolvable:$true] %s90_s26 }
   0xb   :  { %73 = dma.hbm_to_vmem [thread:$0]  %s69_s20, 16, %s71_s24, [#allocation11]  }
   0xc   :  { %s5597_s27 = smov [#allocation13]   ;;  %s113_s30 = sshll.u32 %s8455_s7, 4  ;;  %s114_s30 = int_to_ptr.hbm [resolvable:$true] %s113_s30 }
   0xd   :  { %s92_s28 = sshll.u32 %s5597_s27, 4  ;;  %s5598_s15 = smov [#allocation16]   ;;  %s93_s28 = int_to_ptr.vmem [resolvable:$true] %s92_s28 }
   0xe   :  { %95 = dma.hbm_to_vmem [thread:$0]  %s91_s26, 16, %s93_s28, [#allocation14]  }
   0xf   :  { %s115_s16 = sshll.u32 %s5598_s15, 4  ;;  %s141_s19 = sshll.u32 %s8458_s10, 4  ;;  %s116_s16 = int_to_ptr.vmem [resolvable:$true] %s115_s16  ;;  %s142_s19 = int_to_ptr.hbm [resolvable:$true] %s141_s19 }
  0x10   :  { %s5599_s5 = smov 512   ;;  %s5600_s23 = smov 32  }
  0x11   :  { %121 = dma.hbm_to_vmem [thread:$0]  %s114_s30, 8192, %s116_s16, [#allocation17], %s5599_s5, %s5599_s5, %s5600_s23  }
  0x12   :  { %s31_s7 = sshll.u32 %s8448_s0, 4  ;;  %s5601_s25 = smov [#allocation19]   ;;  %s32_s7 = int_to_ptr.hbm [resolvable:$true] %s31_s7 }
  0x13   :  { %s143_s1 = sshll.u32 %s5601_s25, 4  ;;  %s5602_s10 = smov [#allocation4]   ;;  %s144_s1 = int_to_ptr.vmem [resolvable:$true] %s143_s1 }
  0x14   :  { %149 = dma.hbm_to_vmem [thread:$0]  %s142_s19, 8192, %s144_s1, [#allocation20], %s5599_s5, %s5599_s5, %s5600_s23  }
  0x15   :  { %s33_s26 = sshll.u32 %s5602_s10, 4  ;;  %s54_s3 = sshll.u32 %s8450_s2, 4  ;;  %s34_s26 = int_to_ptr.vmem [resolvable:$true] %s33_s26  ;;  %s55_s3 = int_to_ptr.hbm [resolvable:$true] %s54_s3 }
  0x16   :  { %36 = dma.hbm_to_vmem [thread:$0]  %s32_s7, 128, %s34_s26, [#allocation5]  }
  0x17   :  { %s79_s0 = sshll.u32 %s8452_s4, 4  ;;  %s5603_s15 = smov [#allocation9]   ;;  %s80_s0 = int_to_ptr.hbm [resolvable:$true] %s79_s0 }
  0x18   :  { %s56_s16 = sshll.u32 %s5603_s15, 4  ;;  %s5604_s17 = smov [#allocation12]   ;;  %s57_s16 = int_to_ptr.vmem [resolvable:$true] %s56_s16 }
  0x19   :  { %62 = dma.hbm_to_vmem [thread:$0]  %s55_s3, 768, %s57_s16, [#allocation8], %s5594_s21, %s5594_s21, %s5595_s22  }
  0x1a   :  { %s81_s18 = sshll.u32 %s5604_s17, 4  ;;  %s100_s2 = sshll.u32 %s8454_s6, 4  ;;  %s82_s18 = int_to_ptr.vmem [resolvable:$true] %s81_s18  ;;  %s101_s2 = int_to_ptr.hbm [resolvable:$true] %s100_s2 }
  0x1b   :  { %84 = dma.hbm_to_vmem [thread:$0]  %s80_s0, 16, %s82_s18, [#allocation11]  }
  0x1c   :  { %s128_s4 = sshll.u32 %s8457_s9, 4  ;;  %s5605_s25 = smov [#allocation15]   ;;  %s129_s4 = int_to_ptr.hbm [resolvable:$true] %s128_s4 }
  0x1d   :  { %s102_s1 = sshll.u32 %s5605_s25, 4  ;;  %s5606_s10 = smov [#allocation18]   ;;  %s103_s1 = int_to_ptr.vmem [resolvable:$true] %s102_s1 }
  0x1e   :  { %108 = dma.hbm_to_vmem [thread:$0]  %s101_s2, 8192, %s103_s1, [#allocation14], %s5599_s5, %s5599_s5, %s5600_s23  }
  0x1f   :  { %s130_s26 = sshll.u32 %s5606_s10, 4  ;;  %s156_s6 = sshll.u32 %s8460_s12, 4  ;;  %s131_s26 = int_to_ptr.vmem [resolvable:$true] %s130_s26  ;;  %s157_s6 = int_to_ptr.hbm [resolvable:$true] %s156_s6 }
  0x20   :  { %136 = dma.hbm_to_vmem [thread:$0]  %s129_s4, 8192, %s131_s26, [#allocation17], %s5599_s5, %s5599_s5, %s5600_s23  }
  0x21   :  { %s5607_s9 = smov [#allocation21]  }
  0x22   :  { %s158_s3 = sshll.u32 %s5607_s9, 4  ;;  %s159_s3 = int_to_ptr.vmem [resolvable:$true] %s158_s3 }
  0x23   :  { %164 = dma.hbm_to_vmem [thread:$0]  %s157_s6, 2048, %s159_s3, [#allocation20], %s5594_s21, %s5594_s21, %s5595_s22  }
  0x24   :  { %5579 = dma.done.wait [#allocation5], 128  }
  0x25   :  { %5580 = vsyncadd [#allocation5], 4294967168 }
  0x26   :  { %5581 = dma.done.wait [#allocation8], 1792  }
  0x27   :  { %5582 = vsyncadd [#allocation8], 4294965504 }
  0x28   :  { %5583 = dma.done.wait [#allocation11], 32  }
  0x29   :  { %5584 = vsyncadd [#allocation11], 4294967264 }
  0x2a   :  { %5585 = dma.done.wait [#allocation14], 8208  }
  0x2b   :  { %5586 = vsyncadd [#allocation14], 4294959088 }
  0x2c   :  { %5587 = dma.done.wait [#allocation17], 16384  }
  0x2d   :  { %5588 = vsyncadd [#allocation17], 4294950912 }
  0x2e   :  { %5589 = dma.done.wait [#allocation20], 10240  }
  0x2f   :  { %5590 = vsyncadd [#allocation20], 4294957056  ;;  %v217_v0 = vld [vmem:[#allocation9 + $0x28] sm:$0xff]  ;;  %v216_v1 = vld [vmem:[#allocation9 + $0x20] sm:$0xff]  ;;  %vm222_vm0 = vcmask 392192   ;;  %v246_v18 = vlaneseq  ;;  %v8463_v30 = vmov 0.0  }
  0x30   :  { %236 = vmatpush.msra.mxu0 %v217_v0  ;;  %v215_v2 = vld [vmem:[#allocation9 + $0x18] sm:$0xff]  ;;  %v214_v3 = vld [vmem:[#allocation9 + $0x10] sm:$0xff]  ;;  %v213_v4 = vld [vmem:[#allocation9 + $0x8] sm:$0xff]  ;;  %s4890_s16 = sshll.u32 %s8462_s14, 4  ;;  %s4891_s16 = int_to_ptr.hbm [resolvable:$true] %s4890_s16 }
  0x31   :  { %v212_v5 = vld [vmem:[#allocation9] sm:$0xff]  ;;  %v211_v6 = vld [vmem:[#allocation4] sm:$0xff]  ;;  %v247_v21 = vshrl.u32 %v246_v18, 7  ;;  %v4997_v24 = vld [vmem:[#allocation10] ss:$0 sm:$0xff] }
  0x32   :  { %237 = vmatpush.msra.mxu0 %v216_v1  ;;  %v378_v7 = vld [vmem:[#allocation15 + $0x1e0] sm:$0xff]  ;;  %v5739_v26 = vld [vmem:[#allocation7 + $0x20] sm:$0xff]  ;;  %v381_v28 = vld [vmem:[#allocation15 + $0x1f8] sm:$0xff] }
  0x33   :  { %4964 = vmatpush.msra.mxu3 %v378_v7  ;;  %392 = vmatpush.msra.mxu2 %v378_v7  ;;  %v374_v8 = vld [vmem:[#allocation15 + $0x1c0] sm:$0xff]  ;;  %vm248_vm1 = vcmp.lt.s32.totalorder %v247_v21, 2  ;;  %v380_v27 = vld [vmem:[#allocation15 + $0x1f0] sm:$0xff]  ;;  %v377_v34 = vld [vmem:[#allocation15 + $0x1d8] sm:$0xff] }
  0x34   :  { %238 = vmatpush.msra.mxu0 %v215_v2  ;;  %v370_v9 = vld [vmem:[#allocation15 + $0x1a0] sm:$0xff]  ;;  %v5743_v31 = vsel %vm248_vm1, 1.0, %v8463_v30  ;;  %v376_v33 = vld [vmem:[#allocation15 + $0x1d0] sm:$0xff]  ;;  %v373_v37 = vld [vmem:[#allocation15 + $0x1b8] sm:$0xff] }
  0x35   :  { %4965 = vmatpush.msra.mxu3 %v374_v8  ;;  %393 = vmatpush.msra.mxu2 %v374_v8  ;;  %v366_v10 = vld [vmem:[#allocation15 + $0x180] sm:$0xff]  ;;  %v372_v36 = vld [vmem:[#allocation15 + $0x1b0] sm:$0xff]  ;;  %v369_v40 = vld [vmem:[#allocation15 + $0x198] sm:$0xff] }
  0x36   :  { %239 = vmatpush.msra.mxu0 %v214_v3  ;;  %v362_v11 = vld [vmem:[#allocation15 + $0x160] sm:$0xff]  ;;  %v368_v39 = vld [vmem:[#allocation15 + $0x190] sm:$0xff]  ;;  %v365_v44 = vld [vmem:[#allocation15 + $0x178] sm:$0xff] }
  0x37   :  { %4966 = vmatpush.msra.mxu3 %v370_v9  ;;  %394 = vmatpush.msra.mxu2 %v370_v9  ;;  %v358_v12 = vld [vmem:[#allocation15 + $0x140] sm:$0xff]  ;;  %v5746_v41 = vld [vmem:[#allocation7 + $0x28] sm:$0xff] }
  0x38   :  { %240 = vmatpush.msra.mxu0 %v213_v4  ;;  %v354_v13 = vld [vmem:[#allocation15 + $0x120] sm:$0xff]  ;;  %v364_v43 = vld [vmem:[#allocation15 + $0x170] sm:$0xff]  ;;  %v361_v48 = vld [vmem:[#allocation15 + $0x158] sm:$0xff] }
  0x39   :  { %4967 = vmatpush.msra.mxu3 %v366_v10  ;;  %395 = vmatpush.msra.mxu2 %v366_v10  ;;  %v350_v14 = vld [vmem:[#allocation15 + $0x100] sm:$0xff]  ;;  %v360_v47 = vld [vmem:[#allocation15 + $0x150] sm:$0xff]  ;;  %v357_v52 = vld [vmem:[#allocation15 + $0x138] sm:$0xff] }
  0x3a   :  { %241 = vmatpush.msra.mxu0 %v212_v5  ;;  %v346_v15 = vld [vmem:[#allocation15 + $0xe0] sm:$0xff]  ;;  %v356_v51 = vld [vmem:[#allocation15 + $0x130] sm:$0xff]  ;;  %v353_v56 = vld [vmem:[#allocation15 + $0x118] sm:$0xff] }
  0x3b   :  { %4908 = vmatmul.msk.f32.vlgmr.msra.gmra.mxu0 %vm222_vm0, %v211_v6  ;;  %4968 = vmatpush.msra.mxu3 %v362_v11  ;;  %v342_v16 = vld [vmem:[#allocation15 + $0xc0] sm:$0xff]  ;;  %v352_v55 = vld [vmem:[#allocation15 + $0x110] sm:$0xff]  ;;  %v349_v61 = vld [vmem:[#allocation15 + $0xf8] sm:$0xff] }
  0x3c   :  { %396 = vmatpush.msra.mxu2 %v362_v11  ;;  %v338_v17 = vld [vmem:[#allocation15 + $0xa0] sm:$0xff]  ;;  %524 = vmatpush.msrb.mxu0 %v381_v28  ;;  %v348_v60 = vld [vmem:[#allocation15 + $0xf0] sm:$0xff]  ;;  %v345_v1 = vld [vmem:[#allocation15 + $0xd8] sm:$0xff] }
  0x3d   :  { %4969 = vmatpush.msra.mxu3 %v358_v12  ;;  %v334_v19 = vld [vmem:[#allocation15 + $0x80] sm:$0xff]  ;;  %v344_v0 = vld [vmem:[#allocation15 + $0xd0] sm:$0xff]  ;;  %v341_v5 = vld [vmem:[#allocation15 + $0xb8] sm:$0xff] }
  0x3e   :  { %397 = vmatpush.msra.mxu2 %v358_v12  ;;  %v330_v20 = vld [vmem:[#allocation15 + $0x60] sm:$0xff]  ;;  %525 = vmatpush.msrb.mxu0 %v377_v34  ;;  %v340_v4 = vld [vmem:[#allocation15 + $0xb0] sm:$0xff]  ;;  %v337_v9 = vld [vmem:[#allocation15 + $0x98] sm:$0xff] }
  0x3f   :  { %4970 = vmatpush.msra.mxu3 %v354_v13  ;;  %v326_v22 = vld [vmem:[#allocation15 + $0x40] sm:$0xff]  ;;  %v336_v8 = vld [vmem:[#allocation15 + $0x90] sm:$0xff]  ;;  %v329_v18 = vld [vmem:[#allocation15 + $0x58] sm:$0xff] }
  0x40   :  { %398 = vmatpush.msra.mxu2 %v354_v13  ;;  %v322_v23 = vld [vmem:[#allocation15 + $0x20] sm:$0xff]  ;;  %526 = vmatpush.msrb.mxu0 %v373_v37  ;;  %v332_v13 = vld [vmem:[#allocation15 + $0x70] sm:$0xff] }
  0x41   :  { %4971 = vmatpush.msra.mxu3 %v350_v14  ;;  %v318_v25 = vld [vmem:[#allocation15] sm:$0xff]  ;;  %v324_v21 = vld [vmem:[#allocation15 + $0x30] sm:$0xff] }
  0x42   :  { %399 = vmatpush.msra.mxu2 %v350_v14  ;;  %527 = vmatpush.msrb.mxu0 %v369_v40  ;;  %v5749_v45 = vld [vmem:[#allocation16 + $0x1e0] sm:$0xff]  ;;  %v333_v14 = vld [vmem:[#allocation15 + $0x78] sm:$0xff] }
  0x43   :  { %4972 = vmatpush.msra.mxu3 %v346_v15  ;;  %672 = vmatpush.msra.mxu1 %v5749_v45  ;;  %v5752_v49 = vld [vmem:[#allocation16 + $0x1c0] sm:$0xff] }
  0x44   :  { %400 = vmatpush.msra.mxu2 %v346_v15  ;;  %528 = vmatpush.msrb.mxu0 %v365_v44  ;;  %v5755_v53 = vld [vmem:[#allocation16 + $0x1a0] sm:$0xff]  ;;  %v363_v44 = vld [vmem:[#allocation15 + $0x168] sm:$0xff] }
  0x45   :  { %4973 = vmatpush.msra.mxu3 %v342_v16  ;;  %673 = vmatpush.msra.mxu1 %v5752_v49  ;;  %v5758_v57 = vld [vmem:[#allocation16 + $0x180] sm:$0xff] }
  0x46   :  { %401 = vmatpush.msra.mxu2 %v342_v16  ;;  %529 = vmatpush.msrb.mxu0 %v361_v48  ;;  %v5760_v58 = vld [vmem:[#allocation7 + $0x30] sm:$0xff]  ;;  %v5779_v11 = vld [vmem:[#allocation7 + $0x38] sm:$0xff] }
  0x47   :  { %4974 = vmatpush.msra.mxu3 %v338_v17  ;;  %674 = vmatpush.msra.mxu1 %v5755_v53  ;;  %v5764_v62 = vld [vmem:[#allocation16 + $0x160] sm:$0xff] }
  0x48   :  { %402 = vmatpush.msra.mxu2 %v338_v17  ;;  %530 = vmatpush.msrb.mxu0 %v357_v52  ;;  %v5767_v2 = vld [vmem:[#allocation16 + $0x140] sm:$0xff]  ;;  %v328_v17 = vld [vmem:[#allocation15 + $0x50] sm:$0xff]  ;;  %v347_v52 = vld [vmem:[#allocation15 + $0xe8] sm:$0xff] }
  0x49   :  { %4975 = vmatpush.msra.mxu3 %v334_v19  ;;  %675 = vmatpush.msra.mxu1 %v5758_v57  ;;  %v5772_v6 = vld [vmem:[#allocation16 + $0x120] sm:$0xff] }
  0x4a   :  { %403 = vmatpush.msra.mxu2 %v334_v19  ;;  %531 = vmatpush.msrb.mxu0 %v353_v56  ;;  %v5777_v10 = vld [vmem:[#allocation16 + $0x100] sm:$0xff] }
  0x4b   :  { %4976 = vmatpush.msra.mxu3 %v330_v20  ;;  %676 = vmatpush.msra.mxu1 %v5764_v62  ;;  %v5783_v15 = vld [vmem:[#allocation16 + $0xe0] sm:$0xff] }
  0x4c   :  { %404 = vmatpush.msra.mxu2 %v330_v20  ;;  %532 = vmatpush.msrb.mxu0 %v349_v61  ;;  %v5786_v19 = vld [vmem:[#allocation16 + $0xc0] sm:$0xff]  ;;  %v4999_v61 = vld [vmem:[#allocation13] ss:$0 sm:$0xff] }
  0x4d   :  { %4977 = vmatpush.msra.mxu3 %v326_v22  ;;  %677 = vmatpush.msra.mxu1 %v5767_v2  ;;  %v5797_v34 = vld [vmem:[#allocation16 + $0x40] sm:$0xff] }
  0x4e   :  { %405 = vmatpush.msra.mxu2 %v326_v22  ;;  %533 = vmatpush.msrb.mxu0 %v345_v1  ;;  %v325_v22 = vld [vmem:[#allocation15 + $0x38] sm:$0xff]  ;;  %v5800_v37 = vld [vmem:[#allocation16 + $0x20] sm:$0xff] }
  0x4f   :  { %4978 = vmatpush.msra.mxu3 %v322_v23  ;;  %678 = vmatpush.msra.mxu1 %v5772_v6 }
  0x50   :  { %406 = vmatpush.msra.mxu2 %v322_v23  ;;  %534 = vmatpush.msrb.mxu0 %v341_v5  ;;  %v5789_v23 = vld [vmem:[#allocation16 + $0xa0] sm:$0xff]  ;;  %v5827_v5 = vld [vmem:[#allocation7] sm:$0xff] }
  0x51   :  { %4979 = vmatpush.msra.mxu3 %v318_v25  ;;  %679 = vmatpush.msra.mxu1 %v5777_v10 }
  0x52   :  { %407 = vmatpush.msra.mxu2 %v318_v25  ;;  %423 = vmatmul.f32.vlgmr.msra.gmra.mxu3 %v5739_v26  ;;  %v321_v25 = vld [vmem:[#allocation15 + $0x18] sm:$0xff] }
  0x53   :  { %480 = vmatpush.msrb.mxu3 %v380_v27  ;;  %535 = vmatpush.msrb.mxu0 %v337_v9  ;;  %v5791_v27 = vld [vmem:[#allocation16 + $0x80] sm:$0xff]  ;;  %v5843_v9 = vld [vmem:[#allocation16 + $0x1d0] sm:$0xff] }
  0x54   :  { %680 = vmatpush.msra.mxu1 %v5783_v15 }
  0x55   :  { %481 = vmatpush.msrb.mxu3 %v376_v33  ;;  %536 = vmatpush.msrb.mxu0 %v333_v14  ;;  %v375_v33 = vld [vmem:[#allocation15 + $0x1c8] sm:$0xff]  ;;  %v5854_v14 = vld [vmem:[#allocation16 + $0x1b8] sm:$0xff] }
  0x56   :  { %681 = vmatpush.msra.mxu1 %v5786_v19 }
  0x57   :  { %482 = vmatpush.msrb.mxu3 %v372_v36  ;;  %537 = vmatpush.msrb.mxu0 %v329_v18  ;;  %v371_v36 = vld [vmem:[#allocation15 + $0x1a8] sm:$0xff] }
  0x58   :  { %682 = vmatpush.msra.mxu1 %v5789_v23  ;;  %v5869_v18 = vld [vmem:[#allocation16 + $0x1a8] sm:$0xff] }
  0x59   :  { %483 = vmatpush.msrb.mxu3 %v368_v39  ;;  %538 = vmatpush.msrb.mxu0 %v325_v22  ;;  %v5803_v39 = vld [vmem:[#allocation16] sm:$0xff]  ;;  %v5880_v22 = vld [vmem:[#allocation16 + $0x158] sm:$0xff] }
  0x5a   :  { %426 = vmatmul.f32.gmra.mxu3 %v5746_v41  ;;  %683 = vmatpush.msra.mxu1 %v5791_v27 }
  0x5b   :  { %484 = vmatpush.msrb.mxu3 %v364_v43  ;;  %539 = vmatpush.msrb.mxu0 %v321_v25  ;;  %v367_v43 = vld [vmem:[#allocation15 + $0x188] sm:$0xff]  ;;  %v5888_v25 = vld [vmem:[#allocation7 + $0x10] sm:$0xff] }
  0x5d   :  { %485 = vmatpush.msrb.mxu3 %v360_v47  ;;  %v355_v47 = vld [vmem:[#allocation15 + $0x128] sm:$0xff] }
  0x5f   :  { %486 = vmatpush.msrb.mxu3 %v356_v51  ;;  %v351_v51 = vld [vmem:[#allocation15 + $0x108] sm:$0xff] }
  0x61   :  { %487 = vmatpush.msrb.mxu3 %v352_v55  ;;  %v343_v55 = vld [vmem:[#allocation15 + $0xc8] sm:$0xff] }
  0x62   :  { %429 = vmatmul.f32.gmra.mxu3 %v5760_v58 }
  0x63   :  { %488 = vmatpush.msrb.mxu3 %v348_v60 }
  0x65   :  { %489 = vmatpush.msrb.mxu3 %v344_v0 }
  0x67   :  { %490 = vmatpush.msrb.mxu3 %v340_v4  ;;  %v319_v4 = vld [vmem:[#allocation15 + $0x8] sm:$0xff] }
  0x69   :  { %491 = vmatpush.msrb.mxu3 %v336_v8  ;;  %v5838_v8 = vld [vmem:[#allocation16 + $0x1f8] sm:$0xff] }
  0x6a   :  { %432 = vmatmul.f32.gmra.mxu3 %v5779_v11  ;;  %732 = vmatpush.msra.mxu0 %v5838_v8 }
  0x6b   :  { %492 = vmatpush.msrb.mxu3 %v332_v13  ;;  %v5850_v13 = vld [vmem:[#allocation16 + $0x1b0] sm:$0xff] }
  0x6d   :  { %493 = vmatpush.msrb.mxu3 %v328_v17  ;;  %v5863_v17 = vld [vmem:[#allocation16 + $0x198] sm:$0xff] }
  0x6f   :  { %494 = vmatpush.msrb.mxu3 %v324_v21  ;;  %v5877_v21 = vld [vmem:[#allocation16 + $0x150] sm:$0xff] }
  0xb8   :  { %v243_v29 = vpop.f32.mrf.mxu0 }
  0xb9   :  { %v244_v32 = vadd.f32 %v4997_v24, %v243_v29  ;;  %v320_v24 = vld [vmem:[#allocation15 + $0x10] sm:$0xff] }
  0xba   :  { %495 = vmatpush.msrb.mxu3 %v320_v24  ;;  %v5885_v24 = vld [vmem:[#allocation16 + $0x130] sm:$0xff] }
  0xbb   :  { %v251_v35 = vmul.f32 %v5743_v31, %v244_v32 }
  0xbd   :  { %v252_v38 = vrot.slane %v251_v35, 4 }
  0xbf   :  { %v253_v42 = vadd.f32 %v252_v38, %v251_v35 }
  0xc1   :  { %v254_v46 = vrot.slane %v253_v42, 2 }
  0xc3   :  { %v255_v50 = vadd.f32 %v254_v46, %v253_v42  ;;  %v359_v46 = vld [vmem:[#allocation15 + $0x148] sm:$0xff] }
  0xc5   :  { %v256_v54 = vrot.slane %v255_v50, 1 }
  0xc7   :  { %v257_v59 = vadd.f32 %v256_v54, %v255_v50 }
  0xc9   :  { %v258_v63 = vmul.f32 0.5, %v257_v59  ;;  %v335_v59 = vld [vmem:[#allocation15 + $0x88] sm:$0xff] }
  0xcb   :  { %v5769_v3 = vsub.f32 %v244_v32, %v258_v63  ;;  %v5795_v32 = vld [vmem:[#allocation16 + $0x60] sm:$0xff]  ;;  %v331_v63 = vld [vmem:[#allocation15 + $0x68] sm:$0xff] }
  0xcc   :  { %684 = vmatpush.msra.mxu1 %v5795_v32 }
  0xcd   :  { %v260_v7 = vmul.f32 %v5743_v31, %v5769_v3  ;;  %v379_v31 = vld [vmem:[#allocation15 + $0x1e8] sm:$0xff] }
  0xce   :  { %436 = vmatpush.msrb.mxu2 %v379_v31  ;;  %685 = vmatpush.msra.mxu1 %v5797_v34  ;;  %v5903_v31 = vld [vmem:[#allocation16 + $0xf0] sm:$0xff] }
  0xcf   :  { %v261_v12 = vmul.f32 %v260_v7, %v260_v7  ;;  %v5836_v7 = vld [vmem:[#allocation16 + $0x1f0] sm:$0xff] }
  0xd0   :  { %437 = vmatpush.msrb.mxu2 %v375_v33  ;;  %686 = vmatpush.msra.mxu1 %v5800_v37  ;;  %v5909_v33 = vld [vmem:[#allocation16 + $0xd0] sm:$0xff] }
  0xd1   :  { %v262_v16 = vrot.slane %v261_v12, 4  ;;  %712 = vmatpush.msra.mxu3 %v5836_v7 }
  0xd2   :  { %438 = vmatpush.msrb.mxu2 %v371_v36  ;;  %687 = vmatpush.msra.mxu1 %v5803_v39  ;;  %v5917_v36 = vld [vmem:[#allocation16 + $0xb0] sm:$0xff] }
  0xd3   :  { %v263_v20 = vadd.f32 %v262_v16, %v261_v12  ;;  %688 = vmatmul.f32.vlgmr.msra.gmra.mxu1 %v8463_v30  ;;  %v5847_v12 = vld [vmem:[#allocation16 + $0x1c8] sm:$0xff]  ;;  %713 = vmatpush.msra.mxu3 %v5843_v9  ;;  %v5860_v16 = vld [vmem:[#allocation16 + $0x190] sm:$0xff] }
  0xd4   :  { %439 = vmatpush.msrb.mxu2 %v367_v43  ;;  %889 = vmatpush.msrb.mxu1 %v5749_v45  ;;  %v5937_v43 = vld [vmem:[#allocation16 + $0x128] sm:$0xff] }
  0xd5   :  { %v264_v28 = vrot.slane %v263_v20, 2  ;;  %714 = vmatpush.msra.mxu3 %v5850_v13 }
  0xd6   :  { %440 = vmatpush.msrb.mxu2 %v363_v44  ;;  %890 = vmatpush.msrb.mxu1 %v5752_v49  ;;  %v4998_v49 = vld [vmem:[#allocation12] ss:$0 sm:$0xff]  ;;  %v5941_v44 = vld [vmem:[#allocation16 + $0x50] sm:$0xff] }
  0xd7   :  { %v265_v29 = vadd.f32 %v264_v28, %v263_v20  ;;  %v273_v60 = vmul.f32 %v4998_v49, %v5769_v3  ;;  %v323_v3 = vld [vmem:[#allocation15 + $0x28] sm:$0xff]  ;;  %715 = vmatpush.msra.mxu3 %v5860_v16  ;;  %v5873_v20 = vld [vmem:[#allocation16 + $0x178] sm:$0xff] }
  0xd8   :  { %441 = vmatpush.msrb.mxu2 %v359_v46  ;;  %891 = vmatpush.msrb.mxu1 %v5755_v53  ;;  %v5895_v28 = vld [vmem:[#allocation16 + $0x138] sm:$0xff]  ;;  %v5980_v49 = vld [vmem:[#allocation16 + $0xc8] sm:$0xff] }
  0xd9   :  { %v266_v35 = vrot.slane %v265_v29, 1  ;;  %v5943_v46 = vld [vmem:[#allocation16 + $0x98] sm:$0xff] }
  0xda   :  { %442 = vmatpush.msrb.mxu2 %v355_v47  ;;  %892 = vmatpush.msrb.mxu1 %v5758_v57  ;;  %v339_v57 = vld [vmem:[#allocation15 + $0xa8] sm:$0xff]  ;;  %v5947_v47 = vld [vmem:[#allocation16 + $0x30] sm:$0xff] }
  0xdb   :  { %v267_v38 = vadd.f32 %v266_v35, %v265_v29  ;;  %v5901_v29 = vld [vmem:[#allocation16 + $0x118] sm:$0xff]  ;;  %v5914_v35 = vld [vmem:[#allocation16 + $0x148] sm:$0xff] }
  0xdc   :  { %443 = vmatpush.msrb.mxu2 %v351_v51  ;;  %893 = vmatpush.msrb.mxu1 %v5764_v62  ;;  %v5958_v51 = vld [vmem:[#allocation16 + $0x108] sm:$0xff] }
  0xdd   :  { %v268_v40 = vmul.f32 0.5, %v267_v38  ;;  %v5924_v38 = vld [vmem:[#allocation16 + $0x90] sm:$0xff] }
  0xde   :  { %444 = vmatpush.msrb.mxu2 %v347_v52  ;;  %894 = vmatpush.msrb.mxu1 %v5767_v2  ;;  %v327_v2 = vld [vmem:[#allocation15 + $0x48] sm:$0xff]  ;;  %v5961_v52 = vld [vmem:[#allocation16 + $0x58] sm:$0xff] }
  0xdf   :  { %v274_v42 = vadd.f32 1e-05, %v268_v40  ;;  %v5932_v40 = vld [vmem:[#allocation16 + $0xb8] sm:$0xff] }
  0xe0   :  { %445 = vmatpush.msrb.mxu2 %v343_v55  ;;  %895 = vmatpush.msrb.mxu1 %v5772_v6  ;;  %v5834_v6 = vld [vmem:[#allocation16 + $0x1e8] sm:$0xff]  ;;  %v5968_v55 = vld [vmem:[#allocation16 + $0x38] sm:$0xff] }
  0xe1   :  { %5001 = vrsqrt.f32 %v274_v42  ;;  %vm281_vm3 = vweird.f32 %v274_v42 }
  0xe2   :  { %896 = vmatpush.msrb.mxu1 %v5777_v10  ;;  %446 = vmatpush.msrb.mxu2 %v339_v57  ;;  %v5845_v10 = vld [vmem:[#allocation16 + $0x1d8] sm:$0xff]  ;;  %v5998_v57 = vld [vmem:[#allocation16 + $0x68] sm:$0xff] }
  0xe3   :  { %733 = vmatpush.msra.mxu0 %v5845_v10 }
  0xe4   :  { %897 = vmatpush.msrb.mxu1 %v5783_v15  ;;  %447 = vmatpush.msrb.mxu2 %v335_v59  ;;  %v5856_v15 = vld [vmem:[#allocation7 + $0x8] sm:$0xff]  ;;  %v6011_v59 = vld [vmem:[#allocation16 + $0x48] sm:$0xff] }
  0xe5   :  { %734 = vmatpush.msra.mxu0 %v5854_v14 }
  0xe6   :  { %898 = vmatpush.msrb.mxu1 %v5786_v19  ;;  %448 = vmatpush.msrb.mxu2 %v331_v63  ;;  %v5871_v19 = vld [vmem:[#allocation16 + $0x170] sm:$0xff] }
  0xe7   :  { %v5002_v48 = vpop.eup %5001  ;;  %735 = vmatpush.msra.mxu0 %v5863_v17  ;;  %716 = vmatpush.msra.mxu3 %v5871_v19 }
  0xe8   :  { %v276_v50 = vmul.f32 %v5002_v48, %v274_v42  ;;  %vm282_vm2 = vweird.f32 %v5002_v48  ;;  %899 = vmatpush.msrb.mxu1 %v5789_v23  ;;  %449 = vmatpush.msrb.mxu2 %v327_v2  ;;  %v5882_v23 = vld [vmem:[#allocation16 + $0x188] sm:$0xff]  ;;  %v5935_v42 = vld [vmem:[#allocation16 + $0x70] sm:$0xff] }
  0xe9   :  { %vm283_vm4 = vmor %vm281_vm3, %vm282_vm2  ;;  %736 = vmatpush.msra.mxu0 %v5873_v20  ;;  %717 = vmatpush.msra.mxu3 %v5877_v21 }
  0xea   :  { %v277_v54 = vmul.f32 %v5002_v48, %v276_v50  ;;  %900 = vmatpush.msrb.mxu1 %v5791_v27  ;;  %450 = vmatpush.msrb.mxu2 %v323_v3  ;;  %v5892_v27 = vld [vmem:[#allocation16 + $0x110] sm:$0xff]  ;;  %v5953_v50 = vld [vmem:[#allocation16 + $0x78] sm:$0xff] }
  0xeb   :  { %737 = vmatpush.msra.mxu0 %v5880_v22  ;;  %718 = vmatpush.msra.mxu3 %v5885_v24 }
  0xec   :  { %v278_v45 = vmul.f32 0.5, %v277_v54  ;;  %901 = vmatpush.msrb.mxu1 %v5795_v32  ;;  %451 = vmatpush.msrb.mxu2 %v319_v4  ;;  %v5905_v32 = vld [vmem:[#allocation16 + $0x168] sm:$0xff] }
  0xed   :  { %719 = vmatpush.msra.mxu3 %v5892_v27  ;;  %738 = vmatpush.msra.mxu0 %v5895_v28  ;;  %v5964_v54 = vld [vmem:[#allocation16 + $0xe8] sm:$0xff] }
  0xee   :  { %v279_v53 = vsub.f32 1.5, %v278_v45  ;;  %902 = vmatpush.msrb.mxu1 %v5797_v34  ;;  %v5912_v34 = vld [vmem:[#allocation16 + $0xf8] sm:$0xff] }
  0xef   :  { %720 = vmatpush.msra.mxu3 %v5903_v31  ;;  %739 = vmatpush.msra.mxu0 %v5901_v29  ;;  %v5975_v45 = vld [vmem:[#allocation16 + $0x18] sm:$0xff] }
  0xf0   :  { %v280_v56 = vmul.f32 %v5002_v48, %v279_v53  ;;  %903 = vmatpush.msrb.mxu1 %v5800_v37  ;;  %v5920_v37 = vld [vmem:[#allocation7 + $0x18] sm:$0xff] }
  0xf1   :  { %721 = vmatpush.msra.mxu3 %v5909_v33  ;;  %740 = vmatpush.msra.mxu0 %v5912_v34  ;;  %v5982_v53 = vld [vmem:[#allocation16 + $0xa8] sm:$0xff] }
  0xf2   :  { %v284_v62 = vsel %vm283_vm4, %v5002_v48, %v280_v56  ;;  %904 = vmatpush.msrb.mxu1 %v5803_v39  ;;  %v5926_v39 = vld [vmem:[#allocation16 + $0xd8] sm:$0xff]  ;;  %v5951_v48 = vld [vmem:[#allocation16 + $0x10] sm:$0xff]  ;;  %v5996_v56 = vld [vmem:[#allocation16 + $0x88] sm:$0xff] }
  0xf3   :  { %v285_v0 = vmul.f32 %v284_v62, %v273_v60  ;;  %722 = vmatpush.msra.mxu3 %v5917_v36  ;;  %741 = vmatpush.msra.mxu0 %v5926_v39  ;;  %v6013_v60 = vld [vmem:[#allocation16 + $0x28] sm:$0xff] }
  0xf5   :  { %v5819_v1 = vadd.f32 %v4999_v61, %v285_v0  ;;  %723 = vmatpush.msra.mxu3 %v5924_v38  ;;  %742 = vmatpush.msra.mxu0 %v5932_v40  ;;  %v6026_v61 = vld [vmem:[#allocation16 + $0x8] sm:$0xff] }
  0xf7   :  { %408 = vmatmul.f32.vlgmr.msra.gmra.mxu2 %v5819_v1  ;;  %496 = vmatmul.f32.vlgmr.msrb.gmra.mxu3 %v5819_v1 }
  0xf8   :  { %540 = vmatmul.f32.vlgmr.msrb.gmra.mxu0 %v5819_v1  ;;  %692 = vmatpush.msra.mxu2 %v5834_v6 }
  0xf9   :  { %724 = vmatpush.msra.mxu3 %v5935_v42  ;;  %743 = vmatpush.msra.mxu0 %v5943_v46 }
  0xfa   :  { %693 = vmatpush.msra.mxu2 %v5847_v12 }
  0xfb   :  { %725 = vmatpush.msra.mxu3 %v5941_v44  ;;  %744 = vmatpush.msra.mxu0 %v5953_v50 }
  0xfc   :  { %694 = vmatpush.msra.mxu2 %v5869_v18 }
  0xfd   :  { %726 = vmatpush.msra.mxu3 %v5947_v47  ;;  %745 = vmatpush.msra.mxu0 %v5961_v52 }
  0xfe   :  { %695 = vmatpush.msra.mxu2 %v5882_v23 }
  0xff   :  { %411 = vmatmul.f32.gmra.mxu2 %v5827_v5  ;;  %499 = vmatmul.f32.gmra.mxu3 %v5827_v5 }
 0x100   :  { %543 = vmatmul.f32.gmra.mxu0 %v5827_v5  ;;  %696 = vmatpush.msra.mxu2 %v5905_v32 }
 0x101   :  { %727 = vmatpush.msra.mxu3 %v5951_v48  ;;  %746 = vmatpush.msra.mxu0 %v5968_v55 }
 0x102   :  { %697 = vmatpush.msra.mxu2 %v5914_v35 }
 0x103   :  { %929 = vmatpush.msrb.mxu3 %v5836_v7  ;;  %747 = vmatpush.msra.mxu0 %v5975_v45 }
 0x104   :  { %698 = vmatpush.msra.mxu2 %v5937_v43 }
 0x105   :  { %930 = vmatpush.msrb.mxu3 %v5843_v9  ;;  %949 = vmatpush.msrb.mxu0 %v5838_v8 }
 0x106   :  { %699 = vmatpush.msra.mxu2 %v5958_v51 }
 0x107   :  { %414 = vmatmul.f32.gmra.mxu2 %v5856_v15  ;;  %502 = vmatmul.f32.gmra.mxu3 %v5856_v15 }
 0x108   :  { %546 = vmatmul.f32.gmra.mxu0 %v5856_v15  ;;  %700 = vmatpush.msra.mxu2 %v5964_v54 }
 0x109   :  { %931 = vmatpush.msrb.mxu3 %v5850_v13  ;;  %950 = vmatpush.msrb.mxu0 %v5845_v10 }
 0x10a   :  { %701 = vmatpush.msra.mxu2 %v5980_v49 }
 0x10b   :  { %932 = vmatpush.msrb.mxu3 %v5860_v16  ;;  %951 = vmatpush.msrb.mxu0 %v5854_v14 }
 0x10c   :  { %702 = vmatpush.msra.mxu2 %v5982_v53 }
 0x10d   :  { %933 = vmatpush.msrb.mxu3 %v5871_v19  ;;  %952 = vmatpush.msrb.mxu0 %v5863_v17 }
 0x10e   :  { %703 = vmatpush.msra.mxu2 %v5996_v56 }
 0x10f   :  { %417 = vmatmul.f32.gmra.mxu2 %v5888_v25  ;;  %505 = vmatmul.f32.gmra.mxu3 %v5888_v25 }
 0x110   :  { %549 = vmatmul.f32.gmra.mxu0 %v5888_v25  ;;  %934 = vmatpush.msrb.mxu3 %v5877_v21 }
 0x111   :  { %704 = vmatpush.msra.mxu2 %v5998_v57  ;;  %953 = vmatpush.msrb.mxu0 %v5873_v20 }
 0x112   :  { %935 = vmatpush.msrb.mxu3 %v5885_v24 }
 0x113   :  { %954 = vmatpush.msrb.mxu0 %v5880_v22  ;;  %705 = vmatpush.msra.mxu2 %v6011_v59 }
 0x114   :  { %936 = vmatpush.msrb.mxu3 %v5892_v27 }
 0x115   :  { %955 = vmatpush.msrb.mxu0 %v5895_v28  ;;  %706 = vmatpush.msra.mxu2 %v6013_v60 }
 0x116   :  { %937 = vmatpush.msrb.mxu3 %v5903_v31 }
 0x117   :  { %420 = vmatmul.f32.gmra.mxu2 %v5920_v37  ;;  %508 = vmatmul.f32.gmra.mxu3 %v5920_v37 }
 0x118   :  { %552 = vmatmul.f32.gmra.mxu0 %v5920_v37  ;;  %938 = vmatpush.msrb.mxu3 %v5909_v33 }
 0x119   :  { %956 = vmatpush.msrb.mxu0 %v5901_v29  ;;  %707 = vmatpush.msra.mxu2 %v6026_v61 }
 0x11a   :  { %939 = vmatpush.msrb.mxu3 %v5917_v36 }
 0x11b   :  { %957 = vmatpush.msrb.mxu0 %v5912_v34 }
 0x11c   :  { %940 = vmatpush.msrb.mxu3 %v5924_v38 }
 0x11d   :  { %958 = vmatpush.msrb.mxu0 %v5926_v39 }
 0x11e   :  { %941 = vmatpush.msrb.mxu3 %v5935_v42 }
 0x11f   :  { %452 = vmatmul.f32.vlgmr.msrb.gmra.mxu2 %v5819_v1  ;;  %511 = vmatmul.f32.gmra.mxu3 %v5739_v26 }
 0x120   :  { %555 = vmatmul.f32.gmra.mxu0 %v5739_v26  ;;  %909 = vmatpush.msrb.mxu2 %v5834_v6 }
 0x121   :  { %959 = vmatpush.msrb.mxu0 %v5932_v40  ;;  %942 = vmatpush.msrb.mxu3 %v5941_v44 }
 0x122   :  { %910 = vmatpush.msrb.mxu2 %v5847_v12 }
 0x123   :  { %960 = vmatpush.msrb.mxu0 %v5943_v46  ;;  %943 = vmatpush.msrb.mxu3 %v5947_v47 }
 0x124   :  { %911 = vmatpush.msrb.mxu2 %v5869_v18 }
 0x125   :  { %961 = vmatpush.msrb.mxu0 %v5953_v50  ;;  %944 = vmatpush.msrb.mxu3 %v5951_v48 }
 0x126   :  { %912 = vmatpush.msrb.mxu2 %v5882_v23 }
 0x127   :  { %455 = vmatmul.f32.gmra.mxu2 %v5827_v5  ;;  %514 = vmatmul.f32.gmra.mxu3 %v5746_v41 }
 0x128   :  { %558 = vmatmul.f32.gmra.mxu0 %v5746_v41  ;;  %913 = vmatpush.msrb.mxu2 %v5905_v32 }
 0x129   :  { %962 = vmatpush.msrb.mxu0 %v5961_v52 }
 0x12a   :  { %914 = vmatpush.msrb.mxu2 %v5914_v35 }
 0x12b   :  { %963 = vmatpush.msrb.mxu0 %v5968_v55 }
 0x12c   :  { %915 = vmatpush.msrb.mxu2 %v5937_v43 }
 0x12d   :  { %964 = vmatpush.msrb.mxu0 %v5975_v45 }
 0x12e   :  { %916 = vmatpush.msrb.mxu2 %v5958_v51 }
 0x12f   :  { %458 = vmatmul.f32.gmra.mxu2 %v5856_v15  ;;  %517 = vmatmul.f32.gmra.mxu3 %v5760_v58 }
 0x130   :  { %561 = vmatmul.f32.gmra.mxu0 %v5760_v58  ;;  %917 = vmatpush.msrb.mxu2 %v5964_v54 }
 0x132   :  { %918 = vmatpush.msrb.mxu2 %v5980_v49 }
 0x134   :  { %919 = vmatpush.msrb.mxu2 %v5982_v53 }
 0x136   :  { %920 = vmatpush.msrb.mxu2 %v5996_v56 }
 0x137   :  { %461 = vmatmul.f32.gmra.mxu2 %v5888_v25  ;;  %520 = vmatmul.f32.gmra.mxu3 %v5779_v11 }
 0x138   :  { %564 = vmatmul.f32.gmra.mxu0 %v5779_v11  ;;  %921 = vmatpush.msrb.mxu2 %v5998_v57 }
 0x13a   :  { %922 = vmatpush.msrb.mxu2 %v6011_v59 }
 0x13c   :  { %923 = vmatpush.msrb.mxu2 %v6013_v60 }
 0x13e   :  { %924 = vmatpush.msrb.mxu2 %v6026_v61 }
 0x13f   :  { %464 = vmatmul.f32.gmra.mxu2 %v5920_v37  ;;  %728 = vmatmul.f32.vlgmr.msra.gmra.mxu3 %v8463_v30 }
 0x140   :  { %748 = vmatmul.f32.vlgmr.msra.gmra.mxu0 %v8463_v30  ;;  %1146 = vmatpush.msra.mxu3 %v5836_v7 }
 0x141   :  { %1166 = vmatpush.msra.mxu0 %v5838_v8 }
 0x142   :  { %1147 = vmatpush.msra.mxu3 %v5843_v9 }
 0x143   :  { %1167 = vmatpush.msra.mxu0 %v5845_v10 }
 0x144   :  { %1148 = vmatpush.msra.mxu3 %v5850_v13 }
 0x145   :  { %1168 = vmatpush.msra.mxu0 %v5854_v14 }
 0x146   :  { %1149 = vmatpush.msra.mxu3 %v5860_v16 }
 0x147   :  { %467 = vmatmul.f32.gmra.mxu2 %v5739_v26  ;;  %1169 = vmatpush.msra.mxu0 %v5863_v17  ;;  %v6102_v26 = vpop.f32.mrf.mxu3 }
 0x148   :  { %1150 = vmatpush.msra.mxu3 %v5871_v19  ;;  %8591 = vst [vmem:[#allocation30_spill] sm:$0xff] %v6102_v26  ;;  %v6456_v26 = vld [vmem:[#allocation16 + $0x10] sm:$0xff] }
 0x149   :  { %1170 = vmatpush.msra.mxu0 %v5873_v20 }
 0x14a   :  { %1151 = vmatpush.msra.mxu3 %v5877_v21 }
 0x14b   :  { %1171 = vmatpush.msra.mxu0 %v5880_v22 }
 0x14c   :  { %1152 = vmatpush.msra.mxu3 %v5885_v24 }
 0x14d   :  { %1172 = vmatpush.msra.mxu0 %v5895_v28 }
 0x14e   :  { %1153 = vmatpush.msra.mxu3 %v5892_v27 }
 0x14f   :  { %470 = vmatmul.f32.gmra.mxu2 %v5746_v41  ;;  %1173 = vmatpush.msra.mxu0 %v5901_v29 }
 0x150   :  { %1154 = vmatpush.msra.mxu3 %v5903_v31  ;;  %v689_v29 = vpop.f32.mrf.mxu1 }
 0x151   :  { %1174 = vmatpush.msra.mxu0 %v5912_v34 }
 0x152   :  { %1155 = vmatpush.msra.mxu3 %v5909_v33 }
 0x153   :  { %1175 = vmatpush.msra.mxu0 %v5926_v39 }
 0x154   :  { %1156 = vmatpush.msra.mxu3 %v5917_v36 }
 0x155   :  { %1176 = vmatpush.msra.mxu0 %v5932_v40 }
 0x156   :  { %1157 = vmatpush.msra.mxu3 %v5924_v38 }
 0x157   :  { %473 = vmatmul.f32.gmra.mxu2 %v5760_v58  ;;  %1177 = vmatpush.msra.mxu0 %v5943_v46  ;;  %v6109_v58 = vpop.f32.mrf.mxu3 }
 0x158   :  { %1158 = vmatpush.msra.mxu3 %v5935_v42  ;;  %8592 = vst [vmem:[#allocation31_spill] sm:$0xff] %v6109_v58  ;;  %v6446_v58 = vld [vmem:[#allocation16 + $0x28] sm:$0xff] }
 0x159   :  { %1178 = vmatpush.msra.mxu0 %v5953_v50 }
 0x15a   :  { %1159 = vmatpush.msra.mxu3 %v5941_v44 }
 0x15b   :  { %1179 = vmatpush.msra.mxu0 %v5961_v52 }
 0x15c   :  { %1160 = vmatpush.msra.mxu3 %v5947_v47 }
 0x15d   :  { %1180 = vmatpush.msra.mxu0 %v5968_v55 }
 0x15e   :  { %1161 = vmatpush.msra.mxu3 %v5951_v48 }
 0x15f   :  { %476 = vmatmul.f32.gmra.mxu2 %v5779_v11  ;;  %1181 = vmatpush.msra.mxu0 %v5975_v45  ;;  %v6118_v0 = vpop.f32.mrf.mxu3 }
 0x160   :  { %8593 = vst [vmem:[#allocation32_spill] sm:$0xff] %v6118_v0 }
 0x167   :  { %708 = vmatmul.f32.vlgmr.msra.gmra.mxu2 %v8463_v30  ;;  %v6124_v3 = vpop.f32.mrf.mxu3 }
 0x168   :  { %1126 = vmatpush.msra.mxu2 %v5834_v6  ;;  %8595 = vst [vmem:[#allocation34_spill] sm:$0xff] %v6124_v3 }
 0x16a   :  { %1127 = vmatpush.msra.mxu2 %v5847_v12 }
 0x16c   :  { %1128 = vmatpush.msra.mxu2 %v5869_v18 }
 0x16e   :  { %1129 = vmatpush.msra.mxu2 %v5882_v23  ;;  %v382_v23 = vld [vmem:[%s8456_s8] sm:$0xf] }
 0x16f   :  { %v6161_v24 = vperm.slane %v382_v23, 0  ;;  %v6174_v36 = vperm.slane %v382_v23, 3 }
 0x170   :  { %1130 = vmatpush.msra.mxu2 %v5905_v32 }
 0x171   :  { %8607 = vst [vmem:[#allocation46_spill] sm:$0xff] %v6161_v24 }
 0x172   :  { %1131 = vmatpush.msra.mxu2 %v5914_v35  ;;  %8613 = vst [vmem:[#allocation52_spill] sm:$0xff] %v6174_v36 }
 0x174   :  { %1132 = vmatpush.msra.mxu2 %v5937_v43  ;;  %v6179_v43 = vperm.slane %v382_v23, 1 }
 0x175   :  { %v541_v62 = vpop.f32.mrf.mxu0 }
 0x176   :  { %1133 = vmatpush.msra.mxu2 %v5958_v51  ;;  %v542_v38 = vadd.f32 %v541_v62, %v6174_v36  ;;  %8615 = vst [vmem:[#allocation54_spill] sm:$0xff] %v6179_v43 }
 0x178   :  { %1134 = vmatpush.msra.mxu2 %v5964_v54 }
 0x17a   :  { %v409_v41 = vpop.f32.mrf.mxu2  ;;  %1135 = vmatpush.msra.mxu2 %v5980_v49  ;;  %v497_v6 = vpop.f32.mrf.mxu3 }
 0x17b   :  { %v410_v28 = vadd.f32 %v409_v41, %v6161_v24 }
 0x17c   :  { %1136 = vmatpush.msra.mxu2 %v5982_v53 }
 0x17d   :  { %v6120_v1 = vpop.f32.mrf.mxu0  ;;  %v752_v32 = vadd.f32 %v689_v29, %v410_v28 }
 0x17e   :  { %1137 = vmatpush.msra.mxu2 %v5996_v56 }
 0x17f   :  { %v4910_v34 = vmul.f32 -1.442695, %v752_v32 }
 0x180   :  { %1138 = vmatpush.msra.mxu2 %v5998_v57  ;;  %v6186_v57 = vperm.slane %v382_v23, 2 }
 0x181   :  { %5003 = vpow2.f32 %v4910_v34 }
 0x182   :  { %v6111_v11 = vpop.f32.mrf.mxu2  ;;  %1139 = vmatpush.msra.mxu2 %v6011_v59  ;;  %v6132_v9 = vpop.f32.mrf.mxu3  ;;  %8618 = vst [vmem:[#allocation57_spill] sm:$0xff] %v6186_v57  ;;  %v498_v41 = vadd.f32 %v497_v6, %v6186_v57 }
 0x184   :  { %1140 = vmatpush.msra.mxu2 %v6013_v60 }
 0x185   :  { %v6126_v4 = vpop.f32.mrf.mxu0 }
 0x186   :  { %1141 = vmatpush.msra.mxu2 %v6026_v61 }
 0x187   :  { %v5004_v42 = vpop.eup %5003 }
 0x188   :  { %v759_v47 = vadd.f32 1.0, %v5004_v42 }
 0x18a   :  { %v6116_v63 = vpop.f32.mrf.mxu2  ;;  %v6140_v14 = vpop.f32.mrf.mxu3  ;;  %vm765_vm6 = vweird.f32 %v759_v47  ;;  %v771_v23 = vand.u32 2147483648, %v759_v47  ;;  %v769_v42 = vand.u32 2147483647, %v759_v47 }
 0x18c   :  { %vm770_vm11 = vcmp.eq.f32.partialorder %v769_v42, 8.507059e+37  ;;  %v6207_v42 = vld [vmem:[#allocation16 + $0x180] sm:$0xff] }
 0x18d   :  { %v6130_v8 = vpop.f32.mrf.mxu0 }
 0x18e   :  { %8597 = vst [vmem:[#allocation36_spill] sm:$0xff] %v6130_v8 }
 0x192   :  { %v6122_v2 = vpop.f32.mrf.mxu2  ;;  %v6146_v17 = vpop.f32.mrf.mxu3 }
 0x193   :  { %8594 = vst [vmem:[#allocation33_spill] sm:$0xff] %v6122_v2 }
 0x194   :  { %8601 = vst [vmem:[#allocation40_spill] sm:$0xff] %v6146_v17 }
 0x195   :  { %v6136_v12 = vpop.f32.mrf.mxu0 }
 0x196   :  { %8598 = vst [vmem:[#allocation37_spill] sm:$0xff] %v6136_v12 }
 0x19a   :  { %v6128_v5 = vpop.f32.mrf.mxu2  ;;  %v6152_v20 = vpop.f32.mrf.mxu3 }
 0x19b   :  { %8596 = vst [vmem:[#allocation35_spill] sm:$0xff] %v6128_v5 }
 0x19c   :  { %8604 = vst [vmem:[#allocation43_spill] sm:$0xff] %v6152_v20  ;;  %v6458_v20 = vld [vmem:[#allocation16 + $0x18] sm:$0xff] }
 0x19d   :  { %v6142_v15 = vpop.f32.mrf.mxu0 }
 0x19e   :  { %8599 = vst [vmem:[#allocation38_spill] sm:$0xff] %v6142_v15  ;;  %v6454_v15 = vld [vmem:[#allocation16 + $0x8] sm:$0xff] }
 0x1a2   :  { %v453_v7 = vpop.f32.mrf.mxu2  ;;  %v6163_v25 = vpop.f32.mrf.mxu3 }
 0x1a3   :  { %8608 = vst [vmem:[#allocation47_spill] sm:$0xff] %v6163_v25  ;;  %v454_v48 = vadd.f32 %v453_v7, %v6179_v43  ;;  %v6448_v25 = vld [vmem:[#allocation16 + $0x30] sm:$0xff] }
 0x1a5   :  { %v6148_v18 = vpop.f32.mrf.mxu0 }
 0x1a6   :  { %8602 = vst [vmem:[#allocation41_spill] sm:$0xff] %v6148_v18  ;;  %v6438_v18 = vld [vmem:[#allocation16 + $0x58] sm:$0xff] }
 0x1aa   :  { %v6134_v10 = vpop.f32.mrf.mxu2  ;;  %v6172_v35 = vpop.f32.mrf.mxu3 }
 0x1ab   :  { %8612 = vst [vmem:[#allocation51_spill] sm:$0xff] %v6172_v35 }
 0x1ad   :  { %v6156_v22 = vpop.f32.mrf.mxu0 }
 0x1ae   :  { %8606 = vst [vmem:[#allocation45_spill] sm:$0xff] %v6156_v22 }
 0x1b2   :  { %v6138_v13 = vpop.f32.mrf.mxu2  ;;  %v6181_v44 = vpop.f32.mrf.mxu3 }
 0x1b3   :  { %8616 = vst [vmem:[#allocation55_spill] sm:$0xff] %v6181_v44 }
 0x1b5   :  { %v6168_v31 = vpop.f32.mrf.mxu0 }
 0x1b6   :  { %8610 = vst [vmem:[#allocation49_spill] sm:$0xff] %v6168_v31 }
 0x1ba   :  { %v6144_v16 = vpop.f32.mrf.mxu2  ;;  %v6184_v54 = vpop.f32.mrf.mxu3 }
 0x1bb   :  { %8600 = vst [vmem:[#allocation39_spill] sm:$0xff] %v6144_v16  ;;  %v504_v16 = vadd.f32 %v6140_v14, %v6186_v57 }
 0x1bc   :  { %8617 = vst [vmem:[#allocation56_spill] sm:$0xff] %v6184_v54 }
 0x1bd   :  { %v749_v37 = vpop.f32.mrf.mxu0 }
 0x1be   :  { %v755_v39 = vadd.f32 %v749_v37, %v542_v38 }
 0x1c0   :  { %v4912_v46 = vmul.f32 -1.442695, %v755_v39 }
 0x1c2   :  { %v6150_v19 = vpop.f32.mrf.mxu2  ;;  %5005 = vpow2.f32 %v4912_v46  ;;  %v729_v61 = vpop.f32.mrf.mxu3 }
 0x1c3   :  { %8603 = vst [vmem:[#allocation42_spill] sm:$0xff] %v6150_v19  ;;  %5007 = vrcp.f32 %v759_v47  ;;  %v754_v62 = vadd.f32 %v729_v61, %v498_v41 }
 0x1c8   :  { %v5006_v55 = vpop.eup %5005 }
 0x1c9   :  { %v5008_v45 = vpop.eup %5007  ;;  %v798_v49 = vadd.f32 1.0, %v5006_v55  ;;  %v772_v55 = vor.u32 1.1754944e-38, %v771_v23 }
 0x1ca   :  { %v6154_v21 = vpop.f32.mrf.mxu2  ;;  %v761_v56 = vmul.f32 %v5008_v45, %v759_v47  ;;  %vm766_vm5 = vweird.f32 %v5008_v45 }
 0x1cb   :  { %8605 = vst [vmem:[#allocation44_spill] sm:$0xff] %v6154_v21  ;;  %vm767_vm8 = vmor %vm765_vm6, %vm766_vm5  ;;  %vm804_vm14 = vweird.f32 %v798_v49  ;;  %v6450_v21 = vld [vmem:[#allocation16 + $0x38] sm:$0xff] }
 0x1cc   :  { %v762_v60 = vsub.f32 1.0, %v761_v56 }
 0x1ce   :  { %v763_v28 = vmul.f32 %v5008_v45, %v762_v60 }
 0x1d0   :  { %v764_v37 = vadd.f32 %v5008_v45, %v763_v28 }
 0x1d2   :  { %v6165_v27 = vpop.f32.mrf.mxu2  ;;  %v768_v6 = vsel %vm767_vm8, %v5008_v45, %v764_v37  ;;  %v808_v45 = vand.u32 2147483647, %v798_v49 }
 0x1d3   :  { %8609 = vst [vmem:[#allocation48_spill] sm:$0xff] %v6165_v27  ;;  %v773_v61 = vsel %vm770_vm11, %v772_v55, %v768_v6  ;;  %v6218_v6 = vld [vmem:[#allocation16 + $0x120] sm:$0xff]  ;;  %v6434_v27 = vld [vmem:[#allocation16 + $0x48] sm:$0xff] }
 0x1d4   :  { %vm809_vm0 = vcmp.eq.f32.partialorder %v808_v45, 8.507059e+37 }
 0x1da   :  { %v6170_v33 = vpop.f32.mrf.mxu2 }
 0x1db   :  { %8611 = vst [vmem:[#allocation50_spill] sm:$0xff] %v6170_v33 }
 0x1e2   :  { %v6177_v40 = vpop.f32.mrf.mxu2 }
 0x1e3   :  { %8614 = vst [vmem:[#allocation53_spill] sm:$0xff] %v6177_v40 }
 0x1ea   :  { %v709_v50 = vpop.f32.mrf.mxu2 }
 0x1eb   :  { %v753_v51 = vadd.f32 %v709_v50, %v454_v48 }
 0x1ed   :  { %v4911_v52 = vmul.f32 -1.442695, %v753_v51 }
 0x1ef   :  { %5009 = vpow2.f32 %v4911_v52 }
 0x1f0   :  { %5011 = vrcp.f32 %v798_v49 }
 0x1f5   :  { %v5010_v53 = vpop.eup %5009 }
 0x1f6   :  { %v778_v59 = vadd.f32 1.0, %v5010_v53  ;;  %v5012_v7 = vpop.eup %5011 }
 0x1f7   :  { %v800_v34 = vmul.f32 %v5012_v7, %v798_v49  ;;  %vm805_vm13 = vweird.f32 %v5012_v7 }
 0x1f8   :  { %5013 = vrcp.f32 %v778_v59  ;;  %v790_v39 = vand.u32 2147483648, %v778_v59  ;;  %v788_v48 = vand.u32 2147483647, %v778_v59  ;;  %vm784_vm9 = vweird.f32 %v778_v59  ;;  %vm806_vm15 = vmor %vm804_vm14, %vm805_vm13 }
 0x1f9   :  { %5015 = vtanh.f32 %v754_v62  ;;  %v801_v50 = vsub.f32 1.0, %v800_v34  ;;  %v810_v34 = vand.u32 2147483648, %v798_v49  ;;  %v6201_v49 = vld [vmem:[#allocation16 + $0x1c0] sm:$0xff] }
 0x1fa   :  { %v791_v53 = vor.u32 1.1754944e-38, %v790_v39  ;;  %vm789_vm12 = vcmp.eq.f32.partialorder %v788_v48, 8.507059e+37  ;;  %v6198_v39 = vld [vmem:[#allocation16 + $0x1e0] sm:$0xff] }
 0x1fb   :  { %v802_v60 = vmul.f32 %v5012_v7, %v801_v50  ;;  %v811_v37 = vor.u32 1.1754944e-38, %v810_v34  ;;  %1106 = vmatpush.msra.mxu1 %v6198_v39  ;;  %v6213_v48 = vld [vmem:[#allocation16 + $0x140] sm:$0xff]  ;;  %v413_v50 = vadd.f32 %v6111_v11, %v6161_v24  ;;  %v457_v11 = vadd.f32 %v6134_v10, %v6179_v43 }
 0x1fc   :  { %v6234_v34 = vld [vmem:[#allocation16 + $0xa0] sm:$0xff] }
 0x1fd   :  { %1107 = vmatpush.msra.mxu1 %v6201_v49  ;;  %v6240_v10 = vld [vmem:[#allocation16 + $0x60] sm:$0xff] }
 0x1fe   :  { %v5014_v29 = vpop.eup %5013 }
 0x1ff   :  { %v780_v32 = vmul.f32 %v5014_v29, %v778_v59  ;;  %vm785_vm7 = vweird.f32 %v5014_v29  ;;  %v5016_v52 = vpop.eup %5015 }
 0x200   :  { %vm786_vm10 = vmor %vm784_vm9, %vm785_vm7  ;;  %v815_v62 = vmul.f32 %v5016_v52, %v773_v61 }
 0x201   :  { %v781_v38 = vsub.f32 1.0, %v780_v32  ;;  %v803_v32 = vadd.f32 %v5012_v7, %v802_v60 }
 0x203   :  { %v782_v46 = vmul.f32 %v5014_v29, %v781_v38  ;;  %v807_v59 = vsel %vm806_vm15, %v5012_v7, %v803_v32  ;;  %v6204_v7 = vld [vmem:[#allocation16 + $0x1a0] sm:$0xff] }
 0x204   :  { %v812_v38 = vsel %vm809_vm0, %v811_v37, %v807_v59  ;;  %1108 = vmatpush.msra.mxu1 %v6204_v7  ;;  %v6237_v59 = vld [vmem:[#allocation16 + $0x80] sm:$0xff] }
 0x205   :  { %v783_v51 = vadd.f32 %v5014_v29, %v782_v46  ;;  %v6210_v46 = vld [vmem:[#allocation16 + $0x160] sm:$0xff] }
 0x206   :  { %1109 = vmatpush.msra.mxu1 %v6207_v42 }
 0x207   :  { %v787_v56 = vsel %vm786_vm10, %v5014_v29, %v783_v51  ;;  %v545_v51 = vadd.f32 %v6120_v1, %v6174_v36  ;;  %v6231_v1 = vld [vmem:[#allocation16 + $0xc0] sm:$0xff] }
 0x208   :  { %v792_v41 = vsel %vm789_vm12, %v791_v53, %v787_v56  ;;  %1110 = vmatpush.msra.mxu1 %v6210_v46  ;;  %v6223_v56 = vld [vmem:[#allocation16 + $0x100] sm:$0xff] }
 0x209   :  { %v814_v47 = vmul.f32 0.0, %v792_v41  ;;  %v6226_v41 = vld [vmem:[#allocation16 + $0xe0] sm:$0xff] }
 0x20a   :  { %1111 = vmatpush.msra.mxu1 %v6213_v48 }
 0x20b   :  { %v6189_v28 = vadd.f32 %v815_v62, %v814_v47 }
 0x20c   :  { %1112 = vmatpush.msra.mxu1 %v6218_v6 }
 0x20d   :  { %5017 = vtanh.f32 %v6189_v28 }
 0x20e   :  { %1113 = vmatpush.msra.mxu1 %v6223_v56 }
 0x210   :  { %1114 = vmatpush.msra.mxu1 %v6226_v41 }
 0x212   :  { %1115 = vmatpush.msra.mxu1 %v6231_v1 }
 0x213   :  { %v5018_v29 = vpop.eup %5017 }
 0x214   :  { %v6192_v23 = vmul.f32 %v5018_v29, %v812_v38  ;;  %1116 = vmatpush.msra.mxu1 %v6234_v34 }
 0x216   :  { %8619 = vst [vmem:[#allocation58_spill] sm:$0xff] %v6192_v23  ;;  %905 = vmatmul.f32.vlgmr.msrb.gmra.mxu1 %v6192_v23  ;;  %925 = vmatmul.f32.vlgmr.msrb.gmra.mxu2 %v6192_v23 }
 0x217   :  { %945 = vmatmul.f32.vlgmr.msrb.gmra.mxu3 %v6192_v23  ;;  %965 = vmatmul.f32.vlgmr.msrb.gmra.mxu0 %v6192_v23 }
 0x218   :  { %1117 = vmatpush.msra.mxu1 %v6237_v59 }
 0x21a   :  { %1118 = vmatpush.msra.mxu1 %v6240_v10 }
 0x293   :  { %v906_v52 = vpop.f32.mrf.mxu1 }
 0x294   :  { %v969_v55 = vadd.f32 %v906_v52, %v413_v50  ;;  %v966_v53 = vpop.f32.mrf.mxu0  ;;  %v6243_v50 = vld [vmem:[#allocation16 + $0x40] sm:$0xff] }
 0x295   :  { %v972_v60 = vadd.f32 %v966_v53, %v545_v51  ;;  %1119 = vmatpush.msra.mxu1 %v6243_v50  ;;  %v6248_v52 = vld [vmem:[#allocation16 + $0x20] sm:$0xff] }
 0x296   :  { %v4913_v61 = vmul.f32 -1.442695, %v969_v55  ;;  %v6251_v55 = vld [vmem:[#allocation16] sm:$0xff] }
 0x297   :  { %v4915_v62 = vmul.f32 -1.442695, %v972_v60  ;;  %1120 = vmatpush.msra.mxu1 %v6248_v52 }
 0x298   :  { %5019 = vpow2.f32 %v4913_v61 }
 0x299   :  { %5021 = vpow2.f32 %v4915_v62  ;;  %v926_v47 = vpop.f32.mrf.mxu2  ;;  %1121 = vmatpush.msra.mxu1 %v6251_v55 }
 0x29a   :  { %v970_v32 = vadd.f32 %v926_v47, %v457_v11  ;;  %v946_v47 = vpop.f32.mrf.mxu3 }
 0x29b   :  { %1324 = vmatpush.msrb.mxu1 %v6198_v39 }
 0x29c   :  { %v4914_v45 = vmul.f32 -1.442695, %v970_v32  ;;  %v501_v32 = vadd.f32 %v6132_v9, %v6186_v57 }
 0x29d   :  { %1325 = vmatpush.msrb.mxu1 %v6201_v49 }
 0x29e   :  { %v5020_v37 = vpop.eup %5019  ;;  %5023 = vpow2.f32 %v4914_v45 }
 0x29f   :  { %v5022_v29 = vpop.eup %5021  ;;  %v976_v38 = vadd.f32 1.0, %v5020_v37  ;;  %1326 = vmatpush.msrb.mxu1 %v6204_v7 }
 0x2a0   :  { %v6246_v51 = vadd.f32 1.0, %v5022_v29 }
 0x2a1   :  { %5025 = vrcp.f32 %v976_v38  ;;  %1327 = vmatpush.msrb.mxu1 %v6207_v42  ;;  %vm982_vm2 = vweird.f32 %v976_v38  ;;  %v986_v3 = vand.u32 2147483647, %v976_v38 }
 0x2a2   :  { %5027 = vrcp.f32 %v6246_v51  ;;  %vm1021_vm10 = vweird.f32 %v6246_v51 }
 0x2a3   :  { %1328 = vmatpush.msrb.mxu1 %v6210_v46  ;;  %vm987_vm6 = vcmp.eq.f32.partialorder %v986_v3, 8.507059e+37 }
 0x2a4   :  { %v5024_v53 = vpop.eup %5023 }
 0x2a5   :  { %v995_v60 = vadd.f32 1.0, %v5024_v53  ;;  %v971_v53 = vadd.f32 %v946_v47, %v501_v32  ;;  %1329 = vmatpush.msrb.mxu1 %v6213_v48 }
 0x2a7   :  { %v5026_v61 = vpop.eup %5025  ;;  %5029 = vrcp.f32 %v995_v60  ;;  %v1007_v9 = vand.u32 2147483648, %v995_v60  ;;  %1330 = vmatpush.msrb.mxu1 %v6218_v6  ;;  %vm1001_vm5 = vweird.f32 %v995_v60 }
 0x2a8   :  { %v978_v62 = vmul.f32 %v5026_v61, %v976_v38  ;;  %v5028_v45 = vpop.eup %5027  ;;  %vm983_vm1 = vweird.f32 %v5026_v61  ;;  %5031 = vtanh.f32 %v971_v53 }
 0x2a9   :  { %v1017_v40 = vmul.f32 %v5028_v45, %v6246_v51  ;;  %vm6264_vm3 = vmor %vm982_vm2, %vm983_vm1  ;;  %1331 = vmatpush.msrb.mxu1 %v6223_v56  ;;  %v1008_v44 = vor.u32 1.1754944e-38, %v1007_v9  ;;  %vm1022_vm9 = vweird.f32 %v5028_v45  ;;  %v6365_v9 = vld [vmem:[#allocation16 + $0x128] sm:$0xff] }
 0x2aa   :  { %v979_v11 = vsub.f32 1.0, %v978_v62  ;;  %v988_v62 = vand.u32 2147483648, %v976_v38  ;;  %vm1023_vm11 = vmor %vm1021_vm10, %vm1022_vm9 }
 0x2ab   :  { %v1018_v23 = vsub.f32 1.0, %v1017_v40  ;;  %1332 = vmatpush.msrb.mxu1 %v6226_v41 }
 0x2ac   :  { %v980_v37 = vmul.f32 %v5026_v61, %v979_v11 }
 0x2ad   :  { %v5030_v29 = vpop.eup %5029  ;;  %v1019_v53 = vmul.f32 %v5028_v45, %v1018_v23  ;;  %1333 = vmatpush.msrb.mxu1 %v6231_v1 }
 0x2ae   :  { %v997_v30 = vmul.f32 %v5030_v29, %v995_v60  ;;  %v981_v54 = vadd.f32 %v5026_v61, %v980_v37  ;;  %vm1002_vm4 = vweird.f32 %v5030_v29  ;;  %v1005_v37 = vand.u32 2147483647, %v995_v60 }
 0x2af   :  { %vm1003_vm7 = vmor %vm1001_vm5, %vm1002_vm4  ;;  %1334 = vmatpush.msrb.mxu1 %v6234_v34  ;;  %v1020_v3 = vadd.f32 %v5028_v45, %v1019_v53  ;;  %v1027_v60 = vand.u32 2147483648, %v6246_v51  ;;  %v6378_v53 = vld [vmem:[#allocation16 + $0x110] sm:$0xff] }
 0x2b0   :  { %v998_v31 = vsub.f32 1.0, %v997_v30  ;;  %v985_v32 = vsel %vm6264_vm3, %v5026_v61, %v981_v54  ;;  %v989_v30 = vor.u32 1.1754944e-38, %v988_v62  ;;  %vm1006_vm8 = vcmp.eq.f32.partialorder %v1005_v37, 8.507059e+37 }
 0x2b1   :  { %1335 = vmatpush.msrb.mxu1 %v6237_v59  ;;  %v416_v62 = vadd.f32 %v6116_v63, %v6161_v24  ;;  %v548_v37 = vadd.f32 %v6126_v4, %v6174_v36  ;;  %v6376_v63 = vld [vmem:[#allocation16 + $0x108] sm:$0xff] }
 0x2b2   :  { %v999_v47 = vmul.f32 %v5030_v29, %v998_v31  ;;  %v990_v33 = vsel %vm987_vm6, %v989_v30, %v985_v32  ;;  %v5032_v31 = vpop.eup %5031  ;;  %v6369_v32 = vld [vmem:[#allocation16 + $0x138] sm:$0xff] }
 0x2b3   :  { %v1032_v11 = vmul.f32 %v5032_v31, %v990_v33  ;;  %1336 = vmatpush.msrb.mxu1 %v6240_v10  ;;  %v1024_v33 = vsel %vm1023_vm11, %v5028_v45, %v1020_v3  ;;  %v6358_v45 = vld [vmem:[#allocation16 + $0x158] sm:$0xff]  ;;  %v6387_v3 = vld [vmem:[#allocation16 + $0xf0] sm:$0xff] }
 0x2b4   :  { %v1000_v38 = vadd.f32 %v5030_v29, %v999_v47  ;;  %v6367_v47 = vld [vmem:[#allocation16 + $0x130] sm:$0xff] }
 0x2b5   :  { %1337 = vmatpush.msrb.mxu1 %v6243_v50 }
 0x2b6   :  { %v1004_v22 = vsel %vm1003_vm7, %v5030_v29, %v1000_v38 }
 0x2b7   :  { %v1009_v54 = vsel %vm1006_vm8, %v1008_v44, %v1004_v22  ;;  %v1025_v22 = vand.u32 2147483647, %v6246_v51  ;;  %v1028_v44 = vor.u32 1.1754944e-38, %v1027_v60  ;;  %1338 = vmatpush.msrb.mxu1 %v6248_v52  ;;  %v6349_v51 = vld [vmem:[#allocation16 + $0x178] sm:$0xff] }
 0x2b8   :  { %v1031_v61 = vmul.f32 %v1009_v54, %v6189_v28  ;;  %8624 = vst [vmem:[#allocation61_spill] sm:$0xff] %v6349_v51  ;;  %v6380_v54 = vld [vmem:[#allocation16 + $0x118] sm:$0xff] }
 0x2b9   :  { %vm1026_vm12 = vcmp.eq.f32.partialorder %v1025_v22, 8.507059e+37  ;;  %1339 = vmatpush.msrb.mxu1 %v6251_v55  ;;  %v6389_v60 = vld [vmem:[#allocation16 + $0xf8] sm:$0xff] }
 0x2ba   :  { %v6275_v40 = vadd.f32 %v1032_v11, %v1031_v61  ;;  %v1029_v23 = vsel %vm1026_vm12, %v1028_v44, %v1024_v33  ;;  %v6385_v11 = vld [vmem:[#allocation16 + $0xe8] sm:$0xff]  ;;  %v460_v33 = vadd.f32 %v6138_v13, %v6179_v43  ;;  %v6407_v13 = vld [vmem:[#allocation16 + $0xb0] sm:$0xff] }
 0x2bb   :  { %v6396_v44 = vld [vmem:[#allocation16 + $0xc8] sm:$0xff] }
 0x2bc   :  { %5033 = vtanh.f32 %v6275_v40 }
 0x2c2   :  { %v5034_v28 = vpop.eup %5033 }
 0x2c3   :  { %v6286_v29 = vmul.f32 %v5034_v28, %v1029_v23  ;;  %v6398_v28 = vld [vmem:[#allocation16 + $0xd0] sm:$0xff]  ;;  %v6400_v23 = vld [vmem:[#allocation16 + $0xd8] sm:$0xff] }
 0x2c5   :  { %8622 = vst [vmem:[#allocation59_spill] sm:$0xff] %v6286_v29  ;;  %1122 = vmatmul.f32.vlgmr.msra.gmra.mxu1 %v6286_v29  ;;  %1142 = vmatmul.f32.vlgmr.msra.gmra.mxu2 %v6286_v29 }
 0x2c6   :  { %1162 = vmatmul.f32.vlgmr.msra.gmra.mxu3 %v6286_v29  ;;  %1182 = vmatmul.f32.vlgmr.msra.gmra.mxu0 %v6286_v29  ;;  %v6425_v29 = vld [vmem:[#allocation16 + $0x70] sm:$0xff] }
 0x2c7   :  { %1542 = vmatpush.msra.mxu1 %v6198_v39  ;;  %v6309_v39 = vld [vmem:[#allocation16 + $0x1e8] sm:$0xff] }
 0x2c8   :  { %1344 = vmatpush.msrb.mxu2 %v6309_v39 }
 0x2c9   :  { %1543 = vmatpush.msra.mxu1 %v6201_v49  ;;  %v6311_v49 = vld [vmem:[#allocation16 + $0x1f0] sm:$0xff] }
 0x2ca   :  { %1364 = vmatpush.msrb.mxu3 %v6311_v49 }
 0x2cb   :  { %1544 = vmatpush.msra.mxu1 %v6204_v7  ;;  %v6313_v7 = vld [vmem:[#allocation16 + $0x1f8] sm:$0xff] }
 0x2cc   :  { %1384 = vmatpush.msrb.mxu0 %v6313_v7 }
 0x2cd   :  { %1545 = vmatpush.msra.mxu1 %v6207_v42  ;;  %v6318_v42 = vld [vmem:[#allocation16 + $0x1c8] sm:$0xff] }
 0x2ce   :  { %1345 = vmatpush.msrb.mxu2 %v6318_v42 }
 0x2cf   :  { %1546 = vmatpush.msra.mxu1 %v6210_v46  ;;  %v6320_v46 = vld [vmem:[#allocation16 + $0x1d0] sm:$0xff] }
 0x2d0   :  { %1365 = vmatpush.msrb.mxu3 %v6320_v46 }
 0x2d1   :  { %1547 = vmatpush.msra.mxu1 %v6213_v48  ;;  %v6322_v48 = vld [vmem:[#allocation16 + $0x1d8] sm:$0xff] }
 0x2d2   :  { %1385 = vmatpush.msrb.mxu0 %v6322_v48 }
 0x2d3   :  { %1548 = vmatpush.msra.mxu1 %v6218_v6  ;;  %v6327_v6 = vld [vmem:[#allocation16 + $0x1a8] sm:$0xff] }
 0x2d4   :  { %1346 = vmatpush.msrb.mxu2 %v6327_v6 }
 0x2d5   :  { %1549 = vmatpush.msra.mxu1 %v6223_v56  ;;  %v6329_v56 = vld [vmem:[#allocation16 + $0x1b0] sm:$0xff] }
 0x2d6   :  { %1366 = vmatpush.msrb.mxu3 %v6329_v56 }
 0x2d7   :  { %1550 = vmatpush.msra.mxu1 %v6226_v41  ;;  %v6331_v41 = vld [vmem:[#allocation16 + $0x1b8] sm:$0xff] }
 0x2d8   :  { %1386 = vmatpush.msrb.mxu0 %v6331_v41 }
 0x2d9   :  { %1551 = vmatpush.msra.mxu1 %v6231_v1  ;;  %v6336_v1 = vld [vmem:[#allocation16 + $0x188] sm:$0xff] }
 0x2da   :  { %1347 = vmatpush.msrb.mxu2 %v6336_v1 }
 0x2db   :  { %1552 = vmatpush.msra.mxu1 %v6234_v34  ;;  %v6338_v34 = vld [vmem:[#allocation16 + $0x190] sm:$0xff] }
 0x2dc   :  { %1367 = vmatpush.msrb.mxu3 %v6338_v34 }
 0x2dd   :  { %1553 = vmatpush.msra.mxu1 %v6237_v59  ;;  %v6340_v59 = vld [vmem:[#allocation16 + $0x198] sm:$0xff] }
 0x2de   :  { %1387 = vmatpush.msrb.mxu0 %v6340_v59 }
 0x2df   :  { %1554 = vmatpush.msra.mxu1 %v6240_v10  ;;  %v6345_v10 = vld [vmem:[#allocation16 + $0x168] sm:$0xff] }
 0x2e0   :  { %1348 = vmatpush.msrb.mxu2 %v6345_v10  ;;  %1388 = vmatpush.msrb.mxu0 %v6349_v51 }
 0x2e1   :  { %1555 = vmatpush.msra.mxu1 %v6243_v50  ;;  %v6347_v50 = vld [vmem:[#allocation16 + $0x170] sm:$0xff] }
 0x2e2   :  { %8623 = vst [vmem:[#allocation60_spill] sm:$0xff] %v6347_v50  ;;  %1368 = vmatpush.msrb.mxu3 %v6347_v50  ;;  %1389 = vmatpush.msrb.mxu0 %v6358_v45 }
 0x2e3   :  { %1556 = vmatpush.msra.mxu1 %v6248_v52  ;;  %v6354_v52 = vld [vmem:[#allocation16 + $0x148] sm:$0xff] }
 0x2e4   :  { %8625 = vst [vmem:[#allocation62_spill] sm:$0xff] %v6354_v52  ;;  %1349 = vmatpush.msrb.mxu2 %v6354_v52  ;;  %1390 = vmatpush.msrb.mxu0 %v6369_v32 }
 0x2e5   :  { %1557 = vmatpush.msra.mxu1 %v6251_v55  ;;  %v6356_v55 = vld [vmem:[#allocation16 + $0x150] sm:$0xff] }
 0x2e6   :  { %1369 = vmatpush.msrb.mxu3 %v6356_v55  ;;  %1350 = vmatpush.msrb.mxu2 %v6365_v9 }
 0x2e7   :  { %1391 = vmatpush.msrb.mxu0 %v6380_v54 }
 0x2e8   :  { %1370 = vmatpush.msrb.mxu3 %v6367_v47  ;;  %1351 = vmatpush.msrb.mxu2 %v6376_v63 }
 0x2e9   :  { %1392 = vmatpush.msrb.mxu0 %v6389_v60 }
 0x2ea   :  { %1371 = vmatpush.msrb.mxu3 %v6378_v53  ;;  %1352 = vmatpush.msrb.mxu2 %v6385_v11 }
 0x2eb   :  { %1393 = vmatpush.msrb.mxu0 %v6400_v23 }
 0x2ec   :  { %1372 = vmatpush.msrb.mxu3 %v6387_v3  ;;  %1353 = vmatpush.msrb.mxu2 %v6396_v44 }
 0x2ee   :  { %1373 = vmatpush.msrb.mxu3 %v6398_v28 }
 0x2f0   :  { %1374 = vmatpush.msrb.mxu3 %v6407_v13 }
 0x342   :  { %v1123_v30 = vpop.f32.mrf.mxu1 }
 0x343   :  { %v1186_v38 = vadd.f32 %v1123_v30, %v416_v62  ;;  %v1183_v31 = vpop.f32.mrf.mxu0  ;;  %v6405_v30 = vld [vmem:[#allocation16 + $0xa8] sm:$0xff] }
 0x344   :  { %v1189_v61 = vadd.f32 %v1183_v31, %v548_v37  ;;  %1354 = vmatpush.msrb.mxu2 %v6405_v30 }
 0x345   :  { %v4916_v4 = vmul.f32 -1.442695, %v1186_v38  ;;  %v6409_v38 = vld [vmem:[#allocation16 + $0xb8] sm:$0xff] }
 0x346   :  { %v4918_v22 = vmul.f32 -1.442695, %v1189_v61  ;;  %1394 = vmatpush.msrb.mxu0 %v6409_v38  ;;  %v6414_v61 = vld [vmem:[#allocation16 + $0x88] sm:$0xff] }
 0x347   :  { %5035 = vpow2.f32 %v4916_v4  ;;  %v6416_v4 = vld [vmem:[#allocation16 + $0x90] sm:$0xff]  ;;  %1355 = vmatpush.msrb.mxu2 %v6414_v61 }
 0x348   :  { %5037 = vpow2.f32 %v4918_v22  ;;  %v1143_v62 = vpop.f32.mrf.mxu2  ;;  %v6418_v22 = vld [vmem:[#allocation16 + $0x98] sm:$0xff]  ;;  %1375 = vmatpush.msrb.mxu3 %v6416_v4 }
 0x349   :  { %v1187_v37 = vadd.f32 %v1143_v62, %v460_v33  ;;  %1395 = vmatpush.msrb.mxu0 %v6418_v22  ;;  %v6423_v62 = vld [vmem:[#allocation16 + $0x68] sm:$0xff]  ;;  %v1163_v17 = vpop.f32.mrf.mxu3 }
 0x34a   :  { %1356 = vmatpush.msrb.mxu2 %v6423_v62  ;;  %1376 = vmatpush.msrb.mxu3 %v6425_v29  ;;  %v1188_v2 = vadd.f32 %v1163_v17, %v504_v16 }
 0x34b   :  { %v4917_v31 = vmul.f32 -1.442695, %v1187_v37  ;;  %v6427_v37 = vld [vmem:[#allocation16 + $0x78] sm:$0xff] }
 0x34c   :  { %1396 = vmatpush.msrb.mxu0 %v6427_v37  ;;  %1357 = vmatpush.msrb.mxu2 %v6434_v27 }
 0x34d   :  { %v5036_v33 = vpop.eup %5035  ;;  %5039 = vpow2.f32 %v4917_v31  ;;  %v6436_v31 = vld [vmem:[#allocation16 + $0x50] sm:$0xff] }
 0x34e   :  { %v5038_v0 = vpop.eup %5037  ;;  %v6429_v35 = vadd.f32 1.0, %v5036_v33  ;;  %1377 = vmatpush.msrb.mxu3 %v6436_v31  ;;  %1397 = vmatpush.msrb.mxu0 %v6438_v18 }
 0x34f   :  { %v6443_v33 = vadd.f32 1.0, %v5038_v0  ;;  %1358 = vmatpush.msrb.mxu2 %v6446_v58 }
 0x350   :  { %5041 = vrcp.f32 %v6429_v35  ;;  %1378 = vmatpush.msrb.mxu3 %v6448_v25  ;;  %1398 = vmatpush.msrb.mxu0 %v6450_v21  ;;  %v1205_v57 = vand.u32 2147483648, %v6429_v35  ;;  %vm1199_vm14 = vweird.f32 %v6429_v35  ;;  %v1203_v16 = vand.u32 2147483647, %v6429_v35 }
 0x351   :  { %1359 = vmatpush.msrb.mxu2 %v6454_v15  ;;  %5043 = vrcp.f32 %v6443_v33  ;;  %vm1238_vm6 = vweird.f32 %v6443_v33 }
 0x352   :  { %1379 = vmatpush.msrb.mxu3 %v6456_v26  ;;  %1399 = vmatpush.msrb.mxu0 %v6458_v20  ;;  %vm1204_vm2 = vcmp.eq.f32.partialorder %v1203_v16, 8.507059e+37 }
 0x353   :  { %v5040_v0 = vpop.eup %5039  ;;  %1562 = vmatpush.msra.mxu2 %v6309_v39 }
 0x354   :  { %v6461_v19 = vadd.f32 1.0, %v5040_v0  ;;  %1582 = vmatpush.msra.mxu3 %v6311_v49  ;;  %1602 = vmatpush.msra.mxu0 %v6313_v7 }
 0x355   :  { %1563 = vmatpush.msra.mxu2 %v6318_v42 }
 0x356   :  { %v5042_v12 = vpop.eup %5041  ;;  %5045 = vrcp.f32 %v6461_v19  ;;  %1583 = vmatpush.msra.mxu3 %v6320_v46  ;;  %1603 = vmatpush.msra.mxu0 %v6322_v48  ;;  %vm1218_vm1 = vweird.f32 %v6461_v19 }
 0x357   :  { %v1195_v0 = vmul.f32 %v5042_v12, %v6429_v35  ;;  %1564 = vmatpush.msra.mxu2 %v6327_v6  ;;  %v6480_v43 = vpop.eup %5043  ;;  %vm1200_vm13 = vweird.f32 %v5042_v12  ;;  %5047 = vtanh.f32 %v1188_v2  ;;  %v1222_v35 = vand.u32 2147483647, %v6461_v19 }
 0x358   :  { %1584 = vmatpush.msra.mxu3 %v6329_v56  ;;  %1604 = vmatpush.msra.mxu0 %v6331_v41  ;;  %v1234_v14 = vmul.f32 %v6480_v43, %v6443_v33  ;;  %vm6496_vm15 = vmor %vm1199_vm14, %vm1200_vm13  ;;  %vm1239_vm5 = vweird.f32 %v6480_v43 }
 0x359   :  { %v1196_v5 = vsub.f32 1.0, %v1195_v0  ;;  %1565 = vmatpush.msra.mxu2 %v6336_v1  ;;  %vm1223_vm4 = vcmp.eq.f32.partialorder %v1222_v35, 8.507059e+37  ;;  %vm1240_vm7 = vmor %vm1238_vm6, %vm1239_vm5 }
 0x35a   :  { %1585 = vmatpush.msra.mxu3 %v6338_v34  ;;  %1605 = vmatpush.msra.mxu0 %v6340_v59 }
 0x35b   :  { %v1197_v8 = vmul.f32 %v5042_v12, %v1196_v5  ;;  %1566 = vmatpush.msra.mxu2 %v6345_v10 }
 0x35c   :  { %v5046_v36 = vpop.eup %5045  ;;  %1586 = vmatpush.msra.mxu3 %v6347_v50  ;;  %1606 = vmatpush.msra.mxu0 %v6349_v51  ;;  %v1206_v51 = vor.u32 1.1754944e-38, %v1205_v57 }
 0x35d   :  { %v1214_v0 = vmul.f32 %v5046_v36, %v6461_v19  ;;  %v1198_v24 = vadd.f32 %v5042_v12, %v1197_v8  ;;  %1567 = vmatpush.msra.mxu2 %v6354_v52  ;;  %v1224_v8 = vand.u32 2147483648, %v6461_v19  ;;  %vm1219_vm0 = vweird.f32 %v5046_v36 }
 0x35e   :  { %1587 = vmatpush.msra.mxu3 %v6356_v55  ;;  %1607 = vmatpush.msra.mxu0 %v6358_v45  ;;  %v1235_v52 = vsub.f32 1.0, %v1234_v14  ;;  %vm1220_vm3 = vmor %vm1218_vm1, %vm1219_vm0 }
 0x35f   :  { %v1215_v5 = vsub.f32 1.0, %v1214_v0  ;;  %v1202_v0 = vsel %vm6496_vm15, %v5042_v12, %v1198_v24  ;;  %1568 = vmatpush.msra.mxu2 %v6365_v9  ;;  %v5048_v24 = vpop.eup %5047 }
 0x360   :  { %1588 = vmatpush.msra.mxu3 %v6367_v47  ;;  %1608 = vmatpush.msra.mxu0 %v6369_v32  ;;  %v1207_v17 = vsel %vm1204_vm2, %v1206_v51, %v1202_v0  ;;  %v1236_v57 = vmul.f32 %v6480_v43, %v1235_v52  ;;  %v1242_v52 = vand.u32 2147483647, %v6443_v33 }
 0x361   :  { %v1216_v50 = vmul.f32 %v5046_v36, %v1215_v5  ;;  %1569 = vmatpush.msra.mxu2 %v6376_v63  ;;  %v1225_v5 = vor.u32 1.1754944e-38, %v1224_v8 }
 0x362   :  { %1589 = vmatpush.msra.mxu3 %v6378_v53  ;;  %1609 = vmatpush.msra.mxu0 %v6380_v54  ;;  %v1237_v51 = vadd.f32 %v6480_v43, %v1236_v57  ;;  %vm1243_vm8 = vcmp.eq.f32.partialorder %v1242_v52, 8.507059e+37 }
 0x363   :  { %v1217_v2 = vadd.f32 %v5046_v36, %v1216_v50  ;;  %1570 = vmatpush.msra.mxu2 %v6385_v11  ;;  %v1249_v50 = vmul.f32 %v5048_v24, %v1207_v17 }
 0x364   :  { %1590 = vmatpush.msra.mxu3 %v6387_v3  ;;  %1610 = vmatpush.msra.mxu0 %v6389_v60  ;;  %v1241_v16 = vsel %vm1240_vm7, %v6480_v43, %v1237_v51  ;;  %v8629_v43 = vld [vmem:[#allocation60_spill] sm:$0xff] }
 0x365   :  { %v1221_v12 = vsel %vm1220_vm3, %v5046_v36, %v1217_v2  ;;  %1571 = vmatpush.msra.mxu2 %v6396_v44 }
 0x366   :  { %v1226_v14 = vsel %vm1223_vm4, %v1225_v5, %v1221_v12  ;;  %1591 = vmatpush.msra.mxu3 %v6398_v28  ;;  %1611 = vmatpush.msra.mxu0 %v6400_v23 }
 0x367   :  { %v1248_v19 = vmul.f32 %v1226_v14, %v6275_v40  ;;  %1572 = vmatpush.msra.mxu2 %v6405_v30  ;;  %v1244_v40 = vand.u32 2147483648, %v6443_v33 }
 0x368   :  { %1592 = vmatpush.msra.mxu3 %v6407_v13  ;;  %1612 = vmatpush.msra.mxu0 %v6409_v38 }
 0x369   :  { %v6520_v36 = vadd.f32 %v1249_v50, %v1248_v19  ;;  %1573 = vmatpush.msra.mxu2 %v6414_v61  ;;  %v1245_v8 = vor.u32 1.1754944e-38, %v1244_v40 }
 0x36a   :  { %1593 = vmatpush.msra.mxu3 %v6416_v4  ;;  %1613 = vmatpush.msra.mxu0 %v6418_v22 }
 0x36b   :  { %5049 = vtanh.f32 %v6520_v36  ;;  %1574 = vmatpush.msra.mxu2 %v6423_v62  ;;  %v1246_v0 = vsel %vm1243_vm8, %v1245_v8, %v1241_v16 }
 0x36c   :  { %1594 = vmatpush.msra.mxu3 %v6425_v29  ;;  %1614 = vmatpush.msra.mxu0 %v6427_v37 }
 0x36d   :  { %1575 = vmatpush.msra.mxu2 %v6434_v27 }
 0x36e   :  { %1595 = vmatpush.msra.mxu3 %v6436_v31  ;;  %1615 = vmatpush.msra.mxu0 %v6438_v18 }
 0x36f   :  { %1576 = vmatpush.msra.mxu2 %v6446_v58 }
 0x370   :  { %1596 = vmatpush.msra.mxu3 %v6448_v25  ;;  %1616 = vmatpush.msra.mxu0 %v6450_v21 }
 0x371   :  { %v5050_v33 = vpop.eup %5049  ;;  %1577 = vmatpush.msra.mxu2 %v6454_v15 }
 0x372   :  { %v6542_v35 = vmul.f32 %v5050_v33, %v1246_v0  ;;  %1597 = vmatpush.msra.mxu3 %v6456_v26  ;;  %1617 = vmatpush.msra.mxu0 %v6458_v20 }
 0x374   :  { %8628 = vst [vmem:[#allocation63_spill] sm:$0xff] %v6542_v35  ;;  %1340 = vmatmul.f32.vlgmr.msrb.gmra.mxu1 %v6542_v35  ;;  %1360 = vmatmul.f32.vlgmr.msrb.gmra.mxu2 %v6542_v35 }
 0x375   :  { %1380 = vmatmul.f32.vlgmr.msrb.gmra.mxu3 %v6542_v35  ;;  %1400 = vmatmul.f32.vlgmr.msrb.gmra.mxu0 %v6542_v35 }
 0x376   :  { %1780 = vmatpush.msrb.mxu2 %v6309_v39  ;;  %1800 = vmatpush.msrb.mxu3 %v6311_v49  ;;  %v8630_v39 = vld [vmem:[#allocation61_spill] sm:$0xff]  ;;  %v8631_v49 = vld [vmem:[#allocation62_spill] sm:$0xff] }
 0x377   :  { %1820 = vmatpush.msrb.mxu0 %v6313_v7  ;;  %v8633_v7 = vld [vmem:[#allocation33_spill] sm:$0xff] }
 0x378   :  { %1781 = vmatpush.msrb.mxu2 %v6318_v42  ;;  %1801 = vmatpush.msrb.mxu3 %v6320_v46  ;;  %v8635_v46 = vld [vmem:[#allocation36_spill] sm:$0xff] }
 0x379   :  { %1821 = vmatpush.msrb.mxu0 %v6322_v48 }
 0x37a   :  { %1782 = vmatpush.msrb.mxu2 %v6327_v6  ;;  %1802 = vmatpush.msrb.mxu3 %v6329_v56 }
 0x37b   :  { %1822 = vmatpush.msrb.mxu0 %v6331_v41 }
 0x37c   :  { %1783 = vmatpush.msrb.mxu2 %v6336_v1  ;;  %1803 = vmatpush.msrb.mxu3 %v6338_v34  ;;  %v8636_v1 = vld [vmem:[#allocation54_spill] sm:$0xff] }
 0x37d   :  { %1823 = vmatpush.msrb.mxu0 %v6340_v59 }
 0x37e   :  { %1784 = vmatpush.msrb.mxu2 %v6345_v10  ;;  %1804 = vmatpush.msrb.mxu3 %v8629_v43 }
 0x37f   :  { %1824 = vmatpush.msrb.mxu0 %v8630_v39 }
 0x380   :  { %1785 = vmatpush.msrb.mxu2 %v8631_v49  ;;  %1805 = vmatpush.msrb.mxu3 %v6356_v55 }
 0x381   :  { %1825 = vmatpush.msrb.mxu0 %v6358_v45 }
 0x382   :  { %1786 = vmatpush.msrb.mxu2 %v6365_v9  ;;  %1806 = vmatpush.msrb.mxu3 %v6367_v47 }
 0x383   :  { %1826 = vmatpush.msrb.mxu0 %v6369_v32 }
 0x384   :  { %1787 = vmatpush.msrb.mxu2 %v6376_v63  ;;  %1807 = vmatpush.msrb.mxu3 %v6378_v53 }
 0x385   :  { %1827 = vmatpush.msrb.mxu0 %v6380_v54 }
 0x386   :  { %1788 = vmatpush.msrb.mxu2 %v6385_v11  ;;  %1808 = vmatpush.msrb.mxu3 %v6387_v3  ;;  %v8638_v11 = vld [vmem:[#allocation57_spill] sm:$0xff]  ;;  %v8639_v3 = vld [vmem:[#allocation40_spill] sm:$0xff] }
 0x387   :  { %1828 = vmatpush.msrb.mxu0 %v6389_v60  ;;  %v507_v60 = vadd.f32 %v8639_v3, %v8638_v11 }
 0x388   :  { %1789 = vmatpush.msrb.mxu2 %v6396_v44  ;;  %1809 = vmatpush.msrb.mxu3 %v6398_v28 }
 0x389   :  { %1829 = vmatpush.msrb.mxu0 %v6400_v23 }
 0x38a   :  { %1790 = vmatpush.msrb.mxu2 %v6405_v30  ;;  %1810 = vmatpush.msrb.mxu3 %v6407_v13 }
 0x38b   :  { %1830 = vmatpush.msrb.mxu0 %v6409_v38 }
 0x38c   :  { %1791 = vmatpush.msrb.mxu2 %v6414_v61  ;;  %1811 = vmatpush.msrb.mxu3 %v6416_v4 }
 0x38d   :  { %1831 = vmatpush.msrb.mxu0 %v6418_v22 }
 0x38e   :  { %1792 = vmatpush.msrb.mxu2 %v6423_v62  ;;  %1812 = vmatpush.msrb.mxu3 %v6425_v29  ;;  %v8632_v29 = vld [vmem:[#allocation46_spill] sm:$0xff] }
 0x38f   :  { %1832 = vmatpush.msrb.mxu0 %v6427_v37  ;;  %v419_v42 = vadd.f32 %v8633_v7, %v8632_v29 }
 0x390   :  { %1793 = vmatpush.msrb.mxu2 %v6434_v27  ;;  %1813 = vmatpush.msrb.mxu3 %v6436_v31  ;;  %v8634_v27 = vld [vmem:[#allocation52_spill] sm:$0xff] }
 0x391   :  { %1833 = vmatpush.msrb.mxu0 %v6438_v18  ;;  %v551_v48 = vadd.f32 %v8635_v46, %v8634_v27 }
 0x392   :  { %1794 = vmatpush.msrb.mxu2 %v6446_v58  ;;  %1814 = vmatpush.msrb.mxu3 %v6448_v25 }
 0x393   :  { %1834 = vmatpush.msrb.mxu0 %v6450_v21  ;;  %v8637_v21 = vld [vmem:[#allocation39_spill] sm:$0xff] }
 0x394   :  { %1795 = vmatpush.msrb.mxu2 %v6454_v15  ;;  %1815 = vmatpush.msrb.mxu3 %v6456_v26  ;;  %v463_v34 = vadd.f32 %v8637_v21, %v8636_v1  ;;  %v6639_v21 = vld [vmem:[#allocation16 + $0x120] sm:$0xff] }
 0x395   :  { %1835 = vmatpush.msrb.mxu0 %v6458_v20 }
 0x3f1   :  { %v1341_v6 = vpop.f32.mrf.mxu1 }
 0x3f2   :  { %v1404_v18 = vadd.f32 %v1341_v6, %v419_v42  ;;  %v1401_v56 = vpop.f32.mrf.mxu0  ;;  %v6625_v6 = vld [vmem:[#allocation16 + $0x1a0] sm:$0xff] }
 0x3f3   :  { %v1407_v58 = vadd.f32 %v1401_v56, %v551_v48  ;;  %v6622_v48 = vld [vmem:[#allocation16 + $0x1c0] sm:$0xff] }
 0x3f4   :  { %v4919_v41 = vmul.f32 -1.442695, %v1404_v18  ;;  %v6628_v18 = vld [vmem:[#allocation16 + $0x180] sm:$0xff] }
 0x3f5   :  { %v4921_v25 = vmul.f32 -1.442695, %v1407_v58  ;;  %v6631_v56 = vld [vmem:[#allocation16 + $0x160] sm:$0xff] }
 0x3f6   :  { %5051 = vpow2.f32 %v4919_v41  ;;  %v6634_v58 = vld [vmem:[#allocation16 + $0x140] sm:$0xff]  ;;  %v8641_v41 = vld [vmem:[#allocation35_spill] sm:$0xff] }
 0x3f7   :  { %5053 = vpow2.f32 %v4921_v25  ;;  %v1361_v26 = vpop.f32.mrf.mxu2  ;;  %v422_v25 = vadd.f32 %v8641_v41, %v8632_v29 }
 0x3f8   :  { %v1405_v15 = vadd.f32 %v1361_v26, %v463_v34  ;;  %v1381_v54 = vpop.f32.mrf.mxu3  ;;  %v8642_v34 = vld [vmem:[#allocation37_spill] sm:$0xff] }
 0x3f9   :  { %v1406_v30 = vadd.f32 %v1381_v54, %v507_v60  ;;  %v554_v26 = vadd.f32 %v8642_v34, %v8634_v27  ;;  %v6655_v60 = vld [vmem:[#allocation16 + $0xa0] sm:$0xff] }
 0x3fa   :  { %v4920_v20 = vmul.f32 -1.442695, %v1405_v15 }
 0x3fc   :  { %v5052_v59 = vpop.eup %5051  ;;  %5055 = vpow2.f32 %v4920_v20 }
 0x3fd   :  { %v5054_v10 = vpop.eup %5053  ;;  %v1411_v55 = vadd.f32 1.0, %v5052_v59 }
 0x3fe   :  { %v1450_v45 = vadd.f32 1.0, %v5054_v10  ;;  %v6644_v10 = vld [vmem:[#allocation16 + $0x100] sm:$0xff] }
 0x3ff   :  { %5057 = vrcp.f32 %v1411_v55  ;;  %v1423_v4 = vand.u32 2147483648, %v1411_v55  ;;  %vm1417_vm10 = vweird.f32 %v1411_v55  ;;  %v1421_v62 = vand.u32 2147483647, %v1411_v55 }
 0x400   :  { %5059 = vrcp.f32 %v1450_v45  ;;  %v1462_v0 = vand.u32 2147483648, %v1450_v45  ;;  %vm1456_vm2 = vweird.f32 %v1450_v45  ;;  %v1460_v43 = vand.u32 2147483647, %v1450_v45 }
 0x401   :  { %v1424_v12 = vor.u32 1.1754944e-38, %v1423_v4  ;;  %vm1422_vm14 = vcmp.eq.f32.partialorder %v1421_v62, 8.507059e+37  ;;  %v6672_v62 = vld [vmem:[#allocation16] sm:$0xff] }
 0x402   :  { %v5056_v9 = vpop.eup %5055  ;;  %v1463_v49 = vor.u32 1.1754944e-38, %v1462_v0  ;;  %vm1461_vm4 = vcmp.eq.f32.partialorder %v1460_v43, 8.507059e+37 }
 0x403   :  { %v1430_v47 = vadd.f32 1.0, %v5056_v9  ;;  %v6647_v9 = vld [vmem:[#allocation16 + $0xe0] sm:$0xff] }
 0x405   :  { %v5058_v32 = vpop.eup %5057  ;;  %5061 = vrcp.f32 %v1430_v47  ;;  %v1442_v37 = vand.u32 2147483648, %v1430_v47  ;;  %v1440_v5 = vand.u32 2147483647, %v1430_v47  ;;  %vm1436_vm13 = vweird.f32 %v1430_v47 }
 0x406   :  { %v1413_v63 = vmul.f32 %v5058_v32, %v1411_v55  ;;  %v5060_v44 = vpop.eup %5059  ;;  %vm1418_vm9 = vweird.f32 %v5058_v32  ;;  %5063 = vtanh.f32 %v1406_v30  ;;  %v6661_v30 = vld [vmem:[#allocation16 + $0x60] sm:$0xff] }
 0x407   :  { %v1452_v61 = vmul.f32 %v5060_v44, %v1450_v45  ;;  %vm1419_vm11 = vmor %vm1417_vm10, %vm1418_vm9  ;;  %v1443_v57 = vor.u32 1.1754944e-38, %v1442_v37  ;;  %vm1441_vm0 = vcmp.eq.f32.partialorder %v1440_v5, 8.507059e+37  ;;  %vm1457_vm1 = vweird.f32 %v5060_v44 }
 0x408   :  { %v1414_v53 = vsub.f32 1.0, %v1413_v63  ;;  %vm1458_vm3 = vmor %vm1456_vm2, %vm1457_vm1 }
 0x409   :  { %v1453_v17 = vsub.f32 1.0, %v1452_v61  ;;  %v6664_v61 = vld [vmem:[#allocation16 + $0x40] sm:$0xff] }
 0x40a   :  { %v1415_v28 = vmul.f32 %v5058_v32, %v1414_v53  ;;  %v6652_v53 = vld [vmem:[#allocation16 + $0xc0] sm:$0xff] }
 0x40b   :  { %v5062_v23 = vpop.eup %5061  ;;  %v1454_v51 = vmul.f32 %v5060_v44, %v1453_v17 }
 0x40c   :  { %v1432_v13 = vmul.f32 %v5062_v23, %v1430_v47  ;;  %v1416_v38 = vadd.f32 %v5058_v32, %v1415_v28  ;;  %vm1437_vm12 = vweird.f32 %v5062_v23  ;;  %v5064_v50 = vpop.eup %5063  ;;  %v6658_v28 = vld [vmem:[#allocation16 + $0x80] sm:$0xff] }
 0x40d   :  { %vm1438_vm15 = vmor %vm1436_vm13, %vm1437_vm12  ;;  %v1455_v33 = vadd.f32 %v5060_v44, %v1454_v51 }
 0x40e   :  { %v1433_v22 = vsub.f32 1.0, %v1432_v13  ;;  %v1420_v2 = vsel %vm1419_vm11, %v5058_v32, %v1416_v38  ;;  %v8643_v32 = vld [vmem:[#allocation42_spill] sm:$0xff] }
 0x40f   :  { %v1425_v14 = vsel %vm1422_vm14, %v1424_v12, %v1420_v2  ;;  %v1459_v39 = vsel %vm1458_vm3, %v5060_v44, %v1455_v33  ;;  %v466_v63 = vadd.f32 %v8643_v32, %v8636_v1 }
 0x410   :  { %v1434_v31 = vmul.f32 %v5062_v23, %v1433_v22  ;;  %v1467_v16 = vmul.f32 %v5064_v50, %v1425_v14  ;;  %v1464_v42 = vsel %vm1461_vm4, %v1463_v49, %v1459_v39  ;;  %v6669_v22 = vld [vmem:[#allocation16 + $0x20] sm:$0xff]  ;;  %v6808_v49 = vld [vmem:[#allocation16 + $0xf0] sm:$0xff] }
 0x412   :  { %v1435_v24 = vadd.f32 %v5062_v23, %v1434_v31 }
 0x414   :  { %v1439_v19 = vsel %vm1438_vm15, %v5062_v23, %v1435_v24  ;;  %v8644_v24 = vld [vmem:[#allocation43_spill] sm:$0xff] }
 0x415   :  { %v1444_v40 = vsel %vm1441_vm0, %v1443_v57, %v1439_v19  ;;  %v510_v57 = vadd.f32 %v8644_v24, %v8638_v11  ;;  %v6788_v24 = vld [vmem:[#allocation16 + $0x130] sm:$0xff] }
 0x416   :  { %v1466_v52 = vmul.f32 %v1444_v40, %v6520_v36  ;;  %v6619_v36 = vld [vmem:[#allocation16 + $0x1e0] sm:$0xff] }
 0x417   :  { %1760 = vmatpush.msrb.mxu1 %v6619_v36 }
 0x418   :  { %v6610_v8 = vadd.f32 %v1467_v16, %v1466_v52 }
 0x419   :  { %1761 = vmatpush.msrb.mxu1 %v6622_v48 }
 0x41a   :  { %5065 = vtanh.f32 %v6610_v8 }
 0x41b   :  { %1762 = vmatpush.msrb.mxu1 %v6625_v6 }
 0x41d   :  { %1763 = vmatpush.msrb.mxu1 %v6628_v18 }
 0x41f   :  { %1764 = vmatpush.msrb.mxu1 %v6631_v56 }
 0x420   :  { %v5066_v7 = vpop.eup %5065 }
 0x421   :  { %v6613_v46 = vmul.f32 %v5066_v7, %v1464_v42  ;;  %1765 = vmatpush.msrb.mxu1 %v6634_v58 }
 0x423   :  { %8640 = vst [vmem:[#allocation60_spill] sm:$0xff] %v6613_v46  ;;  %1558 = vmatmul.f32.vlgmr.msra.gmra.mxu1 %v6613_v46  ;;  %1578 = vmatmul.f32.vlgmr.msra.gmra.mxu2 %v6613_v46 }
 0x424   :  { %1598 = vmatmul.f32.vlgmr.msra.gmra.mxu3 %v6613_v46  ;;  %1618 = vmatmul.f32.vlgmr.msra.gmra.mxu0 %v6613_v46 }
 0x425   :  { %1766 = vmatpush.msrb.mxu1 %v6639_v21 }
 0x427   :  { %1767 = vmatpush.msrb.mxu1 %v6644_v10 }
 0x429   :  { %1768 = vmatpush.msrb.mxu1 %v6647_v9 }
 0x42b   :  { %1769 = vmatpush.msrb.mxu1 %v6652_v53 }
 0x42d   :  { %1770 = vmatpush.msrb.mxu1 %v6655_v60 }
 0x42f   :  { %1771 = vmatpush.msrb.mxu1 %v6658_v28 }
 0x431   :  { %1772 = vmatpush.msrb.mxu1 %v6661_v30 }
 0x433   :  { %1773 = vmatpush.msrb.mxu1 %v6664_v61 }
 0x435   :  { %1774 = vmatpush.msrb.mxu1 %v6669_v22 }
 0x437   :  { %1775 = vmatpush.msrb.mxu1 %v6672_v62 }
 0x439   :  { %1978 = vmatpush.msra.mxu1 %v6619_v36 }
 0x43b   :  { %1979 = vmatpush.msra.mxu1 %v6622_v48 }
 0x43d   :  { %1980 = vmatpush.msra.mxu1 %v6625_v6 }
 0x43f   :  { %1981 = vmatpush.msra.mxu1 %v6628_v18 }
 0x441   :  { %1982 = vmatpush.msra.mxu1 %v6631_v56 }
 0x443   :  { %1983 = vmatpush.msra.mxu1 %v6634_v58 }
 0x445   :  { %1984 = vmatpush.msra.mxu1 %v6639_v21 }
 0x447   :  { %1985 = vmatpush.msra.mxu1 %v6644_v10 }
 0x449   :  { %1986 = vmatpush.msra.mxu1 %v6647_v9 }
 0x44b   :  { %1987 = vmatpush.msra.mxu1 %v6652_v53 }
 0x44d   :  { %1988 = vmatpush.msra.mxu1 %v6655_v60 }
 0x44f   :  { %1989 = vmatpush.msra.mxu1 %v6658_v28 }
 0x451   :  { %1990 = vmatpush.msra.mxu1 %v6661_v30 }
 0x453   :  { %1991 = vmatpush.msra.mxu1 %v6664_v61 }
 0x455   :  { %1992 = vmatpush.msra.mxu1 %v6669_v22 }
 0x457   :  { %1993 = vmatpush.msra.mxu1 %v6672_v62 }
 0x4a0   :  { %v1559_v15 = vpop.f32.mrf.mxu1 }
 0x4a1   :  { %v1622_v20 = vadd.f32 %v1559_v15, %v422_v25  ;;  %v1619_v59 = vpop.f32.mrf.mxu0 }
 0x4a2   :  { %v1625_v55 = vadd.f32 %v1619_v59, %v554_v26 }
 0x4a3   :  { %v4922_v45 = vmul.f32 -1.442695, %v1622_v20 }
 0x4a4   :  { %v4924_v47 = vmul.f32 -1.442695, %v1625_v55 }
 0x4a5   :  { %5067 = vpow2.f32 %v4922_v45 }
 0x4a6   :  { %5069 = vpow2.f32 %v4924_v47  ;;  %v1579_v54 = vpop.f32.mrf.mxu2 }
 0x4a7   :  { %v1623_v3 = vadd.f32 %v1579_v54, %v466_v63  ;;  %v1599_v12 = vpop.f32.mrf.mxu3 }
 0x4a8   :  { %v1624_v51 = vadd.f32 %v1599_v12, %v510_v57  ;;  %v6786_v12 = vld [vmem:[#allocation16 + $0x128] sm:$0xff]  ;;  %v6790_v57 = vld [vmem:[#allocation16 + $0x138] sm:$0xff] }
 0x4a9   :  { %v4923_v44 = vmul.f32 -1.442695, %v1623_v3 }
 0x4ab   :  { %v5068_v23 = vpop.eup %5067  ;;  %5071 = vpow2.f32 %v4923_v44 }
 0x4ac   :  { %v5070_v13 = vpop.eup %5069  ;;  %v1629_v38 = vadd.f32 1.0, %v5068_v23 }
 0x4ad   :  { %v6667_v4 = vadd.f32 1.0, %v5070_v13 }
 0x4ae   :  { %5073 = vrcp.f32 %v1629_v38  ;;  %v1641_v33 = vand.u32 2147483648, %v1629_v38  ;;  %vm1635_vm6 = vweird.f32 %v1629_v38  ;;  %v1639_v43 = vand.u32 2147483647, %v1629_v38 }
 0x4af   :  { %5075 = vrcp.f32 %v6667_v4  ;;  %v1680_v44 = vand.u32 2147483648, %v6667_v4  ;;  %vm1674_vm14 = vweird.f32 %v6667_v4  ;;  %v1678_v23 = vand.u32 2147483647, %v6667_v4 }
 0x4b0   :  { %v1642_v34 = vor.u32 1.1754944e-38, %v1641_v33  ;;  %vm1640_vm10 = vcmp.eq.f32.partialorder %v1639_v43, 8.507059e+37  ;;  %v6801_v33 = vld [vmem:[#allocation16 + $0x118] sm:$0xff] }
 0x4b1   :  { %v5072_v37 = vpop.eup %5071  ;;  %v1681_v13 = vor.u32 1.1754944e-38, %v1680_v44  ;;  %vm1679_vm0 = vcmp.eq.f32.partialorder %v1678_v23, 8.507059e+37  ;;  %v6839_v44 = vld [vmem:[#allocation16 + $0x98] sm:$0xff] }
 0x4b2   :  { %v1648_v31 = vadd.f32 1.0, %v5072_v37 }
 0x4b4   :  { %v5074_v2 = vpop.eup %5073  ;;  %5077 = vrcp.f32 %v1648_v31  ;;  %v1660_v39 = vand.u32 2147483648, %v1648_v31  ;;  %v1658_v41 = vand.u32 2147483647, %v1648_v31  ;;  %vm1654_vm9 = vweird.f32 %v1648_v31 }
 0x4b5   :  { %v1631_v5 = vmul.f32 %v5074_v2, %v1629_v38  ;;  %v5076_v14 = vpop.eup %5075  ;;  %vm1636_vm5 = vweird.f32 %v5074_v2  ;;  %5079 = vtanh.f32 %v1624_v51 }
 0x4b6   :  { %v1670_v16 = vmul.f32 %v5076_v14, %v6667_v4  ;;  %vm6685_vm7 = vmor %vm1635_vm6, %vm1636_vm5  ;;  %v1661_v15 = vor.u32 1.1754944e-38, %v1660_v39  ;;  %vm1659_vm12 = vcmp.eq.f32.partialorder %v1658_v41, 8.507059e+37  ;;  %vm1675_vm13 = vweird.f32 %v5076_v14  ;;  %v6770_v4 = vld [vmem:[#allocation16 + $0x178] sm:$0xff]  ;;  %v6806_v39 = vld [vmem:[#allocation16 + $0xe8] sm:$0xff] }
 0x4b7   :  { %v1632_v17 = vsub.f32 1.0, %v1631_v5  ;;  %vm1676_vm15 = vmor %vm1674_vm14, %vm1675_vm13  ;;  %8649 = vst [vmem:[#allocation33_spill] sm:$0xff] %v6770_v4  ;;  %v8651_v5 = vld [vmem:[#allocation30_spill] sm:$0xff]  ;;  %v8653_v41 = vld [vmem:[#allocation44_spill] sm:$0xff] }
 0x4b8   :  { %v1671_v25 = vsub.f32 1.0, %v1670_v16  ;;  %v6799_v16 = vld [vmem:[#allocation16 + $0x110] sm:$0xff] }
 0x4b9   :  { %v1633_v19 = vmul.f32 %v5074_v2, %v1632_v17  ;;  %v425_v17 = vadd.f32 %v8651_v5, %v8632_v29 }
 0x4ba   :  { %v5078_v50 = vpop.eup %5077  ;;  %v1672_v45 = vmul.f32 %v5076_v14, %v1671_v25  ;;  %v469_v25 = vadd.f32 %v8653_v41, %v8636_v1  ;;  %v6879_v41 = vld [vmem:[#allocation16 + $0x18] sm:$0xff] }
 0x4bb   :  { %v1650_v40 = vmul.f32 %v5078_v50, %v1648_v31  ;;  %v1634_v52 = vadd.f32 %v5074_v2, %v1633_v19  ;;  %vm1655_vm8 = vweird.f32 %v5078_v50  ;;  %v5080_v55 = vpop.eup %5079 }
 0x4bc   :  { %vm1656_vm11 = vmor %vm1654_vm9, %vm1655_vm8  ;;  %v1673_v3 = vadd.f32 %v5076_v14, %v1672_v45  ;;  %v6828_v45 = vld [vmem:[#allocation16 + $0xb0] sm:$0xff] }
 0x4bd   :  { %v1651_v0 = vsub.f32 1.0, %v1650_v40  ;;  %v1638_v42 = vsel %vm6685_vm7, %v5074_v2, %v1634_v52  ;;  %v6779_v2 = vld [vmem:[#allocation16 + $0x158] sm:$0xff]  ;;  %v6797_v52 = vld [vmem:[#allocation16 + $0x108] sm:$0xff] }
 0x4be   :  { %v1643_v20 = vsel %vm1640_vm10, %v1642_v34, %v1638_v42  ;;  %v6817_v34 = vld [vmem:[#allocation16 + $0xc8] sm:$0xff] }
 0x4bf   :  { %v1652_v7 = vmul.f32 %v5078_v50, %v1651_v0  ;;  %v1685_v63 = vmul.f32 %v5080_v55, %v1643_v20  ;;  %v6826_v55 = vld [vmem:[#allocation16 + $0xa8] sm:$0xff] }
 0x4c1   :  { %v1653_v26 = vadd.f32 %v5078_v50, %v1652_v7  ;;  %v6810_v7 = vld [vmem:[#allocation16 + $0xf8] sm:$0xff] }
 0x4c3   :  { %v1657_v59 = vsel %vm1656_vm11, %v5078_v50, %v1653_v26  ;;  %v6819_v26 = vld [vmem:[#allocation16 + $0xd0] sm:$0xff] }
 0x4c4   :  { %v1662_v47 = vsel %vm1659_vm12, %v1661_v15, %v1657_v59  ;;  %v6821_v15 = vld [vmem:[#allocation16 + $0xd8] sm:$0xff] }
 0x4c5   :  { %v1684_v32 = vmul.f32 %v1662_v47, %v6610_v8  ;;  %v1677_v8 = vsel %vm1676_vm15, %v5076_v14, %v1673_v3  ;;  %v8652_v14 = vld [vmem:[#allocation38_spill] sm:$0xff]  ;;  %v6830_v47 = vld [vmem:[#allocation16 + $0xb8] sm:$0xff]  ;;  %v6837_v3 = vld [vmem:[#allocation16 + $0x90] sm:$0xff] }
 0x4c6   :  { %v1682_v37 = vsel %vm1679_vm0, %v1681_v13, %v1677_v8  ;;  %v557_v19 = vadd.f32 %v8652_v14, %v8634_v27  ;;  %v6844_v8 = vld [vmem:[#allocation16 + $0x68] sm:$0xff]  ;;  %v6846_v13 = vld [vmem:[#allocation16 + $0x70] sm:$0xff] }
 0x4c7   :  { %v6696_v54 = vadd.f32 %v1685_v63, %v1684_v32  ;;  %v6835_v63 = vld [vmem:[#allocation16 + $0x88] sm:$0xff]  ;;  %v6857_v14 = vld [vmem:[#allocation16 + $0x50] sm:$0xff] }
 0x4c9   :  { %5081 = vtanh.f32 %v6696_v54 }
 0x4cf   :  { %v5082_v38 = vpop.eup %5081 }
 0x4d0   :  { %v6707_v31 = vmul.f32 %v5082_v38, %v1682_v37  ;;  %v6848_v38 = vld [vmem:[#allocation16 + $0x78] sm:$0xff] }
 0x4d2   :  { %8647 = vst [vmem:[#allocation61_spill] sm:$0xff] %v6707_v31  ;;  %1776 = vmatmul.f32.vlgmr.msrb.gmra.mxu1 %v6707_v31  ;;  %1796 = vmatmul.f32.vlgmr.msrb.gmra.mxu2 %v6707_v31 }
 0x4d3   :  { %1816 = vmatmul.f32.vlgmr.msrb.gmra.mxu3 %v6707_v31  ;;  %1836 = vmatmul.f32.vlgmr.msrb.gmra.mxu0 %v6707_v31 }
 0x4d4   :  { %2196 = vmatpush.msrb.mxu1 %v6619_v36  ;;  %v6730_v36 = vld [vmem:[#allocation16 + $0x1e8] sm:$0xff] }
 0x4d5   :  { %1998 = vmatpush.msra.mxu2 %v6730_v36 }
 0x4d6   :  { %2197 = vmatpush.msrb.mxu1 %v6622_v48  ;;  %v6732_v48 = vld [vmem:[#allocation16 + $0x1f0] sm:$0xff] }
 0x4d7   :  { %2018 = vmatpush.msra.mxu3 %v6732_v48 }
 0x4d8   :  { %2198 = vmatpush.msrb.mxu1 %v6625_v6  ;;  %v6734_v6 = vld [vmem:[#allocation16 + $0x1f8] sm:$0xff] }
 0x4d9   :  { %2038 = vmatpush.msra.mxu0 %v6734_v6 }
 0x4da   :  { %2199 = vmatpush.msrb.mxu1 %v6628_v18  ;;  %v6739_v18 = vld [vmem:[#allocation16 + $0x1c8] sm:$0xff] }
 0x4db   :  { %1999 = vmatpush.msra.mxu2 %v6739_v18 }
 0x4dc   :  { %2200 = vmatpush.msrb.mxu1 %v6631_v56  ;;  %v6741_v56 = vld [vmem:[#allocation16 + $0x1d0] sm:$0xff] }
 0x4dd   :  { %2019 = vmatpush.msra.mxu3 %v6741_v56 }
 0x4de   :  { %2201 = vmatpush.msrb.mxu1 %v6634_v58  ;;  %v6743_v58 = vld [vmem:[#allocation16 + $0x1d8] sm:$0xff] }
 0x4df   :  { %2039 = vmatpush.msra.mxu0 %v6743_v58 }
 0x4e0   :  { %2202 = vmatpush.msrb.mxu1 %v6639_v21  ;;  %v6748_v21 = vld [vmem:[#allocation16 + $0x1a8] sm:$0xff] }
 0x4e1   :  { %2000 = vmatpush.msra.mxu2 %v6748_v21 }
 0x4e2   :  { %2203 = vmatpush.msrb.mxu1 %v6644_v10  ;;  %v6750_v10 = vld [vmem:[#allocation16 + $0x1b0] sm:$0xff] }
 0x4e3   :  { %2020 = vmatpush.msra.mxu3 %v6750_v10 }
 0x4e4   :  { %2204 = vmatpush.msrb.mxu1 %v6647_v9  ;;  %v6752_v9 = vld [vmem:[#allocation16 + $0x1b8] sm:$0xff] }
 0x4e5   :  { %2040 = vmatpush.msra.mxu0 %v6752_v9 }
 0x4e6   :  { %2205 = vmatpush.msrb.mxu1 %v6652_v53  ;;  %v6757_v53 = vld [vmem:[#allocation16 + $0x188] sm:$0xff] }
 0x4e7   :  { %2001 = vmatpush.msra.mxu2 %v6757_v53 }
 0x4e8   :  { %2206 = vmatpush.msrb.mxu1 %v6655_v60  ;;  %v6759_v60 = vld [vmem:[#allocation16 + $0x190] sm:$0xff] }
 0x4e9   :  { %2021 = vmatpush.msra.mxu3 %v6759_v60 }
 0x4ea   :  { %2207 = vmatpush.msrb.mxu1 %v6658_v28  ;;  %v6761_v28 = vld [vmem:[#allocation16 + $0x198] sm:$0xff] }
 0x4eb   :  { %2041 = vmatpush.msra.mxu0 %v6761_v28 }
 0x4ec   :  { %2208 = vmatpush.msrb.mxu1 %v6661_v30  ;;  %v6766_v30 = vld [vmem:[#allocation16 + $0x168] sm:$0xff] }
 0x4ed   :  { %2002 = vmatpush.msra.mxu2 %v6766_v30  ;;  %2042 = vmatpush.msra.mxu0 %v6770_v4 }
 0x4ee   :  { %2209 = vmatpush.msrb.mxu1 %v6664_v61  ;;  %v6768_v61 = vld [vmem:[#allocation16 + $0x170] sm:$0xff] }
 0x4ef   :  { %8648 = vst [vmem:[#allocation62_spill] sm:$0xff] %v6768_v61  ;;  %2022 = vmatpush.msra.mxu3 %v6768_v61  ;;  %2043 = vmatpush.msra.mxu0 %v6779_v2 }
 0x4f0   :  { %2210 = vmatpush.msrb.mxu1 %v6669_v22  ;;  %v6775_v22 = vld [vmem:[#allocation16 + $0x148] sm:$0xff] }
 0x4f1   :  { %8650 = vst [vmem:[#allocation36_spill] sm:$0xff] %v6775_v22  ;;  %2003 = vmatpush.msra.mxu2 %v6775_v22  ;;  %2044 = vmatpush.msra.mxu0 %v6790_v57 }
 0x4f2   :  { %2211 = vmatpush.msrb.mxu1 %v6672_v62  ;;  %v6777_v62 = vld [vmem:[#allocation16 + $0x150] sm:$0xff] }
 0x4f3   :  { %2023 = vmatpush.msra.mxu3 %v6777_v62  ;;  %2004 = vmatpush.msra.mxu2 %v6786_v12 }
 0x4f4   :  { %2045 = vmatpush.msra.mxu0 %v6801_v33 }
 0x4f5   :  { %2024 = vmatpush.msra.mxu3 %v6788_v24  ;;  %2005 = vmatpush.msra.mxu2 %v6797_v52 }
 0x4f6   :  { %2046 = vmatpush.msra.mxu0 %v6810_v7 }
 0x4f7   :  { %2025 = vmatpush.msra.mxu3 %v6799_v16  ;;  %2006 = vmatpush.msra.mxu2 %v6806_v39 }
 0x4f8   :  { %2047 = vmatpush.msra.mxu0 %v6821_v15 }
 0x4f9   :  { %2026 = vmatpush.msra.mxu3 %v6808_v49  ;;  %2007 = vmatpush.msra.mxu2 %v6817_v34 }
 0x4fa   :  { %2048 = vmatpush.msra.mxu0 %v6830_v47 }
 0x4fb   :  { %2027 = vmatpush.msra.mxu3 %v6819_v26  ;;  %2008 = vmatpush.msra.mxu2 %v6826_v55 }
 0x4fc   :  { %2049 = vmatpush.msra.mxu0 %v6839_v44 }
 0x4fd   :  { %2028 = vmatpush.msra.mxu3 %v6828_v45  ;;  %2009 = vmatpush.msra.mxu2 %v6835_v63 }
 0x4fe   :  { %2050 = vmatpush.msra.mxu0 %v6848_v38 }
 0x4ff   :  { %2029 = vmatpush.msra.mxu3 %v6837_v3  ;;  %2010 = vmatpush.msra.mxu2 %v6844_v8 }
 0x501   :  { %2030 = vmatpush.msra.mxu3 %v6846_v13 }
 0x503   :  { %2031 = vmatpush.msra.mxu3 %v6857_v14 }
 0x54f   :  { %v1777_v50 = vpop.f32.mrf.mxu1 }
 0x550   :  { %v1840_v51 = vadd.f32 %v1777_v50, %v425_v17  ;;  %v1837_v40 = vpop.f32.mrf.mxu0  ;;  %v6855_v17 = vld [vmem:[#allocation16 + $0x48] sm:$0xff] }
 0x551   :  { %v1843_v0 = vadd.f32 %v1837_v40, %v557_v19  ;;  %v6859_v19 = vld [vmem:[#allocation16 + $0x58] sm:$0xff]  ;;  %2011 = vmatpush.msra.mxu2 %v6855_v17  ;;  %v6869_v40 = vld [vmem:[#allocation16 + $0x30] sm:$0xff] }
 0x552   :  { %v4925_v43 = vmul.f32 -1.442695, %v1840_v51  ;;  %2051 = vmatpush.msra.mxu0 %v6859_v19  ;;  %v6867_v51 = vld [vmem:[#allocation16 + $0x28] sm:$0xff]  ;;  %2032 = vmatpush.msra.mxu3 %v6869_v40 }
 0x553   :  { %v4927_v42 = vmul.f32 -1.442695, %v1843_v0  ;;  %v6871_v0 = vld [vmem:[#allocation16 + $0x38] sm:$0xff]  ;;  %2012 = vmatpush.msra.mxu2 %v6867_v51 }
 0x554   :  { %5083 = vpow2.f32 %v4925_v43  ;;  %v6875_v43 = vld [vmem:[#allocation16 + $0x8] sm:$0xff]  ;;  %2052 = vmatpush.msra.mxu0 %v6871_v0 }
 0x555   :  { %5085 = vpow2.f32 %v4927_v42  ;;  %v1797_v20 = vpop.f32.mrf.mxu2  ;;  %v6877_v42 = vld [vmem:[#allocation16 + $0x10] sm:$0xff]  ;;  %2013 = vmatpush.msra.mxu2 %v6875_v43 }
 0x556   :  { %v1841_v59 = vadd.f32 %v1797_v20, %v469_v25  ;;  %2033 = vmatpush.msra.mxu3 %v6877_v42  ;;  %2053 = vmatpush.msra.mxu0 %v6879_v41 }
 0x557   :  { %2216 = vmatpush.msrb.mxu2 %v6730_v36 }
 0x558   :  { %v4926_v32 = vmul.f32 -1.442695, %v1841_v59  ;;  %2236 = vmatpush.msrb.mxu3 %v6732_v48  ;;  %2256 = vmatpush.msrb.mxu0 %v6734_v6 }
 0x559   :  { %2217 = vmatpush.msrb.mxu2 %v6739_v18 }
 0x55a   :  { %v5084_v23 = vpop.eup %5083  ;;  %5087 = vpow2.f32 %v4926_v32  ;;  %2237 = vmatpush.msrb.mxu3 %v6741_v56  ;;  %2257 = vmatpush.msrb.mxu0 %v6743_v58 }
 0x55b   :  { %v5086_v37 = vpop.eup %5085  ;;  %v6850_v5 = vadd.f32 1.0, %v5084_v23  ;;  %2218 = vmatpush.msrb.mxu2 %v6748_v21 }
 0x55c   :  { %v6864_v50 = vadd.f32 1.0, %v5086_v37  ;;  %v1817_v37 = vpop.f32.mrf.mxu3  ;;  %2238 = vmatpush.msrb.mxu3 %v6750_v10  ;;  %2258 = vmatpush.msrb.mxu0 %v6752_v9 }
 0x55d   :  { %5089 = vrcp.f32 %v6850_v5  ;;  %2219 = vmatpush.msrb.mxu2 %v6757_v53  ;;  %vm1853_vm2 = vweird.f32 %v6850_v5 }
 0x55e   :  { %5091 = vrcp.f32 %v6864_v50  ;;  %2239 = vmatpush.msrb.mxu3 %v6759_v60  ;;  %2259 = vmatpush.msrb.mxu0 %v6761_v28  ;;  %vm1892_vm10 = vweird.f32 %v6864_v50 }
 0x55f   :  { %2220 = vmatpush.msrb.mxu2 %v6766_v30 }
 0x560   :  { %v5088_v25 = vpop.eup %5087  ;;  %2240 = vmatpush.msrb.mxu3 %v6768_v61  ;;  %2260 = vmatpush.msrb.mxu0 %v6770_v4 }
 0x561   :  { %v6882_v20 = vadd.f32 1.0, %v5088_v25  ;;  %v8654_v25 = vld [vmem:[#allocation47_spill] sm:$0xff]  ;;  %2221 = vmatpush.msrb.mxu2 %v6775_v22 }
 0x562   :  { %v513_v31 = vadd.f32 %v8654_v25, %v8638_v11  ;;  %v1859_v11 = vand.u32 2147483648, %v6850_v5  ;;  %2241 = vmatpush.msrb.mxu3 %v6777_v62  ;;  %2261 = vmatpush.msrb.mxu0 %v6779_v2 }
 0x563   :  { %v5090_v59 = vpop.eup %5089  ;;  %5093 = vrcp.f32 %v6882_v20  ;;  %2222 = vmatpush.msrb.mxu2 %v6786_v12  ;;  %vm1872_vm5 = vweird.f32 %v6882_v20 }
 0x564   :  { %v1849_v32 = vmul.f32 %v5090_v59, %v6850_v5  ;;  %v6901_v46 = vpop.eup %5091  ;;  %v1842_v27 = vadd.f32 %v1817_v37, %v513_v31  ;;  %vm1854_vm1 = vweird.f32 %v5090_v59  ;;  %v1860_v4 = vor.u32 1.1754944e-38, %v1859_v11  ;;  %2242 = vmatpush.msrb.mxu3 %v6788_v24  ;;  %2262 = vmatpush.msrb.mxu0 %v6790_v57 }
 0x565   :  { %v1888_v25 = vmul.f32 %v6901_v46, %v6864_v50  ;;  %vm6917_vm3 = vmor %vm1853_vm2, %vm1854_vm1  ;;  %2223 = vmatpush.msrb.mxu2 %v6797_v52  ;;  %vm1893_vm9 = vweird.f32 %v6901_v46 }
 0x566   :  { %v1850_v23 = vsub.f32 1.0, %v1849_v32  ;;  %5095 = vtanh.f32 %v1842_v27  ;;  %2243 = vmatpush.msrb.mxu3 %v6799_v16  ;;  %2263 = vmatpush.msrb.mxu0 %v6801_v33  ;;  %vm1894_vm11 = vmor %vm1892_vm10, %vm1893_vm9 }
 0x567   :  { %v1889_v22 = vsub.f32 1.0, %v1888_v25  ;;  %2224 = vmatpush.msrb.mxu2 %v6806_v39 }
 0x568   :  { %v1851_v35 = vmul.f32 %v5090_v59, %v1850_v23  ;;  %v1857_v23 = vand.u32 2147483647, %v6850_v5  ;;  %v1876_v5 = vand.u32 2147483647, %v6882_v20  ;;  %2244 = vmatpush.msrb.mxu3 %v6808_v49  ;;  %2264 = vmatpush.msrb.mxu0 %v6810_v7 }
 0x569   :  { %v5094_v1 = vpop.eup %5093  ;;  %2225 = vmatpush.msrb.mxu2 %v6817_v34 }
 0x56a   :  { %v1868_v32 = vmul.f32 %v5094_v1, %v6882_v20  ;;  %v1852_v29 = vadd.f32 %v5090_v59, %v1851_v35  ;;  %v1878_v35 = vand.u32 2147483648, %v6882_v20  ;;  %vm1873_vm4 = vweird.f32 %v5094_v1  ;;  %2245 = vmatpush.msrb.mxu3 %v6819_v26  ;;  %2265 = vmatpush.msrb.mxu0 %v6821_v15 }
 0x56b   :  { %vm1858_vm6 = vcmp.eq.f32.partialorder %v1857_v23, 8.507059e+37  ;;  %vm1874_vm7 = vmor %vm1872_vm5, %vm1873_vm4  ;;  %vm1877_vm8 = vcmp.eq.f32.partialorder %v1876_v5, 8.507059e+37  ;;  %2226 = vmatpush.msrb.mxu2 %v6826_v55 }
 0x56c   :  { %v1869_v31 = vsub.f32 1.0, %v1868_v32  ;;  %v1856_v32 = vsel %vm6917_vm3, %v5090_v59, %v1852_v29  ;;  %v5096_v11 = vpop.eup %5095  ;;  %v1890_v59 = vmul.f32 %v6901_v46, %v1889_v22  ;;  %2246 = vmatpush.msrb.mxu3 %v6828_v45  ;;  %2266 = vmatpush.msrb.mxu0 %v6830_v47  ;;  %v1896_v22 = vand.u32 2147483647, %v6864_v50 }
 0x56d   :  { %v1861_v37 = vsel %vm1858_vm6, %v1860_v4, %v1856_v32  ;;  %2227 = vmatpush.msrb.mxu2 %v6835_v63 }
 0x56e   :  { %v1870_v61 = vmul.f32 %v5094_v1, %v1869_v31  ;;  %v1879_v31 = vor.u32 1.1754944e-38, %v1878_v35  ;;  %v1903_v20 = vmul.f32 %v5096_v11, %v1861_v37  ;;  %v1891_v4 = vadd.f32 %v6901_v46, %v1890_v59  ;;  %2247 = vmatpush.msrb.mxu3 %v6837_v3  ;;  %2267 = vmatpush.msrb.mxu0 %v6839_v44 }
 0x56f   :  { %2228 = vmatpush.msrb.mxu2 %v6844_v8  ;;  %vm1897_vm12 = vcmp.eq.f32.partialorder %v1896_v22, 8.507059e+37 }
 0x570   :  { %v1871_v27 = vadd.f32 %v5094_v1, %v1870_v61  ;;  %v1895_v23 = vsel %vm1894_vm11, %v6901_v46, %v1891_v4  ;;  %2248 = vmatpush.msrb.mxu3 %v6846_v13  ;;  %2268 = vmatpush.msrb.mxu0 %v6848_v38  ;;  %v8657_v46 = vld [vmem:[#allocation62_spill] sm:$0xff] }
 0x571   :  { %2229 = vmatpush.msrb.mxu2 %v6855_v17 }
 0x572   :  { %v1875_v29 = vsel %vm1874_vm7, %v5094_v1, %v1871_v27  ;;  %2249 = vmatpush.msrb.mxu3 %v6857_v14  ;;  %2269 = vmatpush.msrb.mxu0 %v6859_v19 }
 0x573   :  { %v1880_v25 = vsel %vm1877_vm8, %v1879_v31, %v1875_v29  ;;  %2230 = vmatpush.msrb.mxu2 %v6867_v51 }
 0x574   :  { %v1902_v61 = vmul.f32 %v1880_v25, %v6696_v54  ;;  %v1898_v54 = vand.u32 2147483648, %v6864_v50  ;;  %2250 = vmatpush.msrb.mxu3 %v6869_v40  ;;  %2270 = vmatpush.msrb.mxu0 %v6871_v0 }
 0x575   :  { %2231 = vmatpush.msrb.mxu2 %v6875_v43 }
 0x576   :  { %v6941_v1 = vadd.f32 %v1903_v20, %v1902_v61  ;;  %v1899_v35 = vor.u32 1.1754944e-38, %v1898_v54  ;;  %2251 = vmatpush.msrb.mxu3 %v6877_v42  ;;  %2271 = vmatpush.msrb.mxu0 %v6879_v41 }
 0x578   :  { %5097 = vtanh.f32 %v6941_v1  ;;  %v1900_v32 = vsel %vm1897_vm12, %v1899_v35, %v1895_v23 }
 0x57e   :  { %v5098_v50 = vpop.eup %5097 }
 0x57f   :  { %v6963_v5 = vmul.f32 %v5098_v50, %v1900_v32 }
 0x581   :  { %1994 = vmatmul.f32.vlgmr.msra.gmra.mxu1 %v6963_v5  ;;  %2014 = vmatmul.f32.vlgmr.msra.gmra.mxu2 %v6963_v5 }
 0x582   :  { %2034 = vmatmul.f32.vlgmr.msra.gmra.mxu3 %v6963_v5  ;;  %2054 = vmatmul.f32.vlgmr.msra.gmra.mxu0 %v6963_v5 }
 0x583   :  { %2434 = vmatpush.msra.mxu2 %v6730_v36  ;;  %2454 = vmatpush.msra.mxu3 %v6732_v48  ;;  %v8658_v36 = vld [vmem:[#allocation33_spill] sm:$0xff]  ;;  %v8659_v48 = vld [vmem:[#allocation36_spill] sm:$0xff] }
 0x584   :  { %2474 = vmatpush.msra.mxu0 %v6734_v6  ;;  %v8660_v6 = vld [vmem:[#allocation46_spill] sm:$0xff] }
 0x585   :  { %2435 = vmatpush.msra.mxu2 %v6739_v18  ;;  %2455 = vmatpush.msra.mxu3 %v6741_v56  ;;  %v8661_v18 = vld [vmem:[#allocation31_spill] sm:$0xff] }
 0x586   :  { %2475 = vmatpush.msra.mxu0 %v6743_v58  ;;  %v428_v56 = vadd.f32 %v8661_v18, %v8660_v6  ;;  %v8662_v58 = vld [vmem:[#allocation52_spill] sm:$0xff] }
 0x587   :  { %2436 = vmatpush.msra.mxu2 %v6748_v21  ;;  %2456 = vmatpush.msra.mxu3 %v6750_v10  ;;  %v8663_v21 = vld [vmem:[#allocation41_spill] sm:$0xff] }
 0x588   :  { %2476 = vmatpush.msra.mxu0 %v6752_v9  ;;  %v560_v10 = vadd.f32 %v8663_v21, %v8662_v58 }
 0x589   :  { %2437 = vmatpush.msra.mxu2 %v6757_v53  ;;  %2457 = vmatpush.msra.mxu3 %v6759_v60 }
 0x58a   :  { %2477 = vmatpush.msra.mxu0 %v6761_v28 }
 0x58b   :  { %2438 = vmatpush.msra.mxu2 %v6766_v30  ;;  %2458 = vmatpush.msra.mxu3 %v8657_v46 }
 0x58c   :  { %2478 = vmatpush.msra.mxu0 %v8658_v36 }
 0x58d   :  { %2439 = vmatpush.msra.mxu2 %v8659_v48  ;;  %2459 = vmatpush.msra.mxu3 %v6777_v62 }
 0x58e   :  { %2479 = vmatpush.msra.mxu0 %v6779_v2  ;;  %v8664_v2 = vld [vmem:[#allocation54_spill] sm:$0xff] }
 0x58f   :  { %2440 = vmatpush.msra.mxu2 %v6786_v12  ;;  %2460 = vmatpush.msra.mxu3 %v6788_v24  ;;  %v8665_v12 = vld [vmem:[#allocation48_spill] sm:$0xff] }
 0x590   :  { %2480 = vmatpush.msra.mxu0 %v6790_v57  ;;  %v472_v24 = vadd.f32 %v8665_v12, %v8664_v2  ;;  %v2378_v12 = vld [vmem:[#allocation16 + $0xe0] sm:$0xff] }
 0x591   :  { %2441 = vmatpush.msra.mxu2 %v6797_v52  ;;  %2461 = vmatpush.msra.mxu3 %v6799_v16 }
 0x592   :  { %2481 = vmatpush.msra.mxu0 %v6801_v33 }
 0x593   :  { %2442 = vmatpush.msra.mxu2 %v6806_v39  ;;  %2462 = vmatpush.msra.mxu3 %v6808_v49 }
 0x594   :  { %2482 = vmatpush.msra.mxu0 %v6810_v7 }
 0x595   :  { %2443 = vmatpush.msra.mxu2 %v6817_v34  ;;  %2463 = vmatpush.msra.mxu3 %v6819_v26 }
 0x596   :  { %2483 = vmatpush.msra.mxu0 %v6821_v15  ;;  %v2410_v15 = vld [vmem:[#allocation16 + $0x1e0] sm:$0xff] }
 0x597   :  { %2444 = vmatpush.msra.mxu2 %v6826_v55  ;;  %2464 = vmatpush.msra.mxu3 %v6828_v45  ;;  %v2406_v55 = vld [vmem:[#allocation16 + $0x1c0] sm:$0xff] }
 0x598   :  { %2484 = vmatpush.msra.mxu0 %v6830_v47  ;;  %2414 = vmatpush.msra.mxu1 %v2410_v15  ;;  %v2635_v15 = vld [vmem:[#allocation18 + $0x1f8] sm:$0xff] }
 0x599   :  { %2445 = vmatpush.msra.mxu2 %v6835_v63  ;;  %2465 = vmatpush.msra.mxu3 %v6837_v3 }
 0x59a   :  { %2485 = vmatpush.msra.mxu0 %v6839_v44  ;;  %2415 = vmatpush.msra.mxu1 %v2406_v55  ;;  %v8666_v44 = vld [vmem:[#allocation57_spill] sm:$0xff] }
 0x59b   :  { %2446 = vmatpush.msra.mxu2 %v6844_v8  ;;  %2466 = vmatpush.msra.mxu3 %v6846_v13  ;;  %v8667_v8 = vld [vmem:[#allocation51_spill] sm:$0xff]  ;;  %v2628_v55 = vld [vmem:[#allocation18 + $0x1c0] sm:$0xff] }
 0x59c   :  { %2486 = vmatpush.msra.mxu0 %v6848_v38  ;;  %v516_v13 = vadd.f32 %v8667_v8, %v8666_v44 }
 0x59d   :  { %2447 = vmatpush.msra.mxu2 %v6855_v17  ;;  %2467 = vmatpush.msra.mxu3 %v6857_v14 }
 0x59e   :  { %2487 = vmatpush.msra.mxu0 %v6859_v19 }
 0x59f   :  { %2448 = vmatpush.msra.mxu2 %v6867_v51  ;;  %2468 = vmatpush.msra.mxu3 %v6869_v40 }
 0x5a0   :  { %2488 = vmatpush.msra.mxu0 %v6871_v0 }
 0x5a1   :  { %2449 = vmatpush.msra.mxu2 %v6875_v43  ;;  %2469 = vmatpush.msra.mxu3 %v6877_v42 }
 0x5a2   :  { %2489 = vmatpush.msra.mxu0 %v6879_v41 }
 0x5fe   :  { %v1995_v9 = vpop.f32.mrf.mxu1 }
 0x5ff   :  { %v2058_v53 = vadd.f32 %v1995_v9, %v428_v56  ;;  %v2055_v60 = vpop.f32.mrf.mxu0 }
 0x600   :  { %v2061_v28 = vadd.f32 %v2055_v60, %v560_v10  ;;  %v2394_v60 = vld [vmem:[#allocation16 + $0x160] sm:$0xff] }
 0x601   :  { %v4928_v30 = vmul.f32 -1.442695, %v2058_v53  ;;  %v2398_v53 = vld [vmem:[#allocation16 + $0x180] sm:$0xff] }
 0x602   :  { %v4930_v62 = vmul.f32 -1.442695, %v2061_v28  ;;  %v2390_v28 = vld [vmem:[#allocation16 + $0x140] sm:$0xff] }
 0x603   :  { %5099 = vpow2.f32 %v4928_v30  ;;  %v2386_v30 = vld [vmem:[#allocation16 + $0x120] sm:$0xff] }
 0x604   :  { %5101 = vpow2.f32 %v4930_v62  ;;  %v2015_v57 = vpop.f32.mrf.mxu2  ;;  %v2382_v62 = vld [vmem:[#allocation16 + $0x100] sm:$0xff] }
 0x605   :  { %v2059_v52 = vadd.f32 %v2015_v57, %v472_v24  ;;  %v2035_v3 = vpop.f32.mrf.mxu3  ;;  %v2374_v24 = vld [vmem:[#allocation16 + $0xc0] sm:$0xff] }
 0x606   :  { %v2060_v19 = vadd.f32 %v2035_v3, %v516_v13  ;;  %v2370_v57 = vld [vmem:[#allocation16 + $0xa0] sm:$0xff]  ;;  %v8668_v3 = vld [vmem:[#allocation32_spill] sm:$0xff] }
 0x607   :  { %v4929_v16 = vmul.f32 -1.442695, %v2059_v52  ;;  %v2366_v52 = vld [vmem:[#allocation16 + $0x80] sm:$0xff]  ;;  %v431_v8 = vadd.f32 %v8668_v3, %v8660_v6 }
 0x608   :  { %v2624_v13 = vld [vmem:[#allocation18 + $0x1a0] sm:$0xff] }
 0x609   :  { %v5100_v33 = vpop.eup %5099  ;;  %5103 = vpow2.f32 %v4929_v16  ;;  %v2362_v16 = vld [vmem:[#allocation16 + $0x60] sm:$0xff] }
 0x60a   :  { %v5102_v39 = vpop.eup %5101  ;;  %v2065_v49 = vadd.f32 1.0, %v5100_v33  ;;  %v2358_v33 = vld [vmem:[#allocation16 + $0x40] sm:$0xff] }
 0x60b   :  { %v2104_v7 = vadd.f32 1.0, %v5102_v39  ;;  %v2354_v39 = vld [vmem:[#allocation16 + $0x20] sm:$0xff] }
 0x60c   :  { %5105 = vrcp.f32 %v2065_v49  ;;  %v2077_v43 = vand.u32 2147483648, %v2065_v49  ;;  %vm2071_vm14 = vweird.f32 %v2065_v49  ;;  %v2075_v41 = vand.u32 2147483647, %v2065_v49 }
 0x60d   :  { %5107 = vrcp.f32 %v2104_v7  ;;  %v2116_v36 = vand.u32 2147483648, %v2104_v7  ;;  %vm2110_vm6 = vweird.f32 %v2104_v7  ;;  %v2114_v48 = vand.u32 2147483647, %v2104_v7 }
 0x60e   :  { %v2078_v59 = vor.u32 1.1754944e-38, %v2077_v43  ;;  %vm2076_vm2 = vcmp.eq.f32.partialorder %v2075_v41, 8.507059e+37  ;;  %v2621_v41 = vld [vmem:[#allocation18 + $0x188] sm:$0xff] }
 0x60f   :  { %v5104_v34 = vpop.eup %5103  ;;  %v2117_v56 = vor.u32 1.1754944e-38, %v2116_v36  ;;  %vm2115_vm8 = vcmp.eq.f32.partialorder %v2114_v48, 8.507059e+37  ;;  %v2608_v48 = vld [vmem:[#allocation18 + $0x120] sm:$0xff] }
 0x610   :  { %v2084_v26 = vadd.f32 1.0, %v5104_v34  ;;  %v2633_v34 = vld [vmem:[#allocation18 + $0x1e8] sm:$0xff] }
 0x612   :  { %v5106_v45 = vpop.eup %5105  ;;  %5109 = vrcp.f32 %v2084_v26  ;;  %v2096_v27 = vand.u32 2147483648, %v2084_v26  ;;  %v2094_v29 = vand.u32 2147483647, %v2084_v26  ;;  %vm2090_vm1 = vweird.f32 %v2084_v26 }
 0x613   :  { %v2067_v47 = vmul.f32 %v5106_v45, %v2065_v49  ;;  %v5108_v38 = vpop.eup %5107  ;;  %vm2072_vm13 = vweird.f32 %v5106_v45  ;;  %5111 = vtanh.f32 %v2060_v19  ;;  %v2350_v49 = vld [vmem:[#allocation16] sm:$0xff] }
 0x614   :  { %v2106_v0 = vmul.f32 %v5108_v38, %v2104_v7  ;;  %vm2073_vm15 = vmor %vm2071_vm14, %vm2072_vm13  ;;  %v2097_v61 = vor.u32 1.1754944e-38, %v2096_v27  ;;  %vm2095_vm4 = vcmp.eq.f32.partialorder %v2094_v29, 8.507059e+37  ;;  %vm2111_vm5 = vweird.f32 %v5108_v38  ;;  %v2632_v7 = vld [vmem:[#allocation18 + $0x1e0] sm:$0xff]  ;;  %v2622_v27 = vld [vmem:[#allocation18 + $0x190] sm:$0xff] }
 0x615   :  { %v2068_v63 = vsub.f32 1.0, %v2067_v47  ;;  %vm2112_vm7 = vmor %vm2110_vm6, %vm2111_vm5  ;;  %v2630_v47 = vld [vmem:[#allocation18 + $0x1d0] sm:$0xff] }
 0x616   :  { %v2107_v11 = vsub.f32 1.0, %v2106_v0 }
 0x617   :  { %v2069_v17 = vmul.f32 %v5106_v45, %v2068_v63  ;;  %v2631_v63 = vld [vmem:[#allocation18 + $0x1d8] sm:$0xff] }
 0x618   :  { %v5110_v14 = vpop.eup %5109  ;;  %v2108_v22 = vmul.f32 %v5108_v38, %v2107_v11  ;;  %v2616_v11 = vld [vmem:[#allocation18 + $0x160] sm:$0xff] }
 0x619   :  { %v2086_v51 = vmul.f32 %v5110_v14, %v2084_v26  ;;  %v2070_v40 = vadd.f32 %v5106_v45, %v2069_v17  ;;  %vm2091_vm0 = vweird.f32 %v5110_v14  ;;  %v5112_v54 = vpop.eup %5111  ;;  %v2634_v26 = vld [vmem:[#allocation18 + $0x1f0] sm:$0xff] }
 0x61a   :  { %vm2092_vm3 = vmor %vm2090_vm1, %vm2091_vm0  ;;  %v2109_v46 = vadd.f32 %v5108_v38, %v2108_v22  ;;  %v2626_v17 = vld [vmem:[#allocation18 + $0x1b0] sm:$0xff]  ;;  %v2612_v22 = vld [vmem:[#allocation18 + $0x140] sm:$0xff] }
 0x61b   :  { %v2087_v42 = vsub.f32 1.0, %v2086_v51  ;;  %v2074_v37 = vsel %vm2073_vm15, %v5106_v45, %v2070_v40  ;;  %v2629_v45 = vld [vmem:[#allocation18 + $0x1c8] sm:$0xff]  ;;  %v2627_v40 = vld [vmem:[#allocation18 + $0x1b8] sm:$0xff] }
 0x61c   :  { %v2079_v20 = vsel %vm2076_vm2, %v2078_v59, %v2074_v37  ;;  %v2113_v18 = vsel %vm2112_vm7, %v5108_v38, %v2109_v46  ;;  %v2625_v38 = vld [vmem:[#allocation18 + $0x1a8] sm:$0xff]  ;;  %v2623_v37 = vld [vmem:[#allocation18 + $0x198] sm:$0xff] }
 0x61d   :  { %v2088_v31 = vmul.f32 %v5110_v14, %v2087_v42  ;;  %v2121_v50 = vmul.f32 %v5112_v54, %v2079_v20  ;;  %v2118_v10 = vsel %vm2115_vm8, %v2117_v56, %v2113_v18  ;;  %v2620_v42 = vld [vmem:[#allocation18 + $0x180] sm:$0xff]  ;;  %v2617_v59 = vld [vmem:[#allocation18 + $0x168] sm:$0xff]  ;;  %v2619_v20 = vld [vmem:[#allocation18 + $0x178] sm:$0xff] }
 0x61e   :  { %v2615_v46 = vld [vmem:[#allocation18 + $0x158] sm:$0xff]  ;;  %v2609_v18 = vld [vmem:[#allocation18 + $0x128] sm:$0xff]  ;;  %v2610_v56 = vld [vmem:[#allocation18 + $0x130] sm:$0xff] }
 0x61f   :  { %v2089_v25 = vadd.f32 %v5110_v14, %v2088_v31 }
 0x621   :  { %v2093_v4 = vsel %vm2092_vm3, %v5110_v14, %v2089_v25  ;;  %v8669_v14 = vld [vmem:[#allocation45_spill] sm:$0xff]  ;;  %v2618_v25 = vld [vmem:[#allocation18 + $0x170] sm:$0xff] }
 0x622   :  { %v2098_v23 = vsel %vm2095_vm4, %v2097_v61, %v2093_v4  ;;  %v563_v19 = vadd.f32 %v8669_v14, %v8662_v58  ;;  %v8670_v4 = vld [vmem:[#allocation50_spill] sm:$0xff] }
 0x623   :  { %v2120_v35 = vmul.f32 %v2098_v23, %v6941_v1  ;;  %v2402_v1 = vld [vmem:[#allocation16 + $0x1a0] sm:$0xff]  ;;  %v475_v54 = vadd.f32 %v8670_v4, %v8664_v2  ;;  %v2613_v23 = vld [vmem:[#allocation18 + $0x148] sm:$0xff] }
 0x624   :  { %2416 = vmatpush.msra.mxu1 %v2402_v1  ;;  %v2604_v1 = vld [vmem:[#allocation18 + $0x100] sm:$0xff]  ;;  %v2585_v14 = vld [vmem:[#allocation18 + $0x68] sm:$0xff] }
 0x625   :  { %v7031_v32 = vadd.f32 %v2121_v50, %v2120_v35  ;;  %v2614_v35 = vld [vmem:[#allocation18 + $0x150] sm:$0xff] }
 0x626   :  { %2417 = vmatpush.msra.mxu1 %v2398_v53  ;;  %v2605_v53 = vld [vmem:[#allocation18 + $0x108] sm:$0xff] }
 0x627   :  { %5113 = vtanh.f32 %v7031_v32 }
 0x628   :  { %2418 = vmatpush.msra.mxu1 %v2394_v60  ;;  %v2606_v60 = vld [vmem:[#allocation18 + $0x110] sm:$0xff] }
 0x62a   :  { %2419 = vmatpush.msra.mxu1 %v2390_v28  ;;  %v2607_v28 = vld [vmem:[#allocation18 + $0x118] sm:$0xff] }
 0x62c   :  { %2420 = vmatpush.msra.mxu1 %v2386_v30 }
 0x62d   :  { %v5114_v21 = vpop.eup %5113 }
 0x62e   :  { %v7034_v9 = vmul.f32 %v5114_v21, %v2118_v10  ;;  %2421 = vmatpush.msra.mxu1 %v2382_v62  ;;  %v2611_v21 = vld [vmem:[#allocation18 + $0x138] sm:$0xff]  ;;  %v2600_v62 = vld [vmem:[#allocation18 + $0xe0] sm:$0xff] }
 0x630   :  { %2212 = vmatmul.f32.vlgmr.msrb.gmra.mxu1 %v7034_v9  ;;  %2232 = vmatmul.f32.vlgmr.msrb.gmra.mxu2 %v7034_v9 }
 0x631   :  { %2252 = vmatmul.f32.vlgmr.msrb.gmra.mxu3 %v7034_v9  ;;  %2272 = vmatmul.f32.vlgmr.msrb.gmra.mxu0 %v7034_v9 }
 0x632   :  { %2422 = vmatpush.msra.mxu1 %v2378_v12  ;;  %2690 = vmatpush.msrb.mxu2 %v2633_v34  ;;  %v2601_v12 = vld [vmem:[#allocation18 + $0xe8] sm:$0xff] }
 0x633   :  { %2734 = vmatpush.msrb.mxu3 %v2634_v26  ;;  %2778 = vmatpush.msrb.mxu0 %v2635_v15  ;;  %v2592_v26 = vld [vmem:[#allocation18 + $0xa0] sm:$0xff]  ;;  %v2593_v15 = vld [vmem:[#allocation18 + $0xa8] sm:$0xff] }
 0x634   :  { %2423 = vmatpush.msra.mxu1 %v2374_v24  ;;  %2691 = vmatpush.msrb.mxu2 %v2629_v45  ;;  %v2602_v24 = vld [vmem:[#allocation18 + $0xf0] sm:$0xff]  ;;  %v2595_v45 = vld [vmem:[#allocation18 + $0xb8] sm:$0xff] }
 0x635   :  { %2735 = vmatpush.msrb.mxu3 %v2630_v47  ;;  %2779 = vmatpush.msrb.mxu0 %v2631_v63  ;;  %v2588_v47 = vld [vmem:[#allocation18 + $0x80] sm:$0xff]  ;;  %v2589_v63 = vld [vmem:[#allocation18 + $0x88] sm:$0xff] }
 0x636   :  { %2424 = vmatpush.msra.mxu1 %v2370_v57  ;;  %2692 = vmatpush.msrb.mxu2 %v2625_v38 }
 0x637   :  { %2736 = vmatpush.msrb.mxu3 %v2626_v17  ;;  %2780 = vmatpush.msrb.mxu0 %v2627_v40  ;;  %v2584_v17 = vld [vmem:[#allocation18 + $0x60] sm:$0xff]  ;;  %v2587_v40 = vld [vmem:[#allocation18 + $0x78] sm:$0xff] }
 0x638   :  { %2425 = vmatpush.msra.mxu1 %v2366_v52  ;;  %2693 = vmatpush.msrb.mxu2 %v2621_v41  ;;  %v2582_v41 = vld [vmem:[#allocation18 + $0x50] sm:$0xff] }
 0x639   :  { %2737 = vmatpush.msrb.mxu3 %v2622_v27  ;;  %2781 = vmatpush.msrb.mxu0 %v2623_v37  ;;  %v2583_v27 = vld [vmem:[#allocation18 + $0x58] sm:$0xff]  ;;  %v2577_v37 = vld [vmem:[#allocation18 + $0x28] sm:$0xff] }
 0x63a   :  { %2426 = vmatpush.msra.mxu1 %v2362_v16  ;;  %2694 = vmatpush.msrb.mxu2 %v2617_v59  ;;  %v2603_v16 = vld [vmem:[#allocation18 + $0xf8] sm:$0xff] }
 0x63b   :  { %2738 = vmatpush.msrb.mxu3 %v2618_v25  ;;  %2782 = vmatpush.msrb.mxu0 %v2619_v20  ;;  %v2579_v25 = vld [vmem:[#allocation18 + $0x38] sm:$0xff]  ;;  %v8671_v20 = vld [vmem:[#allocation55_spill] sm:$0xff] }
 0x63c   :  { %2427 = vmatpush.msra.mxu1 %v2358_v33  ;;  %2695 = vmatpush.msrb.mxu2 %v2613_v23  ;;  %v2596_v33 = vld [vmem:[#allocation18 + $0xc0] sm:$0xff]  ;;  %v519_v4 = vadd.f32 %v8671_v20, %v8666_v44  ;;  %v2575_v23 = vld [vmem:[#allocation18 + $0x18] sm:$0xff] }
 0x63d   :  { %2739 = vmatpush.msrb.mxu3 %v2614_v35  ;;  %2783 = vmatpush.msrb.mxu0 %v2615_v46  ;;  %v8678_v20 = vld [vmem:[#allocation49_spill] sm:$0xff] }
 0x63e   :  { %2428 = vmatpush.msra.mxu1 %v2354_v39  ;;  %2696 = vmatpush.msrb.mxu2 %v2609_v18  ;;  %v2597_v39 = vld [vmem:[#allocation18 + $0xc8] sm:$0xff] }
 0x63f   :  { %2740 = vmatpush.msrb.mxu3 %v2610_v56  ;;  %2784 = vmatpush.msrb.mxu0 %v2611_v21 }
 0x640   :  { %2429 = vmatpush.msra.mxu1 %v2350_v49  ;;  %2697 = vmatpush.msrb.mxu2 %v2605_v53  ;;  %v2598_v49 = vld [vmem:[#allocation18 + $0xd0] sm:$0xff] }
 0x641   :  { %2741 = vmatpush.msrb.mxu3 %v2606_v60  ;;  %2785 = vmatpush.msrb.mxu0 %v2607_v28 }
 0x642   :  { %2646 = vmatpush.msrb.mxu1 %v2632_v7  ;;  %2698 = vmatpush.msrb.mxu2 %v2601_v12  ;;  %v2599_v7 = vld [vmem:[#allocation18 + $0xd8] sm:$0xff] }
 0x643   :  { %2742 = vmatpush.msrb.mxu3 %v2602_v24  ;;  %2786 = vmatpush.msrb.mxu0 %v2603_v16 }
 0x644   :  { %2647 = vmatpush.msrb.mxu1 %v2628_v55  ;;  %2699 = vmatpush.msrb.mxu2 %v2597_v39  ;;  %v2594_v55 = vld [vmem:[#allocation18 + $0xb0] sm:$0xff] }
 0x645   :  { %2743 = vmatpush.msrb.mxu3 %v2598_v49  ;;  %2787 = vmatpush.msrb.mxu0 %v2599_v7 }
 0x646   :  { %2648 = vmatpush.msrb.mxu1 %v2624_v13  ;;  %2700 = vmatpush.msrb.mxu2 %v2593_v15  ;;  %v2591_v13 = vld [vmem:[#allocation18 + $0x98] sm:$0xff] }
 0x647   :  { %2744 = vmatpush.msrb.mxu3 %v2594_v55  ;;  %2788 = vmatpush.msrb.mxu0 %v2595_v45 }
 0x648   :  { %2649 = vmatpush.msrb.mxu1 %v2620_v42  ;;  %2701 = vmatpush.msrb.mxu2 %v2589_v63 }
 0x649   :  { %2789 = vmatpush.msrb.mxu0 %v2591_v13 }
 0x64a   :  { %2650 = vmatpush.msrb.mxu1 %v2616_v11  ;;  %2702 = vmatpush.msrb.mxu2 %v2585_v14  ;;  %v8675_v14 = vld [vmem:[#allocation60_spill] sm:$0xff] }
 0x64b   :  { %2790 = vmatpush.msrb.mxu0 %v2587_v40  ;;  %v7100_v40 = vld [vmem:[#allocation19 + $0x1e0] sm:$0xff] }
 0x64c   :  { %2651 = vmatpush.msrb.mxu1 %v2612_v22  ;;  %v2574_v22 = vld [vmem:[#allocation18 + $0x10] sm:$0xff] }
 0x64d   :  { %2791 = vmatpush.msrb.mxu0 %v2583_v27  ;;  %v7125_v27 = vld [vmem:[#allocation19 + $0x1a0] sm:$0xff] }
 0x64e   :  { %2652 = vmatpush.msrb.mxu1 %v2608_v48 }
 0x64f   :  { %2792 = vmatpush.msrb.mxu0 %v2579_v25  ;;  %v7146_v25 = vld [vmem:[#allocation19 + $0x1b8] sm:$0xff] }
 0x650   :  { %2653 = vmatpush.msrb.mxu1 %v2604_v1 }
 0x651   :  { %2793 = vmatpush.msrb.mxu0 %v2575_v23 }
 0x652   :  { %2654 = vmatpush.msrb.mxu1 %v2600_v62 }
 0x654   :  { %2655 = vmatpush.msrb.mxu1 %v2596_v33 }
 0x656   :  { %2656 = vmatpush.msrb.mxu1 %v2592_v26 }
 0x658   :  { %2657 = vmatpush.msrb.mxu1 %v2588_v47 }
 0x65a   :  { %2658 = vmatpush.msrb.mxu1 %v2584_v17  ;;  %v8674_v17 = vld [vmem:[#allocation63_spill] sm:$0xff] }
 0x6ad   :  { %v2213_v51 = vpop.f32.mrf.mxu1 }
 0x6ae   :  { %v2276_v0 = vadd.f32 %v2213_v51, %v431_v8  ;;  %v2273_v43 = vpop.f32.mrf.mxu0  ;;  %v2590_v8 = vld [vmem:[#allocation18 + $0x90] sm:$0xff] }
 0x6af   :  { %v2279_v31 = vadd.f32 %v2273_v43, %v563_v19  ;;  %2745 = vmatpush.msrb.mxu3 %v2590_v8  ;;  %v2586_v19 = vld [vmem:[#allocation18 + $0x70] sm:$0xff]  ;;  %v2581_v43 = vld [vmem:[#allocation18 + $0x48] sm:$0xff] }
 0x6b0   :  { %v4931_v29 = vmul.f32 -1.442695, %v2276_v0  ;;  %v2580_v0 = vld [vmem:[#allocation18 + $0x40] sm:$0xff]  ;;  %2703 = vmatpush.msrb.mxu2 %v2581_v43  ;;  %v7106_v43 = vld [vmem:[#allocation19 + $0x1a8] sm:$0xff] }
 0x6b1   :  { %v4933_v61 = vmul.f32 -1.442695, %v2279_v31  ;;  %2746 = vmatpush.msrb.mxu3 %v2586_v19  ;;  %v2576_v31 = vld [vmem:[#allocation18 + $0x20] sm:$0xff]  ;;  %2659 = vmatpush.msrb.mxu1 %v2580_v0  ;;  %v7096_v19 = vld [vmem:[#allocation19 + $0x1e8] sm:$0xff] }
 0x6b2   :  { %5115 = vpow2.f32 %v4931_v29  ;;  %v2578_v29 = vld [vmem:[#allocation18 + $0x30] sm:$0xff]  ;;  %2704 = vmatpush.msrb.mxu2 %v2577_v37  ;;  %v7104_v0 = vld [vmem:[#allocation19 + $0x1c0] sm:$0xff]  ;;  %v7138_v37 = vld [vmem:[#allocation19 + $0x1d8] sm:$0xff] }
 0x6b3   :  { %5117 = vpow2.f32 %v4933_v61  ;;  %v2233_v50 = vpop.f32.mrf.mxu2  ;;  %2747 = vmatpush.msrb.mxu3 %v2582_v41  ;;  %v2572_v61 = vld [vmem:[#allocation18] sm:$0xff]  ;;  %2660 = vmatpush.msrb.mxu1 %v2576_v31  ;;  %v7123_v41 = vld [vmem:[#allocation19 + $0x188] sm:$0xff]  ;;  %v7127_v31 = vld [vmem:[#allocation19 + $0x1f8] sm:$0xff] }
 0x6b4   :  { %v2277_v36 = vadd.f32 %v2233_v50, %v475_v54  ;;  %v2253_v59 = vpop.f32.mrf.mxu3  ;;  %v2573_v54 = vld [vmem:[#allocation18 + $0x8] sm:$0xff] }
 0x6b5   :  { %2748 = vmatpush.msrb.mxu3 %v2578_v29  ;;  %2661 = vmatpush.msrb.mxu1 %v2572_v61  ;;  %v7140_v29 = vld [vmem:[#allocation19 + $0x1d0] sm:$0xff] }
 0x6b6   :  { %v4932_v10 = vmul.f32 -1.442695, %v2277_v36  ;;  %v2278_v36 = vadd.f32 %v2253_v59, %v519_v4  ;;  %2705 = vmatpush.msrb.mxu2 %v2573_v54  ;;  %v7148_v61 = vld [vmem:[#allocation19 + $0x1b0] sm:$0xff]  ;;  %v566_v4 = vadd.f32 %v8678_v20, %v8662_v58  ;;  %v7162_v58 = vld [vmem:[#allocation19 + $0x160] sm:$0xff]  ;;  %v7249_v20 = vld [vmem:[#allocation19 + $0xb8] sm:$0xff] }
 0x6b7   :  { %2749 = vmatpush.msrb.mxu3 %v2574_v22  ;;  %8682 = vst [vmem:[#allocation35_spill] sm:$0xff] %v7249_v20 }
 0x6b8   :  { %v5116_v30 = vpop.eup %5115  ;;  %5119 = vpow2.f32 %v4932_v10 }
 0x6b9   :  { %v5118_v57 = vpop.eup %5117  ;;  %v7046_v52 = vadd.f32 1.0, %v5116_v30 }
 0x6ba   :  { %v7049_v34 = vadd.f32 1.0, %v5118_v57 }
 0x6bb   :  { %5121 = vrcp.f32 %v7046_v52  ;;  %v2295_v21 = vand.u32 2147483648, %v7046_v52  ;;  %vm2289_vm10 = vweird.f32 %v7046_v52  ;;  %v2293_v1 = vand.u32 2147483647, %v7046_v52 }
 0x6bc   :  { %5123 = vrcp.f32 %v7049_v34  ;;  %v2334_v45 = vand.u32 2147483648, %v7049_v34  ;;  %vm2328_vm2 = vweird.f32 %v7049_v34  ;;  %v2332_v47 = vand.u32 2147483647, %v7049_v34 }
 0x6bd   :  { %v2296_v12 = vor.u32 1.1754944e-38, %v2295_v21  ;;  %vm2294_vm14 = vcmp.eq.f32.partialorder %v2293_v1, 8.507059e+37  ;;  %v8679_v21 = vld [vmem:[#allocation53_spill] sm:$0xff]  ;;  %v7173_v1 = vld [vmem:[#allocation19 + $0x148] sm:$0xff] }
 0x6be   :  { %v5120_v3 = vpop.eup %5119  ;;  %vm2333_vm4 = vcmp.eq.f32.partialorder %v2332_v47, 8.507059e+37 }
 0x6bf   :  { %v7051_v38 = vadd.f32 1.0, %v5120_v3  ;;  %v2335_v3 = vor.u32 1.1754944e-38, %v2334_v45  ;;  %v7212_v45 = vld [vmem:[#allocation19 + $0x118] sm:$0xff] }
 0x6c1   :  { %v7054_v51 = vpop.eup %5121  ;;  %5125 = vrcp.f32 %v7051_v38  ;;  %v2314_v53 = vand.u32 2147483648, %v7051_v38  ;;  %v2312_v30 = vand.u32 2147483647, %v7051_v38  ;;  %vm2308_vm13 = vweird.f32 %v7051_v38 }
 0x6c2   :  { %v2285_v42 = vmul.f32 %v7054_v51, %v7046_v52  ;;  %v5124_v35 = vpop.eup %5123  ;;  %vm2290_vm9 = vweird.f32 %v7054_v51  ;;  %5127 = vtanh.f32 %v2278_v36 }
 0x6c3   :  { %v2324_v56 = vmul.f32 %v5124_v35, %v7049_v34  ;;  %vm2291_vm11 = vmor %vm2289_vm10, %vm2290_vm9  ;;  %v2315_v57 = vor.u32 1.1754944e-38, %v2314_v53  ;;  %vm2313_vm0 = vcmp.eq.f32.partialorder %v2312_v30, 8.507059e+37  ;;  %vm2329_vm1 = vweird.f32 %v5124_v35  ;;  %v8673_v34 = vld [vmem:[#allocation59_spill] sm:$0xff]  ;;  %v7175_v53 = vld [vmem:[#allocation19 + $0x140] sm:$0xff] }
 0x6c4   :  { %v2286_v11 = vsub.f32 1.0, %v2285_v42  ;;  %vm2330_vm3 = vmor %vm2328_vm2, %vm2329_vm1  ;;  %v8676_v42 = vld [vmem:[#allocation61_spill] sm:$0xff]  ;;  %v7182_v30 = vld [vmem:[#allocation19 + $0x150] sm:$0xff] }
 0x6c5   :  { %v2325_v62 = vsub.f32 1.0, %v2324_v56 }
 0x6c6   :  { %v2287_v50 = vmul.f32 %v7054_v51, %v2286_v11  ;;  %v8677_v11 = vld [vmem:[#allocation34_spill] sm:$0xff] }
 0x6c7   :  { %v5126_v46 = vpop.eup %5125  ;;  %v2326_v39 = vmul.f32 %v5124_v35, %v2325_v62  ;;  %v434_v59 = vadd.f32 %v8677_v11, %v8660_v6  ;;  %v7242_v11 = vld [vmem:[#allocation19 + $0x80] sm:$0xff] }
 0x6c8   :  { %v2304_v48 = vmul.f32 %v5126_v46, %v7051_v38  ;;  %v2288_v18 = vadd.f32 %v7054_v51, %v2287_v50  ;;  %vm2309_vm12 = vweird.f32 %v5126_v46  ;;  %v5128_v33 = vpop.eup %5127  ;;  %v8672_v38 = vld [vmem:[#allocation58_spill] sm:$0xff]  ;;  %v7156_v50 = vld [vmem:[#allocation19 + $0x198] sm:$0xff]  ;;  %8681 = vst [vmem:[#allocation40_spill] sm:$0xff] %v7242_v11 }
 0x6c9   :  { %vm2310_vm15 = vmor %vm2308_vm13, %vm2309_vm12  ;;  %v2327_v55 = vadd.f32 %v5124_v35, %v2326_v39  ;;  %v7200_v39 = vld [vmem:[#allocation19 + $0x100] sm:$0xff] }
 0x6ca   :  { %v2305_v10 = vsub.f32 1.0, %v2304_v48  ;;  %v2292_v28 = vsel %vm2291_vm11, %v7054_v51, %v2288_v18  ;;  %v7098_v51 = vld [vmem:[#allocation19 + $0x1c8] sm:$0xff]  ;;  %v7165_v48 = vld [vmem:[#allocation19 + $0x178] sm:$0xff]  ;;  %v7167_v18 = vld [vmem:[#allocation19 + $0x170] sm:$0xff] }
 0x6cb   :  { %v2297_v16 = vsel %vm2294_vm14, %v2296_v12, %v2292_v28  ;;  %v2331_v63 = vsel %vm2330_vm3, %v5124_v35, %v2327_v55  ;;  %v7154_v35 = vld [vmem:[#allocation19 + $0x180] sm:$0xff]  ;;  %v7184_v12 = vld [vmem:[#allocation19 + $0x128] sm:$0xff] }
 0x6cc   :  { %v2306_v60 = vmul.f32 %v5126_v46, %v2305_v10  ;;  %v2339_v26 = vmul.f32 %v5128_v33, %v2297_v16  ;;  %v2336_v13 = vsel %vm2333_vm4, %v2335_v3, %v2331_v63  ;;  %v478_v10 = vadd.f32 %v8679_v21, %v8664_v2  ;;  %v7186_v2 = vld [vmem:[#allocation19 + $0x120] sm:$0xff]  ;;  %v7198_v33 = vld [vmem:[#allocation19 + $0xe8] sm:$0xff]  ;;  %v7218_v3 = vld [vmem:[#allocation19 + $0x110] sm:$0xff] }
 0x6cd   :  { %v7210_v55 = vld [vmem:[#allocation19 + $0xc0] sm:$0xff] }
 0x6ce   :  { %v2307_v24 = vadd.f32 %v5126_v46, %v2306_v60  ;;  %v7178_v60 = vld [vmem:[#allocation19 + $0x158] sm:$0xff]  ;;  %v7270_v21 = vld [vmem:[#allocation19 + $0x40] sm:$0xff] }
 0x6cf   :  { %8688 = vst [vmem:[#allocation44_spill] sm:$0xff] %v7270_v21 }
 0x6d0   :  { %v2311_v52 = vsel %vm2310_vm15, %v5126_v46, %v2307_v24  ;;  %v7158_v46 = vld [vmem:[#allocation19 + $0x190] sm:$0xff]  ;;  %v7190_v24 = vld [vmem:[#allocation19 + $0x138] sm:$0xff] }
 0x6d1   :  { %v2316_v49 = vsel %vm2313_vm0, %v2315_v57, %v2311_v52  ;;  %v7194_v57 = vld [vmem:[#allocation19 + $0x130] sm:$0xff]  ;;  %v7196_v52 = vld [vmem:[#allocation19 + $0x108] sm:$0xff] }
 0x6d2   :  { %v2338_v7 = vmul.f32 %v2316_v49, %v7031_v32  ;;  %v7206_v49 = vld [vmem:[#allocation19 + $0xe0] sm:$0xff] }
 0x6d4   :  { %v7074_v15 = vadd.f32 %v2339_v26, %v2338_v7  ;;  %v7208_v26 = vld [vmem:[#allocation19 + $0xc8] sm:$0xff] }
 0x6d6   :  { %5129 = vtanh.f32 %v7074_v15 }
 0x6dc   :  { %v5130_v8 = vpop.eup %5129 }
 0x6dd   :  { %v2342_v32 = vmul.f32 %v5130_v8, %v2336_v13  ;;  %v7220_v8 = vld [vmem:[#allocation19 + $0xf8] sm:$0xff]  ;;  %v7222_v13 = vld [vmem:[#allocation19 + $0xa8] sm:$0xff] }
 0x6df   :  { %2430 = vmatmul.f32.vlgmr.msra.gmra.mxu1 %v2342_v32  ;;  %2450 = vmatmul.f32.vlgmr.msra.gmra.mxu2 %v2342_v32 }
 0x6e0   :  { %2470 = vmatmul.f32.vlgmr.msra.gmra.mxu3 %v2342_v32  ;;  %2490 = vmatmul.f32.vlgmr.msra.gmra.mxu0 %v2342_v32 }
 0x6e1   :  { %2946 = vmatpush.msra.mxu2 %v7096_v19  ;;  %2926 = vmatpush.msra.mxu1 %v7100_v40 }
 0x6e2   :  { %2986 = vmatpush.msra.mxu0 %v7127_v31 }
 0x6e3   :  { %2947 = vmatpush.msra.mxu2 %v7098_v51  ;;  %2927 = vmatpush.msra.mxu1 %v7104_v0 }
 0x6e4   :  { %2987 = vmatpush.msra.mxu0 %v7138_v37 }
 0x6e5   :  { %2948 = vmatpush.msra.mxu2 %v7106_v43  ;;  %2928 = vmatpush.msra.mxu1 %v7125_v27 }
 0x6e6   :  { %2988 = vmatpush.msra.mxu0 %v7146_v25 }
 0x6e7   :  { %2662 = vmatmul.f32.vlgmr.msrb.gmra.mxu1 %v8672_v38  ;;  %2706 = vmatmul.f32.vlgmr.msrb.gmra.mxu2 %v8672_v38 }
 0x6e8   :  { %2750 = vmatmul.f32.vlgmr.msrb.gmra.mxu3 %v8672_v38  ;;  %2794 = vmatmul.f32.vlgmr.msrb.gmra.mxu0 %v8672_v38  ;;  %v7228_v38 = vld [vmem:[#allocation19 + $0xf0] sm:$0xff] }
 0x6e9   :  { %2949 = vmatpush.msra.mxu2 %v7123_v41  ;;  %2929 = vmatpush.msra.mxu1 %v7154_v35 }
 0x6ea   :  { %2989 = vmatpush.msra.mxu0 %v7156_v50 }
 0x6eb   :  { %2930 = vmatpush.msra.mxu1 %v7162_v58 }
 0x6ec   :  { %2990 = vmatpush.msra.mxu0 %v7165_v48 }
 0x6ed   :  { %2931 = vmatpush.msra.mxu1 %v7175_v53 }
 0x6ee   :  { %2991 = vmatpush.msra.mxu0 %v7178_v60 }
 0x6ef   :  { %2665 = vmatmul.f32.gmra.mxu1 %v8673_v34  ;;  %2709 = vmatmul.f32.gmra.mxu2 %v8673_v34 }
 0x6f0   :  { %2753 = vmatmul.f32.gmra.mxu3 %v8673_v34  ;;  %2797 = vmatmul.f32.gmra.mxu0 %v8673_v34  ;;  %v7233_v34 = vld [vmem:[#allocation19 + $0xd8] sm:$0xff] }
 0x6f1   :  { %2932 = vmatpush.msra.mxu1 %v7186_v2  ;;  %2992 = vmatpush.msra.mxu0 %v7190_v24 }
 0x6f3   :  { %2933 = vmatpush.msra.mxu1 %v7200_v39  ;;  %2993 = vmatpush.msra.mxu0 %v7212_v45 }
 0x6f5   :  { %2934 = vmatpush.msra.mxu1 %v7206_v49  ;;  %2994 = vmatpush.msra.mxu0 %v7220_v8 }
 0x6f7   :  { %2668 = vmatmul.f32.gmra.mxu1 %v8674_v17  ;;  %2712 = vmatmul.f32.gmra.mxu2 %v8674_v17 }
 0x6f8   :  { %2756 = vmatmul.f32.gmra.mxu3 %v8674_v17  ;;  %2800 = vmatmul.f32.gmra.mxu0 %v8674_v17  ;;  %v7235_v17 = vld [vmem:[#allocation19 + $0xd0] sm:$0xff] }
 0x6f9   :  { %2935 = vmatpush.msra.mxu1 %v7210_v55  ;;  %2995 = vmatpush.msra.mxu0 %v7233_v34 }
 0x6fb   :  { %2996 = vmatpush.msra.mxu0 %v7249_v20  ;;  %v7317_v20 = vld [vmem:[#allocation19 + $0x18] sm:$0xff] }
 0x6fc   :  { %8698 = vst [vmem:[#allocation54_spill] sm:$0xff] %v7317_v20 }
 0x6ff   :  { %2671 = vmatmul.f32.gmra.mxu1 %v8675_v14  ;;  %2715 = vmatmul.f32.gmra.mxu2 %v8675_v14 }
 0x700   :  { %2759 = vmatmul.f32.gmra.mxu3 %v8675_v14  ;;  %2803 = vmatmul.f32.gmra.mxu0 %v8675_v14 }
 0x707   :  { %2674 = vmatmul.f32.gmra.mxu1 %v8676_v42  ;;  %2718 = vmatmul.f32.gmra.mxu2 %v8676_v42 }
 0x708   :  { %2762 = vmatmul.f32.gmra.mxu3 %v8676_v42  ;;  %2806 = vmatmul.f32.gmra.mxu0 %v8676_v42  ;;  %v7239_v42 = vld [vmem:[#allocation19 + $0x88] sm:$0xff] }
 0x709   :  { %8680 = vst [vmem:[#allocation39_spill] sm:$0xff] %v7239_v42 }
 0x70f   :  { %2677 = vmatmul.f32.gmra.mxu1 %v6963_v5  ;;  %2721 = vmatmul.f32.gmra.mxu2 %v6963_v5 }
 0x710   :  { %2765 = vmatmul.f32.gmra.mxu3 %v6963_v5  ;;  %2809 = vmatmul.f32.gmra.mxu0 %v6963_v5  ;;  %v7131_v5 = vld [vmem:[#allocation19 + $0x168] sm:$0xff] }
 0x711   :  { %2950 = vmatpush.msra.mxu2 %v7131_v5 }
 0x713   :  { %2951 = vmatpush.msra.mxu2 %v7173_v1 }
 0x715   :  { %2952 = vmatpush.msra.mxu2 %v7184_v12 }
 0x717   :  { %2680 = vmatmul.f32.gmra.mxu1 %v7034_v9  ;;  %2724 = vmatmul.f32.gmra.mxu2 %v7034_v9 }
 0x718   :  { %2768 = vmatmul.f32.gmra.mxu3 %v7034_v9  ;;  %2812 = vmatmul.f32.gmra.mxu0 %v7034_v9  ;;  %v7135_v9 = vld [vmem:[#allocation19 + $0x1f0] sm:$0xff] }
 0x719   :  { %2966 = vmatpush.msra.mxu3 %v7135_v9  ;;  %2953 = vmatpush.msra.mxu2 %v7196_v52 }
 0x71b   :  { %2967 = vmatpush.msra.mxu3 %v7140_v29  ;;  %2954 = vmatpush.msra.mxu2 %v7198_v33 }
 0x71d   :  { %2968 = vmatpush.msra.mxu3 %v7148_v61  ;;  %2955 = vmatpush.msra.mxu2 %v7208_v26 }
 0x71f   :  { %2683 = vmatmul.f32.gmra.mxu1 %v2342_v32  ;;  %2727 = vmatmul.f32.gmra.mxu2 %v2342_v32 }
 0x720   :  { %2771 = vmatmul.f32.gmra.mxu3 %v2342_v32  ;;  %2815 = vmatmul.f32.gmra.mxu0 %v2342_v32  ;;  %v7225_v32 = vld [vmem:[#allocation19 + $0xa0] sm:$0xff] }
 0x721   :  { %2969 = vmatpush.msra.mxu3 %v7158_v46  ;;  %2956 = vmatpush.msra.mxu2 %v7222_v13 }
 0x722   :  { %2936 = vmatpush.msra.mxu1 %v7225_v32 }
 0x723   :  { %2970 = vmatpush.msra.mxu3 %v7167_v18  ;;  %2957 = vmatpush.msra.mxu2 %v7239_v42  ;;  %v8693_v42 = vld [vmem:[#allocation56_spill] sm:$0xff] }
 0x724   :  { %2937 = vmatpush.msra.mxu1 %v7242_v11  ;;  %v522_v11 = vadd.f32 %v8693_v42, %v8666_v44  ;;  %v7313_v42 = vld [vmem:[#allocation19] sm:$0xff] }
 0x725   :  { %2971 = vmatpush.msra.mxu3 %v7182_v30 }
 0x727   :  { %2972 = vmatpush.msra.mxu3 %v7194_v57 }
 0x729   :  { %2973 = vmatpush.msra.mxu3 %v7218_v3 }
 0x72b   :  { %2974 = vmatpush.msra.mxu3 %v7228_v38 }
 0x72d   :  { %2975 = vmatpush.msra.mxu3 %v7235_v17 }
 0x75c   :  { %v2431_v54 = vpop.f32.mrf.mxu1 }
 0x75d   :  { %v2494_v22 = vadd.f32 %v2431_v54, %v434_v59  ;;  %v2491_v23 = vpop.f32.mrf.mxu0  ;;  %v7247_v59 = vld [vmem:[#allocation19 + $0xb0] sm:$0xff]  ;;  %v7251_v54 = vld [vmem:[#allocation19 + $0x68] sm:$0xff] }
 0x75e   :  { %v2497_v6 = vadd.f32 %v2491_v23, %v566_v4  ;;  %8683 = vst [vmem:[#allocation37_spill] sm:$0xff] %v7251_v54  ;;  %2976 = vmatpush.msra.mxu3 %v7247_v59  ;;  %2958 = vmatpush.msra.mxu2 %v7251_v54 }
 0x75f   :  { %v4934_v36 = vmul.f32 -1.442695, %v2494_v22  ;;  %v7255_v22 = vld [vmem:[#allocation19 + $0x60] sm:$0xff] }
 0x760   :  { %v4936_v56 = vmul.f32 -1.442695, %v2497_v6  ;;  %8684 = vst [vmem:[#allocation42_spill] sm:$0xff] %v7255_v22  ;;  %v7261_v6 = vld [vmem:[#allocation19 + $0x90] sm:$0xff]  ;;  %2938 = vmatpush.msra.mxu1 %v7255_v22 }
 0x761   :  { %5131 = vpow2.f32 %v4934_v36  ;;  %8685 = vst [vmem:[#allocation43_spill] sm:$0xff] %v7261_v6  ;;  %v7263_v36 = vld [vmem:[#allocation19 + $0x98] sm:$0xff]  ;;  %2977 = vmatpush.msra.mxu3 %v7261_v6 }
 0x762   :  { %5133 = vpow2.f32 %v4936_v56  ;;  %v2451_v28 = vpop.f32.mrf.mxu2  ;;  %8686 = vst [vmem:[#allocation30_spill] sm:$0xff] %v7263_v36  ;;  %v7266_v56 = vld [vmem:[#allocation19 + $0x48] sm:$0xff]  ;;  %2997 = vmatpush.msra.mxu0 %v7263_v36  ;;  %2939 = vmatpush.msra.mxu1 %v7270_v21  ;;  %v7302_v21 = vld [vmem:[#allocation19 + $0x30] sm:$0xff] }
 0x763   :  { %v2495_v62 = vadd.f32 %v2451_v28, %v478_v10  ;;  %8687 = vst [vmem:[#allocation38_spill] sm:$0xff] %v7266_v56  ;;  %v7277_v28 = vld [vmem:[#allocation19 + $0x70] sm:$0xff]  ;;  %2959 = vmatpush.msra.mxu2 %v7266_v56  ;;  %v2471_v22 = vpop.f32.mrf.mxu3  ;;  %v7298_v36 = vld [vmem:[#allocation19 + $0x8] sm:$0xff]  ;;  %v7300_v56 = vld [vmem:[#allocation19 + $0x20] sm:$0xff] }
 0x764   :  { %8689 = vst [vmem:[#allocation47_spill] sm:$0xff] %v7277_v28  ;;  %2978 = vmatpush.msra.mxu3 %v7277_v28  ;;  %v2496_v44 = vadd.f32 %v2471_v22, %v522_v11  ;;  %2940 = vmatpush.msra.mxu1 %v7300_v56 }
 0x765   :  { %v4935_v16 = vmul.f32 -1.442695, %v2495_v62  ;;  %v7279_v62 = vld [vmem:[#allocation19 + $0x78] sm:$0xff]  ;;  %8694 = vst [vmem:[#allocation46_spill] sm:$0xff] %v7298_v36 }
 0x766   :  { %8690 = vst [vmem:[#allocation62_spill] sm:$0xff] %v7279_v62  ;;  %2998 = vmatpush.msra.mxu0 %v7279_v62  ;;  %v7309_v62 = vld [vmem:[#allocation19 + $0x38] sm:$0xff]  ;;  %2941 = vmatpush.msra.mxu1 %v7313_v42 }
 0x767   :  { %v5132_v7 = vpop.eup %5131  ;;  %5135 = vpow2.f32 %v4935_v16  ;;  %8695 = vst [vmem:[#allocation31_spill] sm:$0xff] %v7302_v21 }
 0x768   :  { %v5134_v47 = vpop.eup %5133  ;;  %v7214_v63 = vadd.f32 1.0, %v5132_v7  ;;  %v7283_v7 = vld [vmem:[#allocation19 + $0x28] sm:$0xff]  ;;  %8696 = vst [vmem:[#allocation52_spill] sm:$0xff] %v7309_v62  ;;  %3142 = vmatpush.msrb.mxu1 %v7100_v40 }
 0x769   :  { %v7237_v14 = vadd.f32 1.0, %v5134_v47  ;;  %8691 = vst [vmem:[#allocation33_spill] sm:$0xff] %v7283_v7  ;;  %v7289_v47 = vld [vmem:[#allocation19 + $0x50] sm:$0xff]  ;;  %2960 = vmatpush.msra.mxu2 %v7283_v7 }
 0x76a   :  { %5137 = vrcp.f32 %v7214_v63  ;;  %8692 = vst [vmem:[#allocation36_spill] sm:$0xff] %v7289_v47  ;;  %2979 = vmatpush.msra.mxu3 %v7289_v47  ;;  %v7315_v7 = vld [vmem:[#allocation19 + $0x10] sm:$0xff]  ;;  %v2513_v22 = vand.u32 2147483648, %v7214_v63  ;;  %vm2507_vm6 = vweird.f32 %v7214_v63  ;;  %3143 = vmatpush.msrb.mxu1 %v7104_v0 }
 0x76b   :  { %5139 = vrcp.f32 %v7237_v14  ;;  %2961 = vmatpush.msra.mxu2 %v7298_v36  ;;  %8697 = vst [vmem:[#allocation41_spill] sm:$0xff] %v7315_v7  ;;  %vm2546_vm14 = vweird.f32 %v7237_v14 }
 0x76c   :  { %2980 = vmatpush.msra.mxu3 %v7302_v21  ;;  %3144 = vmatpush.msrb.mxu1 %v7125_v27 }
 0x76d   :  { %v5136_v4 = vpop.eup %5135  ;;  %3162 = vmatpush.msrb.mxu2 %v7096_v19 }
 0x76e   :  { %v7257_v23 = vadd.f32 1.0, %v5136_v4  ;;  %v7291_v4 = vld [vmem:[#allocation19 + $0x58] sm:$0xff]  ;;  %2981 = vmatpush.msra.mxu3 %v7315_v7  ;;  %v2514_v7 = vor.u32 1.1754944e-38, %v2513_v22  ;;  %3145 = vmatpush.msrb.mxu1 %v7154_v35  ;;  %v8704_v22 = vld [vmem:[#allocation43_spill] sm:$0xff] }
 0x76f   :  { %2999 = vmatpush.msra.mxu0 %v7291_v4  ;;  %3163 = vmatpush.msrb.mxu2 %v7098_v51 }
 0x770   :  { %v7272_v10 = vpop.eup %5137  ;;  %5141 = vrcp.f32 %v7257_v23  ;;  %3182 = vmatpush.msrb.mxu3 %v7135_v9  ;;  %vm2526_vm9 = vweird.f32 %v7257_v23  ;;  %3146 = vmatpush.msrb.mxu1 %v7162_v58 }
 0x771   :  { %v2503_v16 = vmul.f32 %v7272_v10, %v7214_v63  ;;  %v7304_v6 = vpop.eup %5139  ;;  %vm2508_vm5 = vweird.f32 %v7272_v10  ;;  %3000 = vmatpush.msra.mxu0 %v7309_v62  ;;  %v2532_v62 = vand.u32 2147483648, %v7257_v23  ;;  %5143 = vtanh.f32 %v2496_v44  ;;  %3164 = vmatpush.msrb.mxu2 %v7106_v43  ;;  %v8702_v44 = vld [vmem:[#allocation40_spill] sm:$0xff] }
 0x772   :  { %v2542_v11 = vmul.f32 %v7304_v6, %v7237_v14  ;;  %vm7334_vm7 = vmor %vm2507_vm6, %vm2508_vm5  ;;  %3183 = vmatpush.msrb.mxu3 %v7140_v29  ;;  %vm2547_vm13 = vweird.f32 %v7304_v6  ;;  %3147 = vmatpush.msrb.mxu1 %v7175_v53 }
 0x773   :  { %v2504_v54 = vsub.f32 1.0, %v2503_v16  ;;  %3001 = vmatpush.msra.mxu0 %v7317_v20  ;;  %3165 = vmatpush.msrb.mxu2 %v7123_v41  ;;  %v2550_v41 = vand.u32 2147483647, %v7237_v14  ;;  %vm2548_vm15 = vmor %vm2546_vm14, %vm2547_vm13 }
 0x774   :  { %v2543_v20 = vsub.f32 1.0, %v2542_v11  ;;  %3184 = vmatpush.msrb.mxu3 %v7148_v61  ;;  %3148 = vmatpush.msrb.mxu1 %v7186_v2  ;;  %v8703_v11 = vld [vmem:[#allocation39_spill] sm:$0xff] }
 0x775   :  { %v2505_v16 = vmul.f32 %v7272_v10, %v2504_v54  ;;  %3202 = vmatpush.msrb.mxu0 %v7127_v31  ;;  %3166 = vmatpush.msrb.mxu2 %v7131_v5  ;;  %vm2551_vm0 = vcmp.eq.f32.partialorder %v2550_v41, 8.507059e+37 }
 0x776   :  { %v5142_v28 = vpop.eup %5141  ;;  %3185 = vmatpush.msrb.mxu3 %v7158_v46  ;;  %3149 = vmatpush.msrb.mxu1 %v7200_v39 }
 0x777   :  { %v2522_v54 = vmul.f32 %v5142_v28, %v7257_v23  ;;  %v2506_v47 = vadd.f32 %v7272_v10, %v2505_v16  ;;  %v2511_v16 = vand.u32 2147483647, %v7214_v63  ;;  %vm2527_vm8 = vweird.f32 %v5142_v28  ;;  %3203 = vmatpush.msrb.mxu0 %v7138_v37  ;;  %v5144_v51 = vpop.eup %5143  ;;  %3167 = vmatpush.msrb.mxu2 %v7173_v1 }
 0x778   :  { %vm2528_vm11 = vmor %vm2526_vm9, %vm2527_vm8  ;;  %3186 = vmatpush.msrb.mxu3 %v7167_v18  ;;  %3150 = vmatpush.msrb.mxu1 %v7206_v49 }
 0x779   :  { %v2523_v36 = vsub.f32 1.0, %v2522_v54  ;;  %v2510_v63 = vsel %vm7334_vm7, %v7272_v10, %v2506_v47  ;;  %v2530_v54 = vand.u32 2147483647, %v7257_v23  ;;  %vm2512_vm10 = vcmp.eq.f32.partialorder %v2511_v16, 8.507059e+37  ;;  %3204 = vmatpush.msrb.mxu0 %v7146_v25  ;;  %3168 = vmatpush.msrb.mxu2 %v7184_v12  ;;  %v8701_v47 = vld [vmem:[#allocation35_spill] sm:$0xff]  ;;  %v8705_v16 = vld [vmem:[#allocation30_spill] sm:$0xff] }
 0x77a   :  { %v2515_v21 = vsel %vm2512_vm10, %v2514_v7, %v2510_v63  ;;  %v2544_v23 = vmul.f32 %v7304_v6, %v2543_v20  ;;  %3187 = vmatpush.msrb.mxu3 %v7182_v30  ;;  %3151 = vmatpush.msrb.mxu1 %v7210_v55  ;;  %v8707_v63 = vld [vmem:[#allocation37_spill] sm:$0xff] }
 0x77b   :  { %v2524_v19 = vmul.f32 %v5142_v28, %v2523_v36  ;;  %v2533_v36 = vor.u32 1.1754944e-38, %v2532_v62  ;;  %vm2531_vm12 = vcmp.eq.f32.partialorder %v2530_v54, 8.507059e+37  ;;  %v2557_v7 = vmul.f32 %v5144_v51, %v2515_v21  ;;  %3205 = vmatpush.msrb.mxu0 %v7156_v50  ;;  %3169 = vmatpush.msrb.mxu2 %v7196_v52  ;;  %v8708_v54 = vld [vmem:[#allocation47_spill] sm:$0xff]  ;;  %v8711_v21 = vld [vmem:[#allocation44_spill] sm:$0xff] }
 0x77c   :  { %v2545_v27 = vadd.f32 %v7304_v6, %v2544_v23  ;;  %3188 = vmatpush.msrb.mxu3 %v7194_v57  ;;  %3152 = vmatpush.msrb.mxu1 %v7225_v32  ;;  %v8713_v51 = vld [vmem:[#allocation36_spill] sm:$0xff]  ;;  %v8715_v23 = vld [vmem:[#allocation31_spill] sm:$0xff] }
 0x77d   :  { %v2525_v40 = vadd.f32 %v5142_v28, %v2524_v19  ;;  %3206 = vmatpush.msrb.mxu0 %v7165_v48  ;;  %3170 = vmatpush.msrb.mxu2 %v7198_v33  ;;  %v8706_v19 = vld [vmem:[#allocation42_spill] sm:$0xff] }
 0x77e   :  { %v2549_v5 = vsel %vm2548_vm15, %v7304_v6, %v2545_v27  ;;  %3189 = vmatpush.msrb.mxu3 %v7218_v3  ;;  %3153 = vmatpush.msrb.mxu1 %v8702_v44  ;;  %v8719_v27 = vld [vmem:[#allocation54_spill] sm:$0xff] }
 0x77f   :  { %v2529_v10 = vsel %vm2528_vm11, %v5142_v28, %v2525_v40  ;;  %3207 = vmatpush.msrb.mxu0 %v7178_v60  ;;  %3171 = vmatpush.msrb.mxu2 %v7208_v26  ;;  %v8709_v40 = vld [vmem:[#allocation62_spill] sm:$0xff] }
 0x780   :  { %v2534_v0 = vsel %vm2531_vm12, %v2533_v36, %v2529_v10  ;;  %3190 = vmatpush.msrb.mxu3 %v7228_v38  ;;  %3154 = vmatpush.msrb.mxu1 %v8706_v19  ;;  %v8710_v36 = vmov 0.0   ;;  %v8712_v10 = vld [vmem:[#allocation38_spill] sm:$0xff] }
 0x781   :  { %v2556_v62 = vmul.f32 %v2534_v0, %v7074_v15  ;;  %v2552_v15 = vand.u32 2147483648, %v7237_v14  ;;  %3208 = vmatpush.msrb.mxu0 %v7190_v24  ;;  %3172 = vmatpush.msrb.mxu2 %v7222_v13  ;;  %v8714_v0 = vld [vmem:[#allocation33_spill] sm:$0xff] }
 0x782   :  { %3191 = vmatpush.msrb.mxu3 %v7235_v17  ;;  %3155 = vmatpush.msrb.mxu1 %v8711_v21 }
 0x783   :  { %v2558_v43 = vadd.f32 %v2557_v7, %v2556_v62  ;;  %v2553_v20 = vor.u32 1.1754944e-38, %v2552_v15  ;;  %3209 = vmatpush.msrb.mxu0 %v7212_v45  ;;  %3173 = vmatpush.msrb.mxu2 %v8703_v11  ;;  %v8716_v62 = vld [vmem:[#allocation52_spill] sm:$0xff]  ;;  %v8717_v7 = vld [vmem:[#allocation46_spill] sm:$0xff] }
 0x784   :  { %3192 = vmatpush.msrb.mxu3 %v7247_v59  ;;  %3156 = vmatpush.msrb.mxu1 %v7300_v56 }
 0x785   :  { %5145 = vtanh.f32 %v2558_v43  ;;  %v2554_v28 = vsel %vm2551_vm0, %v2553_v20, %v2549_v5  ;;  %3210 = vmatpush.msrb.mxu0 %v7220_v8  ;;  %3174 = vmatpush.msrb.mxu2 %v8707_v63  ;;  %v8718_v43 = vld [vmem:[#allocation41_spill] sm:$0xff] }
 0x786   :  { %3193 = vmatpush.msrb.mxu3 %v8704_v22  ;;  %3157 = vmatpush.msrb.mxu1 %v7313_v42 }
 0x787   :  { %3211 = vmatpush.msrb.mxu0 %v7233_v34  ;;  %3175 = vmatpush.msrb.mxu2 %v8712_v10 }
 0x788   :  { %3194 = vmatpush.msrb.mxu3 %v8708_v54 }
 0x789   :  { %3212 = vmatpush.msrb.mxu0 %v8701_v47  ;;  %3176 = vmatpush.msrb.mxu2 %v8714_v0 }
 0x78a   :  { %3195 = vmatpush.msrb.mxu3 %v8713_v51 }
 0x78b   :  { %v5146_v14 = vpop.eup %5145  ;;  %3213 = vmatpush.msrb.mxu0 %v8705_v16  ;;  %3177 = vmatpush.msrb.mxu2 %v8717_v7 }
 0x78c   :  { %v2560_v6 = vmul.f32 %v5146_v14, %v2554_v28  ;;  %3196 = vmatpush.msrb.mxu3 %v8715_v23 }
 0x78d   :  { %3214 = vmatpush.msrb.mxu0 %v8709_v40 }
 0x78e   :  { %2686 = vmatmul.f32.gmra.mxu1 %v2560_v6  ;;  %2730 = vmatmul.f32.gmra.mxu2 %v2560_v6 }
 0x78f   :  { %2774 = vmatmul.f32.gmra.mxu3 %v2560_v6  ;;  %2818 = vmatmul.f32.gmra.mxu0 %v2560_v6 }
 0x790   :  { %3215 = vmatpush.msrb.mxu0 %v7291_v4  ;;  %3197 = vmatpush.msrb.mxu3 %v8718_v43 }
 0x792   :  { %3216 = vmatpush.msrb.mxu0 %v8716_v62 }
 0x794   :  { %3217 = vmatpush.msrb.mxu0 %v8719_v27 }
 0x796   :  { %2942 = vmatmul.f32.vlgmr.msra.gmra.mxu1 %v8710_v36  ;;  %2962 = vmatmul.f32.vlgmr.msra.gmra.mxu2 %v8710_v36 }
 0x797   :  { %2982 = vmatmul.f32.vlgmr.msra.gmra.mxu3 %v8710_v36  ;;  %3002 = vmatmul.f32.vlgmr.msra.gmra.mxu0 %v8710_v36 }
 0x798   :  { %3398 = vmatpush.msra.mxu3 %v7135_v9  ;;  %3418 = vmatpush.msra.mxu0 %v7127_v31  ;;  %v2663_v31 = vpop.f32.mrf.mxu1  ;;  %v2795_v9 = vpop.f32.mrf.mxu0 }
 0x79a   :  { %3399 = vmatpush.msra.mxu3 %v7140_v29  ;;  %3419 = vmatpush.msra.mxu0 %v7138_v37  ;;  %v2707_v37 = vpop.f32.mrf.mxu2 }
 0x79c   :  { %3400 = vmatpush.msra.mxu3 %v7148_v61  ;;  %3420 = vmatpush.msra.mxu0 %v7146_v25 }
 0x79e   :  { %3401 = vmatpush.msra.mxu3 %v7158_v46  ;;  %3421 = vmatpush.msra.mxu0 %v7156_v50  ;;  %v2751_v46 = vpop.f32.mrf.mxu3 }
 0x7a0   :  { %3402 = vmatpush.msra.mxu3 %v7167_v18  ;;  %3422 = vmatpush.msra.mxu0 %v7165_v48  ;;  %v7450_v29 = vpop.f32.mrf.mxu1  ;;  %v7452_v25 = vpop.f32.mrf.mxu0 }
 0x7a2   :  { %3403 = vmatpush.msra.mxu3 %v7182_v30  ;;  %3423 = vmatpush.msra.mxu0 %v7178_v60  ;;  %v7454_v61 = vpop.f32.mrf.mxu2 }
 0x7a4   :  { %3404 = vmatpush.msra.mxu3 %v7194_v57  ;;  %3424 = vmatpush.msra.mxu0 %v7190_v24 }
 0x7a6   :  { %3405 = vmatpush.msra.mxu3 %v7218_v3  ;;  %3425 = vmatpush.msra.mxu0 %v7212_v45  ;;  %v7464_v30 = vpop.f32.mrf.mxu3 }
 0x7a8   :  { %3406 = vmatpush.msra.mxu3 %v7228_v38  ;;  %3426 = vmatpush.msra.mxu0 %v7220_v8  ;;  %v7456_v50 = vpop.f32.mrf.mxu1  ;;  %v7458_v48 = vpop.f32.mrf.mxu0 }
 0x7aa   :  { %3407 = vmatpush.msra.mxu3 %v7235_v17  ;;  %3427 = vmatpush.msra.mxu0 %v7233_v34  ;;  %v7460_v18 = vpop.f32.mrf.mxu2 }
 0x7ac   :  { %3408 = vmatpush.msra.mxu3 %v7247_v59  ;;  %3428 = vmatpush.msra.mxu0 %v8701_v47 }
 0x7ae   :  { %3409 = vmatpush.msra.mxu3 %v8704_v22  ;;  %3429 = vmatpush.msra.mxu0 %v8705_v16  ;;  %v7472_v3 = vpop.f32.mrf.mxu3  ;;  %v2636_v22 = vld [vmem:[%s8459_s11] sm:$0xf] }
 0x7b0   :  { %3410 = vmatpush.msra.mxu3 %v8708_v54  ;;  %3430 = vmatpush.msra.mxu0 %v8709_v40  ;;  %v7462_v60 = vpop.f32.mrf.mxu1  ;;  %v7466_v24 = vpop.f32.mrf.mxu0  ;;  %v7509_v40 = vperm.slane %v2636_v22, 0 }
 0x7b1   :  { %8720 = vst [vmem:[#allocation48_spill] sm:$0xff] %v7462_v60  ;;  %v7770_v60 = vld [vmem:[#allocation19 + $0x28] sm:$0xff] }
 0x7b2   :  { %3411 = vmatpush.msra.mxu3 %v8713_v51  ;;  %3431 = vmatpush.msra.mxu0 %v7291_v4  ;;  %8721 = vst [vmem:[#allocation57_spill] sm:$0xff] %v7466_v24  ;;  %v7468_v57 = vpop.f32.mrf.mxu2  ;;  %v7513_v51 = vperm.slane %v2636_v22, 3  ;;  %v7761_v24 = vld [vmem:[#allocation19 + $0x50] sm:$0xff] }
 0x7b3   :  { %8722 = vst [vmem:[#allocation51_spill] sm:$0xff] %v7468_v57 }
 0x7b4   :  { %3412 = vmatpush.msra.mxu3 %v8715_v23  ;;  %3432 = vmatpush.msra.mxu0 %v8716_v62  ;;  %8740 = vst [vmem:[#allocation30_spill] sm:$0xff] %v7509_v40  ;;  %v2664_v62 = vadd.f32 %v2663_v31, %v7509_v40 }
 0x7b5   :  { %8742 = vst [vmem:[#allocation37_spill] sm:$0xff] %v7513_v51 }
 0x7b6   :  { %3413 = vmatpush.msra.mxu3 %v8718_v43  ;;  %3433 = vmatpush.msra.mxu0 %v8719_v27  ;;  %v7480_v17 = vpop.f32.mrf.mxu3  ;;  %v2796_v43 = vadd.f32 %v2795_v9, %v7513_v51 }
 0x7b7   :  { %8727 = vst [vmem:[#allocation58_spill] sm:$0xff] %v7480_v17 }
 0x7b8   :  { %v7470_v45 = vpop.f32.mrf.mxu1  ;;  %v7474_v8 = vpop.f32.mrf.mxu0 }
 0x7b9   :  { %8723 = vst [vmem:[#allocation32_spill] sm:$0xff] %v7470_v45 }
 0x7ba   :  { %8724 = vst [vmem:[#allocation45_spill] sm:$0xff] %v7474_v8  ;;  %v7476_v38 = vpop.f32.mrf.mxu2 }
 0x7bb   :  { %8725 = vst [vmem:[#allocation50_spill] sm:$0xff] %v7476_v38 }
 0x7be   :  { %v7488_v41 = vpop.f32.mrf.mxu3 }
 0x7bf   :  { %8731 = vst [vmem:[#allocation61_spill] sm:$0xff] %v7488_v41 }
 0x7c0   :  { %v7478_v34 = vpop.f32.mrf.mxu1  ;;  %v7482_v59 = vpop.f32.mrf.mxu0 }
 0x7c1   :  { %8726 = vst [vmem:[#allocation55_spill] sm:$0xff] %v7478_v34 }
 0x7c2   :  { %8728 = vst [vmem:[#allocation59_spill] sm:$0xff] %v7482_v59  ;;  %v7484_v4 = vpop.f32.mrf.mxu2 }
 0x7c3   :  { %8729 = vst [vmem:[#allocation63_spill] sm:$0xff] %v7484_v4 }
 0x7c6   :  { %v7496_v28 = vpop.f32.mrf.mxu3 }
 0x7c7   :  { %8735 = vst [vmem:[#allocation56_spill] sm:$0xff] %v7496_v28 }
 0x7c8   :  { %v7486_v15 = vpop.f32.mrf.mxu1  ;;  %v7490_v5 = vpop.f32.mrf.mxu0 }
 0x7c9   :  { %8730 = vst [vmem:[#allocation60_spill] sm:$0xff] %v7486_v15 }
 0x7ca   :  { %8732 = vst [vmem:[#allocation34_spill] sm:$0xff] %v7490_v5  ;;  %v7492_v20 = vpop.f32.mrf.mxu2 }
 0x7cb   :  { %8733 = vst [vmem:[#allocation49_spill] sm:$0xff] %v7492_v20 }
 0x7ce   :  { %v7511_v36 = vpop.f32.mrf.mxu3 }
 0x7cf   :  { %8741 = vst [vmem:[#allocation42_spill] sm:$0xff] %v7511_v36 }
 0x7d0   :  { %v7494_v14 = vpop.f32.mrf.mxu1  ;;  %v7498_v6 = vpop.f32.mrf.mxu0 }
 0x7d1   :  { %8734 = vst [vmem:[#allocation53_spill] sm:$0xff] %v7494_v14 }
 0x7d2   :  { %8736 = vst [vmem:[#allocation35_spill] sm:$0xff] %v7498_v6  ;;  %v7500_v47 = vpop.f32.mrf.mxu2 }
 0x7d3   :  { %8737 = vst [vmem:[#allocation40_spill] sm:$0xff] %v7500_v47  ;;  %v7519_v47 = vperm.slane %v2636_v22, 1 }
 0x7d5   :  { %8744 = vst [vmem:[#allocation62_spill] sm:$0xff] %v7519_v47  ;;  %v2708_v5 = vadd.f32 %v2707_v37, %v7519_v47  ;;  %v7526_v37 = vperm.slane %v2636_v22, 2 }
 0x7d6   :  { %v7522_v15 = vpop.f32.mrf.mxu3 }
 0x7d7   :  { %8745 = vst [vmem:[#allocation44_spill] sm:$0xff] %v7522_v15 }
 0x7d8   :  { %8747 = vst [vmem:[#allocation36_spill] sm:$0xff] %v7526_v37 }
 0x80b   :  { %v7505_v16 = vpop.f32.mrf.mxu1 }
 0x80c   :  { %8738 = vst [vmem:[#allocation39_spill] sm:$0xff] %v7505_v16  ;;  %v7507_v54 = vpop.f32.mrf.mxu0 }
 0x80d   :  { %8739 = vst [vmem:[#allocation43_spill] sm:$0xff] %v7507_v54 }
 0x811   :  { %v7515_v23 = vpop.f32.mrf.mxu2 }
 0x812   :  { %8743 = vst [vmem:[#allocation47_spill] sm:$0xff] %v7515_v23  ;;  %v7524_v59 = vpop.f32.mrf.mxu3 }
 0x813   :  { %v2943_v27 = vpop.f32.mrf.mxu1  ;;  %8746 = vst [vmem:[#allocation38_spill] sm:$0xff] %v7524_v59 }
 0x814   :  { %v3006_v6 = vadd.f32 %v2943_v27, %v2664_v62  ;;  %v3003_v14 = vpop.f32.mrf.mxu0 }
 0x815   :  { %v3009_v16 = vadd.f32 %v3003_v14, %v2796_v43 }
 0x816   :  { %v4937_v20 = vmul.f32 -1.442695, %v3006_v6 }
 0x817   :  { %v4939_v54 = vmul.f32 -1.442695, %v3009_v16 }
 0x818   :  { %5147 = vpow2.f32 %v4937_v20 }
 0x819   :  { %5149 = vpow2.f32 %v4939_v54  ;;  %v2963_v36 = vpop.f32.mrf.mxu2 }
 0x81a   :  { %v3007_v23 = vadd.f32 %v2963_v36, %v2708_v5  ;;  %v2983_v43 = vpop.f32.mrf.mxu3  ;;  %v2752_v5 = vadd.f32 %v2751_v46, %v7526_v37 }
 0x81c   :  { %v4938_v28 = vmul.f32 -1.442695, %v3007_v23  ;;  %v3008_v27 = vadd.f32 %v2983_v43, %v2752_v5 }
 0x81e   :  { %v5148_v31 = vpop.eup %5147  ;;  %5151 = vpow2.f32 %v4938_v28 }
 0x81f   :  { %v5150_v9 = vpop.eup %5149  ;;  %v3013_v4 = vadd.f32 1.0, %v5148_v31 }
 0x820   :  { %v3052_v62 = vadd.f32 1.0, %v5150_v9 }
 0x821   :  { %5153 = vrcp.f32 %v3013_v4  ;;  %v3025_v15 = vand.u32 2147483648, %v3013_v4  ;;  %vm3019_vm2 = vweird.f32 %v3013_v4  ;;  %v3023_v34 = vand.u32 2147483647, %v3013_v4 }
 0x822   :  { %5155 = vrcp.f32 %v3052_v62  ;;  %vm3058_vm10 = vweird.f32 %v3052_v62 }
 0x823   :  { %v3026_v8 = vor.u32 1.1754944e-38, %v3025_v15  ;;  %vm3024_vm6 = vcmp.eq.f32.partialorder %v3023_v34, 8.507059e+37  ;;  %v3062_v34 = vand.u32 2147483647, %v3052_v62 }
 0x824   :  { %v5152_v14 = vpop.eup %5151 }
 0x825   :  { %v3032_v6 = vadd.f32 1.0, %v5152_v14  ;;  %vm3063_vm12 = vcmp.eq.f32.partialorder %v3062_v34, 8.507059e+37 }
 0x827   :  { %v5154_v16 = vpop.eup %5153  ;;  %5157 = vrcp.f32 %v3032_v6  ;;  %v3044_v22 = vand.u32 2147483648, %v3032_v6  ;;  %v3042_v38 = vand.u32 2147483647, %v3032_v6  ;;  %vm3038_vm5 = vweird.f32 %v3032_v6 }
 0x828   :  { %v3015_v20 = vmul.f32 %v5154_v16, %v3013_v4  ;;  %v5156_v36 = vpop.eup %5155  ;;  %vm3020_vm1 = vweird.f32 %v5154_v16  ;;  %5159 = vtanh.f32 %v3008_v27 }
 0x829   :  { %v3054_v9 = vmul.f32 %v5156_v36, %v3052_v62  ;;  %vm3021_vm3 = vmor %vm3019_vm2, %vm3020_vm1  ;;  %v3045_v43 = vor.u32 1.1754944e-38, %v3044_v22  ;;  %vm3043_vm8 = vcmp.eq.f32.partialorder %v3042_v38, 8.507059e+37  ;;  %vm3059_vm9 = vweird.f32 %v5156_v36 }
 0x82a   :  { %v3016_v54 = vsub.f32 1.0, %v3015_v20  ;;  %vm3060_vm11 = vmor %vm3058_vm10, %vm3059_vm9  ;;  %v2667_v22 = vadd.f32 %v7450_v29, %v7509_v40 }
 0x82b   :  { %v3055_v46 = vsub.f32 1.0, %v3054_v9  ;;  %v7556_v9 = vld [vmem:[#allocation19 + $0x188] sm:$0xff] }
 0x82c   :  { %v3017_v28 = vmul.f32 %v5154_v16, %v3016_v54 }
 0x82d   :  { %v5158_v23 = vpop.eup %5157  ;;  %v3056_v45 = vmul.f32 %v5156_v36, %v3055_v46 }
 0x82e   :  { %v3034_v31 = vmul.f32 %v5158_v23, %v3032_v6  ;;  %v3018_v59 = vadd.f32 %v5154_v16, %v3017_v28  ;;  %vm3039_vm4 = vweird.f32 %v5158_v23 }
 0x82f   :  { %vm3040_vm7 = vmor %vm3038_vm5, %vm3039_vm4 }
 0x830   :  { %v3035_v14 = vsub.f32 1.0, %v3034_v31  ;;  %v3022_v20 = vsel %vm3021_vm3, %v5154_v16, %v3018_v59  ;;  %v5160_v31 = vpop.eup %5159  ;;  %v3057_v59 = vadd.f32 %v5156_v36, %v3056_v45  ;;  %v3064_v16 = vand.u32 2147483648, %v3052_v62  ;;  %v7540_v45 = vld [vmem:[#allocation19 + $0x1e8] sm:$0xff] }
 0x831   :  { %v3027_v5 = vsel %vm3024_vm6, %v3026_v8, %v3022_v20  ;;  %3378 = vmatpush.msra.mxu2 %v7540_v45  ;;  %v7546_v62 = vld [vmem:[#allocation19 + $0x1c8] sm:$0xff]  ;;  %v2799_v20 = vadd.f32 %v7452_v25, %v7513_v51 }
 0x832   :  { %v3036_v41 = vmul.f32 %v5158_v23, %v3035_v14  ;;  %v3069_v57 = vmul.f32 %v5160_v31, %v3027_v5  ;;  %v3061_v15 = vsel %vm3060_vm11, %v5156_v36, %v3057_v59  ;;  %v3065_v8 = vor.u32 1.1754944e-38, %v3064_v16  ;;  %v7550_v36 = vld [vmem:[#allocation19 + $0x1a0] sm:$0xff]  ;;  %v7560_v14 = vld [vmem:[#allocation19 + $0x168] sm:$0xff] }
 0x833   :  { %3379 = vmatpush.msra.mxu2 %v7546_v62 }
 0x834   :  { %v3037_v54 = vadd.f32 %v5158_v23, %v3036_v41  ;;  %v3066_v38 = vsel %vm3063_vm12, %v3065_v8, %v3061_v15 }
 0x836   :  { %v3041_v28 = vsel %vm3040_vm7, %v5158_v23, %v3037_v54  ;;  %v7552_v23 = vld [vmem:[#allocation19 + $0x1a8] sm:$0xff] }
 0x837   :  { %v3046_v4 = vsel %vm3043_vm8, %v3045_v43, %v3041_v28  ;;  %3380 = vmatpush.msra.mxu2 %v7552_v23 }
 0x838   :  { %v3068_v17 = vmul.f32 0.0, %v3046_v4 }
 0x839   :  { %3381 = vmatpush.msra.mxu2 %v7556_v9 }
 0x83a   :  { %v7529_v27 = vadd.f32 %v3069_v57, %v3068_v17  ;;  %v7538_v57 = vld [vmem:[#allocation19 + $0x1e0] sm:$0xff] }
 0x83b   :  { %3358 = vmatpush.msra.mxu1 %v7538_v57  ;;  %v7544_v17 = vld [vmem:[#allocation19 + $0x1c0] sm:$0xff]  ;;  %3382 = vmatpush.msra.mxu2 %v7560_v14 }
 0x83c   :  { %5161 = vtanh.f32 %v7529_v27 }
 0x83d   :  { %3359 = vmatpush.msra.mxu1 %v7544_v17  ;;  %3383 = vmatpush.msra.mxu2 %v7173_v1  ;;  %v2711_v1 = vadd.f32 %v7454_v61, %v7519_v47 }
 0x83f   :  { %3360 = vmatpush.msra.mxu1 %v7550_v36  ;;  %3384 = vmatpush.msra.mxu2 %v7184_v12 }
 0x841   :  { %3361 = vmatpush.msra.mxu1 %v7154_v35  ;;  %3385 = vmatpush.msra.mxu2 %v7196_v52 }
 0x842   :  { %v5162_v41 = vpop.eup %5161 }
 0x843   :  { %v7532_v6 = vmul.f32 %v5162_v41, %v3066_v38  ;;  %3362 = vmatpush.msra.mxu1 %v7162_v58  ;;  %3386 = vmatpush.msra.mxu2 %v7198_v33 }
 0x845   :  { %8748 = vst [vmem:[#allocation33_spill] sm:$0xff] %v7532_v6  ;;  %3158 = vmatmul.f32.vlgmr.msrb.gmra.mxu1 %v7532_v6  ;;  %3178 = vmatmul.f32.vlgmr.msrb.gmra.mxu2 %v7532_v6 }
 0x846   :  { %3198 = vmatmul.f32.vlgmr.msrb.gmra.mxu3 %v7532_v6  ;;  %3218 = vmatmul.f32.vlgmr.msrb.gmra.mxu0 %v7532_v6 }
 0x847   :  { %3363 = vmatpush.msra.mxu1 %v7175_v53  ;;  %3387 = vmatpush.msra.mxu2 %v7208_v26 }
 0x849   :  { %3364 = vmatpush.msra.mxu1 %v7186_v2  ;;  %3388 = vmatpush.msra.mxu2 %v7222_v13 }
 0x84b   :  { %3365 = vmatpush.msra.mxu1 %v7200_v39  ;;  %3389 = vmatpush.msra.mxu2 %v8703_v11  ;;  %v2755_v11 = vadd.f32 %v7464_v30, %v7526_v37 }
 0x84d   :  { %3366 = vmatpush.msra.mxu1 %v7206_v49  ;;  %3390 = vmatpush.msra.mxu2 %v8707_v63 }
 0x84f   :  { %3367 = vmatpush.msra.mxu1 %v7210_v55  ;;  %3391 = vmatpush.msra.mxu2 %v8712_v10 }
 0x851   :  { %3368 = vmatpush.msra.mxu1 %v7225_v32  ;;  %3392 = vmatpush.msra.mxu2 %v8714_v0 }
 0x853   :  { %3369 = vmatpush.msra.mxu1 %v8702_v44  ;;  %3393 = vmatpush.msra.mxu2 %v8717_v7 }
 0x855   :  { %3370 = vmatpush.msra.mxu1 %v8706_v19  ;;  %3594 = vmatpush.msrb.mxu2 %v7540_v45 }
 0x857   :  { %3371 = vmatpush.msra.mxu1 %v8711_v21  ;;  %3595 = vmatpush.msrb.mxu2 %v7546_v62 }
 0x859   :  { %3372 = vmatpush.msra.mxu1 %v7300_v56  ;;  %3596 = vmatpush.msrb.mxu2 %v7552_v23 }
 0x85b   :  { %3373 = vmatpush.msra.mxu1 %v7313_v42  ;;  %3597 = vmatpush.msrb.mxu2 %v7556_v9 }
 0x85d   :  { %3574 = vmatpush.msrb.mxu1 %v7538_v57  ;;  %3598 = vmatpush.msrb.mxu2 %v7560_v14 }
 0x85f   :  { %3575 = vmatpush.msrb.mxu1 %v7544_v17 }
 0x861   :  { %3576 = vmatpush.msrb.mxu1 %v7550_v36 }
 0x8c2   :  { %v3159_v46 = vpop.f32.mrf.mxu1 }
 0x8c3   :  { %v3222_v35 = vadd.f32 %v3159_v46, %v2667_v22  ;;  %v3219_v54 = vpop.f32.mrf.mxu0 }
 0x8c4   :  { %v3225_v58 = vadd.f32 %v3219_v54, %v2799_v20 }
 0x8c5   :  { %v4940_v43 = vmul.f32 -1.442695, %v3222_v35 }
 0x8c6   :  { %v4942_v29 = vmul.f32 -1.442695, %v3225_v58 }
 0x8c7   :  { %5163 = vpow2.f32 %v4940_v43 }
 0x8c8   :  { %5165 = vpow2.f32 %v4942_v29  ;;  %v3179_v53 = vpop.f32.mrf.mxu2 }
 0x8c9   :  { %v3223_v2 = vadd.f32 %v3179_v53, %v2711_v1  ;;  %v3199_v44 = vpop.f32.mrf.mxu3 }
 0x8ca   :  { %v3224_v21 = vadd.f32 %v3199_v44, %v2755_v11  ;;  %v7646_v44 = vld [vmem:[#allocation19 + $0x160] sm:$0xff]  ;;  %v7648_v11 = vld [vmem:[#allocation19 + $0x170] sm:$0xff] }
 0x8cb   :  { %v4941_v12 = vmul.f32 -1.442695, %v3223_v2 }
 0x8cd   :  { %v5164_v52 = vpop.eup %5163  ;;  %5167 = vpow2.f32 %v4941_v12 }
 0x8ce   :  { %v5166_v39 = vpop.eup %5165  ;;  %v3229_v33 = vadd.f32 1.0, %v5164_v52  ;;  %v7619_v52 = vld [vmem:[#allocation19 + $0x1f0] sm:$0xff] }
 0x8cf   :  { %v7586_v49 = vadd.f32 1.0, %v5166_v39  ;;  %v7621_v39 = vld [vmem:[#allocation19 + $0x1f8] sm:$0xff]  ;;  %3614 = vmatpush.msrb.mxu3 %v7619_v52 }
 0x8d0   :  { %5169 = vrcp.f32 %v3229_v33  ;;  %v3241_v25 = vand.u32 2147483648, %v3229_v33  ;;  %vm3235_vm14 = vweird.f32 %v3229_v33  ;;  %v3239_v30 = vand.u32 2147483647, %v3229_v33  ;;  %8750 = vst [vmem:[#allocation52_spill] sm:$0xff] %v7621_v39  ;;  %3634 = vmatpush.msrb.mxu0 %v7621_v39 }
 0x8d1   :  { %5171 = vrcp.f32 %v7586_v49  ;;  %v3280_v43 = vand.u32 2147483648, %v7586_v49  ;;  %vm3274_vm6 = vweird.f32 %v7586_v49  ;;  %v3278_v29 = vand.u32 2147483647, %v7586_v49 }
 0x8d2   :  { %v3242_v16 = vor.u32 1.1754944e-38, %v3241_v25  ;;  %vm3240_vm2 = vcmp.eq.f32.partialorder %v3239_v30, 8.507059e+37  ;;  %v7673_v30 = vld [vmem:[#allocation19 + $0x128] sm:$0xff] }
 0x8d3   :  { %v5168_v26 = vpop.eup %5167  ;;  %v3281_v53 = vor.u32 1.1754944e-38, %v3280_v43  ;;  %vm3279_vm8 = vcmp.eq.f32.partialorder %v3278_v29, 8.507059e+37  ;;  %v7711_v43 = vld [vmem:[#allocation19 + $0xc8] sm:$0xff]  ;;  %v7713_v29 = vld [vmem:[#allocation19 + $0xd0] sm:$0xff] }
 0x8d4   :  { %v3248_v55 = vadd.f32 1.0, %v5168_v26  ;;  %v7631_v26 = vld [vmem:[#allocation19 + $0x1b0] sm:$0xff] }
 0x8d6   :  { %v5170_v13 = vpop.eup %5169  ;;  %5173 = vrcp.f32 %v3248_v55  ;;  %v3260_v5 = vand.u32 2147483648, %v3248_v55  ;;  %v3258_v4 = vand.u32 2147483647, %v3248_v55  ;;  %vm3254_vm1 = vweird.f32 %v3248_v55 }
 0x8d7   :  { %v3231_v32 = vmul.f32 %v5170_v13, %v3229_v33  ;;  %v5172_v42 = vpop.eup %5171  ;;  %vm3236_vm13 = vweird.f32 %v5170_v13  ;;  %5175 = vtanh.f32 %v3224_v21  ;;  %v7625_v33 = vld [vmem:[#allocation19 + $0x1d0] sm:$0xff] }
 0x8d8   :  { %v3270_v7 = vmul.f32 %v5172_v42, %v7586_v49  ;;  %vm3237_vm15 = vmor %vm3235_vm14, %vm3236_vm13  ;;  %v3261_v15 = vor.u32 1.1754944e-38, %v3260_v5  ;;  %vm3259_vm4 = vcmp.eq.f32.partialorder %v3258_v4, 8.507059e+37  ;;  %vm3275_vm5 = vweird.f32 %v5172_v42  ;;  %v7627_v49 = vld [vmem:[#allocation19 + $0x1d8] sm:$0xff]  ;;  %3615 = vmatpush.msrb.mxu3 %v7625_v33  ;;  %v7659_v21 = vld [vmem:[#allocation19 + $0x150] sm:$0xff] }
 0x8d9   :  { %v3232_v56 = vsub.f32 1.0, %v3231_v32  ;;  %vm3276_vm7 = vmor %vm3274_vm6, %vm3275_vm5  ;;  %3635 = vmatpush.msrb.mxu0 %v7627_v49  ;;  %v7639_v32 = vld [vmem:[#allocation19 + $0x190] sm:$0xff]  ;;  %v7683_v4 = vld [vmem:[#allocation19 + $0x100] sm:$0xff] }
 0x8da   :  { %v3271_v59 = vsub.f32 1.0, %v3270_v7  ;;  %3616 = vmatpush.msrb.mxu3 %v7631_v26  ;;  %v2802_v7 = vadd.f32 %v7458_v48, %v7513_v51  ;;  %v7675_v5 = vld [vmem:[#allocation19 + $0x130] sm:$0xff]  ;;  %v7763_v51 = vld [vmem:[#allocation19 + $0x58] sm:$0xff] }
 0x8db   :  { %v3233_v19 = vmul.f32 %v5170_v13, %v3232_v56  ;;  %v7641_v56 = vld [vmem:[#allocation19 + $0x198] sm:$0xff]  ;;  %8758 = vst [vmem:[#allocation68_spill] sm:$0xff] %v7763_v51 }
 0x8dc   :  { %v5174_v63 = vpop.eup %5173  ;;  %v3272_v22 = vmul.f32 %v5172_v42, %v3271_v59  ;;  %3617 = vmatpush.msrb.mxu3 %v7639_v32  ;;  %v7685_v59 = vld [vmem:[#allocation19 + $0x108] sm:$0xff] }
 0x8dd   :  { %v3250_v10 = vmul.f32 %v5174_v63, %v3248_v55  ;;  %v3234_v0 = vadd.f32 %v5170_v13, %v3233_v19  ;;  %vm3255_vm0 = vweird.f32 %v5174_v63  ;;  %v5176_v38 = vpop.eup %5175  ;;  %v7633_v55 = vld [vmem:[#allocation19 + $0x1b8] sm:$0xff]  ;;  %v7655_v19 = vld [vmem:[#allocation19 + $0x140] sm:$0xff] }
 0x8de   :  { %vm3256_vm3 = vmor %vm3254_vm1, %vm3255_vm0  ;;  %v3273_v58 = vadd.f32 %v5172_v42, %v3272_v22  ;;  %3636 = vmatpush.msrb.mxu0 %v7633_v55  ;;  %3618 = vmatpush.msrb.mxu3 %v7648_v11  ;;  %v7699_v22 = vld [vmem:[#allocation19 + $0xf0] sm:$0xff] }
 0x8df   :  { %v3251_v61 = vsub.f32 1.0, %v3250_v10  ;;  %v3238_v31 = vsel %vm3237_vm15, %v5170_v13, %v3234_v0  ;;  %v7637_v13 = vld [vmem:[#allocation19 + $0x180] sm:$0xff]  ;;  %v2670_v10 = vadd.f32 %v7456_v50, %v7509_v40  ;;  %v7665_v0 = vld [vmem:[#allocation19 + $0x158] sm:$0xff] }
 0x8e0   :  { %v3243_v8 = vsel %vm3240_vm2, %v3242_v16, %v3238_v31  ;;  %v3277_v1 = vsel %vm3276_vm7, %v5172_v42, %v3273_v58  ;;  %3577 = vmatpush.msrb.mxu1 %v7637_v13  ;;  %3637 = vmatpush.msrb.mxu0 %v7641_v56  ;;  %v7650_v42 = vld [vmem:[#allocation19 + $0x178] sm:$0xff]  ;;  %v7687_v16 = vld [vmem:[#allocation19 + $0x110] sm:$0xff]  ;;  %v7709_v58 = vld [vmem:[#allocation19 + $0xc0] sm:$0xff] }
 0x8e1   :  { %v3252_v28 = vmul.f32 %v5174_v63, %v3251_v61  ;;  %v3285_v35 = vmul.f32 %v5176_v38, %v3243_v8  ;;  %v3282_v12 = vsel %vm3279_vm8, %v3281_v53, %v3277_v1  ;;  %3619 = vmatpush.msrb.mxu3 %v7659_v21  ;;  %v7671_v61 = vld [vmem:[#allocation19 + $0x120] sm:$0xff]  ;;  %v7679_v31 = vld [vmem:[#allocation19 + $0x138] sm:$0xff]  ;;  %v7697_v38 = vld [vmem:[#allocation19 + $0xe8] sm:$0xff] }
 0x8e2   :  { %3578 = vmatpush.msrb.mxu1 %v7646_v44  ;;  %3638 = vmatpush.msrb.mxu0 %v7650_v42  ;;  %v7717_v1 = vld [vmem:[#allocation19 + $0xd8] sm:$0xff]  ;;  %v7721_v53 = vld [vmem:[#allocation19 + $0xa0] sm:$0xff] }
 0x8e3   :  { %v3253_v34 = vadd.f32 %v5174_v63, %v3252_v28  ;;  %3620 = vmatpush.msrb.mxu3 %v7675_v5 }
 0x8e4   :  { %3579 = vmatpush.msrb.mxu1 %v7655_v19  ;;  %3639 = vmatpush.msrb.mxu0 %v7665_v0 }
 0x8e5   :  { %v3257_v41 = vsel %vm3256_vm3, %v5174_v63, %v3253_v34  ;;  %v7657_v63 = vld [vmem:[#allocation19 + $0x148] sm:$0xff]  ;;  %3621 = vmatpush.msrb.mxu3 %v7687_v16 }
 0x8e6   :  { %v3262_v20 = vsel %vm3259_vm4, %v3261_v15, %v3257_v41  ;;  %3599 = vmatpush.msrb.mxu2 %v7657_v63  ;;  %3580 = vmatpush.msrb.mxu1 %v7671_v61  ;;  %v7691_v15 = vld [vmem:[#allocation19 + $0x118] sm:$0xff]  ;;  %v7695_v41 = vld [vmem:[#allocation19 + $0xe0] sm:$0xff] }
 0x8e7   :  { %v3284_v46 = vmul.f32 %v3262_v20, %v7529_v27  ;;  %3640 = vmatpush.msrb.mxu0 %v7679_v31  ;;  %v2714_v20 = vadd.f32 %v7460_v18, %v7519_v47  ;;  %3622 = vmatpush.msrb.mxu3 %v7699_v22  ;;  %v7755_v47 = vld [vmem:[#allocation19 + $0x40] sm:$0xff] }
 0x8e8   :  { %3600 = vmatpush.msrb.mxu2 %v7673_v30  ;;  %3581 = vmatpush.msrb.mxu1 %v7683_v4  ;;  %8756 = vst [vmem:[#allocation66_spill] sm:$0xff] %v7755_v47 }
 0x8e9   :  { %v7607_v54 = vadd.f32 %v3285_v35, %v3284_v46  ;;  %3641 = vmatpush.msrb.mxu0 %v7691_v15  ;;  %v7705_v46 = vld [vmem:[#allocation19 + $0xf8] sm:$0xff]  ;;  %3623 = vmatpush.msrb.mxu3 %v7713_v29 }
 0x8ea   :  { %3601 = vmatpush.msrb.mxu2 %v7685_v59  ;;  %3582 = vmatpush.msrb.mxu1 %v7695_v41 }
 0x8eb   :  { %5177 = vtanh.f32 %v7607_v54  ;;  %3642 = vmatpush.msrb.mxu0 %v7705_v46 }
 0x8ec   :  { %3602 = vmatpush.msrb.mxu2 %v7697_v38  ;;  %3583 = vmatpush.msrb.mxu1 %v7709_v58 }
 0x8ed   :  { %3643 = vmatpush.msrb.mxu0 %v7717_v1 }
 0x8ee   :  { %3603 = vmatpush.msrb.mxu2 %v7711_v43  ;;  %3584 = vmatpush.msrb.mxu1 %v7721_v53 }
 0x8f1   :  { %v5178_v2 = vpop.eup %5177 }
 0x8f2   :  { %v7613_v27 = vmul.f32 %v5178_v2, %v3282_v12  ;;  %v7723_v2 = vld [vmem:[#allocation19 + $0xa8] sm:$0xff]  ;;  %v7725_v12 = vld [vmem:[#allocation19 + $0xb0] sm:$0xff] }
 0x8f3   :  { %3604 = vmatpush.msrb.mxu2 %v7723_v2  ;;  %3624 = vmatpush.msrb.mxu3 %v7725_v12 }
 0x8f4   :  { %8749 = vst [vmem:[#allocation31_spill] sm:$0xff] %v7613_v27  ;;  %3374 = vmatmul.f32.vlgmr.msra.gmra.mxu1 %v7613_v27  ;;  %3394 = vmatmul.f32.vlgmr.msra.gmra.mxu2 %v7613_v27 }
 0x8f5   :  { %3414 = vmatmul.f32.vlgmr.msra.gmra.mxu3 %v7613_v27  ;;  %3434 = vmatmul.f32.vlgmr.msra.gmra.mxu0 %v7613_v27 }
 0x971   :  { %v3375_v25 = vpop.f32.mrf.mxu1 }
 0x972   :  { %v3438_v50 = vadd.f32 %v3375_v25, %v2670_v10  ;;  %v3435_v28 = vpop.f32.mrf.mxu0  ;;  %v7731_v25 = vld [vmem:[#allocation19 + $0x80] sm:$0xff] }
 0x973   :  { %v3441_v48 = vadd.f32 %v3435_v28, %v2802_v7  ;;  %v7729_v7 = vld [vmem:[#allocation19 + $0xb8] sm:$0xff]  ;;  %v7737_v28 = vld [vmem:[#allocation19 + $0x90] sm:$0xff]  ;;  %3585 = vmatpush.msrb.mxu1 %v7731_v25 }
 0x974   :  { %v4943_v34 = vmul.f32 -1.442695, %v3438_v50  ;;  %v7733_v50 = vld [vmem:[#allocation19 + $0x88] sm:$0xff]  ;;  %3644 = vmatpush.msrb.mxu0 %v7729_v7  ;;  %3625 = vmatpush.msrb.mxu3 %v7737_v28 }
 0x975   :  { %v4945_v8 = vmul.f32 -1.442695, %v3441_v48  ;;  %v7739_v48 = vld [vmem:[#allocation19 + $0x98] sm:$0xff]  ;;  %3605 = vmatpush.msrb.mxu2 %v7733_v50 }
 0x976   :  { %5179 = vpow2.f32 %v4943_v34  ;;  %8751 = vst [vmem:[#allocation46_spill] sm:$0xff] %v7739_v48  ;;  %v7741_v34 = vld [vmem:[#allocation19 + $0x60] sm:$0xff]  ;;  %3645 = vmatpush.msrb.mxu0 %v7739_v48 }
 0x977   :  { %5181 = vpow2.f32 %v4945_v8  ;;  %v3395_v35 = vpop.f32.mrf.mxu2  ;;  %8752 = vst [vmem:[#allocation41_spill] sm:$0xff] %v7741_v34  ;;  %3586 = vmatpush.msrb.mxu1 %v7741_v34  ;;  %v7778_v34 = vld [vmem:[#allocation19 + $0x38] sm:$0xff] }
 0x978   :  { %v3439_v18 = vadd.f32 %v3395_v35, %v2714_v20  ;;  %v7745_v20 = vld [vmem:[#allocation19 + $0x68] sm:$0xff]  ;;  %v7747_v35 = vld [vmem:[#allocation19 + $0x70] sm:$0xff]  ;;  %8759 = vst [vmem:[#allocation69_spill] sm:$0xff] %v7778_v34 }
 0x979   :  { %8753 = vst [vmem:[#allocation54_spill] sm:$0xff] %v7745_v20  ;;  %3606 = vmatpush.msrb.mxu2 %v7745_v20  ;;  %3626 = vmatpush.msrb.mxu3 %v7747_v35  ;;  %v7776_v20 = vld [vmem:[#allocation19 + $0x30] sm:$0xff] }
 0x97a   :  { %v4944_v10 = vmul.f32 -1.442695, %v3439_v18  ;;  %8754 = vst [vmem:[#allocation64_spill] sm:$0xff] %v7747_v35  ;;  %v7749_v18 = vld [vmem:[#allocation19 + $0x78] sm:$0xff]  ;;  %3587 = vmatpush.msrb.mxu1 %v7755_v47  ;;  %v7782_v35 = vld [vmem:[#allocation19] sm:$0xff] }
 0x97b   :  { %8755 = vst [vmem:[#allocation65_spill] sm:$0xff] %v7749_v18  ;;  %3646 = vmatpush.msrb.mxu0 %v7749_v18  ;;  %3627 = vmatpush.msrb.mxu3 %v7761_v24  ;;  %v7784_v18 = vld [vmem:[#allocation19 + $0x8] sm:$0xff] }
 0x97c   :  { %v5180_v8 = vpop.eup %5179  ;;  %5183 = vpow2.f32 %v4944_v10  ;;  %v7757_v10 = vld [vmem:[#allocation19 + $0x48] sm:$0xff]  ;;  %8760 = vst [vmem:[#allocation70_spill] sm:$0xff] %v7782_v35 }
 0x97d   :  { %v5182_v27 = vpop.eup %5181  ;;  %v7751_v6 = vadd.f32 1.0, %v5180_v8  ;;  %8757 = vst [vmem:[#allocation67_spill] sm:$0xff] %v7757_v10  ;;  %v7768_v8 = vld [vmem:[#allocation19 + $0x20] sm:$0xff]  ;;  %3607 = vmatpush.msrb.mxu2 %v7757_v10  ;;  %3647 = vmatpush.msrb.mxu0 %v7763_v51  ;;  %v7790_v10 = vld [vmem:[#allocation19 + $0x18] sm:$0xff] }
 0x97e   :  { %v7772_v40 = vadd.f32 1.0, %v5182_v27  ;;  %3588 = vmatpush.msrb.mxu1 %v7768_v8  ;;  %v7788_v27 = vld [vmem:[#allocation19 + $0x10] sm:$0xff]  ;;  %3628 = vmatpush.msrb.mxu3 %v7776_v20 }
 0x97f   :  { %5185 = vrcp.f32 %v7751_v6  ;;  %3608 = vmatpush.msrb.mxu2 %v7770_v60  ;;  %8761 = vst [vmem:[#allocation71_spill] sm:$0xff] %v7788_v27  ;;  %3648 = vmatpush.msrb.mxu0 %v7778_v34  ;;  %v3415_v34 = vpop.f32.mrf.mxu3  ;;  %vm3451_vm10 = vweird.f32 %v7751_v6 }
 0x980   :  { %5187 = vrcp.f32 %v7772_v40  ;;  %3589 = vmatpush.msrb.mxu1 %v7782_v35  ;;  %3629 = vmatpush.msrb.mxu3 %v7788_v27  ;;  %v2758_v27 = vadd.f32 %v7472_v3, %v7526_v37  ;;  %vm3490_vm2 = vweird.f32 %v7772_v40 }
 0x981   :  { %3609 = vmatpush.msrb.mxu2 %v7784_v18  ;;  %3649 = vmatpush.msrb.mxu0 %v7790_v10 }
 0x982   :  { %v5184_v48 = vpop.eup %5183  ;;  %3790 = vmatpush.msra.mxu1 %v7538_v57  ;;  %3830 = vmatpush.msra.mxu3 %v7619_v52 }
 0x983   :  { %v7792_v47 = vadd.f32 1.0, %v5184_v48  ;;  %3810 = vmatpush.msra.mxu2 %v7540_v45  ;;  %3850 = vmatpush.msra.mxu0 %v7621_v39  ;;  %v3440_v39 = vadd.f32 %v3415_v34, %v2758_v27  ;;  %v3455_v34 = vand.u32 2147483647, %v7751_v6 }
 0x984   :  { %3791 = vmatpush.msra.mxu1 %v7544_v17  ;;  %3831 = vmatpush.msra.mxu3 %v7625_v33 }
 0x985   :  { %v5186_v51 = vpop.eup %5185  ;;  %5189 = vrcp.f32 %v7792_v47  ;;  %3811 = vmatpush.msra.mxu2 %v7546_v62  ;;  %3851 = vmatpush.msra.mxu0 %v7627_v49  ;;  %vm3470_vm13 = vweird.f32 %v7792_v47  ;;  %vm3456_vm14 = vcmp.eq.f32.partialorder %v3455_v34, 8.507059e+37 }
 0x986   :  { %v3447_v48 = vmul.f32 %v5186_v51, %v7751_v6  ;;  %v7813_v57 = vpop.eup %5187  ;;  %3792 = vmatpush.msra.mxu1 %v7550_v36  ;;  %3832 = vmatpush.msra.mxu3 %v7631_v26  ;;  %vm3452_vm9 = vweird.f32 %v5186_v51  ;;  %v3457_v36 = vand.u32 2147483648, %v7751_v6  ;;  %5191 = vtanh.f32 %v3440_v39 }
 0x987   :  { %3812 = vmatpush.msra.mxu2 %v7552_v23  ;;  %3852 = vmatpush.msra.mxu0 %v7633_v55  ;;  %v3486_v62 = vmul.f32 %v7813_v57, %v7772_v40  ;;  %vm7832_vm11 = vmor %vm3451_vm10, %vm3452_vm9  ;;  %vm3491_vm1 = vweird.f32 %v7813_v57 }
 0x988   :  { %v3448_v35 = vsub.f32 1.0, %v3447_v48  ;;  %3793 = vmatpush.msra.mxu1 %v7637_v13  ;;  %3833 = vmatpush.msra.mxu3 %v7639_v32  ;;  %vm3492_vm3 = vmor %vm3490_vm2, %vm3491_vm1 }
 0x989   :  { %3813 = vmatpush.msra.mxu2 %v7556_v9  ;;  %3853 = vmatpush.msra.mxu0 %v7641_v56  ;;  %v3476_v9 = vand.u32 2147483648, %v7792_v47 }
 0x98a   :  { %v3449_v45 = vmul.f32 %v5186_v51, %v3448_v35  ;;  %3794 = vmatpush.msra.mxu1 %v7646_v44  ;;  %3834 = vmatpush.msra.mxu3 %v7648_v11 }
 0x98b   :  { %v5190_v48 = vpop.eup %5189  ;;  %3814 = vmatpush.msra.mxu2 %v7560_v14  ;;  %3854 = vmatpush.msra.mxu0 %v7650_v42  ;;  %v3487_v14 = vsub.f32 1.0, %v3486_v62 }
 0x98c   :  { %v3466_v17 = vmul.f32 %v5190_v48, %v7792_v47  ;;  %v3450_v3 = vadd.f32 %v5186_v51, %v3449_v45  ;;  %vm3471_vm12 = vweird.f32 %v5190_v48  ;;  %v3474_v45 = vand.u32 2147483647, %v7792_v47  ;;  %3795 = vmatpush.msra.mxu1 %v7655_v19  ;;  %3835 = vmatpush.msra.mxu3 %v7659_v21  ;;  %v5192_v47 = vpop.eup %5191 }
 0x98d   :  { %3815 = vmatpush.msra.mxu2 %v7657_v63  ;;  %3855 = vmatpush.msra.mxu0 %v7665_v0  ;;  %vm3472_vm15 = vmor %vm3470_vm13, %vm3471_vm12 }
 0x98e   :  { %v3467_v23 = vsub.f32 1.0, %v3466_v17  ;;  %v3454_v6 = vsel %vm7832_vm11, %v5186_v51, %v3450_v3  ;;  %v3458_v17 = vor.u32 1.1754944e-38, %v3457_v36  ;;  %3796 = vmatpush.msra.mxu1 %v7671_v61  ;;  %v3477_v51 = vor.u32 1.1754944e-38, %v3476_v9  ;;  %3836 = vmatpush.msra.mxu3 %v7675_v5 }
 0x98f   :  { %3816 = vmatpush.msra.mxu2 %v7673_v30  ;;  %3856 = vmatpush.msra.mxu0 %v7679_v31  ;;  %vm3475_vm0 = vcmp.eq.f32.partialorder %v3474_v45, 8.507059e+37  ;;  %v3488_v36 = vmul.f32 %v7813_v57, %v3487_v14  ;;  %v8764_v45 = vld [vmem:[#allocation46_spill] sm:$0xff] }
 0x990   :  { %v3468_v27 = vmul.f32 %v5190_v48, %v3467_v23  ;;  %v3459_v3 = vsel %vm3456_vm14, %v3458_v17, %v3454_v6  ;;  %3797 = vmatpush.msra.mxu1 %v7683_v4  ;;  %3837 = vmatpush.msra.mxu3 %v7687_v16  ;;  %v8765_v17 = vld [vmem:[#allocation41_spill] sm:$0xff] }
 0x991   :  { %3817 = vmatpush.msra.mxu2 %v7685_v59  ;;  %3857 = vmatpush.msra.mxu0 %v7691_v15  ;;  %v3501_v9 = vmul.f32 %v5192_v47, %v3459_v3  ;;  %v3489_v35 = vadd.f32 %v7813_v57, %v3488_v36  ;;  %v8769_v47 = vld [vmem:[#allocation66_spill] sm:$0xff]  ;;  %v8770_v36 = vld [vmem:[#allocation67_spill] sm:$0xff] }
 0x992   :  { %v3469_v39 = vadd.f32 %v5190_v48, %v3468_v27  ;;  %3798 = vmatpush.msra.mxu1 %v7695_v41  ;;  %3838 = vmatpush.msra.mxu3 %v7699_v22  ;;  %v3494_v27 = vand.u32 2147483647, %v7772_v40 }
 0x993   :  { %3818 = vmatpush.msra.mxu2 %v7697_v38  ;;  %3858 = vmatpush.msra.mxu0 %v7705_v46  ;;  %v3493_v6 = vsel %vm3492_vm3, %v7813_v57, %v3489_v35  ;;  %v8775_v35 = vld [vmem:[#allocation71_spill] sm:$0xff] }
 0x994   :  { %v3473_v62 = vsel %vm3472_vm15, %v5190_v48, %v3469_v39  ;;  %3799 = vmatpush.msra.mxu1 %v7709_v58  ;;  %3839 = vmatpush.msra.mxu3 %v7713_v29  ;;  %v8766_v39 = vld [vmem:[#allocation54_spill] sm:$0xff]  ;;  %vm3495_vm4 = vcmp.eq.f32.partialorder %v3494_v27, 8.507059e+37 }
 0x995   :  { %v3478_v23 = vsel %vm3475_vm0, %v3477_v51, %v3473_v62  ;;  %3819 = vmatpush.msra.mxu2 %v7711_v43  ;;  %3859 = vmatpush.msra.mxu0 %v7717_v1  ;;  %v8768_v51 = vld [vmem:[#allocation65_spill] sm:$0xff] }
 0x996   :  { %v3500_v34 = vmul.f32 %v3478_v23, %v7607_v54  ;;  %v3496_v54 = vand.u32 2147483648, %v7772_v40  ;;  %3800 = vmatpush.msra.mxu1 %v7721_v53  ;;  %3840 = vmatpush.msra.mxu3 %v7725_v12  ;;  %v8767_v40 = vld [vmem:[#allocation64_spill] sm:$0xff] }
 0x997   :  { %3820 = vmatpush.msra.mxu2 %v7723_v2  ;;  %3860 = vmatpush.msra.mxu0 %v7729_v7  ;;  %v8772_v23 = vld [vmem:[#allocation68_spill] sm:$0xff] }
 0x998   :  { %v7860_v48 = vadd.f32 %v3501_v9, %v3500_v34  ;;  %3801 = vmatpush.msra.mxu1 %v7731_v25  ;;  %3841 = vmatpush.msra.mxu3 %v7737_v28  ;;  %v3497_v14 = vor.u32 1.1754944e-38, %v3496_v54  ;;  %v8773_v34 = vld [vmem:[#allocation69_spill] sm:$0xff]  ;;  %v8774_v9 = vld [vmem:[#allocation70_spill] sm:$0xff]  ;;  %v8776_v54 = vld [vmem:[#allocation52_spill] sm:$0xff] }
 0x999   :  { %3821 = vmatpush.msra.mxu2 %v7733_v50  ;;  %3861 = vmatpush.msra.mxu0 %v8764_v45 }
 0x99a   :  { %5193 = vtanh.f32 %v7860_v48  ;;  %3802 = vmatpush.msra.mxu1 %v8765_v17  ;;  %3842 = vmatpush.msra.mxu3 %v8767_v40  ;;  %v3498_v62 = vsel %vm3495_vm4, %v3497_v14, %v3493_v6 }
 0x99b   :  { %3822 = vmatpush.msra.mxu2 %v8766_v39  ;;  %3862 = vmatpush.msra.mxu0 %v8768_v51 }
 0x99c   :  { %3803 = vmatpush.msra.mxu1 %v8769_v47  ;;  %3843 = vmatpush.msra.mxu3 %v7761_v24 }
 0x99d   :  { %3823 = vmatpush.msra.mxu2 %v8770_v36  ;;  %3863 = vmatpush.msra.mxu0 %v8772_v23 }
 0x99e   :  { %3804 = vmatpush.msra.mxu1 %v7768_v8  ;;  %3844 = vmatpush.msra.mxu3 %v7776_v20 }
 0x99f   :  { %3824 = vmatpush.msra.mxu2 %v7770_v60  ;;  %3864 = vmatpush.msra.mxu0 %v8773_v34 }
 0x9a0   :  { %v5194_v3 = vpop.eup %5193  ;;  %3805 = vmatpush.msra.mxu1 %v8774_v9  ;;  %3845 = vmatpush.msra.mxu3 %v8775_v35 }
 0x9a1   :  { %v7887_v57 = vmul.f32 %v5194_v3, %v3498_v62  ;;  %3825 = vmatpush.msra.mxu2 %v7784_v18  ;;  %3865 = vmatpush.msra.mxu0 %v7790_v10 }
 0x9a3   :  { %8771 = vst [vmem:[#allocation46_spill] sm:$0xff] %v7887_v57  ;;  %3590 = vmatmul.f32.vlgmr.msrb.gmra.mxu1 %v7887_v57  ;;  %3610 = vmatmul.f32.vlgmr.msrb.gmra.mxu2 %v7887_v57 }
 0x9a4   :  { %3630 = vmatmul.f32.vlgmr.msrb.gmra.mxu3 %v7887_v57  ;;  %3650 = vmatmul.f32.vlgmr.msrb.gmra.mxu0 %v7887_v57  ;;  %v8178_v57 = vld [vmem:[#allocation19 + $0x58] sm:$0xff] }
 0x9a5   :  { %4046 = vmatpush.msrb.mxu3 %v7619_v52  ;;  %4066 = vmatpush.msrb.mxu0 %v8776_v54  ;;  %v8777_v52 = vld [vmem:[#allocation30_spill] sm:$0xff] }
 0x9a7   :  { %4047 = vmatpush.msrb.mxu3 %v7625_v33  ;;  %4067 = vmatpush.msrb.mxu0 %v7627_v49  ;;  %v8778_v33 = vld [vmem:[#allocation48_spill] sm:$0xff] }
 0x9a8   :  { %v2673_v49 = vadd.f32 %v8778_v33, %v8777_v52 }
 0x9a9   :  { %4048 = vmatpush.msrb.mxu3 %v7631_v26  ;;  %4068 = vmatpush.msrb.mxu0 %v7633_v55  ;;  %v8779_v26 = vld [vmem:[#allocation37_spill] sm:$0xff] }
 0x9aa   :  { %v8780_v55 = vld [vmem:[#allocation57_spill] sm:$0xff] }
 0x9ab   :  { %4049 = vmatpush.msrb.mxu3 %v7639_v32  ;;  %4069 = vmatpush.msrb.mxu0 %v7641_v56  ;;  %v2805_v32 = vadd.f32 %v8780_v55, %v8779_v26 }
 0x9ad   :  { %4050 = vmatpush.msrb.mxu3 %v7648_v11  ;;  %4070 = vmatpush.msrb.mxu0 %v7650_v42 }
 0x9af   :  { %4051 = vmatpush.msrb.mxu3 %v7659_v21  ;;  %4071 = vmatpush.msrb.mxu0 %v7665_v0 }
 0x9b1   :  { %4052 = vmatpush.msrb.mxu3 %v7675_v5  ;;  %4072 = vmatpush.msrb.mxu0 %v7679_v31  ;;  %v8781_v5 = vld [vmem:[#allocation62_spill] sm:$0xff]  ;;  %v8782_v31 = vld [vmem:[#allocation51_spill] sm:$0xff] }
 0x9b3   :  { %4053 = vmatpush.msrb.mxu3 %v7687_v16  ;;  %4073 = vmatpush.msrb.mxu0 %v7691_v15  ;;  %v2717_v16 = vadd.f32 %v8782_v31, %v8781_v5 }
 0x9b5   :  { %4054 = vmatpush.msrb.mxu3 %v7699_v22  ;;  %4074 = vmatpush.msrb.mxu0 %v7705_v46 }
 0x9b7   :  { %4055 = vmatpush.msrb.mxu3 %v7713_v29  ;;  %4075 = vmatpush.msrb.mxu0 %v7717_v1 }
 0x9b9   :  { %4056 = vmatpush.msrb.mxu3 %v7725_v12  ;;  %4076 = vmatpush.msrb.mxu0 %v7729_v7 }
 0x9bb   :  { %4057 = vmatpush.msrb.mxu3 %v7737_v28  ;;  %4077 = vmatpush.msrb.mxu0 %v8764_v45 }
 0x9bd   :  { %4058 = vmatpush.msrb.mxu3 %v8767_v40  ;;  %4078 = vmatpush.msrb.mxu0 %v8768_v51 }
 0x9bf   :  { %4059 = vmatpush.msrb.mxu3 %v7761_v24  ;;  %4079 = vmatpush.msrb.mxu0 %v8772_v23 }
 0x9c1   :  { %4060 = vmatpush.msrb.mxu3 %v7776_v20  ;;  %4080 = vmatpush.msrb.mxu0 %v8773_v34 }
 0x9c3   :  { %4061 = vmatpush.msrb.mxu3 %v8775_v35  ;;  %4081 = vmatpush.msrb.mxu0 %v7790_v10  ;;  %v8783_v10 = vld [vmem:[#allocation58_spill] sm:$0xff] }
 0x9c4   :  { %v2761_v27 = vadd.f32 %v8783_v10, %v7526_v37 }
 0xa20   :  { %v3591_v56 = vpop.f32.mrf.mxu1 }
 0xa21   :  { %v3654_v11 = vadd.f32 %v3591_v56, %v2673_v49  ;;  %v3651_v42 = vpop.f32.mrf.mxu0 }
 0xa22   :  { %v3657_v24 = vadd.f32 %v3651_v42, %v2805_v32 }
 0xa23   :  { %v4946_v21 = vmul.f32 -1.442695, %v3654_v11 }
 0xa24   :  { %v4948_v0 = vmul.f32 -1.442695, %v3657_v24 }
 0xa25   :  { %5195 = vpow2.f32 %v4946_v21 }
 0xa26   :  { %5197 = vpow2.f32 %v4948_v0  ;;  %v3611_v15 = vpop.f32.mrf.mxu2 }
 0xa27   :  { %v3655_v22 = vadd.f32 %v3611_v15, %v2717_v16  ;;  %v3631_v20 = vpop.f32.mrf.mxu3 }
 0xa28   :  { %v3656_v14 = vadd.f32 %v3631_v20, %v2761_v27 }
 0xa29   :  { %v4947_v46 = vmul.f32 -1.442695, %v3655_v22 }
 0xa2b   :  { %v5196_v29 = vpop.eup %5195  ;;  %5199 = vpow2.f32 %v4947_v46 }
 0xa2c   :  { %v5198_v1 = vpop.eup %5197  ;;  %v3661_v12 = vadd.f32 1.0, %v5196_v29 }
 0xa2d   :  { %v3700_v7 = vadd.f32 1.0, %v5198_v1 }
 0xa2e   :  { %5201 = vrcp.f32 %v3661_v12  ;;  %v3673_v3 = vand.u32 2147483648, %v3661_v12  ;;  %v3671_v34 = vand.u32 2147483647, %v3661_v12  ;;  %vm3667_vm6 = vweird.f32 %v3661_v12 }
 0xa2f   :  { %5203 = vrcp.f32 %v3700_v7  ;;  %v3712_v10 = vand.u32 2147483648, %v3700_v7  ;;  %vm3706_vm14 = vweird.f32 %v3700_v7  ;;  %v3710_v27 = vand.u32 2147483647, %v3700_v7 }
 0xa30   :  { %v3674_v55 = vor.u32 1.1754944e-38, %v3673_v3  ;;  %vm3672_vm8 = vcmp.eq.f32.partialorder %v3671_v34, 8.507059e+37  ;;  %v7955_v3 = vld [vmem:[#allocation19 + $0x1e8] sm:$0xff] }
 0xa31   :  { %v5200_v28 = vpop.eup %5199  ;;  %vm3711_vm0 = vcmp.eq.f32.partialorder %v3710_v27, 8.507059e+37  ;;  %4026 = vmatpush.msrb.mxu2 %v7955_v3  ;;  %v7967_v34 = vld [vmem:[#allocation19 + $0x1a8] sm:$0xff] }
 0xa32   :  { %v3680_v6 = vadd.f32 1.0, %v5200_v28 }
 0xa34   :  { %v5202_v45 = vpop.eup %5201  ;;  %5205 = vrcp.f32 %v3680_v6  ;;  %v3692_v42 = vand.u32 2147483648, %v3680_v6  ;;  %v3690_v0 = vand.u32 2147483647, %v3680_v6  ;;  %vm3686_vm10 = vweird.f32 %v3680_v6 }
 0xa35   :  { %v3663_v40 = vmul.f32 %v5202_v45, %v3661_v12  ;;  %5207 = vtanh.f32 %v3656_v14  ;;  %v5204_v62 = vpop.eup %5203  ;;  %vm3668_vm5 = vweird.f32 %v5202_v45 }
 0xa36   :  { %v3702_v49 = vmul.f32 %v5204_v62, %v3700_v7  ;;  %vm3669_vm7 = vmor %vm3667_vm6, %vm3668_vm5  ;;  %v3693_v22 = vor.u32 1.1754944e-38, %v3692_v42  ;;  %vm3691_vm12 = vcmp.eq.f32.partialorder %v3690_v0, 8.507059e+37  ;;  %vm3707_vm13 = vweird.f32 %v5204_v62  ;;  %v7959_v7 = vld [vmem:[#allocation19 + $0x1c0] sm:$0xff] }
 0xa37   :  { %v3664_v51 = vsub.f32 1.0, %v3663_v40  ;;  %vm3708_vm15 = vmor %vm3706_vm14, %vm3707_vm13 }
 0xa38   :  { %v3703_v16 = vsub.f32 1.0, %v3702_v49 }
 0xa39   :  { %v3665_v23 = vmul.f32 %v5202_v45, %v3664_v51 }
 0xa3a   :  { %v5206_v35 = vpop.eup %5205  ;;  %v3704_v29 = vmul.f32 %v5204_v62, %v3703_v16 }
 0xa3b   :  { %v3682_v54 = vmul.f32 %v5206_v35, %v3680_v6  ;;  %v3666_v33 = vadd.f32 %v5202_v45, %v3665_v23  ;;  %v5208_v11 = vpop.eup %5207  ;;  %vm3687_vm9 = vweird.f32 %v5206_v35  ;;  %v7965_v23 = vld [vmem:[#allocation19 + $0x1a0] sm:$0xff] }
 0xa3c   :  { %vm3688_vm11 = vmor %vm3686_vm10, %vm3687_vm9  ;;  %v3705_v20 = vadd.f32 %v5204_v62, %v3704_v29 }
 0xa3d   :  { %v3683_v32 = vsub.f32 1.0, %v3682_v54  ;;  %v3670_v56 = vsel %vm3669_vm7, %v5202_v45, %v3666_v33  ;;  %v3713_v45 = vor.u32 1.1754944e-38, %v3712_v10  ;;  %v7975_v54 = vld [vmem:[#allocation19 + $0x168] sm:$0xff]  ;;  %v8785_v33 = vld [vmem:[#allocation32_spill] sm:$0xff] }
 0xa3e   :  { %v3675_v24 = vsel %vm3672_vm8, %v3674_v55, %v3670_v56  ;;  %v3709_v6 = vsel %vm3708_vm15, %v5204_v62, %v3705_v20  ;;  %v7961_v62 = vld [vmem:[#allocation19 + $0x1c8] sm:$0xff]  ;;  %v2676_v49 = vadd.f32 %v8785_v33, %v8777_v52  ;;  %v8786_v55 = vld [vmem:[#allocation45_spill] sm:$0xff] }
 0xa3f   :  { %v3684_v21 = vmul.f32 %v5206_v35, %v3683_v32  ;;  %v3717_v31 = vmul.f32 %v5208_v11, %v3675_v24  ;;  %v3714_v40 = vsel %vm3711_vm0, %v3713_v45, %v3709_v6  ;;  %4027 = vmatpush.msrb.mxu2 %v7961_v62  ;;  %v2808_v32 = vadd.f32 %v8786_v55, %v8779_v26 }
 0xa41   :  { %v3685_v15 = vadd.f32 %v5206_v35, %v3684_v21  ;;  %4028 = vmatpush.msrb.mxu2 %v7967_v34 }
 0xa43   :  { %v3689_v46 = vsel %vm3688_vm11, %v5206_v35, %v3685_v15  ;;  %v7971_v35 = vld [vmem:[#allocation19 + $0x188] sm:$0xff] }
 0xa44   :  { %v3694_v1 = vsel %vm3691_vm12, %v3693_v22, %v3689_v46  ;;  %4029 = vmatpush.msrb.mxu2 %v7971_v35 }
 0xa45   :  { %v3716_v12 = vmul.f32 %v3694_v1, %v7860_v48  ;;  %v7953_v48 = vld [vmem:[#allocation19 + $0x1e0] sm:$0xff] }
 0xa46   :  { %4006 = vmatpush.msrb.mxu1 %v7953_v48  ;;  %4030 = vmatpush.msrb.mxu2 %v7975_v54 }
 0xa47   :  { %v7944_v28 = vadd.f32 %v3717_v31, %v3716_v12 }
 0xa48   :  { %4007 = vmatpush.msrb.mxu1 %v7959_v7  ;;  %4031 = vmatpush.msrb.mxu2 %v7657_v63 }
 0xa49   :  { %5209 = vtanh.f32 %v7944_v28 }
 0xa4a   :  { %4008 = vmatpush.msrb.mxu1 %v7965_v23  ;;  %4032 = vmatpush.msrb.mxu2 %v7673_v30 }
 0xa4c   :  { %4009 = vmatpush.msrb.mxu1 %v7637_v13  ;;  %4033 = vmatpush.msrb.mxu2 %v7685_v59 }
 0xa4e   :  { %4010 = vmatpush.msrb.mxu1 %v7646_v44  ;;  %4034 = vmatpush.msrb.mxu2 %v7697_v38 }
 0xa4f   :  { %v5210_v14 = vpop.eup %5209 }
 0xa50   :  { %v7947_v51 = vmul.f32 %v5210_v14, %v3714_v40  ;;  %4011 = vmatpush.msrb.mxu1 %v7655_v19  ;;  %v8787_v19 = vld [vmem:[#allocation50_spill] sm:$0xff]  ;;  %4035 = vmatpush.msrb.mxu2 %v7711_v43 }
 0xa51   :  { %v2720_v63 = vadd.f32 %v8787_v19, %v8781_v5 }
 0xa52   :  { %8784 = vst [vmem:[#allocation41_spill] sm:$0xff] %v7947_v51  ;;  %3806 = vmatmul.f32.vlgmr.msra.gmra.mxu1 %v7947_v51  ;;  %3826 = vmatmul.f32.vlgmr.msra.gmra.mxu2 %v7947_v51 }
 0xa53   :  { %3846 = vmatmul.f32.vlgmr.msra.gmra.mxu3 %v7947_v51  ;;  %3866 = vmatmul.f32.vlgmr.msra.gmra.mxu0 %v7947_v51  ;;  %v8176_v51 = vld [vmem:[#allocation19 + $0x50] sm:$0xff] }
 0xa54   :  { %4012 = vmatpush.msrb.mxu1 %v7671_v61  ;;  %4036 = vmatpush.msrb.mxu2 %v7723_v2  ;;  %8802 = vst [vmem:[#allocation48_spill] sm:$0xff] %v8176_v51 }
 0xa56   :  { %4013 = vmatpush.msrb.mxu1 %v7683_v4  ;;  %4037 = vmatpush.msrb.mxu2 %v7733_v50 }
 0xa58   :  { %4014 = vmatpush.msrb.mxu1 %v7695_v41  ;;  %4038 = vmatpush.msrb.mxu2 %v8766_v39 }
 0xa5a   :  { %4015 = vmatpush.msrb.mxu1 %v7709_v58  ;;  %4039 = vmatpush.msrb.mxu2 %v8770_v36 }
 0xa5c   :  { %4016 = vmatpush.msrb.mxu1 %v7721_v53  ;;  %4040 = vmatpush.msrb.mxu2 %v7770_v60  ;;  %v8788_v53 = vld [vmem:[#allocation61_spill] sm:$0xff] }
 0xa5d   :  { %v2764_v2 = vadd.f32 %v8788_v53, %v7526_v37  ;;  %v8063_v53 = vld [vmem:[#allocation19 + $0x170] sm:$0xff] }
 0xa5e   :  { %4017 = vmatpush.msrb.mxu1 %v7731_v25  ;;  %4041 = vmatpush.msrb.mxu2 %v7784_v18 }
 0xa60   :  { %4018 = vmatpush.msrb.mxu1 %v8765_v17  ;;  %4242 = vmatpush.msra.mxu2 %v7955_v3 }
 0xa62   :  { %4019 = vmatpush.msrb.mxu1 %v8769_v47  ;;  %4243 = vmatpush.msra.mxu2 %v7961_v62 }
 0xa64   :  { %4020 = vmatpush.msrb.mxu1 %v7768_v8  ;;  %4244 = vmatpush.msra.mxu2 %v7967_v34 }
 0xa66   :  { %4021 = vmatpush.msrb.mxu1 %v8774_v9  ;;  %4245 = vmatpush.msra.mxu2 %v7971_v35 }
 0xa68   :  { %4222 = vmatpush.msra.mxu1 %v7953_v48  ;;  %4246 = vmatpush.msra.mxu2 %v7975_v54 }
 0xa6a   :  { %4223 = vmatpush.msra.mxu1 %v7959_v7 }
 0xa6c   :  { %4224 = vmatpush.msra.mxu1 %v7965_v23 }
 0xacf   :  { %v3807_v56 = vpop.f32.mrf.mxu1 }
 0xad0   :  { %v3870_v13 = vadd.f32 %v3807_v56, %v2676_v49  ;;  %v3867_v11 = vpop.f32.mrf.mxu0 }
 0xad1   :  { %v3873_v44 = vadd.f32 %v3867_v11, %v2808_v32 }
 0xad2   :  { %v4949_v42 = vmul.f32 -1.442695, %v3870_v13 }
 0xad3   :  { %v4951_v24 = vmul.f32 -1.442695, %v3873_v44 }
 0xad4   :  { %5211 = vpow2.f32 %v4949_v42 }
 0xad5   :  { %5213 = vpow2.f32 %v4951_v24  ;;  %v3827_v21 = vpop.f32.mrf.mxu2 }
 0xad6   :  { %v3871_v61 = vadd.f32 %v3827_v21, %v2720_v63  ;;  %v3847_v43 = vpop.f32.mrf.mxu3  ;;  %v8036_v21 = vld [vmem:[#allocation19 + $0x1f8] sm:$0xff] }
 0xad7   :  { %v3872_v17 = vadd.f32 %v3847_v43, %v2764_v2  ;;  %4282 = vmatpush.msra.mxu0 %v8036_v21  ;;  %v8061_v43 = vld [vmem:[#allocation19 + $0x160] sm:$0xff]  ;;  %v8065_v2 = vld [vmem:[#allocation19 + $0x178] sm:$0xff] }
 0xad8   :  { %v4950_v30 = vmul.f32 -1.442695, %v3871_v61  ;;  %v8040_v61 = vld [vmem:[#allocation19 + $0x1d0] sm:$0xff] }
 0xada   :  { %v5212_v4 = vpop.eup %5211  ;;  %5215 = vpow2.f32 %v4950_v30  ;;  %v8042_v30 = vld [vmem:[#allocation19 + $0x1d8] sm:$0xff] }
 0xadb   :  { %v5214_v59 = vpop.eup %5213  ;;  %v3877_v41 = vadd.f32 1.0, %v5212_v4  ;;  %4283 = vmatpush.msra.mxu0 %v8042_v30  ;;  %v8046_v4 = vld [vmem:[#allocation19 + $0x1b0] sm:$0xff] }
 0xadc   :  { %v8001_v38 = vadd.f32 1.0, %v5214_v59  ;;  %v8048_v59 = vld [vmem:[#allocation19 + $0x1b8] sm:$0xff] }
 0xadd   :  { %5217 = vrcp.f32 %v3877_v41  ;;  %v3889_v39 = vand.u32 2147483648, %v3877_v41  ;;  %v3887_v36 = vand.u32 2147483647, %v3877_v41  ;;  %vm3883_vm2 = vweird.f32 %v3877_v41  ;;  %4284 = vmatpush.msra.mxu0 %v8048_v59 }
 0xade   :  { %5219 = vrcp.f32 %v8001_v38  ;;  %v3928_v13 = vand.u32 2147483648, %v8001_v38  ;;  %vm3922_vm10 = vweird.f32 %v8001_v38  ;;  %v3926_v11 = vand.u32 2147483647, %v8001_v38 }
 0xadf   :  { %v3890_v15 = vor.u32 1.1754944e-38, %v3889_v39  ;;  %vm3888_vm4 = vcmp.eq.f32.partialorder %v3887_v36, 8.507059e+37  ;;  %v8080_v39 = vld [vmem:[#allocation19 + $0x158] sm:$0xff] }
 0xae0   :  { %v5216_v58 = vpop.eup %5215  ;;  %v3929_v42 = vor.u32 1.1754944e-38, %v3928_v13  ;;  %vm3927_vm12 = vcmp.eq.f32.partialorder %v3926_v11, 8.507059e+37  ;;  %v8126_v13 = vld [vmem:[#allocation19 + $0xc8] sm:$0xff]  ;;  %v8128_v11 = vld [vmem:[#allocation19 + $0xd0] sm:$0xff] }
 0xae1   :  { %v3896_v25 = vadd.f32 1.0, %v5216_v58  ;;  %v8056_v58 = vld [vmem:[#allocation19 + $0x198] sm:$0xff] }
 0xae2   :  { %4285 = vmatpush.msra.mxu0 %v8056_v58 }
 0xae3   :  { %v5218_v50 = vpop.eup %5217  ;;  %5221 = vrcp.f32 %v3896_v25  ;;  %v3908_v1 = vand.u32 2147483648, %v3896_v25  ;;  %v3906_v10 = vand.u32 2147483647, %v3896_v25  ;;  %vm3902_vm6 = vweird.f32 %v3896_v25 }
 0xae4   :  { %v3879_v8 = vmul.f32 %v5218_v50, %v3877_v41  ;;  %5223 = vtanh.f32 %v3872_v17  ;;  %v5220_v18 = vpop.eup %5219  ;;  %vm3884_vm1 = vweird.f32 %v5218_v50  ;;  %v8052_v41 = vld [vmem:[#allocation19 + $0x180] sm:$0xff]  ;;  %4286 = vmatpush.msra.mxu0 %v8065_v2  ;;  %v8074_v17 = vld [vmem:[#allocation19 + $0x150] sm:$0xff] }
 0xae5   :  { %v3918_v16 = vmul.f32 %v5220_v18, %v8001_v38  ;;  %vm3885_vm3 = vmor %vm3883_vm2, %vm3884_vm1  ;;  %v3909_v14 = vor.u32 1.1754944e-38, %v3908_v1  ;;  %vm3907_vm8 = vcmp.eq.f32.partialorder %v3906_v10, 8.507059e+37  ;;  %vm3923_vm9 = vweird.f32 %v5220_v18  ;;  %8790 = vst [vmem:[#allocation64_spill] sm:$0xff] %v8052_v41  ;;  %v8054_v38 = vld [vmem:[#allocation19 + $0x190] sm:$0xff]  ;;  %4225 = vmatpush.msra.mxu1 %v8052_v41  ;;  %v8100_v1 = vld [vmem:[#allocation19 + $0x108] sm:$0xff] }
 0xae6   :  { %v3880_v60 = vsub.f32 1.0, %v3879_v8  ;;  %vm3924_vm11 = vmor %vm3922_vm10, %vm3923_vm9  ;;  %v8791_v8 = vld [vmem:[#allocation55_spill] sm:$0xff]  ;;  %4287 = vmatpush.msra.mxu0 %v8080_v39  ;;  %v8106_v10 = vld [vmem:[#allocation19 + $0x118] sm:$0xff] }
 0xae7   :  { %v3919_v6 = vsub.f32 1.0, %v3918_v16  ;;  %4226 = vmatpush.msra.mxu1 %v8061_v43 }
 0xae8   :  { %v3881_v47 = vmul.f32 %v5218_v50, %v3880_v60  ;;  %v2679_v60 = vadd.f32 %v8791_v8, %v8777_v52  ;;  %v8140_v8 = vld [vmem:[#allocation19 + $0xb0] sm:$0xff] }
 0xae9   :  { %v5222_v9 = vpop.eup %5221  ;;  %v3920_v33 = vmul.f32 %v5220_v18, %v3919_v6  ;;  %v8110_v6 = vld [vmem:[#allocation19 + $0xe0] sm:$0xff]  ;;  %v8191_v52 = vld [vmem:[#allocation19 + $0x30] sm:$0xff] }
 0xaea   :  { %v3898_v0 = vmul.f32 %v5222_v9, %v3896_v25  ;;  %v3882_v31 = vadd.f32 %v5218_v50, %v3881_v47  ;;  %v5224_v29 = vpop.eup %5223  ;;  %vm3903_vm5 = vweird.f32 %v5222_v9  ;;  %v8070_v25 = vld [vmem:[#allocation19 + $0x140] sm:$0xff] }
 0xaeb   :  { %vm3904_vm7 = vmor %vm3902_vm6, %vm3903_vm5  ;;  %v3921_v56 = vadd.f32 %v5220_v18, %v3920_v33  ;;  %4227 = vmatpush.msra.mxu1 %v8070_v25 }
 0xaec   :  { %v3899_v22 = vsub.f32 1.0, %v3898_v0  ;;  %v3886_v46 = vsel %vm3885_vm3, %v5218_v50, %v3882_v31  ;;  %v8072_v50 = vld [vmem:[#allocation19 + $0x148] sm:$0xff]  ;;  %v8090_v31 = vld [vmem:[#allocation19 + $0x130] sm:$0xff] }
 0xaed   :  { %v3891_v12 = vsel %vm3888_vm4, %v3890_v15, %v3886_v46  ;;  %v3925_v44 = vsel %vm3924_vm11, %v5220_v18, %v3921_v56  ;;  %4247 = vmatpush.msra.mxu2 %v8072_v50  ;;  %v8792_v18 = vld [vmem:[#allocation59_spill] sm:$0xff]  ;;  %v8088_v0 = vld [vmem:[#allocation19 + $0x128] sm:$0xff]  ;;  %v8124_v56 = vld [vmem:[#allocation19 + $0xc0] sm:$0xff] }
 0xaee   :  { %v3900_v20 = vmul.f32 %v5222_v9, %v3899_v22  ;;  %v3933_v27 = vmul.f32 %v5224_v29, %v3891_v12  ;;  %v3930_v19 = vsel %vm3927_vm12, %v3929_v42, %v3925_v44  ;;  %v2811_v47 = vadd.f32 %v8792_v18, %v8779_v26  ;;  %v8094_v22 = vld [vmem:[#allocation19 + $0x138] sm:$0xff]  ;;  %v8098_v29 = vld [vmem:[#allocation19 + $0x100] sm:$0xff]  ;;  %v8102_v12 = vld [vmem:[#allocation19 + $0x110] sm:$0xff] }
 0xaef   :  { %4248 = vmatpush.msra.mxu2 %v8088_v0  ;;  %4288 = vmatpush.msra.mxu0 %v8094_v22  ;;  %v8132_v42 = vld [vmem:[#allocation19 + $0xd8] sm:$0xff] }
 0xaf0   :  { %v3901_v45 = vadd.f32 %v5222_v9, %v3900_v20  ;;  %v8144_v18 = vld [vmem:[#allocation19 + $0xb8] sm:$0xff] }
 0xaf1   :  { %4249 = vmatpush.msra.mxu2 %v8100_v1  ;;  %4289 = vmatpush.msra.mxu0 %v8106_v10 }
 0xaf2   :  { %v3905_v40 = vsel %vm3904_vm7, %v5222_v9, %v3901_v45  ;;  %v8086_v9 = vld [vmem:[#allocation19 + $0x120] sm:$0xff]  ;;  %v8112_v45 = vld [vmem:[#allocation19 + $0xe8] sm:$0xff] }
 0xaf3   :  { %v3910_v49 = vsel %vm3907_vm8, %v3909_v14, %v3905_v40  ;;  %4228 = vmatpush.msra.mxu1 %v8086_v9  ;;  %v8114_v14 = vld [vmem:[#allocation19 + $0xf0] sm:$0xff]  ;;  %4250 = vmatpush.msra.mxu2 %v8112_v45 }
 0xaf4   :  { %v3932_v55 = vmul.f32 %v3910_v49, %v7944_v28  ;;  %v8034_v28 = vld [vmem:[#allocation19 + $0x1f0] sm:$0xff]  ;;  %v8120_v49 = vld [vmem:[#allocation19 + $0xf8] sm:$0xff] }
 0xaf5   :  { %4262 = vmatpush.msra.mxu3 %v8034_v28  ;;  %4229 = vmatpush.msra.mxu1 %v8098_v29  ;;  %v8793_v40 = vld [vmem:[#allocation63_spill] sm:$0xff] }
 0xaf6   :  { %v8022_v32 = vadd.f32 %v3933_v27, %v3932_v55  ;;  %v2723_v33 = vadd.f32 %v8793_v40, %v8781_v5  ;;  %4290 = vmatpush.msra.mxu0 %v8120_v49  ;;  %4251 = vmatpush.msra.mxu2 %v8126_v13  ;;  %v8162_v40 = vld [vmem:[#allocation19 + $0x70] sm:$0xff]  ;;  %v8185_v5 = vld [vmem:[#allocation19 + $0x28] sm:$0xff] }
 0xaf7   :  { %4263 = vmatpush.msra.mxu3 %v8040_v61  ;;  %4230 = vmatpush.msra.mxu1 %v8110_v6  ;;  %8798 = vst [vmem:[#allocation69_spill] sm:$0xff] %v8162_v40 }
 0xaf8   :  { %5225 = vtanh.f32 %v8022_v32  ;;  %4291 = vmatpush.msra.mxu0 %v8132_v42  ;;  %8804 = vst [vmem:[#allocation51_spill] sm:$0xff] %v8185_v5 }
 0xaf9   :  { %4264 = vmatpush.msra.mxu3 %v8046_v4  ;;  %4231 = vmatpush.msra.mxu1 %v8124_v56 }
 0xafa   :  { %4292 = vmatpush.msra.mxu0 %v8144_v18 }
 0xafb   :  { %4265 = vmatpush.msra.mxu3 %v8054_v38 }
 0xafd   :  { %4266 = vmatpush.msra.mxu3 %v8063_v53 }
 0xafe   :  { %v5226_v24 = vpop.eup %5225 }
 0xaff   :  { %v8028_v63 = vmul.f32 %v5226_v24, %v3930_v19  ;;  %4267 = vmatpush.msra.mxu3 %v8074_v17  ;;  %v8136_v24 = vld [vmem:[#allocation19 + $0xa0] sm:$0xff]  ;;  %v8138_v19 = vld [vmem:[#allocation19 + $0xa8] sm:$0xff] }
 0xb00   :  { %4232 = vmatpush.msra.mxu1 %v8136_v24  ;;  %4252 = vmatpush.msra.mxu2 %v8138_v19 }
 0xb01   :  { %8789 = vst [vmem:[#allocation54_spill] sm:$0xff] %v8028_v63  ;;  %4022 = vmatmul.f32.vlgmr.msrb.gmra.mxu1 %v8028_v63  ;;  %4042 = vmatmul.f32.vlgmr.msrb.gmra.mxu2 %v8028_v63 }
 0xb02   :  { %4062 = vmatmul.f32.vlgmr.msrb.gmra.mxu3 %v8028_v63  ;;  %4082 = vmatmul.f32.vlgmr.msrb.gmra.mxu0 %v8028_v63  ;;  %v8170_v63 = vld [vmem:[#allocation19 + $0x40] sm:$0xff] }
 0xb03   :  { %4268 = vmatpush.msra.mxu3 %v8090_v31  ;;  %8800 = vst [vmem:[#allocation71_spill] sm:$0xff] %v8170_v63 }
 0xb05   :  { %4269 = vmatpush.msra.mxu3 %v8102_v12 }
 0xb07   :  { %4270 = vmatpush.msra.mxu3 %v8114_v14 }
 0xb09   :  { %4271 = vmatpush.msra.mxu3 %v8128_v11 }
 0xb0b   :  { %4272 = vmatpush.msra.mxu3 %v8140_v8 }
 0xb7e   :  { %v4023_v36 = vpop.f32.mrf.mxu1 }
 0xb7f   :  { %v4086_v16 = vadd.f32 %v4023_v36, %v2679_v60  ;;  %v4083_v15 = vpop.f32.mrf.mxu0  ;;  %v8148_v36 = vld [vmem:[#allocation19 + $0x88] sm:$0xff] }
 0xb80   :  { %v4089_v46 = vadd.f32 %v4083_v15, %v2811_v47  ;;  %v8146_v47 = vld [vmem:[#allocation19 + $0x80] sm:$0xff]  ;;  %v8154_v15 = vld [vmem:[#allocation19 + $0x98] sm:$0xff]  ;;  %4253 = vmatpush.msra.mxu2 %v8148_v36 }
 0xb81   :  { %v4952_v20 = vmul.f32 -1.442695, %v4086_v16  ;;  %v8152_v16 = vld [vmem:[#allocation19 + $0x90] sm:$0xff]  ;;  %8795 = vst [vmem:[#allocation66_spill] sm:$0xff] %v8154_v15  ;;  %4233 = vmatpush.msra.mxu1 %v8146_v47  ;;  %4293 = vmatpush.msra.mxu0 %v8154_v15 }
 0xb82   :  { %v4954_v27 = vmul.f32 -1.442695, %v4089_v46  ;;  %8794 = vst [vmem:[#allocation65_spill] sm:$0xff] %v8152_v16  ;;  %v8156_v46 = vld [vmem:[#allocation19 + $0x60] sm:$0xff]  ;;  %4273 = vmatpush.msra.mxu3 %v8152_v16 }
 0xb83   :  { %5227 = vpow2.f32 %v4952_v20  ;;  %8796 = vst [vmem:[#allocation67_spill] sm:$0xff] %v8156_v46  ;;  %4234 = vmatpush.msra.mxu1 %v8156_v46 }
 0xb84   :  { %5229 = vpow2.f32 %v4954_v27  ;;  %v4043_v55 = vpop.f32.mrf.mxu2  ;;  %v8160_v27 = vld [vmem:[#allocation19 + $0x68] sm:$0xff]  ;;  %4274 = vmatpush.msra.mxu3 %v8162_v40  ;;  %v8197_v40 = vld [vmem:[#allocation19] sm:$0xff] }
 0xb85   :  { %v4087_v44 = vadd.f32 %v4043_v55, %v2723_v33  ;;  %8797 = vst [vmem:[#allocation68_spill] sm:$0xff] %v8160_v27  ;;  %v8164_v33 = vld [vmem:[#allocation19 + $0x78] sm:$0xff]  ;;  %4254 = vmatpush.msra.mxu2 %v8160_v27  ;;  %4235 = vmatpush.msra.mxu1 %v8170_v63  ;;  %v4063_v15 = vpop.f32.mrf.mxu3 }
 0xb86   :  { %8799 = vst [vmem:[#allocation70_spill] sm:$0xff] %v8164_v33  ;;  %4294 = vmatpush.msra.mxu0 %v8164_v33  ;;  %v8193_v27 = vld [vmem:[#allocation19 + $0x38] sm:$0xff]  ;;  %4275 = vmatpush.msra.mxu3 %v8176_v51  ;;  %v8199_v33 = vld [vmem:[#allocation19 + $0x8] sm:$0xff] }
 0xb87   :  { %v4953_v60 = vmul.f32 -1.442695, %v4087_v44  ;;  %v8805_v63 = vld [vmem:[#allocation56_spill] sm:$0xff] }
 0xb88   :  { %4295 = vmatpush.msra.mxu0 %v8178_v57  ;;  %v2767_v16 = vadd.f32 %v8805_v63, %v7526_v37  ;;  %4276 = vmatpush.msra.mxu3 %v8191_v52 }
 0xb89   :  { %v5228_v20 = vpop.eup %5227  ;;  %5231 = vpow2.f32 %v4953_v60  ;;  %v8172_v60 = vld [vmem:[#allocation19 + $0x48] sm:$0xff] }
 0xb8a   :  { %v5230_v55 = vpop.eup %5229  ;;  %v8166_v44 = vadd.f32 1.0, %v5228_v20  ;;  %8801 = vst [vmem:[#allocation52_spill] sm:$0xff] %v8172_v60  ;;  %v8183_v20 = vld [vmem:[#allocation19 + $0x20] sm:$0xff]  ;;  %4255 = vmatpush.msra.mxu2 %v8172_v60  ;;  %v8205_v60 = vld [vmem:[#allocation19 + $0x18] sm:$0xff]  ;;  %4296 = vmatpush.msra.mxu0 %v8193_v27 }
 0xb8b   :  { %8803 = vst [vmem:[#allocation57_spill] sm:$0xff] %v8183_v20  ;;  %v8187_v26 = vadd.f32 1.0, %v5230_v55  ;;  %4236 = vmatpush.msra.mxu1 %v8183_v20  ;;  %v8203_v55 = vld [vmem:[#allocation19 + $0x10] sm:$0xff]  ;;  %v4088_v20 = vadd.f32 %v4063_v15, %v2767_v16 }
 0xb8c   :  { %5233 = vrcp.f32 %v8166_v44  ;;  %4256 = vmatpush.msra.mxu2 %v8185_v5  ;;  %4277 = vmatpush.msra.mxu3 %v8203_v55  ;;  %v4105_v16 = vand.u32 2147483648, %v8166_v44  ;;  %vm4099_vm14 = vweird.f32 %v8166_v44 }
 0xb8d   :  { %5235 = vrcp.f32 %v8187_v26  ;;  %4237 = vmatpush.msra.mxu1 %v8197_v40  ;;  %4297 = vmatpush.msra.mxu0 %v8205_v60  ;;  %vm4138_vm6 = vweird.f32 %v8187_v26 }
 0xb8e   :  { %4257 = vmatpush.msra.mxu2 %v8199_v33  ;;  %4478 = vmatpush.msrb.mxu3 %v8034_v28 }
 0xb8f   :  { %v5232_v46 = vpop.eup %5231  ;;  %4438 = vmatpush.msrb.mxu1 %v7953_v48  ;;  %4498 = vmatpush.msrb.mxu0 %v8036_v21 }
 0xb90   :  { %v8209_v51 = vadd.f32 1.0, %v5232_v46  ;;  %4458 = vmatpush.msrb.mxu2 %v7955_v3  ;;  %4479 = vmatpush.msrb.mxu3 %v8040_v61  ;;  %v4103_v3 = vand.u32 2147483647, %v8166_v44 }
 0xb91   :  { %4439 = vmatpush.msrb.mxu1 %v7959_v7  ;;  %4499 = vmatpush.msrb.mxu0 %v8042_v30 }
 0xb92   :  { %v5234_v5 = vpop.eup %5233  ;;  %5237 = vrcp.f32 %v8209_v51  ;;  %4459 = vmatpush.msrb.mxu2 %v7961_v62  ;;  %4480 = vmatpush.msrb.mxu3 %v8046_v4  ;;  %vm4104_vm0 = vcmp.eq.f32.partialorder %v4103_v3, 8.507059e+37  ;;  %vm4118_vm2 = vweird.f32 %v8209_v51 }
 0xb93   :  { %v4095_v63 = vmul.f32 %v5234_v5, %v8166_v44  ;;  %5239 = vtanh.f32 %v4088_v20  ;;  %v8229_v15 = vpop.eup %5235  ;;  %vm4100_vm13 = vweird.f32 %v5234_v5  ;;  %4440 = vmatpush.msrb.mxu1 %v7965_v23  ;;  %4500 = vmatpush.msrb.mxu0 %v8048_v59  ;;  %v4106_v23 = vor.u32 1.1754944e-38, %v4105_v16 }
 0xb94   :  { %4460 = vmatpush.msrb.mxu2 %v7967_v34  ;;  %vm4101_vm15 = vmor %vm4099_vm14, %vm4100_vm13  ;;  %4481 = vmatpush.msrb.mxu3 %v8054_v38  ;;  %vm4139_vm5 = vweird.f32 %v8229_v15 }
 0xb95   :  { %v4096_v46 = vsub.f32 1.0, %v4095_v63  ;;  %4441 = vmatpush.msrb.mxu1 %v8052_v41  ;;  %v4134_v63 = vmul.f32 %v8229_v15, %v8187_v26  ;;  %4501 = vmatpush.msrb.mxu0 %v8056_v58  ;;  %v4122_v41 = vand.u32 2147483647, %v8209_v51  ;;  %vm4140_vm7 = vmor %vm4138_vm6, %vm4139_vm5 }
 0xb96   :  { %4461 = vmatpush.msrb.mxu2 %v7971_v35  ;;  %4482 = vmatpush.msrb.mxu3 %v8063_v53 }
 0xb97   :  { %v4097_v48 = vmul.f32 %v5234_v5, %v4096_v46  ;;  %4442 = vmatpush.msrb.mxu1 %v8061_v43  ;;  %4502 = vmatpush.msrb.mxu0 %v8065_v2  ;;  %vm4123_vm4 = vcmp.eq.f32.partialorder %v4122_v41, 8.507059e+37 }
 0xb98   :  { %v5238_v7 = vpop.eup %5237  ;;  %4462 = vmatpush.msrb.mxu2 %v7975_v54  ;;  %4483 = vmatpush.msrb.mxu3 %v8074_v17 }
 0xb99   :  { %v4114_v62 = vmul.f32 %v5238_v7, %v8209_v51  ;;  %v4098_v20 = vadd.f32 %v5234_v5, %v4097_v48  ;;  %v5240_v44 = vpop.eup %5239  ;;  %v4124_v48 = vand.u32 2147483648, %v8209_v51  ;;  %vm4119_vm1 = vweird.f32 %v5238_v7  ;;  %4443 = vmatpush.msrb.mxu1 %v8070_v25  ;;  %4503 = vmatpush.msrb.mxu0 %v8080_v39 }
 0xb9a   :  { %4463 = vmatpush.msrb.mxu2 %v8072_v50  ;;  %vm4120_vm3 = vmor %vm4118_vm2, %vm4119_vm1  ;;  %4484 = vmatpush.msrb.mxu3 %v8090_v31 }
 0xb9b   :  { %v4115_v34 = vsub.f32 1.0, %v4114_v62  ;;  %v4102_v46 = vsel %vm4101_vm15, %v5234_v5, %v4098_v20  ;;  %v4135_v5 = vsub.f32 1.0, %v4134_v63  ;;  %4444 = vmatpush.msrb.mxu1 %v8086_v9  ;;  %v4125_v3 = vor.u32 1.1754944e-38, %v4124_v48  ;;  %4504 = vmatpush.msrb.mxu0 %v8094_v22  ;;  %v8808_v48 = vld [vmem:[#allocation67_spill] sm:$0xff] }
 0xb9c   :  { %v4107_v35 = vsel %vm4104_vm0, %v4106_v23, %v4102_v46  ;;  %4464 = vmatpush.msrb.mxu2 %v8088_v0  ;;  %4485 = vmatpush.msrb.mxu3 %v8102_v12  ;;  %v8807_v46 = vld [vmem:[#allocation66_spill] sm:$0xff] }
 0xb9d   :  { %v4116_v16 = vmul.f32 %v5238_v7, %v4115_v34  ;;  %v4149_v37 = vmul.f32 %v5240_v44, %v4107_v35  ;;  %4445 = vmatpush.msrb.mxu1 %v8098_v29  ;;  %v4136_v20 = vmul.f32 %v8229_v15, %v4135_v5  ;;  %4505 = vmatpush.msrb.mxu0 %v8106_v10  ;;  %v8806_v34 = vld [vmem:[#allocation65_spill] sm:$0xff]  ;;  %v8809_v35 = vld [vmem:[#allocation68_spill] sm:$0xff] }
 0xb9e   :  { %4465 = vmatpush.msrb.mxu2 %v8100_v1  ;;  %4486 = vmatpush.msrb.mxu3 %v8114_v14 }
 0xb9f   :  { %v4117_v54 = vadd.f32 %v5238_v7, %v4116_v16  ;;  %4446 = vmatpush.msrb.mxu1 %v8110_v6  ;;  %4506 = vmatpush.msrb.mxu0 %v8120_v49  ;;  %v8811_v16 = vld [vmem:[#allocation70_spill] sm:$0xff] }
 0xba0   :  { %4466 = vmatpush.msrb.mxu2 %v8112_v45  ;;  %4487 = vmatpush.msrb.mxu3 %v8128_v11 }
 0xba1   :  { %v4121_v62 = vsel %vm4120_vm3, %v5238_v7, %v4117_v54  ;;  %4447 = vmatpush.msrb.mxu1 %v8124_v56  ;;  %v4137_v7 = vadd.f32 %v8229_v15, %v4136_v20  ;;  %4507 = vmatpush.msrb.mxu0 %v8132_v42  ;;  %v8814_v20 = vld [vmem:[#allocation48_spill] sm:$0xff] }
 0xba2   :  { %v4126_v51 = vsel %vm4123_vm4, %v4125_v3, %v4121_v62  ;;  %4467 = vmatpush.msrb.mxu2 %v8126_v13  ;;  %4488 = vmatpush.msrb.mxu3 %v8140_v8  ;;  %v8812_v3 = vld [vmem:[#allocation71_spill] sm:$0xff]  ;;  %v8813_v62 = vld [vmem:[#allocation52_spill] sm:$0xff] }
 0xba3   :  { %v4148_v63 = vmul.f32 %v4126_v51, %v8022_v32  ;;  %v4144_v32 = vand.u32 2147483648, %v8187_v26  ;;  %4448 = vmatpush.msrb.mxu1 %v8136_v24  ;;  %4508 = vmatpush.msrb.mxu0 %v8144_v18  ;;  %v4141_v23 = vsel %vm4140_vm7, %v8229_v15, %v4137_v7  ;;  %v8815_v51 = vld [vmem:[#allocation57_spill] sm:$0xff] }
 0xba4   :  { %4468 = vmatpush.msrb.mxu2 %v8138_v19  ;;  %4489 = vmatpush.msrb.mxu3 %v8806_v34 }
 0xba5   :  { %v8269_v41 = vadd.f32 %v4149_v37, %v4148_v63  ;;  %v4142_v37 = vand.u32 2147483647, %v8187_v26  ;;  %4449 = vmatpush.msrb.mxu1 %v8146_v47  ;;  %4509 = vmatpush.msrb.mxu0 %v8807_v46  ;;  %v4145_v44 = vor.u32 1.1754944e-38, %v4144_v32  ;;  %v8810_v26 = vld [vmem:[#allocation69_spill] sm:$0xff]  ;;  %v8816_v63 = vld [vmem:[#allocation51_spill] sm:$0xff] }
 0xba6   :  { %4469 = vmatpush.msrb.mxu2 %v8148_v36  ;;  %4490 = vmatpush.msrb.mxu3 %v8810_v26  ;;  %v4650_v32 = vld [vmem:[#allocation19 + $0x1e0] sm:$0xff] }
 0xba7   :  { %5241 = vtanh.f32 %v8269_v41  ;;  %4450 = vmatpush.msrb.mxu1 %v8808_v48  ;;  %vm4143_vm8 = vcmp.eq.f32.partialorder %v4142_v37, 8.507059e+37  ;;  %4510 = vmatpush.msrb.mxu0 %v8811_v16  ;;  %v4646_v37 = vld [vmem:[#allocation19 + $0x1c0] sm:$0xff] }
 0xba8   :  { %4470 = vmatpush.msrb.mxu2 %v8809_v35  ;;  %v4146_v54 = vsel %vm4143_vm8, %v4145_v44, %v4141_v23  ;;  %4491 = vmatpush.msrb.mxu3 %v8814_v20 }
 0xba9   :  { %4451 = vmatpush.msrb.mxu1 %v8812_v3  ;;  %4511 = vmatpush.msrb.mxu0 %v8178_v57 }
 0xbaa   :  { %4471 = vmatpush.msrb.mxu2 %v8813_v62  ;;  %4492 = vmatpush.msrb.mxu3 %v8191_v52 }
 0xbab   :  { %4452 = vmatpush.msrb.mxu1 %v8815_v51  ;;  %4512 = vmatpush.msrb.mxu0 %v8193_v27 }
 0xbac   :  { %4472 = vmatpush.msrb.mxu2 %v8816_v63  ;;  %4493 = vmatpush.msrb.mxu3 %v8203_v55 }
 0xbad   :  { %v5242_v5 = vpop.eup %5241  ;;  %4453 = vmatpush.msrb.mxu1 %v8197_v40  ;;  %4513 = vmatpush.msrb.mxu0 %v8205_v60 }
 0xbae   :  { %v8296_v15 = vmul.f32 %v5242_v5, %v4146_v54  ;;  %4473 = vmatpush.msrb.mxu2 %v8199_v33 }
 0xbb0   :  { %4238 = vmatmul.f32.vlgmr.msra.gmra.mxu1 %v8296_v15  ;;  %4258 = vmatmul.f32.vlgmr.msra.gmra.mxu2 %v8296_v15 }
 0xbb1   :  { %4278 = vmatmul.f32.vlgmr.msra.gmra.mxu3 %v8296_v15  ;;  %4298 = vmatmul.f32.vlgmr.msra.gmra.mxu0 %v8296_v15 }
 0xbb2   :  { %4694 = vmatpush.msra.mxu3 %v8034_v28  ;;  %4714 = vmatpush.msra.mxu0 %v8036_v21  ;;  %v8817_v28 = vld [vmem:[#allocation30_spill] sm:$0xff]  ;;  %v8818_v21 = vld [vmem:[#allocation60_spill] sm:$0xff] }
 0xbb3   :  { %4654 = vmatpush.msra.mxu1 %v4650_v32 }
 0xbb4   :  { %4695 = vmatpush.msra.mxu3 %v8040_v61  ;;  %4715 = vmatpush.msra.mxu0 %v8042_v30  ;;  %v2682_v61 = vadd.f32 %v8818_v21, %v8817_v28  ;;  %v8819_v30 = vld [vmem:[#allocation37_spill] sm:$0xff] }
 0xbb5   :  { %4655 = vmatpush.msra.mxu1 %v4646_v37 }
 0xbb6   :  { %4696 = vmatpush.msra.mxu3 %v8046_v4  ;;  %4716 = vmatpush.msra.mxu0 %v8048_v59  ;;  %v8820_v4 = vld [vmem:[#allocation34_spill] sm:$0xff] }
 0xbb7   :  { %v2814_v59 = vadd.f32 %v8820_v4, %v8819_v30 }
 0xbb8   :  { %4697 = vmatpush.msra.mxu3 %v8054_v38  ;;  %4717 = vmatpush.msra.mxu0 %v8056_v58 }
 0xbba   :  { %4698 = vmatpush.msra.mxu3 %v8063_v53  ;;  %4718 = vmatpush.msra.mxu0 %v8065_v2 }
 0xbbc   :  { %4699 = vmatpush.msra.mxu3 %v8074_v17  ;;  %4719 = vmatpush.msra.mxu0 %v8080_v39  ;;  %v8821_v39 = vld [vmem:[#allocation62_spill] sm:$0xff] }
 0xbbe   :  { %4700 = vmatpush.msra.mxu3 %v8090_v31  ;;  %4720 = vmatpush.msra.mxu0 %v8094_v22 }
 0xbc0   :  { %4701 = vmatpush.msra.mxu3 %v8102_v12  ;;  %4721 = vmatpush.msra.mxu0 %v8106_v10 }
 0xbc2   :  { %4702 = vmatpush.msra.mxu3 %v8114_v14  ;;  %4722 = vmatpush.msra.mxu0 %v8120_v49 }
 0xbc4   :  { %4703 = vmatpush.msra.mxu3 %v8128_v11  ;;  %4723 = vmatpush.msra.mxu0 %v8132_v42 }
 0xbc6   :  { %4704 = vmatpush.msra.mxu3 %v8140_v8  ;;  %4724 = vmatpush.msra.mxu0 %v8144_v18 }
 0xbc8   :  { %4705 = vmatpush.msra.mxu3 %v8806_v34  ;;  %4725 = vmatpush.msra.mxu0 %v8807_v46 }
 0xbca   :  { %4706 = vmatpush.msra.mxu3 %v8810_v26  ;;  %4726 = vmatpush.msra.mxu0 %v8811_v16 }
 0xbcc   :  { %4707 = vmatpush.msra.mxu3 %v8814_v20  ;;  %4727 = vmatpush.msra.mxu0 %v8178_v57 }
 0xbce   :  { %4708 = vmatpush.msra.mxu3 %v8191_v52  ;;  %4728 = vmatpush.msra.mxu0 %v8193_v27  ;;  %v8822_v52 = vld [vmem:[#allocation49_spill] sm:$0xff]  ;;  %v8823_v27 = vld [vmem:[#allocation36_spill] sm:$0xff] }
 0xbcf   :  { %v2726_v31 = vadd.f32 %v8822_v52, %v8821_v39 }
 0xbd0   :  { %4709 = vmatpush.msra.mxu3 %v8203_v55  ;;  %4729 = vmatpush.msra.mxu0 %v8205_v60  ;;  %v8824_v60 = vld [vmem:[#allocation42_spill] sm:$0xff] }
 0xbd1   :  { %v2770_v55 = vadd.f32 %v8824_v60, %v8823_v27 }
 0xc2d   :  { %v4239_v38 = vpop.f32.mrf.mxu1 }
 0xc2e   :  { %v4302_v58 = vadd.f32 %v4239_v38, %v2682_v61  ;;  %v4299_v53 = vpop.f32.mrf.mxu0 }
 0xc2f   :  { %v4305_v2 = vadd.f32 %v4299_v53, %v2814_v59 }
 0xc30   :  { %v4955_v17 = vmul.f32 -1.442695, %v4302_v58 }
 0xc31   :  { %v4957_v57 = vmul.f32 -1.442695, %v4305_v2 }
 0xc32   :  { %5243 = vpow2.f32 %v4955_v17 }
 0xc33   :  { %5245 = vpow2.f32 %v4957_v57  ;;  %v4259_v22 = vpop.f32.mrf.mxu2 }
 0xc34   :  { %v4303_v12 = vadd.f32 %v4259_v22, %v2726_v31  ;;  %v4279_v18 = vpop.f32.mrf.mxu3 }
 0xc35   :  { %v4304_v34 = vadd.f32 %v4279_v18, %v2770_v55 }
 0xc36   :  { %v4956_v10 = vmul.f32 -1.442695, %v4303_v12 }
 0xc38   :  { %v5244_v14 = vpop.eup %5243  ;;  %5247 = vpow2.f32 %v4956_v10 }
 0xc39   :  { %v5246_v49 = vpop.eup %5245  ;;  %v4309_v11 = vadd.f32 1.0, %v5244_v14 }
 0xc3a   :  { %v4348_v42 = vadd.f32 1.0, %v5246_v49 }
 0xc3b   :  { %5249 = vrcp.f32 %v4309_v11  ;;  %v4321_v26 = vand.u32 2147483648, %v4309_v11  ;;  %v4319_v54 = vand.u32 2147483647, %v4309_v11  ;;  %vm4315_vm10 = vweird.f32 %v4309_v11 }
 0xc3c   :  { %5251 = vrcp.f32 %v4348_v42  ;;  %v4360_v55 = vand.u32 2147483648, %v4348_v42  ;;  %vm4354_vm2 = vweird.f32 %v4348_v42  ;;  %v4358_v32 = vand.u32 2147483647, %v4348_v42 }
 0xc3d   :  { %v4322_v59 = vor.u32 1.1754944e-38, %v4321_v26  ;;  %vm4320_vm12 = vcmp.eq.f32.partialorder %v4319_v54, 8.507059e+37  ;;  %v4647_v26 = vld [vmem:[#allocation19 + $0x1c8] sm:$0xff]  ;;  %v4823_v54 = vld [vmem:[#allocation21 + $0x60] sm:$0xff] }
 0xc3e   :  { %v5248_v8 = vpop.eup %5247  ;;  %v4361_v37 = vor.u32 1.1754944e-38, %v4360_v55  ;;  %vm4359_vm4 = vcmp.eq.f32.partialorder %v4358_v32, 8.507059e+37 }
 0xc3f   :  { %v4328_v7 = vadd.f32 1.0, %v5248_v8 }
 0xc41   :  { %v5250_v23 = vpop.eup %5249  ;;  %5253 = vrcp.f32 %v4328_v7  ;;  %v4340_v2 = vand.u32 2147483648, %v4328_v7  ;;  %v4338_v52 = vand.u32 2147483647, %v4328_v7  ;;  %vm4334_vm14 = vweird.f32 %v4328_v7 }
 0xc42   :  { %v4311_v46 = vmul.f32 %v5250_v23, %v4309_v11  ;;  %5255 = vtanh.f32 %v4304_v34  ;;  %v5252_v16 = vpop.eup %5251  ;;  %vm4316_vm9 = vweird.f32 %v5250_v23 }
 0xc43   :  { %v4350_v4 = vmul.f32 %v5252_v16, %v4348_v42  ;;  %vm4317_vm11 = vmor %vm4315_vm10, %vm4316_vm9  ;;  %v4341_v10 = vor.u32 1.1754944e-38, %v4340_v2  ;;  %vm4339_vm0 = vcmp.eq.f32.partialorder %v4338_v52, 8.507059e+37  ;;  %vm4355_vm1 = vweird.f32 %v5252_v16  ;;  %v4651_v42 = vld [vmem:[#allocation19 + $0x1e8] sm:$0xff]  ;;  %v4818_v2 = vld [vmem:[#allocation21 + $0x38] sm:$0xff] }
 0xc44   :  { %v4312_v44 = vsub.f32 1.0, %v4311_v46  ;;  %vm4356_vm3 = vmor %vm4354_vm2, %vm4355_vm1  ;;  %4674 = vmatpush.msra.mxu2 %v4651_v42  ;;  %v4817_v52 = vld [vmem:[#allocation21 + $0x30] sm:$0xff] }
 0xc45   :  { %v4351_v22 = vsub.f32 1.0, %v4350_v4 }
 0xc46   :  { %v4313_v5 = vmul.f32 %v5250_v23, %v4312_v44  ;;  %v8825_v44 = vld [vmem:[#allocation64_spill] sm:$0xff]  ;;  %4675 = vmatpush.msra.mxu2 %v4647_v26 }
 0xc47   :  { %v5254_v20 = vpop.eup %5253  ;;  %v4352_v49 = vmul.f32 %v5252_v16, %v4351_v22 }
 0xc48   :  { %v4330_v21 = vmul.f32 %v5254_v20, %v4328_v7  ;;  %v4314_v61 = vadd.f32 %v5250_v23, %v4313_v5  ;;  %v5256_v53 = vpop.eup %5255  ;;  %vm4335_vm13 = vweird.f32 %v5254_v20 }
 0xc49   :  { %vm4336_vm15 = vmor %vm4334_vm14, %vm4335_vm13  ;;  %v4353_v60 = vadd.f32 %v5252_v16, %v4352_v49  ;;  %v4812_v49 = vld [vmem:[#allocation21 + $0x8] sm:$0xff] }
 0xc4a   :  { %v4331_v38 = vsub.f32 1.0, %v4330_v21  ;;  %v4318_v58 = vsel %vm4317_vm11, %v5250_v23, %v4314_v61  ;;  %v4822_v61 = vld [vmem:[#allocation21 + $0x58] sm:$0xff] }
 0xc4b   :  { %v4323_v17 = vsel %vm4320_vm12, %v4322_v59, %v4318_v58  ;;  %v4357_v7 = vsel %vm4356_vm3, %v5252_v16, %v4353_v60  ;;  %v4820_v58 = vld [vmem:[#allocation21 + $0x48] sm:$0xff]  ;;  %v4811_v60 = vld [vmem:[#allocation21] sm:$0xff] }
 0xc4c   :  { %v4332_v57 = vmul.f32 %v5254_v20, %v4331_v38  ;;  %v4365_v31 = vmul.f32 %v5256_v53, %v4323_v17  ;;  %v4362_v34 = vsel %vm4359_vm4, %v4361_v37, %v4357_v7  ;;  %v4821_v38 = vld [vmem:[#allocation21 + $0x50] sm:$0xff] }
 0xc4e   :  { %v4333_v12 = vadd.f32 %v5254_v20, %v4332_v57 }
 0xc50   :  { %v4337_v14 = vsel %vm4336_vm15, %v5254_v20, %v4333_v12 }
 0xc51   :  { %v4342_v11 = vsel %vm4339_vm0, %v4341_v10, %v4337_v14  ;;  %v4813_v10 = vld [vmem:[#allocation21 + $0x10] sm:$0xff] }
 0xc52   :  { %v4364_v8 = vmul.f32 %v4342_v11, %v8269_v41  ;;  %v4642_v41 = vld [vmem:[#allocation19 + $0x1a0] sm:$0xff] }
 0xc53   :  { %4656 = vmatpush.msra.mxu1 %v4642_v41 }
 0xc54   :  { %v8353_v18 = vadd.f32 %v4365_v31, %v4364_v8  ;;  %v8829_v8 = vld [vmem:[#allocation44_spill] sm:$0xff] }
 0xc55   :  { %4657 = vmatpush.msra.mxu1 %v8825_v44 }
 0xc56   :  { %5257 = vtanh.f32 %v8353_v18 }
 0xc57   :  { %4658 = vmatpush.msra.mxu1 %v8061_v43  ;;  %v4643_v43 = vld [vmem:[#allocation19 + $0x1a8] sm:$0xff] }
 0xc58   :  { %4676 = vmatpush.msra.mxu2 %v4643_v43 }
 0xc59   :  { %4659 = vmatpush.msra.mxu1 %v8070_v25  ;;  %v4639_v25 = vld [vmem:[#allocation19 + $0x188] sm:$0xff] }
 0xc5a   :  { %4677 = vmatpush.msra.mxu2 %v4639_v25 }
 0xc5b   :  { %4660 = vmatpush.msra.mxu1 %v8086_v9  ;;  %v4635_v9 = vld [vmem:[#allocation19 + $0x168] sm:$0xff] }
 0xc5c   :  { %v5258_v23 = vpop.eup %5257  ;;  %4678 = vmatpush.msra.mxu2 %v4635_v9 }
 0xc5d   :  { %v8356_v46 = vmul.f32 %v5258_v23, %v4362_v34  ;;  %4661 = vmatpush.msra.mxu1 %v8098_v29  ;;  %v4826_v29 = vld [vmem:[#allocation21 + $0x78] sm:$0xff] }
 0xc5e   :  { %4679 = vmatpush.msra.mxu2 %v8072_v50  ;;  %v8828_v50 = vld [vmem:[#allocation40_spill] sm:$0xff] }
 0xc5f   :  { %4454 = vmatmul.f32.vlgmr.msrb.gmra.mxu1 %v8356_v46  ;;  %4474 = vmatmul.f32.vlgmr.msrb.gmra.mxu2 %v8356_v46  ;;  %v2729_v4 = vadd.f32 %v8828_v50, %v8821_v39 }
 0xc60   :  { %4494 = vmatmul.f32.vlgmr.msrb.gmra.mxu3 %v8356_v46  ;;  %4514 = vmatmul.f32.vlgmr.msrb.gmra.mxu0 %v8356_v46 }
 0xc61   :  { %4662 = vmatpush.msra.mxu1 %v8110_v6  ;;  %v4825_v6 = vld [vmem:[#allocation21 + $0x70] sm:$0xff]  ;;  %4680 = vmatpush.msra.mxu2 %v8088_v0 }
 0xc63   :  { %4663 = vmatpush.msra.mxu1 %v8124_v56  ;;  %v8826_v56 = vld [vmem:[#allocation53_spill] sm:$0xff]  ;;  %4681 = vmatpush.msra.mxu2 %v8100_v1 }
 0xc64   :  { %v4819_v1 = vld [vmem:[#allocation21 + $0x40] sm:$0xff] }
 0xc65   :  { %4664 = vmatpush.msra.mxu1 %v8136_v24  ;;  %v2685_v24 = vadd.f32 %v8826_v56, %v8817_v28  ;;  %4682 = vmatpush.msra.mxu2 %v8112_v45 }
 0xc67   :  { %4665 = vmatpush.msra.mxu1 %v8146_v47  ;;  %v8827_v47 = vld [vmem:[#allocation35_spill] sm:$0xff]  ;;  %4683 = vmatpush.msra.mxu2 %v8126_v13  ;;  %v4816_v13 = vld [vmem:[#allocation21 + $0x28] sm:$0xff] }
 0xc69   :  { %4666 = vmatpush.msra.mxu1 %v8808_v48  ;;  %v2817_v48 = vadd.f32 %v8827_v47, %v8819_v30  ;;  %4684 = vmatpush.msra.mxu2 %v8138_v19  ;;  %v4815_v19 = vld [vmem:[#allocation21 + $0x20] sm:$0xff] }
 0xc6b   :  { %4667 = vmatpush.msra.mxu1 %v8812_v3  ;;  %4685 = vmatpush.msra.mxu2 %v8148_v36 }
 0xc6d   :  { %4668 = vmatpush.msra.mxu1 %v8815_v51  ;;  %v4824_v51 = vld [vmem:[#allocation21 + $0x68] sm:$0xff]  ;;  %4686 = vmatpush.msra.mxu2 %v8809_v35  ;;  %v4814_v35 = vld [vmem:[#allocation21 + $0x18] sm:$0xff] }
 0xc6f   :  { %4669 = vmatpush.msra.mxu1 %v8197_v40  ;;  %4687 = vmatpush.msra.mxu2 %v8813_v62 }
 0xc71   :  { %4831 = vmatpush.msrb.mxu1 %v4826_v29  ;;  %4688 = vmatpush.msra.mxu2 %v8816_v63  ;;  %v2773_v63 = vadd.f32 %v8829_v8, %v8823_v27 }
 0xc73   :  { %4832 = vmatpush.msrb.mxu1 %v4825_v6  ;;  %4689 = vmatpush.msra.mxu2 %v8199_v33 }
 0xc75   :  { %4833 = vmatpush.msrb.mxu1 %v4824_v51 }
 0xc77   :  { %4834 = vmatpush.msrb.mxu1 %v4823_v54 }
 0xc79   :  { %4835 = vmatpush.msrb.mxu1 %v4822_v61 }
 0xc7b   :  { %4836 = vmatpush.msrb.mxu1 %v4821_v38 }
 0xc7d   :  { %4837 = vmatpush.msrb.mxu1 %v4820_v58  ;;  %v8831_v58 = vld [vmem:[#allocation31_spill] sm:$0xff] }
 0xc7f   :  { %4838 = vmatpush.msrb.mxu1 %v4819_v1  ;;  %v8833_v1 = vld [vmem:[#allocation41_spill] sm:$0xff] }
 0xc81   :  { %4839 = vmatpush.msrb.mxu1 %v4818_v2  ;;  %v8834_v2 = vld [vmem:[#allocation54_spill] sm:$0xff] }
 0xc83   :  { %4840 = vmatpush.msrb.mxu1 %v4817_v52 }
 0xc85   :  { %4841 = vmatpush.msrb.mxu1 %v4816_v13 }
 0xc87   :  { %4842 = vmatpush.msrb.mxu1 %v4815_v19 }
 0xc89   :  { %4843 = vmatpush.msrb.mxu1 %v4814_v35 }
 0xc8b   :  { %4844 = vmatpush.msrb.mxu1 %v4813_v10 }
 0xc8d   :  { %4845 = vmatpush.msrb.mxu1 %v4812_v49 }
 0xc8f   :  { %4846 = vmatpush.msrb.mxu1 %v4811_v60 }
 0xcdc   :  { %v4455_v3 = vpop.f32.mrf.mxu1 }
 0xcdd   :  { %v4518_v16 = vadd.f32 %v4455_v3, %v2685_v24  ;;  %v4515_v5 = vpop.f32.mrf.mxu0 }
 0xcde   :  { %v4521_v40 = vadd.f32 %v4515_v5, %v2817_v48 }
 0xcdf   :  { %v4958_v20 = vmul.f32 -1.442695, %v4518_v16 }
 0xce0   :  { %v4960_v21 = vmul.f32 -1.442695, %v4521_v40 }
 0xce1   :  { %5259 = vpow2.f32 %v4958_v20 }
 0xce2   :  { %5261 = vpow2.f32 %v4960_v21  ;;  %v4475_v59 = vpop.f32.mrf.mxu2 }
 0xce3   :  { %v4519_v0 = vadd.f32 %v4475_v59, %v2729_v4  ;;  %v4495_v11 = vpop.f32.mrf.mxu3 }
 0xce4   :  { %v4520_v33 = vadd.f32 %v4495_v11, %v2773_v63 }
 0xce5   :  { %v4959_v53 = vmul.f32 -1.442695, %v4519_v0  ;;  %v8830_v0 = vld [vmem:[#allocation33_spill] sm:$0xff] }
 0xce7   :  { %v5260_v17 = vpop.eup %5259  ;;  %5263 = vpow2.f32 %v4959_v53  ;;  %v8832_v53 = vld [vmem:[#allocation46_spill] sm:$0xff] }
 0xce8   :  { %v5262_v45 = vpop.eup %5261  ;;  %v4525_v57 = vadd.f32 1.0, %v5260_v17  ;;  %v8835_v17 = vld [vmem:[#allocation39_spill] sm:$0xff] }
 0xce9   :  { %v8389_v31 = vadd.f32 1.0, %v5262_v45  ;;  %v2688_v45 = vadd.f32 %v8835_v17, %v8817_v28 }
 0xcea   :  { %5265 = vrcp.f32 %v4525_v57  ;;  %v4537_v41 = vand.u32 2147483648, %v4525_v57  ;;  %vm4531_vm6 = vweird.f32 %v4525_v57  ;;  %v4535_v42 = vand.u32 2147483647, %v4525_v57 }
 0xceb   :  { %5267 = vrcp.f32 %v8389_v31  ;;  %v4576_v21 = vand.u32 2147483648, %v8389_v31  ;;  %vm4570_vm14 = vweird.f32 %v8389_v31  ;;  %v4574_v61 = vand.u32 2147483647, %v8389_v31 }
 0xcec   :  { %v4538_v6 = vor.u32 1.1754944e-38, %v4537_v41  ;;  %vm4536_vm10 = vcmp.eq.f32.partialorder %v4535_v42, 8.507059e+37 }
 0xced   :  { %v5264_v22 = vpop.eup %5263  ;;  %v4577_v4 = vor.u32 1.1754944e-38, %v4576_v21  ;;  %vm4575_vm0 = vcmp.eq.f32.partialorder %v4574_v61, 8.507059e+37 }
 0xcee   :  { %v4544_v36 = vadd.f32 1.0, %v5264_v22 }
 0xcf0   :  { %v5266_v12 = vpop.eup %5265  ;;  %5269 = vrcp.f32 %v4544_v36  ;;  %v4556_v26 = vand.u32 2147483648, %v4544_v36  ;;  %v4554_v9 = vand.u32 2147483647, %v4544_v36  ;;  %vm4550_vm9 = vweird.f32 %v4544_v36 }
 0xcf1   :  { %v4527_v14 = vmul.f32 %v5266_v12, %v4525_v57  ;;  %v5268_v55 = vpop.eup %5267  ;;  %vm4532_vm5 = vweird.f32 %v5266_v12  ;;  %5271 = vtanh.f32 %v4520_v33  ;;  %v8836_v57 = vld [vmem:[#allocation43_spill] sm:$0xff] }
 0xcf2   :  { %v4566_v34 = vmul.f32 %v5268_v55, %v8389_v31  ;;  %vm4533_vm7 = vmor %vm4531_vm6, %vm4532_vm5  ;;  %v4557_v24 = vor.u32 1.1754944e-38, %v4556_v26  ;;  %vm4555_vm12 = vcmp.eq.f32.partialorder %v4554_v9, 8.507059e+37  ;;  %vm4571_vm13 = vweird.f32 %v5268_v55 }
 0xcf3   :  { %v4528_v62 = vsub.f32 1.0, %v4527_v14  ;;  %vm4572_vm15 = vmor %vm4570_vm14, %vm4571_vm13  ;;  %v2820_v52 = vadd.f32 %v8836_v57, %v8819_v30 }
 0xcf4   :  { %v4567_v29 = vsub.f32 1.0, %v4566_v34 }
 0xcf5   :  { %v4529_v32 = vmul.f32 %v5266_v12, %v4528_v62 }
 0xcf6   :  { %v5270_v7 = vpop.eup %5269  ;;  %v4568_v51 = vmul.f32 %v5268_v55, %v4567_v29 }
 0xcf7   :  { %v4546_v37 = vmul.f32 %v5270_v7, %v4544_v36  ;;  %v4530_v23 = vadd.f32 %v5266_v12, %v4529_v32  ;;  %vm4551_vm8 = vweird.f32 %v5270_v7  ;;  %v5272_v3 = vpop.eup %5271 }
 0xcf8   :  { %vm4552_vm11 = vmor %vm4550_vm9, %vm4551_vm8  ;;  %v4569_v20 = vadd.f32 %v5268_v55, %v4568_v51 }
 0xcf9   :  { %v4547_v44 = vsub.f32 1.0, %v4546_v37  ;;  %v4534_v25 = vsel %vm4533_vm7, %v5266_v12, %v4530_v23  ;;  %v8837_v12 = vld [vmem:[#allocation47_spill] sm:$0xff] }
 0xcfa   :  { %v4539_v47 = vsel %vm4536_vm10, %v4538_v6, %v4534_v25  ;;  %v4573_v50 = vsel %vm4572_vm15, %v5268_v55, %v4569_v20  ;;  %v2732_v10 = vadd.f32 %v8837_v12, %v8821_v39 }
 0xcfb   :  { %v4548_v43 = vmul.f32 %v5270_v7, %v4547_v44  ;;  %v4581_v40 = vmul.f32 %v5272_v3, %v4539_v47  ;;  %v4578_v38 = vsel %vm4575_vm0, %v4577_v4, %v4573_v50 }
 0xcfd   :  { %v4549_v56 = vadd.f32 %v5270_v7, %v4548_v43 }
 0xcff   :  { %v4553_v48 = vsel %vm4552_vm11, %v5270_v7, %v4549_v56  ;;  %v8838_v7 = vld [vmem:[#allocation38_spill] sm:$0xff] }
 0xd00   :  { %v4558_v16 = vsel %vm4555_vm12, %v4557_v24, %v4553_v48  ;;  %v2776_v33 = vadd.f32 %v8838_v7, %v8823_v27 }
 0xd01   :  { %v4580_v5 = vmul.f32 %v4558_v16, %v8353_v18 }
 0xd03   :  { %v8399_v54 = vadd.f32 %v4581_v40, %v4580_v5 }
 0xd05   :  { %5273 = vtanh.f32 %v8399_v54 }
 0xd0b   :  { %v5274_v59 = vpop.eup %5273 }
 0xd0c   :  { %v4584_v18 = vmul.f32 %v5274_v59, %v4578_v38 }
 0xd0e   :  { %4670 = vmatmul.f32.vlgmr.msra.gmra.mxu1 %v4584_v18  ;;  %4690 = vmatmul.f32.vlgmr.msra.gmra.mxu2 %v4584_v18 }
 0xd0f   :  { %4710 = vmatmul.f32.vlgmr.msra.gmra.mxu3 %v4584_v18  ;;  %4730 = vmatmul.f32.vlgmr.msra.gmra.mxu0 %v4584_v18 }
 0xd16   :  { %4847 = vmatmul.f32.vlgmr.msrb.gmra.mxu1 %v8830_v0 }
 0xd1e   :  { %4850 = vmatmul.f32.gmra.mxu1 %v8831_v58 }
 0xd26   :  { %4853 = vmatmul.f32.gmra.mxu1 %v8832_v53 }
 0xd2e   :  { %4856 = vmatmul.f32.gmra.mxu1 %v8833_v1 }
 0xd36   :  { %4859 = vmatmul.f32.gmra.mxu1 %v8834_v2 }
 0xd3e   :  { %4862 = vmatmul.f32.gmra.mxu1 %v8296_v15  ;;  %v8421_v15 = vld [vmem:[%s8461_s13] ss:$0 sm:$0xff]  ;;  %s5609_s13 = smov [#allocation22]  }
 0xd3f   :  { %s4888_s30 = sshll.u32 %s5609_s13, 4  ;;  %s4889_s30 = int_to_ptr.vmem [resolvable:$true] %s4888_s30 }
 0xd46   :  { %4865 = vmatmul.f32.gmra.mxu1 %v8356_v46 }
 0xd4e   :  { %4868 = vmatmul.f32.gmra.mxu1 %v4584_v18 }
 0xd8b   :  { %v4671_v13 = vpop.f32.mrf.mxu1 }
 0xd8c   :  { %v4734_v31 = vadd.f32 %v4671_v13, %v2688_v45  ;;  %v4731_v19 = vpop.f32.mrf.mxu0 }
 0xd8d   :  { %v4737_v22 = vadd.f32 %v4731_v19, %v2820_v52 }
 0xd8e   :  { %v4961_v36 = vmul.f32 -1.442695, %v4734_v31 }
 0xd8f   :  { %v4963_v35 = vmul.f32 -1.442695, %v4737_v22 }
 0xd90   :  { %5275 = vpow2.f32 %v4961_v36 }
 0xd91   :  { %5277 = vpow2.f32 %v4963_v35  ;;  %v4691_v28 = vpop.f32.mrf.mxu2 }
 0xd92   :  { %v4735_v46 = vadd.f32 %v4691_v28, %v2732_v10  ;;  %v4711_v55 = vpop.f32.mrf.mxu3 }
 0xd93   :  { %v4848_v14 = vpop.f32.mrf.mxu1  ;;  %v4736_v34 = vadd.f32 %v4711_v55, %v2776_v33 }
 0xd94   :  { %v4962_v30 = vmul.f32 -1.442695, %v4735_v46  ;;  %v4849_v49 = vadd.f32 %v8421_v15, %v4848_v14 }
 0xd96   :  { %v5276_v62 = vpop.eup %5275  ;;  %5279 = vpow2.f32 %v4962_v30  ;;  %4875 = vst [vmem:[#allocation22] sm:$0xff] %v4849_v49 }
 0xd97   :  { %v5278_v11 = vpop.eup %5277  ;;  %v4741_v8 = vadd.f32 1.0, %v5276_v62 }
 0xd98   :  { %v8424_v39 = vadd.f32 1.0, %v5278_v11 }
 0xd99   :  { %5281 = vrcp.f32 %v4741_v8  ;;  %v4753_v42 = vand.u32 2147483648, %v4741_v8  ;;  %v4751_v9 = vand.u32 2147483647, %v4741_v8  ;;  %vm4747_vm2 = vweird.f32 %v4741_v8 }
 0xd9a   :  { %5283 = vrcp.f32 %v8424_v39  ;;  %v4792_v57 = vand.u32 2147483648, %v8424_v39  ;;  %vm4786_vm10 = vweird.f32 %v8424_v39  ;;  %v4790_v52 = vand.u32 2147483647, %v8424_v39 }
 0xd9b   :  { %v4851_v63 = vpop.f32.mrf.mxu1  ;;  %v4754_v47 = vor.u32 1.1754944e-38, %v4753_v42  ;;  %vm4752_vm4 = vcmp.eq.f32.partialorder %v4751_v9, 8.507059e+37 }
 0xd9c   :  { %v5280_v60 = vpop.eup %5279  ;;  %v4852_v32 = vadd.f32 %v8421_v15, %v4851_v63  ;;  %v4793_v31 = vor.u32 1.1754944e-38, %v4792_v57  ;;  %vm4791_vm12 = vcmp.eq.f32.partialorder %v4790_v52, 8.507059e+37 }
 0xd9d   :  { %v4760_v37 = vadd.f32 1.0, %v5280_v60 }
 0xd9e   :  { %4876 = vst [vmem:[#allocation22 + $0x8] sm:$0xff] %v4852_v32 }
 0xd9f   :  { %v5282_v23 = vpop.eup %5281  ;;  %5285 = vrcp.f32 %v4760_v37  ;;  %v4772_v16 = vand.u32 2147483648, %v4760_v37  ;;  %v4770_v20 = vand.u32 2147483647, %v4760_v37  ;;  %vm4766_vm6 = vweird.f32 %v4760_v37 }
 0xda0   :  { %v4743_v41 = vmul.f32 %v5282_v23, %v4741_v8  ;;  %5287 = vtanh.f32 %v4736_v34  ;;  %v5284_v43 = vpop.eup %5283  ;;  %vm4748_vm1 = vweird.f32 %v5282_v23 }
 0xda1   :  { %v4782_v24 = vmul.f32 %v5284_v43, %v8424_v39  ;;  %vm4749_vm3 = vmor %vm4747_vm2, %vm4748_vm1  ;;  %v4773_v38 = vor.u32 1.1754944e-38, %v4772_v16  ;;  %vm4771_vm8 = vcmp.eq.f32.partialorder %v4770_v20, 8.507059e+37  ;;  %vm4787_vm9 = vweird.f32 %v5284_v43 }
 0xda2   :  { %v4744_v44 = vsub.f32 1.0, %v4743_v41  ;;  %vm4788_vm11 = vmor %vm4786_vm10, %vm4787_vm9 }
 0xda3   :  { %v4854_v26 = vpop.f32.mrf.mxu1  ;;  %v4783_v50 = vsub.f32 1.0, %v4782_v24 }
 0xda4   :  { %v4745_v25 = vmul.f32 %v5282_v23, %v4744_v44  ;;  %v4855_v29 = vadd.f32 %v8421_v15, %v4854_v26 }
 0xda5   :  { %v5286_v6 = vpop.eup %5285  ;;  %v4784_v58 = vmul.f32 %v5284_v43, %v4783_v50 }
 0xda6   :  { %v4762_v27 = vmul.f32 %v5286_v6, %v4760_v37  ;;  %v4746_v56 = vadd.f32 %v5282_v23, %v4745_v25  ;;  %4877 = vst [vmem:[#allocation22 + $0x10] sm:$0xff] %v4855_v29  ;;  %v5288_v51 = vpop.eup %5287  ;;  %vm4767_vm5 = vweird.f32 %v5286_v6 }
 0xda7   :  { %vm4768_vm7 = vmor %vm4766_vm6, %vm4767_vm5  ;;  %v4785_v17 = vadd.f32 %v5284_v43, %v4784_v58 }
 0xda8   :  { %v4763_v48 = vsub.f32 1.0, %v4762_v27  ;;  %v4750_v3 = vsel %vm4749_vm3, %v5282_v23, %v4746_v56 }
 0xda9   :  { %v4755_v5 = vsel %vm4752_vm4, %v4754_v47, %v4750_v3  ;;  %v4789_v13 = vsel %vm4788_vm11, %v5284_v43, %v4785_v17 }
 0xdaa   :  { %v4764_v40 = vmul.f32 %v5286_v6, %v4763_v48  ;;  %v4797_v21 = vmul.f32 %v5288_v51, %v4755_v5 }
 0xdab   :  { %v4857_v61 = vpop.f32.mrf.mxu1 }
 0xdac   :  { %v4765_v4 = vadd.f32 %v5286_v6, %v4764_v40  ;;  %v4858_v59 = vadd.f32 %v8421_v15, %v4857_v61 }
 0xdae   :  { %v4769_v18 = vsel %vm4768_vm7, %v5286_v6, %v4765_v4  ;;  %4878 = vst [vmem:[#allocation22 + $0x18] sm:$0xff] %v4858_v59 }
 0xdaf   :  { %v4774_v0 = vsel %vm4771_vm8, %v4773_v38, %v4769_v18 }
 0xdb0   :  { %v4796_v53 = vmul.f32 %v4774_v0, %v8399_v54  ;;  %v4794_v54 = vsel %vm4791_vm12, %v4793_v31, %v4789_v13 }
 0xdb2   :  { %v4798_v1 = vadd.f32 %v4797_v21, %v4796_v53 }
 0xdb3   :  { %v4860_v2 = vpop.f32.mrf.mxu1 }
 0xdb4   :  { %5289 = vtanh.f32 %v4798_v1  ;;  %v4861_v45 = vadd.f32 %v8421_v15, %v4860_v2 }
 0xdb6   :  { %4879 = vst [vmem:[#allocation22 + $0x20] sm:$0xff] %v4861_v45 }
 0xdba   :  { %v5290_v19 = vpop.eup %5289 }
 0xdbb   :  { %v4863_v22 = vpop.f32.mrf.mxu1  ;;  %v4800_v36 = vmul.f32 %v5290_v19, %v4794_v54 }
 0xdbc   :  { %v4864_v35 = vadd.f32 %v8421_v15, %v4863_v22 }
 0xdbd   :  { %4871 = vmatmul.f32.gmra.mxu1 %v4800_v36 }
 0xdbe   :  { %4880 = vst [vmem:[#allocation22 + $0x28] sm:$0xff] %v4864_v35 }
 0xdc3   :  { %v4866_v12 = vpop.f32.mrf.mxu1 }
 0xdc4   :  { %v4867_v10 = vadd.f32 %v8421_v15, %v4866_v12 }
 0xdc6   :  { %4881 = vst [vmem:[#allocation22 + $0x30] sm:$0xff] %v4867_v10 }
 0xdcb   :  { %v4869_v28 = vpop.f32.mrf.mxu1 }
 0xdcc   :  { %v4870_v46 = vadd.f32 %v8421_v15, %v4869_v28 }
 0xdce   :  { %4882 = vst [vmem:[#allocation22 + $0x38] sm:$0xff] %v4870_v46 }
 0xe3a   :  { %v4872_v14 = vpop.f32.mrf.mxu1 }
 0xe3b   :  { %v4873_v30 = vadd.f32 %v8421_v15, %v4872_v14 }
 0xe3d   :  { %4883 = vst [vmem:[#allocation22 + $0x40] sm:$0xff] %v4873_v30 }
 0xe3e   :  { %4896 = dma.vmem_to_hbm [thread:$0]  %s4889_s30, 1152, %s4891_s16, [#allocation6], %s5594_s21, %s5594_s21, %s5595_s22  }
 0xe3f   :  { %5591 = dma.done.wait [#allocation6], 1152  }
 0xe40   :  { %5592 = vsyncadd [#allocation6], 4294966144 }
 0xe41   :  { %4901 = vsyncpa [#allocation5], 1 }
 0xe42   :  { %4902 = vsyncpa [#allocation8], 1 }
 0xe43   :  { %4903 = vsyncpa [#allocation11], 1 }
 0xe44   :  { %4904 = vsyncpa [#allocation14], 1 }
 0xe45   :  { %4905 = vsyncpa [#allocation17], 1 }
 0xe46   :  { %4906 = vsyncpa [#allocation20], 1 }
 0xe47   :  { %4907 = vsyncpa [#allocation6], 1 }

</bundles_post_ra>
